<compile_context>
chip_gen: v6e
topology: v6e:2x2x1
jax: 0.10.0
libtpu: 0.0.40
codegen_flags: <defaults>
</compile_context>

<pallas_src>
import functools

import jax
import jax.numpy as jnp
from jax import lax
from jax.experimental import pallas as pl
from jax.experimental.pallas import tpu as pltpu


def _round_up(x, m):
    return (x + m - 1) // m * m


# ----------------------------- Pallas kernels ------------------------------

def _linear_kernel(x_ref, w_ref, b_ref, *rest, activation, has_residual):
    if has_residual:
        r_ref, o_ref = rest
    else:
        (o_ref,) = rest
    y = jnp.dot(x_ref[...], w_ref[...], preferred_element_type=jnp.float32)
    y = y + b_ref[...]
    if activation == "gelu":
        # TODO(synk): PyTorch nn.GELU default is the exact erf form; tanh
        # approximation used here for EUP-friendly lowering (small drift).
        y = jax.nn.gelu(y, approximate=True)
    if has_residual:
        y = y + r_ref[...].astype(jnp.float32)
    o_ref[...] = y.astype(o_ref.dtype)


def linear(x, w, b, activation=None, residual=None,
           out_dtype=jnp.bfloat16, tile_m=256):
    """[M,K] @ [K,N] + b (+ optional residual).  bf16 MXU operands, f32 accum.

    M is tiled on a 'parallel' grid axis so HBM->VMEM DMAs pipeline behind the
    MXU and v7x can shard across its two TensorCores."""
    M, K = x.shape
    N = w.shape[1]
    Mp = _round_up(M, 8)
    tm = min(tile_m, Mp)
    Mp = _round_up(Mp, tm)
    pad = Mp - M
    xp = jnp.pad(x, ((0, pad), (0, 0))) if pad else x

    operands = [xp.astype(jnp.bfloat16), w.astype(jnp.bfloat16),
                b.reshape(1, N).astype(jnp.float32)]
    in_specs = [pl.BlockSpec((tm, K), lambda i: (i, 0)),
                pl.BlockSpec((K, N), lambda i: (0, 0)),
                pl.BlockSpec((1, N), lambda i: (0, 0))]
    has_res = residual is not None
    if has_res:
        rp = jnp.pad(residual, ((0, pad), (0, 0))) if pad else residual
        operands.append(rp.astype(jnp.bfloat16))
        in_specs.append(pl.BlockSpec((tm, N), lambda i: (i, 0)))

    kern = functools.partial(_linear_kernel, activation=activation,
                             has_residual=has_res)
    out = pl.pallas_call(
        kern,
        out_shape=jax.ShapeDtypeStruct((Mp, N), out_dtype),
        grid=(Mp // tm,),
        in_specs=in_specs,
        out_specs=pl.BlockSpec((tm, N), lambda i: (i, 0)),
        compiler_params=pltpu.CompilerParams(dimension_semantics=("parallel",)),
    )(*operands)
    return out[:M] if pad else out


def _mlp_kernel(x_ref, w1_ref, b1_ref, w2_ref, b2_ref, r_ref, o_ref):
    h = jnp.dot(x_ref[...], w1_ref[...], preferred_element_type=jnp.float32)
    h = jax.nn.gelu(h + b1_ref[...], approximate=True)
    y = jnp.dot(h.astype(jnp.bfloat16), w2_ref[...],
                preferred_element_type=jnp.float32)
    y = y + b2_ref[...] + r_ref[...].astype(jnp.float32)
    o_ref[...] = y.astype(o_ref.dtype)


def mlp_block(x, w1, b1, w2, b2, residual, out_dtype=jnp.bfloat16, tile_m=256):
    """Fused MLP: gelu(x@w1+b1)@w2 + b2 + residual.  Intermediate [tm,4D] stays
    in VMEM; tile_m=256 keeps the double-buffered working set well under the
    32 MiB default scoped VMEM (v7x safe)."""
    M, D = x.shape
    H = w1.shape[1]
    Mp = _round_up(M, 8)
    tm = min(tile_m, Mp)
    Mp = _round_up(Mp, tm)
    pad = Mp - M
    xp = jnp.pad(x, ((0, pad), (0, 0))) if pad else x
    rp = jnp.pad(residual, ((0, pad), (0, 0))) if pad else residual
    out = pl.pallas_call(
        _mlp_kernel,
        out_shape=jax.ShapeDtypeStruct((Mp, D), out_dtype),
        grid=(Mp // tm,),
        in_specs=[pl.BlockSpec((tm, D), lambda i: (i, 0)),
                  pl.BlockSpec((D, H), lambda i: (0, 0)),
                  pl.BlockSpec((1, H), lambda i: (0, 0)),
                  pl.BlockSpec((H, D), lambda i: (0, 0)),
                  pl.BlockSpec((1, D), lambda i: (0, 0)),
                  pl.BlockSpec((tm, D), lambda i: (i, 0))],
        out_specs=pl.BlockSpec((tm, D), lambda i: (i, 0)),
        compiler_params=pltpu.CompilerParams(dimension_semantics=("parallel",)),
    )(xp.astype(jnp.bfloat16), w1.astype(jnp.bfloat16),
      b1.reshape(1, H).astype(jnp.float32), w2.astype(jnp.bfloat16),
      b2.reshape(1, D).astype(jnp.float32), rp.astype(jnp.bfloat16))
    return out[:M] if pad else out


def _attn_kernel(q_ref, k_ref, v_ref, m_ref, o_ref):
    q = q_ref[0]                                        # [Nq, D] bf16
    k = k_ref[0]                                        # [Nk, D] bf16
    v = v_ref[0]                                        # [Nk, D] bf16
    d = q.shape[-1]
    # q @ k^T via dot_general (contract last dims), f32 accumulation.
    s = lax.dot_general(q, k, (((1,), (1,)), ((), ())),
                        preferred_element_type=jnp.float32)   # [Nq, Nk]
    s = s * (1.0 / jnp.sqrt(jnp.float32(d)))
    s = s - m_ref[0] * 1e9                              # mask padded keys (f32)
    s = s - jnp.max(s, axis=-1, keepdims=True)
    p = jnp.exp(s)
    inv = pl.reciprocal(jnp.sum(p, axis=-1, keepdims=True), approx=True)
    p = p * inv
    o = jnp.dot(p.astype(v.dtype), v, preferred_element_type=jnp.float32)
    o_ref[0] = o.astype(o_ref.dtype)


def attention(q, k, v, key_mask, out_dtype=jnp.bfloat16):
    """Single-head SDPA with key padding mask.  Grid over B (parallel) so each
    step is one 2-D matmul pair and K/V tiles double-buffer across batch."""
    B, Nq, D = q.shape
    Nk = k.shape[1]
    return pl.pallas_call(
        _attn_kernel,
        out_shape=jax.ShapeDtypeStruct((B, Nq, D), out_dtype),
        grid=(B,),
        in_specs=[pl.BlockSpec((1, Nq, D), lambda b: (b, 0, 0)),
                  pl.BlockSpec((1, Nk, D), lambda b: (b, 0, 0)),
                  pl.BlockSpec((1, Nk, D), lambda b: (b, 0, 0)),
                  pl.BlockSpec((1, 1, Nk), lambda b: (b, 0, 0))],
        out_specs=pl.BlockSpec((1, Nq, D), lambda b: (b, 0, 0)),
        compiler_params=pltpu.CompilerParams(dimension_semantics=("parallel",)),
    )(q.astype(jnp.bfloat16), k.astype(jnp.bfloat16),
      v.astype(jnp.bfloat16), key_mask.astype(jnp.float32))


def _fuse_pool_kernel(img_ref, i2q_ref, que_ref, q2i_ref, im_ref, qm_ref,
                      wrec_ref, brec_ref, out_ref, loss_ref):
    img = img_ref[...].astype(jnp.float32) + i2q_ref[...].astype(jnp.float32)
    que = que_ref[...].astype(jnp.float32) + q2i_ref[...].astype(jnp.float32)
    iv = 1.0 - im_ref[...]                              # [B, Ni] valid flags
    qv = 1.0 - qm_ref[...]                              # [B, Nt]
    img_pool = jnp.sum(img * iv[:, :, None], axis=1) / jnp.maximum(
        jnp.sum(iv, axis=1, keepdims=True), 1.0)        # [B, D] f32
    que_pool = jnp.sum(que * qv[:, :, None], axis=1) / jnp.maximum(
        jnp.sum(qv, axis=1, keepdims=True), 1.0)        # [B, D] f32
    # Single lane-dense full-row store (concat along lanes, both halves 128-aligned).
    out_ref[...] = jnp.concatenate([img_pool, que_pool],
                                   axis=-1).astype(out_ref.dtype)
    recon = jnp.dot(que_pool.astype(jnp.bfloat16), wrec_ref[...],
                    preferred_element_type=jnp.float32) + brec_ref[...]
    d = recon - img_pool
    loss_ref[...] = jnp.reshape(jnp.mean(d * d), (1, 1))


# --------------------------- module sub-blocks ------------------------------

def vit_encoder(img, p, hidden_dim, patch=16):
    """Simplified VitS: patch embed + cls + pos + one self-attn/MLP block.
    Returns all tokens (cls first), like forward(img, return_all_tokens=True)."""
    # TODO(synk): real VisionTransformer has depth=12, 6 heads, LayerNorm/DropPath.
    B, C, H, W = img.shape
    D = hidden_dim
    nh, nw = H // patch, W // patch
    x = img.reshape(B, C, nh, patch, nw, patch)
    x = jnp.transpose(x, (0, 2, 4, 1, 3, 5)).reshape(B, nh * nw, C * patch * patch)
    Np = nh * nw
    tok = linear(x.reshape(B * Np, -1), p["w_pe"], p["b_pe"],
                 out_dtype=jnp.float32).reshape(B, Np, D)
    cls = jnp.broadcast_to(p["cls"], (B, 1, D))
    tok = jnp.concatenate([cls, tok], axis=1) + p["pos"]        # [B, N, D] f32
    N = Np + 1
    flat = tok.reshape(B * N, D)

    qkv = linear(flat, p["w_qkv"], p["b_qkv"])                  # fused QKV, bf16
    q = qkv[:, :D].reshape(B, N, D)
    k = qkv[:, D:2 * D].reshape(B, N, D)
    v = qkv[:, 2 * D:].reshape(B, N, D)
    a = attention(q, k, v, jnp.zeros((B, 1, N), jnp.float32))   # [B, N, D] bf16
    tok = linear(a.reshape(B * N, D), p["wo"], p["bo"],
                 residual=flat)                                 # out-proj + residual
    tok = mlp_block(tok, p["w1"], p["b1"], p["w2"], p["b2"], residual=tok)
    return tok.reshape(B, N, D)                                 # bf16 tokens


def lstm_encoder(que, p, hidden_dim):
    """LSTM(pretrained_emb, token_size, hidden_dim, avg_pool=False) -> [B,T,D].
    Heavy input projection is a Pallas matmul; the tiny recurrence is scan glue."""
    # TODO(synk): embedding gather + sequential LSTM recurrence have no clean
    # Pallas equivalent at this scale; they run as plain JAX (scan) glue.
    emb = jnp.take(p["emb"], que, axis=0)                       # [B, T, E]
    B, T, E = emb.shape
    xp = linear(emb.reshape(B * T, E), p["w_ih"], p["b_ih"],
                out_dtype=jnp.float32).reshape(B, T, 4 * hidden_dim)
    w_hh, b_hh = p["w_hh"], p["b_hh"]

    def step(carry, x_t):
        h, c = carry
        gates = x_t + h @ w_hh + b_hh                           # tiny recurrent matmul
        i, f, g, o = jnp.split(gates, 4, axis=-1)
        i, f, o = jax.nn.sigmoid(i), jax.nn.sigmoid(f), jax.nn.sigmoid(o)
        g = jnp.tanh(g)
        c = f * c + i * g
        h = o * jnp.tanh(c)
        return (h, c), h

    h0 = jnp.zeros((B, hidden_dim), jnp.float32)
    c0 = jnp.zeros((B, hidden_dim), jnp.float32)
    _, hs = jax.lax.scan(step, (h0, c0), jnp.swapaxes(xp, 0, 1))
    return jnp.swapaxes(hs, 0, 1)                               # [B, T, D] f32


def fusion_transformer(img_tot, que_tot, img_mask, que_mask, p):
    """Simplified Transformer(hidden_dim): masked cross-attention both ways,
    then one fused Pallas kernel for residual + masked mean pooling + concat +
    reconstruction linear + MSE loss."""
    # TODO(synk): exact co-attention stack / entropy-recon head of the original
    # Transformer is not available; this is a faithful-shape simplification.
    im = img_mask.astype(jnp.float32)                           # [B, Ni] 1=pad
    qm = que_mask.astype(jnp.float32)                           # [B, Nt]
    i2q = attention(img_tot, que_tot, que_tot, qm[:, None, :])  # [B, Ni, D] bf16
    q2i = attention(que_tot, img_tot, img_tot, im[:, None, :])  # [B, Nt, D] bf16

    B, Ni, D = img_tot.shape
    Nt = que_tot.shape[1]
    multi, loss = pl.pallas_call(
        _fuse_pool_kernel,
        out_shape=(jax.ShapeDtypeStruct((B, 2 * D), jnp.bfloat16),
                   jax.ShapeDtypeStruct((1, 1), jnp.float32)),
        grid=(1,),
        in_specs=[pl.BlockSpec((B, Ni, D), lambda i: (0, 0, 0)),
                  pl.BlockSpec((B, Ni, D), lambda i: (0, 0, 0)),
                  pl.BlockSpec((B, Nt, D), lambda i: (0, 0, 0)),
                  pl.BlockSpec((B, Nt, D), lambda i: (0, 0, 0)),
                  pl.BlockSpec((B, Ni), lambda i: (0, 0)),
                  pl.BlockSpec((B, Nt), lambda i: (0, 0)),
                  pl.BlockSpec((D, D), lambda i: (0, 0)),
                  pl.BlockSpec((1, D), lambda i: (0, 0))],
        out_specs=(pl.BlockSpec((B, 2 * D), lambda i: (0, 0)),
                   pl.BlockSpec((1, 1), lambda i: (0, 0))),
        compiler_params=pltpu.CompilerParams(dimension_semantics=("arbitrary",)),
    )(img_tot.astype(jnp.bfloat16), i2q, que_tot.astype(jnp.bfloat16), q2i,
      im, qm, p["w_rec"].astype(jnp.bfloat16),
      p["b_rec"].reshape(1, -1).astype(jnp.float32))
    return multi, loss[0, 0]


def vqa_backbone_forward(img, que, params, hidden_dim):
    img_tokens = vit_encoder(img, params["vit"], hidden_dim)    # all tokens, bf16
    img_tot = img_tokens[:, 1:]                                 # drop cls
    # make_mask semantics: (sum(|feature|, -1) == 0) — tiny reductions, JAX glue.
    img_mask = jnp.sum(jnp.abs(img_tot.astype(jnp.float32)), axis=-1) == 0.0
    que_mask = (que == 0)                                       # |que| over size-1 dim
    que_tot = lstm_encoder(que, params["lstm"], hidden_dim)     # [B, T, D] f32
    multi_tot, recon_loss = fusion_transformer(
        img_tot, que_tot, img_mask, que_mask, params["fusion"])
    multi_tot = linear(multi_tot, params["w_proto"], params["b_proto"],
                       out_dtype=jnp.float32)                   # multi_linear_proto
    return multi_tot, recon_loss


# ------------------------------- parameters ---------------------------------

def init_params(key, hidden_dim, vocab, emb_dim, patch_dim, n_tokens):
    D = hidden_dim
    ks = jax.random.split(key, 16)

    def w(k, shape, scale=0.02):
        return (scale * jax.random.normal(k, shape)).astype(jnp.float32)

    def z(n):
        return jnp.zeros((n,), jnp.float32)

    vit = dict(
        w_pe=w(ks[0], (patch_dim, D)), b_pe=z(D),
        cls=w(ks[1], (1, 1, D)), pos=w(ks[2], (1, n_tokens, D)),
        w_qkv=w(ks[3], (D, 3 * D)), b_qkv=z(3 * D),              # fused Q/K/V
        wo=w(ks[6], (D, D)), bo=z(D),
        w1=w(ks[7], (D, 4 * D)), b1=z(4 * D),
        w2=w(ks[8], (4 * D, D)), b2=z(D),
    )
    emb = w(ks[9], (vocab, emb_dim)).at[0].set(0.0)              # padding idx -> zero
    lstm = dict(
        emb=emb,
        w_ih=w(ks[10], (emb_dim, 4 * D)), b_ih=z(4 * D),
        w_hh=w(ks[11], (D, 4 * D)), b_hh=z(4 * D),
    )
    fusion = dict(w_rec=w(ks[12], (D, D)), b_rec=z(D))
    return dict(
        vit=vit, lstm=lstm, fusion=fusion,
        w_proto=w(ks[13], (2 * D, D)), b_proto=z(D),             # multi_linear_proto
    )


# ---------------------------------- main -------------------------------------

if __name__ == "__main__":
    B, C, H, W = 2, 3, 32, 32      # small image, 16x16 patches -> 4 tokens
    patch = 16
    hidden_dim = 384               # args.hidden_dim for VitS
    vocab, emb_dim, T = 100, 300, 8

    key = jax.random.PRNGKey(0)
    k_img, k_que, k_par = jax.random.split(key, 3)

    img = jax.random.normal(k_img, (B, C, H, W), jnp.float32)
    que = jax.random.randint(k_que, (B, T), 1, vocab, dtype=jnp.int32)
    que = que.at[:, -2:].set(0)    # padded question tokens (id 0)

    n_tokens = (H // patch) * (W // patch) + 1
    params = init_params(k_par, hidden_dim, vocab, emb_dim,
                         patch_dim=C * patch * patch, n_tokens=n_tokens)

    fwd = jax.jit(functools.partial(vqa_backbone_forward, hidden_dim=hidden_dim))
    multi_tot, recon_loss = fwd(img, que, params)
    jax.block_until_ready(multi_tot)
    jax.block_until_ready(recon_loss)

    assert multi_tot.shape == (B, hidden_dim)
    assert recon_loss.shape == ()
    print("KERNEL_OK")
</pallas_src>

<mosaic_0001>
module attributes {stable_mosaic.version = 11 : i64} {
  func.func @_linear_kernel(%arg0: i32, %arg1: memref<8x768xbf16, #tpu.memory_space<vmem>>, %arg2: memref<768x384xbf16, #tpu.memory_space<vmem>>, %arg3: memref<1x384xf32, #tpu.memory_space<vmem>>, %arg4: memref<8x384xf32, #tpu.memory_space<vmem>>) attributes {dimension_semantics = [#tpu.dimension_semantics<parallel>], iteration_bounds = array<i64: 1>, scalar_prefetch = 0 : i64, scratch_operands = 0 : i64, tpu.core_type = #tpu.core_type<tc>, window_params = [{transform_indices = @transform_0, window_bounds = array<i64: 8, 768>}, {pipeline_mode = #tpu.pipeline_mode<synchronous>, transform_indices = @transform_1, window_bounds = array<i64: 768, 384>}, {pipeline_mode = #tpu.pipeline_mode<synchronous>, transform_indices = @transform_2, window_bounds = array<i64: 1, 384>}, {transform_indices = @transform_3, window_bounds = array<i64: 8, 384>}]} {
    %c0 = arith.constant 0 : index
    %c0_0 = arith.constant 0 : index
    %0 = vector.load %arg1[%c0, %c0_0] : memref<8x768xbf16, #tpu.memory_space<vmem>>, vector<8x768xbf16>
    %c0_1 = arith.constant 0 : index
    %c0_2 = arith.constant 0 : index
    %1 = vector.load %arg2[%c0_1, %c0_2] : memref<768x384xbf16, #tpu.memory_space<vmem>>, vector<768x384xbf16>
    %cst = arith.constant dense<0.000000e+00> : vector<8x384xf32>
    %2 = tpu.matmul %0, %1, %cst {dimension_numbers = #tpu.dot_dimension_numbers<[1], [0], [0], [1], [0, 0, 1, 1], [], []>} : vector<8x768xbf16>, vector<768x384xbf16>, vector<8x384xf32> -> vector<8x384xf32>
    %c0_3 = arith.constant 0 : index
    %c0_4 = arith.constant 0 : index
    %3 = vector.load %arg3[%c0_3, %c0_4] : memref<1x384xf32, #tpu.memory_space<vmem>>, vector<1x384xf32>
    %4 = vector.broadcast %3 : vector<1x384xf32> to vector<8x384xf32>
    %5 = arith.addf %2, %4 : vector<8x384xf32>
    %c0_5 = arith.constant 0 : index
    %c0_6 = arith.constant 0 : index
    %6 = vector.load %arg4[%c0_5, %c0_6] : memref<8x384xf32, #tpu.memory_space<vmem>>, vector<8x384xf32>
    tpu.vector_store %arg4[%c0_5, %c0_6], %5 {strides = array<i32>} : memref<8x384xf32, #tpu.memory_space<vmem>>, vector<8x384xf32>,
    return
  }
  func.func @transform_0(%arg0: i32) -> (i32, i32) {
    %c0_i32 = arith.constant 0 : i32
    %c0_i32_0 = arith.constant 0 : i32
    return %arg0, %c0_i32 : i32, i32
  }
  func.func @transform_1(%arg0: i32) -> (i32, i32) {
    %c0_i32 = arith.constant 0 : i32
    %c0_i32_0 = arith.constant 0 : i32
    %c0_i32_1 = arith.constant 0 : i32
    return %c0_i32, %c0_i32_0 : i32, i32
  }
  func.func @transform_2(%arg0: i32) -> (i32, i32) {
    %c0_i32 = arith.constant 0 : i32
    %c0_i32_0 = arith.constant 0 : i32
    %c0_i32_1 = arith.constant 0 : i32
    return %c0_i32, %c0_i32_0 : i32, i32
  }
  func.func @transform_3(%arg0: i32) -> (i32, i32) {
    %c0_i32 = arith.constant 0 : i32
    %c0_i32_0 = arith.constant 0 : i32
    return %arg0, %c0_i32 : i32, i32
  }
}

module attributes {stable_mosaic.version = 11 : i64} {
  func.func @_linear_kernel(%arg0: i32, %arg1: memref<16x384xbf16, #tpu.memory_space<vmem>>, %arg2: memref<384x1152xbf16, #tpu.memory_space<vmem>>, %arg3: memref<1x1152xf32, #tpu.memory_space<vmem>>, %arg4: memref<16x1152xbf16, #tpu.memory_space<vmem>>) attributes {dimension_semantics = [#tpu.dimension_semantics<parallel>], iteration_bounds = array<i64: 1>, scalar_prefetch = 0 : i64, scratch_operands = 0 : i64, tpu.core_type = #tpu.core_type<tc>, window_params = [{transform_indices = @transform_0, window_bounds = array<i64: 16, 384>}, {pipeline_mode = #tpu.pipeline_mode<synchronous>, transform_indices = @transform_1, window_bounds = array<i64: 384, 1152>}, {pipeline_mode = #tpu.pipeline_mode<synchronous>, transform_indices = @transform_2, window_bounds = array<i64: 1, 1152>}, {transform_indices = @transform_3, window_bounds = array<i64: 16, 1152>}]} {
    %c0 = arith.constant 0 : index
    %c0_0 = arith.constant 0 : index
    %0 = vector.load %arg1[%c0, %c0_0] : memref<16x384xbf16, #tpu.memory_space<vmem>>, vector<16x384xbf16>
    %c0_1 = arith.constant 0 : index
    %c0_2 = arith.constant 0 : index
    %1 = vector.load %arg2[%c0_1, %c0_2] : memref<384x1152xbf16, #tpu.memory_space<vmem>>, vector<384x1152xbf16>
    %cst = arith.constant dense<0.000000e+00> : vector<16x1152xf32>
    %2 = tpu.matmul %0, %1, %cst {dimension_numbers = #tpu.dot_dimension_numbers<[1], [0], [0], [1], [0, 0, 1, 1], [], []>} : vector<16x384xbf16>, vector<384x1152xbf16>, vector<16x1152xf32> -> vector<16x1152xf32>
    %c0_3 = arith.constant 0 : index
    %c0_4 = arith.constant 0 : index
    %3 = vector.load %arg3[%c0_3, %c0_4] : memref<1x1152xf32, #tpu.memory_space<vmem>>, vector<1x1152xf32>
    %4 = vector.broadcast %3 : vector<1x1152xf32> to vector<16x1152xf32>
    %5 = arith.addf %2, %4 : vector<16x1152xf32>
    %6 = arith.truncf %5 : vector<16x1152xf32> to vector<16x1152xbf16>
    %c0_5 = arith.constant 0 : index
    %c0_6 = arith.constant 0 : index
    %7 = vector.load %arg4[%c0_5, %c0_6] : memref<16x1152xbf16, #tpu.memory_space<vmem>>, vector<16x1152xbf16>
    tpu.vector_store %arg4[%c0_5, %c0_6], %6 {strides = array<i32>} : memref<16x1152xbf16, #tpu.memory_space<vmem>>, vector<16x1152xbf16>,
    return
  }
  func.func @transform_0(%arg0: i32) -> (i32, i32) {
    %c0_i32 = arith.constant 0 : i32
    %c0_i32_0 = arith.constant 0 : i32
    return %arg0, %c0_i32 : i32, i32
  }
  func.func @transform_1(%arg0: i32) -> (i32, i32) {
    %c0_i32 = arith.constant 0 : i32
    %c0_i32_0 = arith.constant 0 : i32
    %c0_i32_1 = arith.constant 0 : i32
    return %c0_i32, %c0_i32_0 : i32, i32
  }
  func.func @transform_2(%arg0: i32) -> (i32, i32) {
    %c0_i32 = arith.constant 0 : i32
    %c0_i32_0 = arith.constant 0 : i32
    %c0_i32_1 = arith.constant 0 : i32
    return %c0_i32, %c0_i32_0 : i32, i32
  }
  func.func @transform_3(%arg0: i32) -> (i32, i32) {
    %c0_i32 = arith.constant 0 : i32
    %c0_i32_0 = arith.constant 0 : i32
    return %arg0, %c0_i32 : i32, i32
  }
}

module attributes {stable_mosaic.version = 11 : i64} {
  func.func @_attn_kernel(%arg0: i32, %arg1: memref<1x5x384xbf16, #tpu.memory_space<vmem>>, %arg2: memref<1x5x384xbf16, #tpu.memory_space<vmem>>, %arg3: memref<1x5x384xbf16, #tpu.memory_space<vmem>>, %arg4: memref<1x1x5xf32, #tpu.memory_space<vmem>>, %arg5: memref<1x5x384xbf16, #tpu.memory_space<vmem>>) attributes {dimension_semantics = [#tpu.dimension_semantics<parallel>], iteration_bounds = array<i64: 2>, scalar_prefetch = 0 : i64, scratch_operands = 0 : i64, tpu.core_type = #tpu.core_type<tc>, window_params = [{transform_indices = @transform_0, window_bounds = array<i64: 1, 5, 384>}, {transform_indices = @transform_1, window_bounds = array<i64: 1, 5, 384>}, {transform_indices = @transform_2, window_bounds = array<i64: 1, 5, 384>}, {transform_indices = @transform_3, window_bounds = array<i64: 1, 1, 5>}, {transform_indices = @transform_4, window_bounds = array<i64: 1, 5, 384>}]} {
    %c0 = arith.constant 0 : index
    %c0_0 = arith.constant 0 : index
    %c0_1 = arith.constant 0 : index
    %0 = vector.load %arg1[%c0, %c0_0, %c0_1] : memref<1x5x384xbf16, #tpu.memory_space<vmem>>, vector<1x5x384xbf16>
    %1 = vector.shape_cast %0 : vector<1x5x384xbf16> to vector<5x384xbf16>
    %c0_2 = arith.constant 0 : index
    %c0_3 = arith.constant 0 : index
    %c0_4 = arith.constant 0 : index
    %2 = vector.load %arg2[%c0_2, %c0_3, %c0_4] : memref<1x5x384xbf16, #tpu.memory_space<vmem>>, vector<1x5x384xbf16>
    %3 = vector.shape_cast %2 : vector<1x5x384xbf16> to vector<5x384xbf16>
    %c0_5 = arith.constant 0 : index
    %c0_6 = arith.constant 0 : index
    %c0_7 = arith.constant 0 : index
    %4 = vector.load %arg3[%c0_5, %c0_6, %c0_7] : memref<1x5x384xbf16, #tpu.memory_space<vmem>>, vector<1x5x384xbf16>
    %5 = vector.shape_cast %4 : vector<1x5x384xbf16> to vector<5x384xbf16>
    %cst = arith.constant dense<0.000000e+00> : vector<5x5xf32>
    %6 = tpu.matmul %1, %3, %cst {dimension_numbers = #tpu.dot_dimension_numbers<[1], [1], [0], [0], [0, 0, 1, 0], [], []>} : vector<5x384xbf16>, vector<5x384xbf16>, vector<5x5xf32> -> vector<5x5xf32>
    %cst_8 = arith.constant 3.840000e+02 : f32
    %7 = math.sqrt %cst_8 : f32
    %cst_9 = arith.constant 1.000000e+00 : f32
    %8 = arith.divf %cst_9, %7 : f32
    %9 = vector.broadcast %8 : f32 to vector<5x5xf32>
    %10 = arith.mulf %6, %9 : vector<5x5xf32>
    %c0_10 = arith.constant 0 : index
    %c0_11 = arith.constant 0 : index
    %c0_12 = arith.constant 0 : index
    %11 = vector.load %arg4[%c0_10, %c0_11, %c0_12] : memref<1x1x5xf32, #tpu.memory_space<vmem>>, vector<1x1x5xf32>
    %12 = vector.shape_cast %11 : vector<1x1x5xf32> to vector<1x5xf32>
    %cst_13 = arith.constant 1.000000e+09 : f32
    %13 = vector.broadcast %cst_13 : f32 to vector<1x5xf32>
    %14 = arith.mulf %12, %13 : vector<1x5xf32>
    %15 = vector.broadcast %14 : vector<1x5xf32> to vector<5x5xf32>
    %16 = arith.subf %10, %15 : vector<5x5xf32>
    %cst_14 = arith.constant dense<0xFF800000> : vector<5xf32>
    %17 = vector.multi_reduction <maximumf>, %16, %cst_14 [1] : vector<5x5xf32> to vector<5xf32>
    %18 = vector.shape_cast %17 : vector<5xf32> to vector<5x1xf32>
    %19 = vector.broadcast %18 : vector<5x1xf32> to vector<5x5xf32>
    %20 = arith.subf %16, %19 : vector<5x5xf32>
    %21 = math.exp %20 : vector<5x5xf32>
    %cst_15 = arith.constant dense<0.000000e+00> : vector<5xf32>
    %22 = vector.multi_reduction <add>, %21, %cst_15 [1] : vector<5x5xf32> to vector<5xf32>
    %23 = vector.shape_cast %22 : vector<5xf32> to vector<5x1xf32>
    %24 = tpu.reciprocal %23 {approx = true} : vector<5x1xf32> -> vector<5x1xf32>
    %25 = vector.broadcast %24 : vector<5x1xf32> to vector<5x5xf32>
    %26 = arith.mulf %21, %25 : vector<5x5xf32>
    %27 = arith.truncf %26 : vector<5x5xf32> to vector<5x5xbf16>
    %cst_16 = arith.constant dense<0.000000e+00> : vector<5x384xf32>
    %28 = tpu.matmul %27, %5, %cst_16 {dimension_numbers = #tpu.dot_dimension_numbers<[1], [0], [0], [1], [0, 0, 1, 1], [], []>} : vector<5x5xbf16>, vector<5x384xbf16>, vector<5x384xf32> -> vector<5x384xf32>
    %29 = arith.truncf %28 : vector<5x384xf32> to vector<5x384xbf16>
    %c0_17 = arith.constant 0 : index
    %c0_18 = arith.constant 0 : index
    %c0_19 = arith.constant 0 : index
    %30 = vector.load %arg5[%c0_17, %c0_18, %c0_19] : memref<1x5x384xbf16, #tpu.memory_space<vmem>>, vector<1x5x384xbf16>
    %31 = vector.shape_cast %30 : vector<1x5x384xbf16> to vector<5x384xbf16>
    %32 = vector.shape_cast %29 : vector<5x384xbf16> to vector<1x5x384xbf16>
    tpu.vector_store %arg5[%c0_17, %c0_18, %c0_19], %32 {strides = array<i32>} : memref<1x5x384xbf16, #tpu.memory_space<vmem>>, vector<1x5x384xbf16>,
    return
  }
  func.func @transform_0(%arg0: i32) -> (i32, i32, i32) {
    %c0_i32 = arith.constant 0 : i32
    %c0_i32_0 = arith.constant 0 : i32
    %c0_i32_1 = arith.constant 0 : i32
    return %arg0, %c0_i32, %c0_i32_0 : i32, i32, i32
  }
  func.func @transform_1(%arg0: i32) -> (i32, i32, i32) {
    %c0_i32 = arith.constant 0 : i32
    %c0_i32_0 = arith.constant 0 : i32
    %c0_i32_1 = arith.constant 0 : i32
    return %arg0, %c0_i32, %c0_i32_0 : i32, i32, i32
  }
  func.func @transform_2(%arg0: i32) -> (i32, i32, i32) {
    %c0_i32 = arith.constant 0 : i32
    %c0_i32_0 = arith.constant 0 : i32
    %c0_i32_1 = arith.constant 0 : i32
    return %arg0, %c0_i32, %c0_i32_0 : i32, i32, i32
  }
  func.func @transform_3(%arg0: i32) -> (i32, i32, i32) {
    %c0_i32 = arith.constant 0 : i32
    %c0_i32_0 = arith.constant 0 : i32
    %c0_i32_1 = arith.constant 0 : i32
    return %arg0, %c0_i32, %c0_i32_0 : i32, i32, i32
  }
  func.func @transform_4(%arg0: i32) -> (i32, i32, i32) {
    %c0_i32 = arith.constant 0 : i32
    %c0_i32_0 = arith.constant 0 : i32
    %c0_i32_1 = arith.constant 0 : i32
    return %arg0, %c0_i32, %c0_i32_0 : i32, i32, i32
  }
}

module attributes {stable_mosaic.version = 11 : i64} {
  func.func @_linear_kernel(%arg0: i32, %arg1: memref<16x384xbf16, #tpu.memory_space<vmem>>, %arg2: memref<384x384xbf16, #tpu.memory_space<vmem>>, %arg3: memref<1x384xf32, #tpu.memory_space<vmem>>, %arg4: memref<16x384xbf16, #tpu.memory_space<vmem>>, %arg5: memref<16x384xbf16, #tpu.memory_space<vmem>>) attributes {dimension_semantics = [#tpu.dimension_semantics<parallel>], iteration_bounds = array<i64: 1>, scalar_prefetch = 0 : i64, scratch_operands = 0 : i64, tpu.core_type = #tpu.core_type<tc>, window_params = [{transform_indices = @transform_0, window_bounds = array<i64: 16, 384>}, {pipeline_mode = #tpu.pipeline_mode<synchronous>, transform_indices = @transform_1, window_bounds = array<i64: 384, 384>}, {pipeline_mode = #tpu.pipeline_mode<synchronous>, transform_indices = @transform_2, window_bounds = array<i64: 1, 384>}, {transform_indices = @transform_3, window_bounds = array<i64: 16, 384>}, {transform_indices = @transform_4, window_bounds = array<i64: 16, 384>}]} {
    %c0 = arith.constant 0 : index
    %c0_0 = arith.constant 0 : index
    %0 = vector.load %arg1[%c0, %c0_0] : memref<16x384xbf16, #tpu.memory_space<vmem>>, vector<16x384xbf16>
    %c0_1 = arith.constant 0 : index
    %c0_2 = arith.constant 0 : index
    %1 = vector.load %arg2[%c0_1, %c0_2] : memref<384x384xbf16, #tpu.memory_space<vmem>>, vector<384x384xbf16>
    %cst = arith.constant dense<0.000000e+00> : vector<16x384xf32>
    %2 = tpu.matmul %0, %1, %cst {dimension_numbers = #tpu.dot_dimension_numbers<[1], [0], [0], [1], [0, 0, 1, 1], [], []>} : vector<16x384xbf16>, vector<384x384xbf16>, vector<16x384xf32> -> vector<16x384xf32>
    %c0_3 = arith.constant 0 : index
    %c0_4 = arith.constant 0 : index
    %3 = vector.load %arg3[%c0_3, %c0_4] : memref<1x384xf32, #tpu.memory_space<vmem>>, vector<1x384xf32>
    %4 = vector.broadcast %3 : vector<1x384xf32> to vector<16x384xf32>
    %5 = arith.addf %2, %4 : vector<16x384xf32>
    %c0_5 = arith.constant 0 : index
    %c0_6 = arith.constant 0 : index
    %6 = vector.load %arg4[%c0_5, %c0_6] : memref<16x384xbf16, #tpu.memory_space<vmem>>, vector<16x384xbf16>
    %7 = arith.extf %6 : vector<16x384xbf16> to vector<16x384xf32>
    %8 = arith.addf %5, %7 : vector<16x384xf32>
    %9 = arith.truncf %8 : vector<16x384xf32> to vector<16x384xbf16>
    %c0_7 = arith.constant 0 : index
    %c0_8 = arith.constant 0 : index
    %10 = vector.load %arg5[%c0_7, %c0_8] : memref<16x384xbf16, #tpu.memory_space<vmem>>, vector<16x384xbf16>
    tpu.vector_store %arg5[%c0_7, %c0_8], %9 {strides = array<i32>} : memref<16x384xbf16, #tpu.memory_space<vmem>>, vector<16x384xbf16>,
    return
  }
  func.func @transform_0(%arg0: i32) -> (i32, i32) {
    %c0_i32 = arith.constant 0 : i32
    %c0_i32_0 = arith.constant 0 : i32
    return %arg0, %c0_i32 : i32, i32
  }
  func.func @transform_1(%arg0: i32) -> (i32, i32) {
    %c0_i32 = arith.constant 0 : i32
    %c0_i32_0 = arith.constant 0 : i32
    %c0_i32_1 = arith.constant 0 : i32
    return %c0_i32, %c0_i32_0 : i32, i32
  }
  func.func @transform_2(%arg0: i32) -> (i32, i32) {
    %c0_i32 = arith.constant 0 : i32
    %c0_i32_0 = arith.constant 0 : i32
    %c0_i32_1 = arith.constant 0 : i32
    return %c0_i32, %c0_i32_0 : i32, i32
  }
  func.func @transform_3(%arg0: i32) -> (i32, i32) {
    %c0_i32 = arith.constant 0 : i32
    %c0_i32_0 = arith.constant 0 : i32
    return %arg0, %c0_i32 : i32, i32
  }
  func.func @transform_4(%arg0: i32) -> (i32, i32) {
    %c0_i32 = arith.constant 0 : i32
    %c0_i32_0 = arith.constant 0 : i32
    return %arg0, %c0_i32 : i32, i32
  }
}

module attributes {stable_mosaic.version = 11 : i64} {
  func.func @_mlp_kernel(%arg0: i32, %arg1: memref<16x384xbf16, #tpu.memory_space<vmem>>, %arg2: memref<384x1536xbf16, #tpu.memory_space<vmem>>, %arg3: memref<1x1536xf32, #tpu.memory_space<vmem>>, %arg4: memref<1536x384xbf16, #tpu.memory_space<vmem>>, %arg5: memref<1x384xf32, #tpu.memory_space<vmem>>, %arg6: memref<16x384xbf16, #tpu.memory_space<vmem>>, %arg7: memref<16x384xbf16, #tpu.memory_space<vmem>>) attributes {dimension_semantics = [#tpu.dimension_semantics<parallel>], iteration_bounds = array<i64: 1>, scalar_prefetch = 0 : i64, scratch_operands = 0 : i64, tpu.core_type = #tpu.core_type<tc>, window_params = [{transform_indices = @transform_0, window_bounds = array<i64: 16, 384>}, {pipeline_mode = #tpu.pipeline_mode<synchronous>, transform_indices = @transform_1, window_bounds = array<i64: 384, 1536>}, {pipeline_mode = #tpu.pipeline_mode<synchronous>, transform_indices = @transform_2, window_bounds = array<i64: 1, 1536>}, {pipeline_mode = #tpu.pipeline_mode<synchronous>, transform_indices = @transform_3, window_bounds = array<i64: 1536, 384>}, {pipeline_mode = #tpu.pipeline_mode<synchronous>, transform_indices = @transform_4, window_bounds = array<i64: 1, 384>}, {transform_indices = @transform_5, window_bounds = array<i64: 16, 384>}, {transform_indices = @transform_6, window_bounds = array<i64: 16, 384>}]} {
    %c0 = arith.constant 0 : index
    %c0_0 = arith.constant 0 : index
    %0 = vector.load %arg1[%c0, %c0_0] : memref<16x384xbf16, #tpu.memory_space<vmem>>, vector<16x384xbf16>
    %c0_1 = arith.constant 0 : index
    %c0_2 = arith.constant 0 : index
    %1 = vector.load %arg2[%c0_1, %c0_2] : memref<384x1536xbf16, #tpu.memory_space<vmem>>, vector<384x1536xbf16>
    %cst = arith.constant dense<0.000000e+00> : vector<16x1536xf32>
    %2 = tpu.matmul %0, %1, %cst {dimension_numbers = #tpu.dot_dimension_numbers<[1], [0], [0], [1], [0, 0, 1, 1], [], []>} : vector<16x384xbf16>, vector<384x1536xbf16>, vector<16x1536xf32> -> vector<16x1536xf32>
    %c0_3 = arith.constant 0 : index
    %c0_4 = arith.constant 0 : index
    %3 = vector.load %arg3[%c0_3, %c0_4] : memref<1x1536xf32, #tpu.memory_space<vmem>>, vector<1x1536xf32>
    %4 = vector.broadcast %3 : vector<1x1536xf32> to vector<16x1536xf32>
    %5 = arith.addf %2, %4 : vector<16x1536xf32>
    %6 = arith.mulf %5, %5 : vector<16x1536xf32>
    %7 = arith.mulf %5, %6 : vector<16x1536xf32>
    %cst_5 = arith.constant 4.471500e-02 : f32
    %8 = vector.broadcast %cst_5 : f32 to vector<16x1536xf32>
    %9 = arith.mulf %8, %7 : vector<16x1536xf32>
    %10 = arith.addf %5, %9 : vector<16x1536xf32>
    %cst_6 = arith.constant 0.797884583 : f32
    %11 = vector.broadcast %cst_6 : f32 to vector<16x1536xf32>
    %12 = arith.mulf %11, %10 : vector<16x1536xf32>
    %13 = math.tanh %12 : vector<16x1536xf32>
    %cst_7 = arith.constant 1.000000e+00 : f32
    %14 = vector.broadcast %cst_7 : f32 to vector<16x1536xf32>
    %15 = arith.addf %14, %13 : vector<16x1536xf32>
    %cst_8 = arith.constant 5.000000e-01 : f32
    %16 = vector.broadcast %cst_8 : f32 to vector<16x1536xf32>
    %17 = arith.mulf %16, %15 : vector<16x1536xf32>
    %18 = arith.mulf %5, %17 : vector<16x1536xf32>
    %19 = arith.truncf %18 : vector<16x1536xf32> to vector<16x1536xbf16>
    %c0_9 = arith.constant 0 : index
    %c0_10 = arith.constant 0 : index
    %20 = vector.load %arg4[%c0_9, %c0_10] : memref<1536x384xbf16, #tpu.memory_space<vmem>>, vector<1536x384xbf16>
    %cst_11 = arith.constant dense<0.000000e+00> : vector<16x384xf32>
    %21 = tpu.matmul %19, %20, %cst_11 {dimension_numbers = #tpu.dot_dimension_numbers<[1], [0], [0], [1], [0, 0, 1, 1], [], []>} : vector<16x1536xbf16>, vector<1536x384xbf16>, vector<16x384xf32> -> vector<16x384xf32>
    %c0_12 = arith.constant 0 : index
    %c0_13 = arith.constant 0 : index
    %22 = vector.load %arg5[%c0_12, %c0_13] : memref<1x384xf32, #tpu.memory_space<vmem>>, vector<1x384xf32>
    %23 = vector.broadcast %22 : vector<1x384xf32> to vector<16x384xf32>
    %24 = arith.addf %21, %23 : vector<16x384xf32>
    %c0_14 = arith.constant 0 : index
    %c0_15 = arith.constant 0 : index
    %25 = vector.load %arg6[%c0_14, %c0_15] : memref<16x384xbf16, #tpu.memory_space<vmem>>, vector<16x384xbf16>
    %26 = arith.extf %25 : vector<16x384xbf16> to vector<16x384xf32>
    %27 = arith.addf %24, %26 : vector<16x384xf32>
    %28 = arith.truncf %27 : vector<16x384xf32> to vector<16x384xbf16>
    %c0_16 = arith.constant 0 : index
    %c0_17 = arith.constant 0 : index
    %29 = vector.load %arg7[%c0_16, %c0_17] : memref<16x384xbf16, #tpu.memory_space<vmem>>, vector<16x384xbf16>
    tpu.vector_store %arg7[%c0_16, %c0_17], %28 {strides = array<i32>} : memref<16x384xbf16, #tpu.memory_space<vmem>>, vector<16x384xbf16>,
    return
  }
  func.func @transform_0(%arg0: i32) -> (i32, i32) {
    %c0_i32 = arith.constant 0 : i32
    %c0_i32_0 = arith.constant 0 : i32
    return %arg0, %c0_i32 : i32, i32
  }
  func.func @transform_1(%arg0: i32) -> (i32, i32) {
    %c0_i32 = arith.constant 0 : i32
    %c0_i32_0 = arith.constant 0 : i32
    %c0_i32_1 = arith.constant 0 : i32
    return %c0_i32, %c0_i32_0 : i32, i32
  }
  func.func @transform_2(%arg0: i32) -> (i32, i32) {
    %c0_i32 = arith.constant 0 : i32
    %c0_i32_0 = arith.constant 0 : i32
    %c0_i32_1 = arith.constant 0 : i32
    return %c0_i32, %c0_i32_0 : i32, i32
  }
  func.func @transform_3(%arg0: i32) -> (i32, i32) {
    %c0_i32 = arith.constant 0 : i32
    %c0_i32_0 = arith.constant 0 : i32
    %c0_i32_1 = arith.constant 0 : i32
    return %c0_i32, %c0_i32_0 : i32, i32
  }
  func.func @transform_4(%arg0: i32) -> (i32, i32) {
    %c0_i32 = arith.constant 0 : i32
    %c0_i32_0 = arith.constant 0 : i32
    %c0_i32_1 = arith.constant 0 : i32
    return %c0_i32, %c0_i32_0 : i32, i32
  }
  func.func @transform_5(%arg0: i32) -> (i32, i32) {
    %c0_i32 = arith.constant 0 : i32
    %c0_i32_0 = arith.constant 0 : i32
    return %arg0, %c0_i32 : i32, i32
  }
  func.func @transform_6(%arg0: i32) -> (i32, i32) {
    %c0_i32 = arith.constant 0 : i32
    %c0_i32_0 = arith.constant 0 : i32
    return %arg0, %c0_i32 : i32, i32
  }
}

module attributes {stable_mosaic.version = 11 : i64} {
  func.func @_linear_kernel(%arg0: i32, %arg1: memref<16x300xbf16, #tpu.memory_space<vmem>>, %arg2: memref<300x1536xbf16, #tpu.memory_space<vmem>>, %arg3: memref<1x1536xf32, #tpu.memory_space<vmem>>, %arg4: memref<16x1536xf32, #tpu.memory_space<vmem>>) attributes {dimension_semantics = [#tpu.dimension_semantics<parallel>], iteration_bounds = array<i64: 1>, scalar_prefetch = 0 : i64, scratch_operands = 0 : i64, tpu.core_type = #tpu.core_type<tc>, window_params = [{transform_indices = @transform_0, window_bounds = array<i64: 16, 300>}, {pipeline_mode = #tpu.pipeline_mode<synchronous>, transform_indices = @transform_1, window_bounds = array<i64: 300, 1536>}, {pipeline_mode = #tpu.pipeline_mode<synchronous>, transform_indices = @transform_2, window_bounds = array<i64: 1, 1536>}, {transform_indices = @transform_3, window_bounds = array<i64: 16, 1536>}]} {
    %c0 = arith.constant 0 : index
    %c0_0 = arith.constant 0 : index
    %0 = vector.load %arg1[%c0, %c0_0] : memref<16x300xbf16, #tpu.memory_space<vmem>>, vector<16x300xbf16>
    %c0_1 = arith.constant 0 : index
    %c0_2 = arith.constant 0 : index
    %1 = vector.load %arg2[%c0_1, %c0_2] : memref<300x1536xbf16, #tpu.memory_space<vmem>>, vector<300x1536xbf16>
    %cst = arith.constant dense<0.000000e+00> : vector<16x1536xf32>
    %2 = tpu.matmul %0, %1, %cst {dimension_numbers = #tpu.dot_dimension_numbers<[1], [0], [0], [1], [0, 0, 1, 1], [], []>} : vector<16x300xbf16>, vector<300x1536xbf16>, vector<16x1536xf32> -> vector<16x1536xf32>
    %c0_3 = arith.constant 0 : index
    %c0_4 = arith.constant 0 : index
    %3 = vector.load %arg3[%c0_3, %c0_4] : memref<1x1536xf32, #tpu.memory_space<vmem>>, vector<1x1536xf32>
    %4 = vector.broadcast %3 : vector<1x1536xf32> to vector<16x1536xf32>
    %5 = arith.addf %2, %4 : vector<16x1536xf32>
    %c0_5 = arith.constant 0 : index
    %c0_6 = arith.constant 0 : index
    %6 = vector.load %arg4[%c0_5, %c0_6] : memref<16x1536xf32, #tpu.memory_space<vmem>>, vector<16x1536xf32>
    tpu.vector_store %arg4[%c0_5, %c0_6], %5 {strides = array<i32>} : memref<16x1536xf32, #tpu.memory_space<vmem>>, vector<16x1536xf32>,
    return
  }
  func.func @transform_0(%arg0: i32) -> (i32, i32) {
    %c0_i32 = arith.constant 0 : i32
    %c0_i32_0 = arith.constant 0 : i32
    return %arg0, %c0_i32 : i32, i32
  }
  func.func @transform_1(%arg0: i32) -> (i32, i32) {
    %c0_i32 = arith.constant 0 : i32
    %c0_i32_0 = arith.constant 0 : i32
    %c0_i32_1 = arith.constant 0 : i32
    return %c0_i32, %c0_i32_0 : i32, i32
  }
  func.func @transform_2(%arg0: i32) -> (i32, i32) {
    %c0_i32 = arith.constant 0 : i32
    %c0_i32_0 = arith.constant 0 : i32
    %c0_i32_1 = arith.constant 0 : i32
    return %c0_i32, %c0_i32_0 : i32, i32
  }
  func.func @transform_3(%arg0: i32) -> (i32, i32) {
    %c0_i32 = arith.constant 0 : i32
    %c0_i32_0 = arith.constant 0 : i32
    return %arg0, %c0_i32 : i32, i32
  }
}

module attributes {stable_mosaic.version = 11 : i64} {
  func.func @_attn_kernel(%arg0: i32, %arg1: memref<1x8x384xbf16, #tpu.memory_space<vmem>>, %arg2: memref<1x4x384xbf16, #tpu.memory_space<vmem>>, %arg3: memref<1x4x384xbf16, #tpu.memory_space<vmem>>, %arg4: memref<1x1x4xf32, #tpu.memory_space<vmem>>, %arg5: memref<1x8x384xbf16, #tpu.memory_space<vmem>>) attributes {dimension_semantics = [#tpu.dimension_semantics<parallel>], iteration_bounds = array<i64: 2>, scalar_prefetch = 0 : i64, scratch_operands = 0 : i64, tpu.core_type = #tpu.core_type<tc>, window_params = [{transform_indices = @transform_0, window_bounds = array<i64: 1, 8, 384>}, {transform_indices = @transform_1, window_bounds = array<i64: 1, 4, 384>}, {transform_indices = @transform_2, window_bounds = array<i64: 1, 4, 384>}, {transform_indices = @transform_3, window_bounds = array<i64: 1, 1, 4>}, {transform_indices = @transform_4, window_bounds = array<i64: 1, 8, 384>}]} {
    %c0 = arith.constant 0 : index
    %c0_0 = arith.constant 0 : index
    %c0_1 = arith.constant 0 : index
    %0 = vector.load %arg1[%c0, %c0_0, %c0_1] : memref<1x8x384xbf16, #tpu.memory_space<vmem>>, vector<1x8x384xbf16>
    %1 = vector.shape_cast %0 : vector<1x8x384xbf16> to vector<8x384xbf16>
    %c0_2 = arith.constant 0 : index
    %c0_3 = arith.constant 0 : index
    %c0_4 = arith.constant 0 : index
    %2 = vector.load %arg2[%c0_2, %c0_3, %c0_4] : memref<1x4x384xbf16, #tpu.memory_space<vmem>>, vector<1x4x384xbf16>
    %3 = vector.shape_cast %2 : vector<1x4x384xbf16> to vector<4x384xbf16>
    %c0_5 = arith.constant 0 : index
    %c0_6 = arith.constant 0 : index
    %c0_7 = arith.constant 0 : index
    %4 = vector.load %arg3[%c0_5, %c0_6, %c0_7] : memref<1x4x384xbf16, #tpu.memory_space<vmem>>, vector<1x4x384xbf16>
    %5 = vector.shape_cast %4 : vector<1x4x384xbf16> to vector<4x384xbf16>
    %cst = arith.constant dense<0.000000e+00> : vector<8x4xf32>
    %6 = tpu.matmul %1, %3, %cst {dimension_numbers = #tpu.dot_dimension_numbers<[1], [1], [0], [0], [0, 0, 1, 0], [], []>} : vector<8x384xbf16>, vector<4x384xbf16>, vector<8x4xf32> -> vector<8x4xf32>
    %cst_8 = arith.constant 3.840000e+02 : f32
    %7 = math.sqrt %cst_8 : f32
    %cst_9 = arith.constant 1.000000e+00 : f32
    %8 = arith.divf %cst_9, %7 : f32
    %9 = vector.broadcast %8 : f32 to vector<8x4xf32>
    %10 = arith.mulf %6, %9 : vector<8x4xf32>
    %c0_10 = arith.constant 0 : index
    %c0_11 = arith.constant 0 : index
    %c0_12 = arith.constant 0 : index
    %11 = vector.load %arg4[%c0_10, %c0_11, %c0_12] : memref<1x1x4xf32, #tpu.memory_space<vmem>>, vector<1x1x4xf32>
    %12 = vector.shape_cast %11 : vector<1x1x4xf32> to vector<1x4xf32>
    %cst_13 = arith.constant 1.000000e+09 : f32
    %13 = vector.broadcast %cst_13 : f32 to vector<1x4xf32>
    %14 = arith.mulf %12, %13 : vector<1x4xf32>
    %15 = vector.broadcast %14 : vector<1x4xf32> to vector<8x4xf32>
    %16 = arith.subf %10, %15 : vector<8x4xf32>
    %cst_14 = arith.constant dense<0xFF800000> : vector<8xf32>
    %17 = vector.multi_reduction <maximumf>, %16, %cst_14 [1] : vector<8x4xf32> to vector<8xf32>
    %18 = vector.shape_cast %17 : vector<8xf32> to vector<8x1xf32>
    %19 = vector.broadcast %18 : vector<8x1xf32> to vector<8x4xf32>
    %20 = arith.subf %16, %19 : vector<8x4xf32>
    %21 = math.exp %20 : vector<8x4xf32>
    %cst_15 = arith.constant dense<0.000000e+00> : vector<8xf32>
    %22 = vector.multi_reduction <add>, %21, %cst_15 [1] : vector<8x4xf32> to vector<8xf32>
    %23 = vector.shape_cast %22 : vector<8xf32> to vector<8x1xf32>
    %24 = tpu.reciprocal %23 {approx = true} : vector<8x1xf32> -> vector<8x1xf32>
    %25 = vector.broadcast %24 : vector<8x1xf32> to vector<8x4xf32>
    %26 = arith.mulf %21, %25 : vector<8x4xf32>
    %27 = arith.truncf %26 : vector<8x4xf32> to vector<8x4xbf16>
    %cst_16 = arith.constant dense<0.000000e+00> : vector<8x384xf32>
    %28 = tpu.matmul %27, %5, %cst_16 {dimension_numbers = #tpu.dot_dimension_numbers<[1], [0], [0], [1], [0, 0, 1, 1], [], []>} : vector<8x4xbf16>, vector<4x384xbf16>, vector<8x384xf32> -> vector<8x384xf32>
    %29 = arith.truncf %28 : vector<8x384xf32> to vector<8x384xbf16>
    %c0_17 = arith.constant 0 : index
    %c0_18 = arith.constant 0 : index
    %c0_19 = arith.constant 0 : index
    %30 = vector.load %arg5[%c0_17, %c0_18, %c0_19] : memref<1x8x384xbf16, #tpu.memory_space<vmem>>, vector<1x8x384xbf16>
    %31 = vector.shape_cast %30 : vector<1x8x384xbf16> to vector<8x384xbf16>
    %32 = vector.shape_cast %29 : vector<8x384xbf16> to vector<1x8x384xbf16>
    tpu.vector_store %arg5[%c0_17, %c0_18, %c0_19], %32 {strides = array<i32>} : memref<1x8x384xbf16, #tpu.memory_space<vmem>>, vector<1x8x384xbf16>,
    return
  }
  func.func @transform_0(%arg0: i32) -> (i32, i32, i32) {
    %c0_i32 = arith.constant 0 : i32
    %c0_i32_0 = arith.constant 0 : i32
    %c0_i32_1 = arith.constant 0 : i32
    return %arg0, %c0_i32, %c0_i32_0 : i32, i32, i32
  }
  func.func @transform_1(%arg0: i32) -> (i32, i32, i32) {
    %c0_i32 = arith.constant 0 : i32
    %c0_i32_0 = arith.constant 0 : i32
    %c0_i32_1 = arith.constant 0 : i32
    return %arg0, %c0_i32, %c0_i32_0 : i32, i32, i32
  }
  func.func @transform_2(%arg0: i32) -> (i32, i32, i32) {
    %c0_i32 = arith.constant 0 : i32
    %c0_i32_0 = arith.constant 0 : i32
    %c0_i32_1 = arith.constant 0 : i32
    return %arg0, %c0_i32, %c0_i32_0 : i32, i32, i32
  }
  func.func @transform_3(%arg0: i32) -> (i32, i32, i32) {
    %c0_i32 = arith.constant 0 : i32
    %c0_i32_0 = arith.constant 0 : i32
    %c0_i32_1 = arith.constant 0 : i32
    return %arg0, %c0_i32, %c0_i32_0 : i32, i32, i32
  }
  func.func @transform_4(%arg0: i32) -> (i32, i32, i32) {
    %c0_i32 = arith.constant 0 : i32
    %c0_i32_0 = arith.constant 0 : i32
    %c0_i32_1 = arith.constant 0 : i32
    return %arg0, %c0_i32, %c0_i32_0 : i32, i32, i32
  }
}

module attributes {stable_mosaic.version = 11 : i64} {
  func.func @_attn_kernel(%arg0: i32, %arg1: memref<1x4x384xbf16, #tpu.memory_space<vmem>>, %arg2: memref<1x8x384xbf16, #tpu.memory_space<vmem>>, %arg3: memref<1x8x384xbf16, #tpu.memory_space<vmem>>, %arg4: memref<1x1x8xf32, #tpu.memory_space<vmem>>, %arg5: memref<1x4x384xbf16, #tpu.memory_space<vmem>>) attributes {dimension_semantics = [#tpu.dimension_semantics<parallel>], iteration_bounds = array<i64: 2>, scalar_prefetch = 0 : i64, scratch_operands = 0 : i64, tpu.core_type = #tpu.core_type<tc>, window_params = [{transform_indices = @transform_0, window_bounds = array<i64: 1, 4, 384>}, {transform_indices = @transform_1, window_bounds = array<i64: 1, 8, 384>}, {transform_indices = @transform_2, window_bounds = array<i64: 1, 8, 384>}, {transform_indices = @transform_3, window_bounds = array<i64: 1, 1, 8>}, {transform_indices = @transform_4, window_bounds = array<i64: 1, 4, 384>}]} {
    %c0 = arith.constant 0 : index
    %c0_0 = arith.constant 0 : index
    %c0_1 = arith.constant 0 : index
    %0 = vector.load %arg1[%c0, %c0_0, %c0_1] : memref<1x4x384xbf16, #tpu.memory_space<vmem>>, vector<1x4x384xbf16>
    %1 = vector.shape_cast %0 : vector<1x4x384xbf16> to vector<4x384xbf16>
    %c0_2 = arith.constant 0 : index
    %c0_3 = arith.constant 0 : index
    %c0_4 = arith.constant 0 : index
    %2 = vector.load %arg2[%c0_2, %c0_3, %c0_4] : memref<1x8x384xbf16, #tpu.memory_space<vmem>>, vector<1x8x384xbf16>
    %3 = vector.shape_cast %2 : vector<1x8x384xbf16> to vector<8x384xbf16>
    %c0_5 = arith.constant 0 : index
    %c0_6 = arith.constant 0 : index
    %c0_7 = arith.constant 0 : index
    %4 = vector.load %arg3[%c0_5, %c0_6, %c0_7] : memref<1x8x384xbf16, #tpu.memory_space<vmem>>, vector<1x8x384xbf16>
    %5 = vector.shape_cast %4 : vector<1x8x384xbf16> to vector<8x384xbf16>
    %cst = arith.constant dense<0.000000e+00> : vector<4x8xf32>
    %6 = tpu.matmul %1, %3, %cst {dimension_numbers = #tpu.dot_dimension_numbers<[1], [1], [0], [0], [0, 0, 1, 0], [], []>} : vector<4x384xbf16>, vector<8x384xbf16>, vector<4x8xf32> -> vector<4x8xf32>
    %cst_8 = arith.constant 3.840000e+02 : f32
    %7 = math.sqrt %cst_8 : f32
    %cst_9 = arith.constant 1.000000e+00 : f32
    %8 = arith.divf %cst_9, %7 : f32
    %9 = vector.broadcast %8 : f32 to vector<4x8xf32>
    %10 = arith.mulf %6, %9 : vector<4x8xf32>
    %c0_10 = arith.constant 0 : index
    %c0_11 = arith.constant 0 : index
    %c0_12 = arith.constant 0 : index
    %11 = vector.load %arg4[%c0_10, %c0_11, %c0_12] : memref<1x1x8xf32, #tpu.memory_space<vmem>>, vector<1x1x8xf32>
    %12 = vector.shape_cast %11 : vector<1x1x8xf32> to vector<1x8xf32>
    %cst_13 = arith.constant 1.000000e+09 : f32
    %13 = vector.broadcast %cst_13 : f32 to vector<1x8xf32>
    %14 = arith.mulf %12, %13 : vector<1x8xf32>
    %15 = vector.broadcast %14 : vector<1x8xf32> to vector<4x8xf32>
    %16 = arith.subf %10, %15 : vector<4x8xf32>
    %cst_14 = arith.constant dense<0xFF800000> : vector<4xf32>
    %17 = vector.multi_reduction <maximumf>, %16, %cst_14 [1] : vector<4x8xf32> to vector<4xf32>
    %18 = vector.shape_cast %17 : vector<4xf32> to vector<4x1xf32>
    %19 = vector.broadcast %18 : vector<4x1xf32> to vector<4x8xf32>
    %20 = arith.subf %16, %19 : vector<4x8xf32>
    %21 = math.exp %20 : vector<4x8xf32>
    %cst_15 = arith.constant dense<0.000000e+00> : vector<4xf32>
    %22 = vector.multi_reduction <add>, %21, %cst_15 [1] : vector<4x8xf32> to vector<4xf32>
    %23 = vector.shape_cast %22 : vector<4xf32> to vector<4x1xf32>
    %24 = tpu.reciprocal %23 {approx = true} : vector<4x1xf32> -> vector<4x1xf32>
    %25 = vector.broadcast %24 : vector<4x1xf32> to vector<4x8xf32>
    %26 = arith.mulf %21, %25 : vector<4x8xf32>
    %27 = arith.truncf %26 : vector<4x8xf32> to vector<4x8xbf16>
    %cst_16 = arith.constant dense<0.000000e+00> : vector<4x384xf32>
    %28 = tpu.matmul %27, %5, %cst_16 {dimension_numbers = #tpu.dot_dimension_numbers<[1], [0], [0], [1], [0, 0, 1, 1], [], []>} : vector<4x8xbf16>, vector<8x384xbf16>, vector<4x384xf32> -> vector<4x384xf32>
    %29 = arith.truncf %28 : vector<4x384xf32> to vector<4x384xbf16>
    %c0_17 = arith.constant 0 : index
    %c0_18 = arith.constant 0 : index
    %c0_19 = arith.constant 0 : index
    %30 = vector.load %arg5[%c0_17, %c0_18, %c0_19] : memref<1x4x384xbf16, #tpu.memory_space<vmem>>, vector<1x4x384xbf16>
    %31 = vector.shape_cast %30 : vector<1x4x384xbf16> to vector<4x384xbf16>
    %32 = vector.shape_cast %29 : vector<4x384xbf16> to vector<1x4x384xbf16>
    tpu.vector_store %arg5[%c0_17, %c0_18, %c0_19], %32 {strides = array<i32>} : memref<1x4x384xbf16, #tpu.memory_space<vmem>>, vector<1x4x384xbf16>,
    return
  }
  func.func @transform_0(%arg0: i32) -> (i32, i32, i32) {
    %c0_i32 = arith.constant 0 : i32
    %c0_i32_0 = arith.constant 0 : i32
    %c0_i32_1 = arith.constant 0 : i32
    return %arg0, %c0_i32, %c0_i32_0 : i32, i32, i32
  }
  func.func @transform_1(%arg0: i32) -> (i32, i32, i32) {
    %c0_i32 = arith.constant 0 : i32
    %c0_i32_0 = arith.constant 0 : i32
    %c0_i32_1 = arith.constant 0 : i32
    return %arg0, %c0_i32, %c0_i32_0 : i32, i32, i32
  }
  func.func @transform_2(%arg0: i32) -> (i32, i32, i32) {
    %c0_i32 = arith.constant 0 : i32
    %c0_i32_0 = arith.constant 0 : i32
    %c0_i32_1 = arith.constant 0 : i32
    return %arg0, %c0_i32, %c0_i32_0 : i32, i32, i32
  }
  func.func @transform_3(%arg0: i32) -> (i32, i32, i32) {
    %c0_i32 = arith.constant 0 : i32
    %c0_i32_0 = arith.constant 0 : i32
    %c0_i32_1 = arith.constant 0 : i32
    return %arg0, %c0_i32, %c0_i32_0 : i32, i32, i32
  }
  func.func @transform_4(%arg0: i32) -> (i32, i32, i32) {
    %c0_i32 = arith.constant 0 : i32
    %c0_i32_0 = arith.constant 0 : i32
    %c0_i32_1 = arith.constant 0 : i32
    return %arg0, %c0_i32, %c0_i32_0 : i32, i32, i32
  }
}

module attributes {stable_mosaic.version = 11 : i64} {
  func.func @_fuse_pool_kernel(%arg0: i32, %arg1: memref<2x4x384xbf16, #tpu.memory_space<vmem>>, %arg2: memref<2x4x384xbf16, #tpu.memory_space<vmem>>, %arg3: memref<2x8x384xbf16, #tpu.memory_space<vmem>>, %arg4: memref<2x8x384xbf16, #tpu.memory_space<vmem>>, %arg5: memref<2x4xf32, #tpu.memory_space<vmem>>, %arg6: memref<2x8xf32, #tpu.memory_space<vmem>>, %arg7: memref<384x384xbf16, #tpu.memory_space<vmem>>, %arg8: memref<1x384xf32, #tpu.memory_space<vmem>>, %arg9: memref<2x768xbf16, #tpu.memory_space<vmem>>, %arg10: memref<1x1xf32, #tpu.memory_space<vmem>>) attributes {dimension_semantics = [#tpu.dimension_semantics<arbitrary>], iteration_bounds = array<i64: 1>, scalar_prefetch = 0 : i64, scratch_operands = 0 : i64, tpu.core_type = #tpu.core_type<tc>, window_params = [{pipeline_mode = #tpu.pipeline_mode<synchronous>, transform_indices = @transform_0, window_bounds = array<i64: 2, 4, 384>}, {pipeline_mode = #tpu.pipeline_mode<synchronous>, transform_indices = @transform_1, window_bounds = array<i64: 2, 4, 384>}, {pipeline_mode = #tpu.pipeline_mode<synchronous>, transform_indices = @transform_2, window_bounds = array<i64: 2, 8, 384>}, {pipeline_mode = #tpu.pipeline_mode<synchronous>, transform_indices = @transform_3, window_bounds = array<i64: 2, 8, 384>}, {pipeline_mode = #tpu.pipeline_mode<synchronous>, transform_indices = @transform_4, window_bounds = array<i64: 2, 4>}, {pipeline_mode = #tpu.pipeline_mode<synchronous>, transform_indices = @transform_5, window_bounds = array<i64: 2, 8>}, {pipeline_mode = #tpu.pipeline_mode<synchronous>, transform_indices = @transform_6, window_bounds = array<i64: 384, 384>}, {pipeline_mode = #tpu.pipeline_mode<synchronous>, transform_indices = @transform_7, window_bounds = array<i64: 1, 384>}, {pipeline_mode = #tpu.pipeline_mode<synchronous>, transform_indices = @transform_8, window_bounds = array<i64: 2, 768>}, {pipeline_mode = #tpu.pipeline_mode<synchronous>, transform_indices = @transform_9, window_bounds = array<i64: 1, 1>}]} {
    %c0 = arith.constant 0 : index
    %c0_0 = arith.constant 0 : index
    %c0_1 = arith.constant 0 : index
    %0 = vector.load %arg1[%c0, %c0_0, %c0_1] : memref<2x4x384xbf16, #tpu.memory_space<vmem>>, vector<2x4x384xbf16>
    %1 = arith.extf %0 : vector<2x4x384xbf16> to vector<2x4x384xf32>
    %c0_2 = arith.constant 0 : index
    %c0_3 = arith.constant 0 : index
    %c0_4 = arith.constant 0 : index
    %2 = vector.load %arg2[%c0_2, %c0_3, %c0_4] : memref<2x4x384xbf16, #tpu.memory_space<vmem>>, vector<2x4x384xbf16>
    %3 = arith.extf %2 : vector<2x4x384xbf16> to vector<2x4x384xf32>
    %4 = arith.addf %1, %3 : vector<2x4x384xf32>
    %c0_5 = arith.constant 0 : index
    %c0_6 = arith.constant 0 : index
    %c0_7 = arith.constant 0 : index
    %5 = vector.load %arg3[%c0_5, %c0_6, %c0_7] : memref<2x8x384xbf16, #tpu.memory_space<vmem>>, vector<2x8x384xbf16>
    %6 = arith.extf %5 : vector<2x8x384xbf16> to vector<2x8x384xf32>
    %c0_8 = arith.constant 0 : index
    %c0_9 = arith.constant 0 : index
    %c0_10 = arith.constant 0 : index
    %7 = vector.load %arg4[%c0_8, %c0_9, %c0_10] : memref<2x8x384xbf16, #tpu.memory_space<vmem>>, vector<2x8x384xbf16>
    %8 = arith.extf %7 : vector<2x8x384xbf16> to vector<2x8x384xf32>
    %9 = arith.addf %6, %8 : vector<2x8x384xf32>
    %c0_11 = arith.constant 0 : index
    %c0_12 = arith.constant 0 : index
    %10 = vector.load %arg5[%c0_11, %c0_12] : memref<2x4xf32, #tpu.memory_space<vmem>>, vector<2x4xf32>
    %cst = arith.constant 1.000000e+00 : f32
    %11 = vector.broadcast %cst : f32 to vector<2x4xf32>
    %12 = arith.subf %11, %10 : vector<2x4xf32>
    %c0_13 = arith.constant 0 : index
    %c0_14 = arith.constant 0 : index
    %13 = vector.load %arg6[%c0_13, %c0_14] : memref<2x8xf32, #tpu.memory_space<vmem>>, vector<2x8xf32>
    %cst_15 = arith.constant 1.000000e+00 : f32
    %14 = vector.broadcast %cst_15 : f32 to vector<2x8xf32>
    %15 = arith.subf %14, %13 : vector<2x8xf32>
    %16 = vector.shape_cast %12 : vector<2x4xf32> to vector<2x4x1xf32>
    %17 = vector.broadcast %16 : vector<2x4x1xf32> to vector<2x4x384xf32>
    %18 = arith.mulf %4, %17 : vector<2x4x384xf32>
    %cst_16 = arith.constant dense<0.000000e+00> : vector<2x384xf32>
    %19 = vector.multi_reduction <add>, %18, %cst_16 [1] : vector<2x4x384xf32> to vector<2x384xf32>
    %cst_17 = arith.constant dense<0.000000e+00> : vector<2xf32>
    %20 = vector.multi_reduction <add>, %12, %cst_17 [1] : vector<2x4xf32> to vector<2xf32>
    %21 = vector.shape_cast %20 : vector<2xf32> to vector<2x1xf32>
    %cst_18 = arith.constant 1.000000e+00 : f32
    %22 = vector.broadcast %cst_18 : f32 to vector<2x1xf32>
    %23 = arith.maximumf %21, %22 : vector<2x1xf32>
    %24 = vector.broadcast %23 : vector<2x1xf32> to vector<2x384xf32>
    %25 = arith.divf %19, %24 : vector<2x384xf32>
    %26 = vector.shape_cast %15 : vector<2x8xf32> to vector<2x8x1xf32>
    %27 = vector.broadcast %26 : vector<2x8x1xf32> to vector<2x8x384xf32>
    %28 = arith.mulf %9, %27 : vector<2x8x384xf32>
    %cst_19 = arith.constant dense<0.000000e+00> : vector<2x384xf32>
    %29 = vector.multi_reduction <add>, %28, %cst_19 [1] : vector<2x8x384xf32> to vector<2x384xf32>
    %cst_20 = arith.constant dense<0.000000e+00> : vector<2xf32>
    %30 = vector.multi_reduction <add>, %15, %cst_20 [1] : vector<2x8xf32> to vector<2xf32>
    %31 = vector.shape_cast %30 : vector<2xf32> to vector<2x1xf32>
    %cst_21 = arith.constant 1.000000e+00 : f32
    %32 = vector.broadcast %cst_21 : f32 to vector<2x1xf32>
    %33 = arith.maximumf %31, %32 : vector<2x1xf32>
    %34 = vector.broadcast %33 : vector<2x1xf32> to vector<2x384xf32>
    %35 = arith.divf %29, %34 : vector<2x384xf32>
    %36 = tpu.concatenate %25, %35 in 1 : vector<2x384xf32>, vector<2x384xf32> -> vector<2x768xf32>
    %37 = arith.truncf %36 : vector<2x768xf32> to vector<2x768xbf16>
    %c0_22 = arith.constant 0 : index
    %c0_23 = arith.constant 0 : index
    %38 = vector.load %arg9[%c0_22, %c0_23] : memref<2x768xbf16, #tpu.memory_space<vmem>>, vector<2x768xbf16>
    tpu.vector_store %arg9[%c0_22, %c0_23], %37 {strides = array<i32>} : memref<2x768xbf16, #tpu.memory_space<vmem>>, vector<2x768xbf16>,
    %39 = arith.truncf %35 : vector<2x384xf32> to vector<2x384xbf16>
    %c0_24 = arith.constant 0 : index
    %c0_25 = arith.constant 0 : index
    %40 = vector.load %arg7[%c0_24, %c0_25] : memref<384x384xbf16, #tpu.memory_space<vmem>>, vector<384x384xbf16>
    %cst_26 = arith.constant dense<0.000000e+00> : vector<2x384xf32>
    %41 = tpu.matmul %39, %40, %cst_26 {dimension_numbers = #tpu.dot_dimension_numbers<[1], [0], [0], [1], [0, 0, 1, 1], [], []>} : vector<2x384xbf16>, vector<384x384xbf16>, vector<2x384xf32> -> vector<2x384xf32>
    %c0_27 = arith.constant 0 : index
    %c0_28 = arith.constant 0 : index
    %42 = vector.load %arg8[%c0_27, %c0_28] : memref<1x384xf32, #tpu.memory_space<vmem>>, vector<1x384xf32>
    %43 = vector.broadcast %42 : vector<1x384xf32> to vector<2x384xf32>
    %44 = arith.addf %41, %43 : vector<2x384xf32>
    %45 = arith.subf %44, %25 : vector<2x384xf32>
    %46 = arith.mulf %45, %45 : vector<2x384xf32>
    %47 = vector.shape_cast %46 : vector<2x384xf32> to vector<1x2x384xf32>
    %cst_29 = arith.constant dense<0.000000e+00> : vector<1xf32>
    %48 = vector.multi_reduction <add>, %47, %cst_29 [1, 2] : vector<1x2x384xf32> to vector<1xf32>
    %49 = vector.shape_cast %48 : vector<1xf32> to vector<1x1x1xf32>
    %50 = vector.extract %49[0, 0, 0] : f32 from vector<1x1x1xf32>
    %cst_30 = arith.constant 7.680000e+02 : f32
    %51 = arith.divf %50, %cst_30 : f32
    %52 = vector.broadcast %51 : f32 to vector<1x1xf32>
    %c0_31 = arith.constant 0 : index
    %c0_32 = arith.constant 0 : index
    %53 = vector.load %arg10[%c0_31, %c0_32] : memref<1x1xf32, #tpu.memory_space<vmem>>, vector<1x1xf32>
    tpu.vector_store %arg10[%c0_31, %c0_32], %52 {strides = array<i32>} : memref<1x1xf32, #tpu.memory_space<vmem>>, vector<1x1xf32>,
    return
  }
  func.func @transform_0(%arg0: i32) -> (i32, i32, i32) {
    %c0_i32 = arith.constant 0 : i32
    %c0_i32_0 = arith.constant 0 : i32
    %c0_i32_1 = arith.constant 0 : i32
    %c0_i32_2 = arith.constant 0 : i32
    return %c0_i32, %c0_i32_0, %c0_i32_1 : i32, i32, i32
  }
  func.func @transform_1(%arg0: i32) -> (i32, i32, i32) {
    %c0_i32 = arith.constant 0 : i32
    %c0_i32_0 = arith.constant 0 : i32
    %c0_i32_1 = arith.constant 0 : i32
    %c0_i32_2 = arith.constant 0 : i32
    return %c0_i32, %c0_i32_0, %c0_i32_1 : i32, i32, i32
  }
  func.func @transform_2(%arg0: i32) -> (i32, i32, i32) {
    %c0_i32 = arith.constant 0 : i32
    %c0_i32_0 = arith.constant 0 : i32
    %c0_i32_1 = arith.constant 0 : i32
    %c0_i32_2 = arith.constant 0 : i32
    return %c0_i32, %c0_i32_0, %c0_i32_1 : i32, i32, i32
  }
  func.func @transform_3(%arg0: i32) -> (i32, i32, i32) {
    %c0_i32 = arith.constant 0 : i32
    %c0_i32_0 = arith.constant 0 : i32
    %c0_i32_1 = arith.constant 0 : i32
    %c0_i32_2 = arith.constant 0 : i32
    return %c0_i32, %c0_i32_0, %c0_i32_1 : i32, i32, i32
  }
  func.func @transform_4(%arg0: i32) -> (i32, i32) {
    %c0_i32 = arith.constant 0 : i32
    %c0_i32_0 = arith.constant 0 : i32
    %c0_i32_1 = arith.constant 0 : i32
    return %c0_i32, %c0_i32_0 : i32, i32
  }
  func.func @transform_5(%arg0: i32) -> (i32, i32) {
    %c0_i32 = arith.constant 0 : i32
    %c0_i32_0 = arith.constant 0 : i32
    %c0_i32_1 = arith.constant 0 : i32
    return %c0_i32, %c0_i32_0 : i32, i32
  }
  func.func @transform_6(%arg0: i32) -> (i32, i32) {
    %c0_i32 = arith.constant 0 : i32
    %c0_i32_0 = arith.constant 0 : i32
    %c0_i32_1 = arith.constant 0 : i32
    return %c0_i32, %c0_i32_0 : i32, i32
  }
  func.func @transform_7(%arg0: i32) -> (i32, i32) {
    %c0_i32 = arith.constant 0 : i32
    %c0_i32_0 = arith.constant 0 : i32
    %c0_i32_1 = arith.constant 0 : i32
    return %c0_i32, %c0_i32_0 : i32, i32
  }
  func.func @transform_8(%arg0: i32) -> (i32, i32) {
    %c0_i32 = arith.constant 0 : i32
    %c0_i32_0 = arith.constant 0 : i32
    %c0_i32_1 = arith.constant 0 : i32
    return %c0_i32, %c0_i32_0 : i32, i32
  }
  func.func @transform_9(%arg0: i32) -> (i32, i32) {
    %c0_i32 = arith.constant 0 : i32
    %c0_i32_0 = arith.constant 0 : i32
    %c0_i32_1 = arith.constant 0 : i32
    return %c0_i32, %c0_i32_0 : i32, i32
  }
}

</mosaic_0001>

<bundles_post_ra>
// kernel: vqa_backbone_forward.10
= control target key start
LH: loop header
LB: loop body
LE: loop exit
PB: predicated region body
PF: predicated region fallthrough
CT: control target
= control target key end

     0   :  { %s2173_s1 = inlined_call_operand.vmem [shape: bf16[768,384], index: 1, kind: input, shape index: {}]   ;;  %s2174_s0 = inlined_call_operand.vmem [shape: bf16[8,768], index: 0, kind: input, shape index: {}]   ;;  %s2175_s2 = inlined_call_operand.vmem [shape: f32[1,384], index: 2, kind: input, shape index: {}]   ;;  %s2176_s3 = inlined_call_operand.vmem [shape: f32[8,384], index: 3, kind: output, shape index: {}]  }
   0x1   :  { %v1482_v0 = vld [vmem:[%s2173_s1 + $0xac] ss:$12 sps:$4 sm:$0xff]   ;;  %v1486_v2 = vld [vmem:[%s2173_s1 + $0xa8] ss:$12 sps:$4 sm:$0xff]   ;;  %v1492_v6 = vld [vmem:[%s2173_s1 + $0x90] ss:$12 sps:$4 sm:$0xff]  }
   0x2   :  { %v1484_v1 = vld [vmem:[%s2173_s1 + $0x22c] ss:$12 sps:$4 sm:$0xff]   ;;  %1016 = vmatprep.subr.bf16.mxu0 %v1482_v0  ;;  %v1487_v3 = vld [vmem:[%s2173_s1 + $0x228] ss:$12 sps:$4 sm:$0xff]   ;;  %v1493_v7 = vld [vmem:[%s2173_s1 + $0x210] ss:$12 sps:$4 sm:$0xff]  }
   0x3   :  { %1057 = vmatprep.subr.bf16.mxu1 %v1484_v1  ;;  %v1488_v4 = vld [vmem:[%s2173_s1 + $0x94] ss:$12 sps:$4 sm:$0xff]   ;;  %1017 = vmatpush1.bf16.msra.mxu0 %v1486_v2  ;;  %v1494_v8 = vld [vmem:[%s2173_s1 + $0x7c] ss:$12 sps:$4 sm:$0xff]   ;;  %v1498_v10 = vld [vmem:[%s2173_s1 + $0x78] ss:$12 sps:$4 sm:$0xff]  }
   0x4   :  { %1058 = vmatpush1.bf16.msra.mxu1 %v1487_v3  ;;  %v1490_v5 = vld [vmem:[%s2173_s1 + $0x214] ss:$12 sps:$4 sm:$0xff]   ;;  %1018 = vmatprep.subr.bf16.mxu0 %v1488_v4  ;;  %v1496_v9 = vld [vmem:[%s2173_s1 + $0x1fc] ss:$12 sps:$4 sm:$0xff]   ;;  %v1499_v11 = vld [vmem:[%s2173_s1 + $0x1f8] ss:$12 sps:$4 sm:$0xff]  }
   0x5   :  { %1059 = vmatprep.subr.bf16.mxu1 %v1490_v5  ;;  %v1500_v12 = vld [vmem:[%s2173_s1 + $0x64] ss:$12 sps:$4 sm:$0xff]   ;;  %v1504_v14 = vld [vmem:[%s2173_s1 + $0x60] ss:$12 sps:$4 sm:$0xff]   ;;  %v1510_v18 = vld [vmem:[%s2173_s1 + $0x48] ss:$12 sps:$4 sm:$0xff]  }
   0x6   :  { %v1502_v13 = vld [vmem:[%s2173_s1 + $0x1e4] ss:$12 sps:$4 sm:$0xff]   ;;  %v1505_v15 = vld [vmem:[%s2173_s1 + $0x1e0] ss:$12 sps:$4 sm:$0xff]   ;;  %v1511_v19 = vld [vmem:[%s2173_s1 + $0x1c8] ss:$12 sps:$4 sm:$0xff]  }
   0x7   :  { %1019 = vmatpush1.bf16.msra.mxu0 %v1492_v6  ;;  %v1506_v16 = vld [vmem:[%s2173_s1 + $0x4c] ss:$12 sps:$4 sm:$0xff]   ;;  %v1512_v20 = vld [vmem:[%s2173_s1 + $0x34] ss:$12 sps:$4 sm:$0xff]   ;;  %v1516_v22 = vld [vmem:[%s2173_s1 + $0x30] ss:$12 sps:$4 sm:$0xff]  }
   0x8   :  { %1060 = vmatpush1.bf16.msra.mxu1 %v1493_v7  ;;  %1020 = vmatprep.subr.bf16.mxu0 %v1494_v8  ;;  %v1508_v17 = vld [vmem:[%s2173_s1 + $0x1cc] ss:$12 sps:$4 sm:$0xff]   ;;  %v1514_v21 = vld [vmem:[%s2173_s1 + $0x1b4] ss:$12 sps:$4 sm:$0xff]   ;;  %v1517_v23 = vld [vmem:[%s2173_s1 + $0x1b0] ss:$12 sps:$4 sm:$0xff]  }
   0x9   :  { %1061 = vmatprep.subr.bf16.mxu1 %v1496_v9  ;;  %v1518_v24 = vld [vmem:[%s2173_s1 + $0x1c] ss:$12 sps:$4 sm:$0xff]   ;;  %v1522_v26 = vld [vmem:[%s2173_s1 + $0x18] ss:$12 sps:$4 sm:$0xff]   ;;  %v1528_v30 = vld [vmem:[%s2173_s1] ss:$12 sps:$4 sm:$0xff]  }
   0xa   :  { %v1520_v25 = vld [vmem:[%s2173_s1 + $0x19c] ss:$12 sps:$4 sm:$0xff]   ;;  %v1523_v27 = vld [vmem:[%s2173_s1 + $0x198] ss:$12 sps:$4 sm:$0xff]   ;;  %v1529_v31 = vld [vmem:[%s2173_s1 + $0x180] ss:$12 sps:$4 sm:$0xff]  }
   0xb   :  { %1021 = vmatpush1.bf16.msra.mxu0 %v1498_v10  ;;  %v1524_v28 = vld [vmem:[%s2173_s1 + $0x4] ss:$12 sps:$4 sm:$0xff]   ;;  %v1530_v32 = vld [vmem:[%s2173_s1 + $0x16c] ss:$12 sps:$4 sm:$0xff]   ;;  %v1534_v34 = vld [vmem:[%s2173_s1 + $0x168] ss:$12 sps:$4 sm:$0xff]  }
   0xc   :  { %1062 = vmatpush1.bf16.msra.mxu1 %v1499_v11  ;;  %1022 = vmatprep.subr.bf16.mxu0 %v1500_v12  ;;  %v1526_v29 = vld [vmem:[%s2173_s1 + $0x184] ss:$12 sps:$4 sm:$0xff]   ;;  %v1532_v33 = vld [vmem:[%s2173_s1 + $0x2ec] ss:$12 sps:$4 sm:$0xff]   ;;  %v1535_v35 = vld [vmem:[%s2173_s1 + $0x2e8] ss:$12 sps:$4 sm:$0xff]  }
   0xd   :  { %1063 = vmatprep.subr.bf16.mxu1 %v1502_v13  ;;  %v1536_v36 = vld [vmem:[%s2173_s1 + $0x154] ss:$12 sps:$4 sm:$0xff]   ;;  %v1540_v38 = vld [vmem:[%s2173_s1 + $0x150] ss:$12 sps:$4 sm:$0xff]   ;;  %v1546_v42 = vld [vmem:[%s2173_s1 + $0x138] ss:$12 sps:$4 sm:$0xff]  }
   0xe   :  { %v1538_v37 = vld [vmem:[%s2173_s1 + $0x2d4] ss:$12 sps:$4 sm:$0xff]   ;;  %v1541_v39 = vld [vmem:[%s2173_s1 + $0x2d0] ss:$12 sps:$4 sm:$0xff]   ;;  %v1547_v43 = vld [vmem:[%s2173_s1 + $0x2b8] ss:$12 sps:$4 sm:$0xff]  }
   0xf   :  { %1023 = vmatpush1.bf16.msra.mxu0 %v1504_v14  ;;  %v1542_v40 = vld [vmem:[%s2173_s1 + $0x13c] ss:$12 sps:$4 sm:$0xff]   ;;  %v1548_v44 = vld [vmem:[%s2173_s1 + $0x124] ss:$12 sps:$4 sm:$0xff]   ;;  %v1552_v46 = vld [vmem:[%s2173_s1 + $0x120] ss:$12 sps:$4 sm:$0xff]  }
  0x10   :  { %1064 = vmatpush1.bf16.msra.mxu1 %v1505_v15  ;;  %1024 = vmatprep.subr.bf16.mxu0 %v1506_v16  ;;  %v1544_v41 = vld [vmem:[%s2173_s1 + $0x2bc] ss:$12 sps:$4 sm:$0xff]   ;;  %v1550_v45 = vld [vmem:[%s2173_s1 + $0x2a4] ss:$12 sps:$4 sm:$0xff]   ;;  %v1553_v50 = vld [vmem:[%s2173_s1 + $0x2a0] ss:$12 sps:$4 sm:$0xff]  }
  0x11   :  { %1065 = vmatprep.subr.bf16.mxu1 %v1508_v17  ;;  %v15_v47 = vld [vmem:[%s2174_s0] sm:$0xff]  ;;  %v16_v49 = vld [vmem:[%s2174_s0 + $0x8] sm:$0xff]  ;;  %v1564_v58 = vld [vmem:[%s2173_s1 + $0xf0] ss:$12 sps:$4 sm:$0xff]  }
  0x12   :  { %v1844_v48 = vcombine.high %v15_v47, %v15_v47  ;;  %v1554_v51 = vld [vmem:[%s2173_s1 + $0x10c] ss:$12 sps:$4 sm:$0xff]   ;;  %v1855_v52 = vcombine.high %v16_v49, %v16_v49  ;;  %v1558_v54 = vld [vmem:[%s2173_s1 + $0x108] ss:$12 sps:$4 sm:$0xff]   ;;  %v1565_v59 = vld [vmem:[%s2173_s1 + $0x270] ss:$12 sps:$4 sm:$0xff]   ;;  %v1910_v6 = vcombine.low %v15_v47, %v15_v47  ;;  %v1912_v7 = vcombine.low %v16_v49, %v16_v49 }
  0x13   :  { %1025 = vmatpush1.bf16.msra.mxu0 %v1510_v18  ;;  %v1556_v53 = vld [vmem:[%s2173_s1 + $0x28c] ss:$12 sps:$4 sm:$0xff]   ;;  %v1559_v55 = vld [vmem:[%s2173_s1 + $0x288] ss:$12 sps:$4 sm:$0xff]   ;;  %v1572_v0 = vld [vmem:[%s2173_s1 + $0xc4] ss:$12 sps:$4 sm:$0xff]  }
  0x14   :  { %1066 = vmatpush1.bf16.msra.mxu1 %v1511_v19  ;;  %1026 = vmatprep.subr.bf16.mxu0 %v1512_v20  ;;  %v1560_v56 = vld [vmem:[%s2173_s1 + $0xf4] ss:$12 sps:$4 sm:$0xff]   ;;  %v1566_v60 = vld [vmem:[%s2173_s1 + $0xdc] ss:$12 sps:$4 sm:$0xff]   ;;  %v1570_v62 = vld [vmem:[%s2173_s1 + $0xd8] ss:$12 sps:$4 sm:$0xff]  }
  0x15   :  { %1067 = vmatprep.subr.bf16.mxu1 %v1514_v21  ;;  %1048 = vmatprep.mubr.bf16.mxu0 %v1844_v48  ;;  %v1562_v57 = vld [vmem:[%s2173_s1 + $0x274] ss:$12 sps:$4 sm:$0xff]   ;;  %v1568_v61 = vld [vmem:[%s2173_s1 + $0x25c] ss:$12 sps:$4 sm:$0xff]   ;;  %v1571_v63 = vld [vmem:[%s2173_s1 + $0x258] ss:$12 sps:$4 sm:$0xff]  }
  0x16   :  { %1089 = vmatprep.mubr.bf16.mxu1 %v1855_v52  ;;  %v1574_v1 = vld [vmem:[%s2173_s1 + $0x244] ss:$12 sps:$4 sm:$0xff]   ;;  %v1576_v2 = vld [vmem:[%s2173_s1 + $0xc0] ss:$12 sps:$4 sm:$0xff]   ;;  %v1582_v8 = vld [vmem:[%s2173_s1 + $0x3a8] ss:$12 sps:$4 sm:$0xff]  }
  0x17   :  { %1027 = vmatpush1.bf16.msra.mxu0 %v1516_v22  ;;  %v1577_v3 = vld [vmem:[%s2173_s1 + $0x240] ss:$12 sps:$4 sm:$0xff]   ;;  %v1585_v5 = vld [vmem:[%s2173_s1 + $0x170] ss:$12 sps:$4 sm:$0xff]   ;;  %v1590_v11 = vld [vmem:[%s2173_s1 + $0x158] ss:$12 sps:$4 sm:$0xff]  }
  0x18   :  { %1068 = vmatpush1.bf16.msra.mxu1 %v1517_v23  ;;  %1028 = vmatprep.subr.bf16.mxu0 %v1518_v24  ;;  %v1584_v4 = vld [vmem:[%s2173_s1 + $0x3ac] ss:$12 sps:$4 sm:$0xff]   ;;  %v1586_v9 = vld [vmem:[%s2173_s1 + $0xb0] ss:$12 sps:$4 sm:$0xff]   ;;  %v1589_v10 = vld [vmem:[%s2173_s1 + $0x394] ss:$12 sps:$4 sm:$0xff]  }
  0x19   :  { %1069 = vmatprep.subr.bf16.mxu1 %v1520_v25  ;;  %v1587_v12 = vld [vmem:[%s2173_s1 + $0x390] ss:$12 sps:$4 sm:$0xff]   ;;  %v1591_v13 = vld [vmem:[%s2173_s1 + $0x98] ss:$12 sps:$4 sm:$0xff]   ;;  %v1595_v15 = vld [vmem:[%s2173_s1 + $0x140] ss:$12 sps:$4 sm:$0xff]  }
  0x1a   :  { %v1594_v14 = vld [vmem:[%s2173_s1 + $0x37c] ss:$12 sps:$4 sm:$0xff]   ;;  %v1592_v16 = vld [vmem:[%s2173_s1 + $0x378] ss:$12 sps:$4 sm:$0xff]   ;;  %v1596_v17 = vld [vmem:[%s2173_s1 + $0x80] ss:$12 sps:$4 sm:$0xff]  }
  0x1b   :  { %1029 = vmatpush1.bf16.msra.mxu0 %v1522_v26  ;;  %v1599_v18 = vld [vmem:[%s2173_s1 + $0x364] ss:$12 sps:$4 sm:$0xff]   ;;  %v1600_v19 = vld [vmem:[%s2173_s1 + $0x128] ss:$12 sps:$4 sm:$0xff]   ;;  %v1597_v20 = vld [vmem:[%s2173_s1 + $0x360] ss:$12 sps:$4 sm:$0xff]  }
  0x1c   :  { %1070 = vmatpush1.bf16.msra.mxu1 %v1523_v27  ;;  %1030 = vmatprep.subr.bf16.mxu0 %v1524_v28  ;;  %v1601_v21 = vld [vmem:[%s2173_s1 + $0x68] ss:$12 sps:$4 sm:$0xff]   ;;  %v1604_v22 = vld [vmem:[%s2173_s1 + $0x34c] ss:$12 sps:$4 sm:$0xff]   ;;  %v1605_v23 = vld [vmem:[%s2173_s1 + $0x110] ss:$12 sps:$4 sm:$0xff]  }
  0x1d   :  { %1071 = vmatprep.subr.bf16.mxu1 %v1526_v29  ;;  %v1602_v24 = vld [vmem:[%s2173_s1 + $0x348] ss:$12 sps:$4 sm:$0xff]   ;;  %v1606_v25 = vld [vmem:[%s2173_s1 + $0x50] ss:$12 sps:$4 sm:$0xff]   ;;  %v1610_v27 = vld [vmem:[%s2173_s1 + $0xf8] ss:$12 sps:$4 sm:$0xff]  }
  0x1e   :  { %v1609_v26 = vld [vmem:[%s2173_s1 + $0x334] ss:$12 sps:$4 sm:$0xff]   ;;  %v1607_v28 = vld [vmem:[%s2173_s1 + $0x330] ss:$12 sps:$4 sm:$0xff]   ;;  %v1611_v29 = vld [vmem:[%s2173_s1 + $0x38] ss:$12 sps:$4 sm:$0xff]  }
  0x1f   :  { %1031 = vmatpush1.bf16.msra.mxu0 %v1528_v30  ;;  %v1614_v30 = vld [vmem:[%s2173_s1 + $0x31c] ss:$12 sps:$4 sm:$0xff]   ;;  %v1631_v47 = vld [vmem:[%s2173_s1 + $0x218] ss:$12 sps:$4 sm:$0xff]   ;;  %v1635_v49 = vld [vmem:[%s2173_s1 + $0x2c0] ss:$12 sps:$4 sm:$0xff]  }
  0x20   :  { %1072 = vmatpush1.bf16.msra.mxu1 %v1529_v31  ;;  %1032 = vmatprep.subr.bf16.mxu0 %v1530_v32  ;;  %v1615_v31 = vld [vmem:[%s2173_s1 + $0xe0] ss:$12 sps:$4 sm:$0xff]   ;;  %v1612_v32 = vld [vmem:[%s2173_s1 + $0x318] ss:$12 sps:$4 sm:$0xff]  }
  0x21   :  { %1073 = vmatprep.subr.bf16.mxu1 %v1532_v33  ;;  %v1616_v33 = vld [vmem:[%s2173_s1 + $0x20] ss:$12 sps:$4 sm:$0xff]  }
  0x23   :  { %1033 = vmatpush2.bf16.msra.mxu0 %v1534_v34  ;;  %v1619_v34 = vld [vmem:[%s2173_s1 + $0x304] ss:$12 sps:$4 sm:$0xff]  }
  0x24   :  { %1074 = vmatpush2.bf16.msra.mxu1 %v1535_v35  ;;  %1034 = vmatprep.subr.bf16.mxu0 %v1536_v36  ;;  %v1620_v35 = vld [vmem:[%s2173_s1 + $0xc8] ss:$12 sps:$4 sm:$0xff]   ;;  %v1617_v36 = vld [vmem:[%s2173_s1 + $0x300] ss:$12 sps:$4 sm:$0xff]  }
  0x25   :  { %1075 = vmatprep.subr.bf16.mxu1 %v1538_v37  ;;  %v1621_v37 = vld [vmem:[%s2173_s1 + $0x8] ss:$12 sps:$4 sm:$0xff]  }
  0x27   :  { %1035 = vmatpush2.bf16.msra.mxu0 %v1540_v38  ;;  %v1624_v38 = vld [vmem:[%s2173_s1 + $0x46c] ss:$12 sps:$4 sm:$0xff]  }
  0x28   :  { %1076 = vmatpush2.bf16.msra.mxu1 %v1541_v39  ;;  %1036 = vmatprep.subr.bf16.mxu0 %v1542_v40  ;;  %v1625_v39 = vld [vmem:[%s2173_s1 + $0x2f0] ss:$12 sps:$4 sm:$0xff]   ;;  %v1622_v40 = vld [vmem:[%s2173_s1 + $0x468] ss:$12 sps:$4 sm:$0xff]  }
  0x29   :  { %1077 = vmatprep.subr.bf16.mxu1 %v1544_v41  ;;  %v1626_v41 = vld [vmem:[%s2173_s1 + $0x230] ss:$12 sps:$4 sm:$0xff]  }
  0x2b   :  { %1037 = vmatpush2.bf16.msra.mxu0 %v1546_v42  ;;  %v1629_v42 = vld [vmem:[%s2173_s1 + $0x454] ss:$12 sps:$4 sm:$0xff]  }
  0x2c   :  { %1078 = vmatpush2.bf16.msra.mxu1 %v1547_v43  ;;  %1038 = vmatprep.subr.bf16.mxu0 %v1548_v44  ;;  %v17_v43 = vld [vmem:[%s2174_s0 + $0x10] sm:$0xff]  ;;  %v1630_v44 = vld [vmem:[%s2173_s1 + $0x2d8] ss:$12 sps:$4 sm:$0xff]  }
  0x2d   :  { %1079 = vmatprep.subr.bf16.mxu1 %v1550_v45  ;;  %v2028_v45 = vcombine.high %v17_v43, %v17_v43 }
  0x2f   :  { %1039 = vmatpush2.bf16.msra.mxu0 %v1552_v46  ;;  %v1627_v46 = vld [vmem:[%s2173_s1 + $0x450] ss:$12 sps:$4 sm:$0xff]  }
  0x30   :  { %1080 = vmatpush2.bf16.msra.mxu1 %v1553_v50  ;;  %1040 = vmatprep.subr.bf16.mxu0 %v1554_v51  ;;  %v1632_v50 = vld [vmem:[%s2173_s1 + $0x438] ss:$12 sps:$4 sm:$0xff]   ;;  %v1636_v51 = vld [vmem:[%s2173_s1 + $0x200] ss:$12 sps:$4 sm:$0xff]  }
  0x31   :  { %1081 = vmatprep.subr.bf16.mxu1 %v1556_v53  ;;  %v1639_v53 = vld [vmem:[%s2173_s1 + $0x424] ss:$12 sps:$4 sm:$0xff]  }
  0x33   :  { %1041 = vmatpush2.bf16.msra.mxu0 %v1558_v54  ;;  %v1640_v54 = vld [vmem:[%s2173_s1 + $0x2a8] ss:$12 sps:$4 sm:$0xff]  }
  0x34   :  { %1082 = vmatpush2.bf16.msra.mxu1 %v1559_v55  ;;  %1042 = vmatprep.subr.bf16.mxu0 %v1560_v56  ;;  %v1641_v55 = vld [vmem:[%s2173_s1 + $0x1e8] ss:$12 sps:$4 sm:$0xff]   ;;  %v1644_v56 = vld [vmem:[%s2173_s1 + $0x40c] ss:$12 sps:$4 sm:$0xff]  }
  0x35   :  { %1083 = vmatprep.subr.bf16.mxu1 %v1562_v57  ;;  %v1645_v57 = vld [vmem:[%s2173_s1 + $0x290] ss:$12 sps:$4 sm:$0xff]  }
  0x37   :  { %1043 = vmatpush2.bf16.msra.mxu0 %v1564_v58  ;;  %v1642_v58 = vld [vmem:[%s2173_s1 + $0x408] ss:$12 sps:$4 sm:$0xff]  }
  0x38   :  { %1084 = vmatpush2.bf16.msra.mxu1 %v1565_v59  ;;  %1044 = vmatprep.subr.bf16.mxu0 %v1566_v60  ;;  %v1646_v59 = vld [vmem:[%s2173_s1 + $0x1d0] ss:$12 sps:$4 sm:$0xff]   ;;  %v1649_v60 = vld [vmem:[%s2173_s1 + $0x3f4] ss:$12 sps:$4 sm:$0xff]  }
  0x39   :  { %1085 = vmatprep.subr.bf16.mxu1 %v1568_v61  ;;  %v1650_v61 = vld [vmem:[%s2173_s1 + $0x278] ss:$12 sps:$4 sm:$0xff]  }
  0x3b   :  { %1045 = vmatpush2.bf16.msra.mxu0 %v1570_v62  ;;  %v1647_v62 = vld [vmem:[%s2173_s1 + $0x3f0] ss:$12 sps:$4 sm:$0xff]  }
  0x3c   :  { %1086 = vmatpush2.bf16.msra.mxu1 %v1571_v63  ;;  %1046 = vmatprep.subr.bf16.mxu0 %v1572_v0  ;;  %v1651_v63 = vld [vmem:[%s2173_s1 + $0x1b8] ss:$12 sps:$4 sm:$0xff]   ;;  %v1654_v0 = vld [vmem:[%s2173_s1 + $0x3dc] ss:$12 sps:$4 sm:$0xff]  }
  0x3d   :  { %1087 = vmatprep.subr.bf16.mxu1 %v1574_v1  ;;  %v1655_v1 = vld [vmem:[%s2173_s1 + $0x260] ss:$12 sps:$4 sm:$0xff]  }
  0x3f   :  { %1047 = vmatpush2.bf16.msra.mxu0 %v1576_v2  ;;  %v1652_v2 = vld [vmem:[%s2173_s1 + $0x3d8] ss:$12 sps:$4 sm:$0xff]  }
  0x40   :  { %1088 = vmatpush2.bf16.msra.mxu1 %v1577_v3  ;;  %1098 = vmatprep.subr.bf16.mxu0 %v1584_v4  ;;  %v1656_v3 = vld [vmem:[%s2173_s1 + $0x1a0] ss:$12 sps:$4 sm:$0xff]   ;;  %v1659_v4 = vld [vmem:[%s2173_s1 + $0x3c4] ss:$12 sps:$4 sm:$0xff]  }
  0x41   :  { %1416 = vmatprep.subr.bf16.mxu1 %v1585_v5  ;;  %v1660_v5 = vld [vmem:[%s2173_s1 + $0x248] ss:$12 sps:$4 sm:$0xff]  }
  0x42   :  { %1049 = vmatmul.mubr.bf16.vlgmr.msra.gmra.mxu0 %v1910_v6 }
  0x43   :  { %1090 = vmatmul.mubr.bf16.vlgmr.msra.gmra.mxu1 %v1912_v7  ;;  %1099 = vmatpush1.bf16.msra.mxu0 %v1582_v8  ;;  %v1661_v8 = vld [vmem:[%s2173_s1 + $0x188] ss:$12 sps:$4 sm:$0xff]  }
  0x44   :  { %1417 = vmatpush3.bf16.msra.mxu1 %v1586_v9  ;;  %1100 = vmatprep.subr.bf16.mxu0 %v1589_v10  ;;  %v1664_v9 = vld [vmem:[%s2173_s1 + $0x470] ss:$12 sps:$4 sm:$0xff]   ;;  %v1270_v10 = vcombine.low %v17_v43, %v17_v43 }
  0x45   :  { %1418 = vmatprep.subr.bf16.mxu1 %v1590_v11  ;;  %1171 = vmatprep.mubr.bf16.mxu1 %v1844_v48  ;;  %v1634_v48 = vld [vmem:[%s2173_s1 + $0x43c] ss:$12 sps:$4 sm:$0xff]  }
  0x46   :  { %1130 = vmatprep.mubr.bf16.mxu0 %v2028_v45  ;;  %v1665_v11 = vld [vmem:[%s2173_s1 + $0x3b0] ss:$12 sps:$4 sm:$0xff]  }
  0x47   :  { %1101 = vmatpush1.bf16.msra.mxu0 %v1587_v12  ;;  %v1666_v12 = vld [vmem:[%s2173_s1 + $0x458] ss:$12 sps:$4 sm:$0xff]  }
  0x48   :  { %1419 = vmatpush3.bf16.msra.mxu1 %v1591_v13  ;;  %1102 = vmatprep.subr.bf16.mxu0 %v1594_v14  ;;  %v1667_v13 = vld [vmem:[%s2173_s1 + $0x398] ss:$12 sps:$4 sm:$0xff]   ;;  %v1668_v14 = vld [vmem:[%s2173_s1 + $0x440] ss:$12 sps:$4 sm:$0xff]  }
  0x49   :  { %1420 = vmatprep.subr.bf16.mxu1 %v1595_v15  ;;  %v1669_v15 = vld [vmem:[%s2173_s1 + $0x380] ss:$12 sps:$4 sm:$0xff]  }
  0x4b   :  { %1103 = vmatpush1.bf16.msra.mxu0 %v1592_v16  ;;  %v1671_v16 = vld [vmem:[%s2173_s1 + $0x368] ss:$12 sps:$4 sm:$0xff]  }
  0x4c   :  { %1421 = vmatpush3.bf16.msra.mxu1 %v1596_v17  ;;  %1104 = vmatprep.subr.bf16.mxu0 %v1599_v18  ;;  %v1672_v17 = vld [vmem:[%s2173_s1 + $0x410] ss:$12 sps:$4 sm:$0xff]  }
  0x4d   :  { %1422 = vmatprep.subr.bf16.mxu1 %v1600_v19  ;;  %v1673_v18 = vld [vmem:[%s2173_s1 + $0x350] ss:$12 sps:$4 sm:$0xff]   ;;  %v1674_v19 = vld [vmem:[%s2173_s1 + $0x3f8] ss:$12 sps:$4 sm:$0xff]  }
  0x4f   :  { %1105 = vmatpush1.bf16.msra.mxu0 %v1597_v20  ;;  %v1675_v20 = vld [vmem:[%s2173_s1 + $0x338] ss:$12 sps:$4 sm:$0xff]  }
  0x50   :  { %1423 = vmatpush3.bf16.msra.mxu1 %v1601_v21  ;;  %1106 = vmatprep.subr.bf16.mxu0 %v1604_v22  ;;  %v1676_v21 = vld [vmem:[%s2173_s1 + $0x3e0] ss:$12 sps:$4 sm:$0xff]  }
  0x51   :  { %1424 = vmatprep.subr.bf16.mxu1 %v1605_v23  ;;  %v1677_v22 = vld [vmem:[%s2173_s1 + $0x320] ss:$12 sps:$4 sm:$0xff]   ;;  %v1678_v23 = vld [vmem:[%s2173_s1 + $0x3c8] ss:$12 sps:$4 sm:$0xff]  }
  0x53   :  { %1107 = vmatpush1.bf16.msra.mxu0 %v1602_v24  ;;  %v1679_v24 = vld [vmem:[%s2173_s1 + $0x308] ss:$12 sps:$4 sm:$0xff]  }
  0x54   :  { %1425 = vmatpush3.bf16.msra.mxu1 %v1606_v25  ;;  %1108 = vmatprep.subr.bf16.mxu0 %v1609_v26 }
  0x55   :  { %1426 = vmatprep.subr.bf16.mxu1 %v1610_v27 }
  0x57   :  { %1109 = vmatpush1.bf16.msra.mxu0 %v1607_v28 }
  0x58   :  { %1427 = vmatpush3.bf16.msra.mxu1 %v1611_v29  ;;  %1110 = vmatprep.subr.bf16.mxu0 %v1614_v30 }
  0x59   :  { %1428 = vmatprep.subr.bf16.mxu1 %v1615_v31 }
  0x5b   :  { %1111 = vmatpush1.bf16.msra.mxu0 %v1612_v32 }
  0x5c   :  { %1429 = vmatpush3.bf16.msra.mxu1 %v1616_v33  ;;  %1112 = vmatprep.subr.bf16.mxu0 %v1619_v34 }
  0x5d   :  { %1430 = vmatprep.subr.bf16.mxu1 %v1620_v35 }
  0x5f   :  { %1113 = vmatpush1.bf16.msra.mxu0 %v1617_v36 }
  0x60   :  { %1431 = vmatpush3.bf16.msra.mxu1 %v1621_v37  ;;  %1114 = vmatprep.subr.bf16.mxu0 %v1624_v38  ;;  %v212_v37 = vlaneseq }
  0x61   :  { %1438 = vmatprep.subr.bf16.mxu1 %v1625_v39 }
  0x62   :  { %v213_v38 = vshrl.u32 %v212_v37, 7 }
  0x63   :  { %1172 = vmatmul.mubr.bf16.vlgmr.msra.gmra.mxu1 %v1910_v6  ;;  %1115 = vmatpush2.bf16.msra.mxu0 %v1622_v40  ;;  %v1657_v6 = vld [vmem:[%s2173_s1 + $0x3c0] ss:$12 sps:$4 sm:$0xff]  }
  0x64   :  { %1439 = vmatpush3.bf16.msra.mxu1 %v1626_v41  ;;  %1116 = vmatprep.subr.bf16.mxu0 %v1629_v42  ;;  %v214_v39 = vsub.s32 0, %v213_v38  ;;  %v210_v40 = vld [vmem:[%s2175_s2] sm:$0x7]  ;;  %v218_v41 = vsub.s32 1, %v213_v38 }
  0x65   :  { %1440 = vmatprep.subr.bf16.mxu1 %v1630_v44  ;;  %1211 = vmatprep.mubr.bf16.mxu1 %v1855_v52  ;;  %v1637_v52 = vld [vmem:[%s2173_s1 + $0x420] ss:$12 sps:$4 sm:$0xff]  }
  0x66   :  { %v215_v42 = vrot.slane %v210_v40, %v214_v39  ;;  %v219_v43 = vrot.slane %v210_v40, %v218_v41 }
  0x67   :  { %1117 = vmatpush2.bf16.msra.mxu0 %v1627_v46 }
  0x68   :  { %1441 = vmatpush3.bf16.msra.mxu1 %v1631_v47  ;;  %1118 = vmatprep.subr.bf16.mxu0 %v1634_v48 }
  0x69   :  { %1442 = vmatprep.subr.bf16.mxu1 %v1635_v49 }
  0x6b   :  { %1119 = vmatpush2.bf16.msra.mxu0 %v1632_v50 }
  0x6c   :  { %1443 = vmatpush3.bf16.msra.mxu1 %v1636_v51  ;;  %1120 = vmatprep.subr.bf16.mxu0 %v1639_v53 }
  0x6d   :  { %1444 = vmatprep.subr.bf16.mxu1 %v1640_v54 }
  0x6f   :  { %1121 = vmatpush2.bf16.msra.mxu0 %v1637_v52 }
  0x70   :  { %1445 = vmatpush3.bf16.msra.mxu1 %v1641_v55  ;;  %1122 = vmatprep.subr.bf16.mxu0 %v1644_v56 }
  0x71   :  { %1446 = vmatprep.subr.bf16.mxu1 %v1645_v57 }
  0x73   :  { %1123 = vmatpush2.bf16.msra.mxu0 %v1642_v58  ;;  %v222_v58 = vsub.s32 2, %v213_v38 }
  0x74   :  { %1447 = vmatpush3.bf16.msra.mxu1 %v1646_v59  ;;  %1124 = vmatprep.subr.bf16.mxu0 %v1649_v60 }
  0x75   :  { %1448 = vmatprep.subr.bf16.mxu1 %v1650_v61  ;;  %v223_v59 = vrot.slane %v210_v40, %v222_v58 }
  0x77   :  { %1125 = vmatpush2.bf16.msra.mxu0 %v1647_v62 }
  0x78   :  { %1449 = vmatpush3.bf16.msra.mxu1 %v1651_v63  ;;  %1126 = vmatprep.subr.bf16.mxu0 %v1654_v0 }
  0x79   :  { %1450 = vmatprep.subr.bf16.mxu1 %v1655_v1 }
  0x7b   :  { %1127 = vmatpush2.bf16.msra.mxu0 %v1652_v2 }
  0x7c   :  { %1451 = vmatpush3.bf16.msra.mxu1 %v1656_v3  ;;  %1128 = vmatprep.subr.bf16.mxu0 %v1659_v4 }
  0x7d   :  { %1452 = vmatprep.subr.bf16.mxu1 %v1660_v5 }
  0x7f   :  { %1129 = vmatpush2.bf16.msra.mxu0 %v1657_v6 }
  0x80   :  { %1453 = vmatpush3.bf16.msra.mxu1 %v1661_v8  ;;  %1460 = vmatprep.subr.bf16.mxu0 %v1664_v9 }
  0x82   :  { %1131 = vmatmul.mubr.bf16.vlgmr.msra.gmra.mxu0 %v1270_v10 }
  0x83   :  { %1212 = vmatmul.mubr.bf16.vlgmr.msra.gmra.mxu1 %v1912_v7  ;;  %1461 = vmatpush3.bf16.msra.mxu0 %v1665_v11  ;;  %v1670_v7 = vld [vmem:[%s2173_s1 + $0x428] ss:$12 sps:$4 sm:$0xff]  }
  0x84   :  { %1251 = vmatprep.mubr.bf16.mxu0 %v2028_v45  ;;  %1462 = vmatprep.subr.bf16.mxu0 %v1666_v12 }
  0x87   :  { %1463 = vmatpush3.bf16.msra.mxu0 %v1667_v13 }
  0x88   :  { %1464 = vmatprep.subr.bf16.mxu0 %v1668_v14 }
  0x8b   :  { %1465 = vmatpush3.bf16.msra.mxu0 %v1669_v15 }
  0x8c   :  { %1466 = vmatprep.subr.bf16.mxu0 %v1670_v7 }
  0x8f   :  { %1467 = vmatpush3.bf16.msra.mxu0 %v1671_v16 }
  0x90   :  { %1468 = vmatprep.subr.bf16.mxu0 %v1672_v17 }
  0x93   :  { %1469 = vmatpush3.bf16.msra.mxu0 %v1673_v18 }
  0x94   :  { %1470 = vmatprep.subr.bf16.mxu0 %v1674_v19 }
  0x97   :  { %1471 = vmatpush3.bf16.msra.mxu0 %v1675_v20 }
  0x98   :  { %1472 = vmatprep.subr.bf16.mxu0 %v1676_v21 }
  0x9b   :  { %1473 = vmatpush3.bf16.msra.mxu0 %v1677_v22 }
  0x9c   :  { %1474 = vmatprep.subr.bf16.mxu0 %v1678_v23 }
  0x9f   :  { %1475 = vmatpush3.bf16.msra.mxu0 %v1679_v24 }
  0xa2   :  { %1252 = vmatmul.mubr.bf16.vlgmr.msra.gmra.mxu0 %v1270_v10 }
 0x102   :  { %v1050_v25 = vpop.f32.mrf.mxu0 }
 0x103   :  { %v1091_v26 = vpop.f32.mrf.mxu1  ;;  %v1051_v44 = vadd.f32 %v1050_v25, %v215_v42 }
 0x104   :  { %v1052_v27 = vpop.f32.mrf.mxu0 }
 0x105   :  { %v1093_v28 = vpop.f32.mrf.mxu1  ;;  %v1053_v45 = vadd.f32 %v1052_v27, %v219_v43  ;;  %v1092_v46 = vadd.f32 %v1091_v26, %v1051_v44 }
 0x106   :  { %v1054_v29 = vpop.f32.mrf.mxu0 }
 0x107   :  { %v1095_v30 = vpop.f32.mrf.mxu1  ;;  %v1094_v49 = vadd.f32 %v1093_v28, %v1053_v45 }
 0x108   :  { %v1055_v31 = vpop.f32.mrf.mxu0 }
 0x109   :  { %v1096_v32 = vpop.f32.mrf.mxu1 }
 0x123   :  { %v1432_v33 = vpop.f32.mrf.mxu1 }
 0x125   :  { %v1433_v34 = vpop.f32.mrf.mxu1 }
 0x126   :  { %v1434_v60 = vadd.f32 %v1433_v34, %v1432_v33 }
 0x127   :  { %v1435_v35 = vpop.f32.mrf.mxu1 }
 0x128   :  { %v1174_v61 = vadd.f32 %v1434_v60, %v223_v59 }
 0x129   :  { %v1436_v36 = vpop.f32.mrf.mxu1 }
 0x142   :  { %v1132_v47 = vpop.f32.mrf.mxu0 }
 0x143   :  { %v1454_v48 = vpop.f32.mrf.mxu1  ;;  %v1133_v50 = vadd.f32 %v1132_v47, %v1092_v46 }
 0x144   :  { %v1134_v51 = vpop.f32.mrf.mxu0 }
 0x145   :  { %v1455_v53 = vpop.f32.mrf.mxu1  ;;  %1259 = vst [vmem:[%s2176_s3] sm:$0xff] %v1133_v50  ;;  %v1135_v54 = vadd.f32 %v1134_v51, %v1094_v49 }
 0x146   :  { %v1136_v52 = vpop.f32.mrf.mxu0  ;;  %v1456_v62 = vadd.f32 %v1455_v53, %v1454_v48 }
 0x147   :  { %v1457_v55 = vpop.f32.mrf.mxu1  ;;  %1260 = vst [vmem:[%s2176_s3 + $0x8] sm:$0xff] %v1135_v54 }
 0x148   :  { %v1137_v56 = vpop.f32.mrf.mxu0  ;;  %v1214_v1 = vadd.f32 %v1456_v62, %v1174_v61 }
 0x149   :  { %v1458_v57 = vpop.f32.mrf.mxu1 }
 0x162   :  { %v1476_v63 = vpop.f32.mrf.mxu0 }
 0x164   :  { %v1477_v0 = vpop.f32.mrf.mxu0 }
 0x165   :  { %v1478_v2 = vadd.f32 %v1477_v0, %v1476_v63 }
 0x166   :  { %v1479_v3 = vpop.f32.mrf.mxu0 }
 0x167   :  { %v1254_v4 = vadd.f32 %v1478_v2, %v1214_v1 }
 0x168   :  { %v1480_v5 = vpop.f32.mrf.mxu0 }
 0x169   :  { %1261 = vst [vmem:[%s2176_s3 + $0x10] sm:$0xff] %v1254_v4 }

// kernel: vqa_backbone_forward.12
= control target key start
LH: loop header
LB: loop body
LE: loop exit
PB: predicated region body
PF: predicated region fallthrough
CT: control target
= control target key end

     0   :  { %s709_s15 = smov 0   ;;  %s753_s0 = inlined_call_operand.vmem [shape: bf16[2,5,384], index: 0, kind: input, shape index: {}]   ;;  %s754_s1 = inlined_call_operand.vmem [shape: bf16[2,5,384], index: 1, kind: input, shape index: {}]   ;;  %s755_s2 = inlined_call_operand.vmem [shape: bf16[2,5,384], index: 2, kind: input, shape index: {}]   ;;  %s756_s3 = inlined_call_operand.vmem [shape: f32[2,1,5], index: 3, kind: input, shape index: {}]   ;;  %s757_s4 = inlined_call_operand.vmem [shape: bf16[2,5,384], index: 4, kind: output, shape index: {}]  }
   0x1 LB: > { %s604_s16 = sadd.s32 4294967295, %s678_s15   ;;  %p608_p0 = scmp.ge.s32.totalorder %s678_s15, 1  ;;  %s678_s15 = sphi %s709_s15, %s14_s15  }
   0x2   : > { %p190_p1 = scmp.lt.s32.totalorder %s678_s15, 3 }
   0x4   : > { %p191_p2 = pnand %p608_p0, %p190_p1 }
   0x5   : > { %p229_p3 = scmp.lt.s32.totalorder (!%p191_p2), %s604_s16, 1 }
   0x6   : > { %194 = sbr.rel (%p191_p2) target bundleno = 738 (0x2e2), region = 36 }
   0xb   : > { %v680_v0 = vmov 0.0   ;;  %vm681_vm0 = vmmov 0   ;;  %s761_s16 = smov (!%p229_p3, %s604_s16), 1  ;;  %v365_v9 = vlaneseq  ;;  %vm371_vm1 = vcmask 36864  }
   0xc   : > { %634 = vmatprep.subr.bf16.mxu1 %v680_v0  ;;  %636 = vmatprep.mubr.msk.bf16.mxu1 %vm681_vm0, %v680_v0  ;;  %s718_s17 = smul.u32 12, %s761_s16  ;;  %s246_s26 = scalar_lea.vmem %s756_s3, %s761_s16  ;;  %vm396_vm2 = vcmask 1041408   ;;  %vm397_vm3 = vcmask 1042432   ;;  %v682_v33 = vmov 65535   ;;  %v683_v35 = vmov 0  }
   0xd   : > { %v366_v10 = vshrl.u32 %v365_v9, 7  ;;  %v362_v11 = vld [vmem:[%s246_s26] sm:$0x1]  ;;  %v398_v34 = vsel %vm396_vm2, 4294967295, %v682_v33  ;;  %vm392_vm4 = vcmask 39936   ;;  %vm506_vm6 = vcmask 1046532  }
   0xe   : > { %s238_s20 = scalar_lea.vmem %s754_s1, %s718_s17  ;;  %s233_s23 = scalar_lea.vmem %s753_s0, %s718_s17  ;;  %v363_v12 = vmul.f32 1e+09, %v362_v11  ;;  %v399_v39 = vsel %vm397_vm3, %v398_v34, 0  ;;  %vm504_vm5 = vsmask.f32 2304 }
   0xf   : > { %v255_v1 = vld [vmem:[%s238_s20] sm:$0x77]  ;;  %v660_v4 = vld [vmem:[%s238_s20 + $0x8] ss:$0 sps:$4 sm:$0x77]   ;;  %v367_v13 = vsub.s32 0, %v366_v10  ;;  %s243_s29 = scalar_lea.vmem %s755_s2, %s718_s17  ;;  %s251_s6 = scalar_lea.vmem %s757_s4, %s718_s17  ;;  %vm742_vm8 = vmand %vm397_vm3, %vm504_vm5 }
  0x10   : > { %v253_v2 = vld [vmem:[%s233_s23] sm:$0x77]  ;;  %v617_v3 = vcombine.high %v255_v1, %v255_v1  ;;  %v616_v5 = vcombine.low %v255_v1, %v255_v1  ;;  %635 = vmatpush3.bf16.xpose.msra.mxu1 %v660_v4  ;;  %v664_v7 = vld [vmem:[%s233_s23 + $0x8] ss:$0 sps:$4 sm:$0x77]  }
  0x11   : > { %v614_v6 = vcombine.high %v253_v2, %v253_v2  ;;  %640 = vmatprep.subr.bf16.mxu1 %v680_v0  ;;  %v613_v8 = vcombine.low %v253_v2, %v253_v2  ;;  %v368_v18 = vrot.slane %v363_v12, %v367_v13  ;;  %v257_v32 = vld [vmem:[%s243_s29] sm:$0x77]  ;;  %v667_v38 = vld [vmem:[%s243_s29 + $0x8] ss:$0 sps:$4 sm:$0x77]  }
  0x12   : > { %295 = vmatprep.subr.bf16.mxu0 %v617_v3  ;;  %v619_v36 = vcombine.low %v257_v32, %v257_v32  ;;  %v620_v37 = vcombine.high %v257_v32, %v257_v32  ;;  %v407_v42 = vand.u32 %v667_v38, %v399_v39  ;;  %vm507_vm7 = vsmask.f32 6400  ;;  %v513_v50 = vld [vmem:[%s251_s6 + $0x8] sm:$0x7]  ;;  %v510_v53 = vld [vmem:[%s251_s6] sm:$0x77] }
  0x13   : > { %296 = vmatpush1.bf16.xpose.msra.mxu0 %v616_v5  ;;  %313 = vmatprep.mubr.bf16.mxu0 %v614_v6  ;;  %vm508_vm9 = vmand %vm506_vm6, %vm507_vm7 }
  0x14   : > { %v404_v40 = vand.u32 %v620_v37, %v399_v39  ;;  %v401_v41 = vand.u32 %v619_v36, %v399_v39  ;;  %vm509_vm10 = vmor %vm508_vm9, %vm742_vm8 }
  0x16   : > { %423 = vmatprep.subr.bf16.mxu0 %v404_v40 }
  0x17   : > { %637 = vmatmul.mubr.bf16.vlgmr.msra.gmra.mxu1 %v664_v7 }
  0x18   : > { %642 = vmatprep.mubr.msk.bf16.mxu1 %vm681_vm0, %v680_v0  ;;  %641 = vmatpush3.bf16.msra.mxu1 %v407_v42 }
  0x1a   : > { %314 = vmatmul.mubr.bf16.vlgmr.msra.gmra.mxu0 %v613_v8 }
  0x1b   : > { %441 = vmatprep.mubr.bf16.mxu0 %v683_v35  ;;  %424 = vmatpush1.bf16.msra.mxu0 %v401_v41 }
  0xd7   : > { %v355_v14 = vpop.f32.mrf.mxu1 }
  0xd9   : > { %v638_v17 = vpop.f32.mrf.mxu1 }
  0xda   : > { %v315_v15 = vpop.f32.mrf.mxu0 }
  0xdb   : > { %v356_v16 = vadd.f32 %v355_v14, %v315_v15  ;;  %v358_v21 = vpop.f32.mrf.mxu1 }
  0xdc   : > { %v317_v19 = vpop.f32.mrf.mxu0 }
  0xdd   : > { %v361_v20 = vmul.f32 0.051031034, %v356_v16  ;;  %v639_v23 = vpop.f32.mrf.mxu1 }
  0xde   : > { %v318_v22 = vpop.f32.mrf.mxu0 }
  0xdf   : > { %v370_v24 = vsub.f32 %v361_v20, %v368_v18 }
  0xe0   : > { %v319_v25 = vpop.f32.mrf.mxu0 }
  0xe1   : > { %v372_v26 = vsel %vm371_vm1, %v370_v24, -inf }
  0xe2   : > { %373 = vmax.xlane.f32.xlu0 %v372_v26 }
 0x16b   : > { %v374_v27 = vpop.xlane.xlu0 %373 }
 0x16c   : > { %v375_v28 = vsub.f32 %v370_v24, %v374_v27 }
 0x16e   : > { %v376_v29 = vmul.f32 1.442695, %v375_v28 }
 0x170   : > { %668 = vpow2.f32 %v376_v29 }
 0x17d   : > { %v669_v30 = vpop.eup %668 }
 0x17e   : > { %v378_v31 = vsel %vm371_vm1, %v669_v30, 0.0 }
 0x17f   : > { %379 = vadd.xlane.f32.xlu0 %v378_v31 }
 0x208   : > { %v380_v43 = vpop.xlane.xlu0 %379 }
 0x209   : > { %670 = vrcp.f32 %v380_v43 }
 0x216   : > { %v671_v44 = vpop.eup %670 }
 0x217   : > { %v382_v45 = vmul.f32 %v671_v44, %v669_v30 }
 0x219   : > { %v383_v46 = vpack.c.bf16 %v382_v45, %v382_v45 }
 0x21b   : > { %622 = vmatmul.mubr.msk.bf16.vlgmr.msra.gmra.mxu0 %vm392_vm4, %v383_v46  ;;  %643 = vmatmul.mubr.msk.bf16.vlgmr.msra.gmra.mxu1 %vm392_vm4, %v383_v46 }
 0x2db   : > { %v443_v48 = vpop.f32.mrf.mxu0  ;;  %v484_v49 = vpop.f32.mrf.mxu1 }
 0x2dc   : > { %v629_v51 = vpack.c.bf16 %v484_v49, %v484_v49 }
 0x2dd   : > { %v445_v52 = vpop.f32.mrf.mxu0  ;;  %v644_v54 = vpop.f32.mrf.mxu1 }
 0x2de   : > { %v514_v55 = vsel %vm742_vm8, %v629_v51, %v513_v50  ;;  %v628_v56 = vpack.c.bf16 %v445_v52, %v443_v48 }
 0x2df   : > { %515 = vst [vmem:[%s251_s6 + $0x8] sm:$0x7] %v514_v55  ;;  %v447_v57 = vpop.f32.mrf.mxu0  ;;  %v487_v58 = vpop.f32.mrf.mxu1 }
 0x2e0   : > { %v511_v59 = vsel %vm509_vm10, %v628_v56, %v510_v53 }
 0x2e1   : > { %512 = vst [vmem:[%s251_s6] sm:$0x77] %v511_v59  ;;  %v448_v60 = vpop.f32.mrf.mxu0  ;;  %v645_v61 = vpop.f32.mrf.mxu1 }
 0x2e2 PF: > { %s14_s15 = sadd.s32 1, %s678_s15  }
 0x2e3   : > { %p11_p4 = scmp.ge.s32.totalorder %s14_s15, 4  }
 0x2e5   :  { %13 = sbr.rel (!%p11_p4) target bundleno = 1 (0x1), region = 75 }

// kernel: vqa_backbone_forward.11
= control target key start
LH: loop header
LB: loop body
LE: loop exit
PB: predicated region body
PF: predicated region fallthrough
CT: control target
= control target key end

     0   :  { %v2535_v1 = vmov 0   ;;  %vm2537_vm0 = vmmov 0   ;;  %s3297_s1 = inlined_call_operand.vmem [shape: bf16[384,1152], index: 1, kind: input, shape index: {}]   ;;  %s3298_s0 = inlined_call_operand.vmem [shape: bf16[16,384], index: 0, kind: input, shape index: {}]   ;;  %s3299_s2 = inlined_call_operand.vmem [shape: f32[1,1152], index: 2, kind: input, shape index: {}]   ;;  %s3300_s3 = inlined_call_operand.vmem [shape: bf16[16,1152], index: 3, kind: output, shape index: {}]  }
   0x1   :  { %v2218_v0 = vld [vmem:[%s3297_s1 + $0x1fc] ss:$36 sps:$4 sm:$0xff]   ;;  %1503 = vmatprep.mubr.bf16.mxu1 %v2535_v1  ;;  %v2224_v5 = vld [vmem:[%s3297_s1 + $0x1b4] ss:$36 sps:$4 sm:$0xff]   ;;  %v2230_v9 = vld [vmem:[%s3297_s1 + $0x16c] ss:$36 sps:$4 sm:$0xff]  }
   0x2   :  { %v2220_v2 = vld [vmem:[%s3297_s1 + $0x67c] ss:$36 sps:$4 sm:$0xff]   ;;  %1428 = vmatprep.subr.bf16.mxu0 %v2218_v0  ;;  %v2226_v6 = vld [vmem:[%s3297_s1 + $0x634] ss:$36 sps:$4 sm:$0xff]   ;;  %v2232_v10 = vld [vmem:[%s3297_s1 + $0x5ec] ss:$36 sps:$4 sm:$0xff]  }
   0x3   :  { %v2222_v3 = vld [vmem:[%s3297_s1 + $0x1f8] ss:$36 sps:$4 sm:$0xff]   ;;  %1471 = vmatprep.subr.bf16.mxu1 %v2220_v2  ;;  %v2228_v7 = vld [vmem:[%s3297_s1 + $0x1b0] ss:$36 sps:$4 sm:$0xff]   ;;  %v2234_v11 = vld [vmem:[%s3297_s1 + $0x168] ss:$36 sps:$4 sm:$0xff]  }
   0x4   :  { %v2223_v4 = vld [vmem:[%s3297_s1 + $0x678] ss:$36 sps:$4 sm:$0xff]   ;;  %1429 = vmatpush1.bf16.msra.mxu0 %v2222_v3  ;;  %v2229_v8 = vld [vmem:[%s3297_s1 + $0x630] ss:$36 sps:$4 sm:$0xff]   ;;  %v2235_v12 = vld [vmem:[%s3297_s1 + $0x5e8] ss:$36 sps:$4 sm:$0xff]  }
   0x5   :  { %1472 = vmatpush1.bf16.msra.mxu1 %v2223_v4  ;;  %1430 = vmatprep.subr.bf16.mxu0 %v2224_v5  ;;  %v2236_v13 = vld [vmem:[%s3297_s1 + $0x124] ss:$36 sps:$4 sm:$0xff]   ;;  %v2242_v17 = vld [vmem:[%s3297_s1 + $0xdc] ss:$36 sps:$4 sm:$0xff]   ;;  %v2248_v21 = vld [vmem:[%s3297_s1 + $0x94] ss:$36 sps:$4 sm:$0xff]  }
   0x6   :  { %1473 = vmatprep.subr.bf16.mxu1 %v2226_v6  ;;  %v2238_v14 = vld [vmem:[%s3297_s1 + $0x5a4] ss:$36 sps:$4 sm:$0xff]   ;;  %v2244_v18 = vld [vmem:[%s3297_s1 + $0x55c] ss:$36 sps:$4 sm:$0xff]   ;;  %v2250_v22 = vld [vmem:[%s3297_s1 + $0x514] ss:$36 sps:$4 sm:$0xff]  }
   0x7   :  { %v2240_v15 = vld [vmem:[%s3297_s1 + $0x120] ss:$36 sps:$4 sm:$0xff]   ;;  %v2246_v19 = vld [vmem:[%s3297_s1 + $0xd8] ss:$36 sps:$4 sm:$0xff]   ;;  %v2252_v23 = vld [vmem:[%s3297_s1 + $0x90] ss:$36 sps:$4 sm:$0xff]  }
   0x8   :  { %1431 = vmatpush1.bf16.msra.mxu0 %v2228_v7  ;;  %v2241_v16 = vld [vmem:[%s3297_s1 + $0x5a0] ss:$36 sps:$4 sm:$0xff]   ;;  %v2247_v20 = vld [vmem:[%s3297_s1 + $0x558] ss:$36 sps:$4 sm:$0xff]   ;;  %v2253_v24 = vld [vmem:[%s3297_s1 + $0x510] ss:$36 sps:$4 sm:$0xff]  }
   0x9   :  { %1474 = vmatpush1.bf16.msra.mxu1 %v2229_v8  ;;  %1432 = vmatprep.subr.bf16.mxu0 %v2230_v9  ;;  %v2254_v25 = vld [vmem:[%s3297_s1 + $0x4c] ss:$36 sps:$4 sm:$0xff]   ;;  %v2260_v29 = vld [vmem:[%s3297_s1 + $0x4] ss:$36 sps:$4 sm:$0xff]   ;;  %v2266_v33 = vld [vmem:[%s3297_s1 + $0x43c] ss:$36 sps:$4 sm:$0xff]  }
   0xa   :  { %1475 = vmatprep.subr.bf16.mxu1 %v2232_v10  ;;  %v2256_v26 = vld [vmem:[%s3297_s1 + $0x4cc] ss:$36 sps:$4 sm:$0xff]   ;;  %v2262_v30 = vld [vmem:[%s3297_s1 + $0x484] ss:$36 sps:$4 sm:$0xff]   ;;  %v2271_v37 = vld [vmem:[%s3297_s1 + $0x438] ss:$36 sps:$4 sm:$0xff]  }
   0xb   :  { %v2258_v27 = vld [vmem:[%s3297_s1 + $0x48] ss:$36 sps:$4 sm:$0xff]   ;;  %v2264_v31 = vld [vmem:[%s3297_s1] ss:$36 sps:$4 sm:$0xff]   ;;  %v2273_v38 = vld [vmem:[%s3297_s1 + $0x3f4] ss:$36 sps:$4 sm:$0xff]  }
   0xc   :  { %1433 = vmatpush1.bf16.msra.mxu0 %v2234_v11  ;;  %v2259_v28 = vld [vmem:[%s3297_s1 + $0x4c8] ss:$36 sps:$4 sm:$0xff]   ;;  %v2265_v32 = vld [vmem:[%s3297_s1 + $0x480] ss:$36 sps:$4 sm:$0xff]   ;;  %v2275_v40 = vld [vmem:[%s3297_s1 + $0x1b8] ss:$36 sps:$4 sm:$0xff]  }
   0xd   :  { %1476 = vmatpush1.bf16.msra.mxu1 %v2235_v12  ;;  %1434 = vmatprep.subr.bf16.mxu0 %v2236_v13  ;;  %v2270_v34 = vld [vmem:[%s3297_s1 + $0x204] ss:$36 sps:$4 sm:$0xff]   ;;  %v2277_v39 = vld [vmem:[%s3297_s1 + $0x1bc] ss:$36 sps:$4 sm:$0xff]   ;;  %v2278_v41 = vld [vmem:[%s3297_s1 + $0x3f0] ss:$36 sps:$4 sm:$0xff]  }
   0xe   :  { %1477 = vmatprep.subr.bf16.mxu1 %v2238_v14  ;;  %v2664_v35 = vld [vmem:[%s3298_s0 + $0x8] ss:$12 sps:$4 sm:$0xff]   ;;  %v2268_v36 = vld [vmem:[%s3297_s1 + $0x200] ss:$36 sps:$4 sm:$0xff]   ;;  %v2279_v42 = vld [vmem:[%s3297_s1 + $0x3ac] ss:$36 sps:$4 sm:$0xff]  }
   0xf   :  { %v2283_v43 = vld [vmem:[%s3297_s1 + $0x174] ss:$36 sps:$4 sm:$0xff]   ;;  %v2284_v45 = vld [vmem:[%s3297_s1 + $0x3a8] ss:$36 sps:$4 sm:$0xff]   ;;  %v2290_v49 = vld [vmem:[%s3297_s1 + $0x360] ss:$36 sps:$4 sm:$0xff]  }
  0x10   :  { %1435 = vmatpush1.bf16.msra.mxu0 %v2240_v15  ;;  %v2281_v44 = vld [vmem:[%s3297_s1 + $0x170] ss:$36 sps:$4 sm:$0xff]   ;;  %v2285_v46 = vld [vmem:[%s3297_s1 + $0x364] ss:$36 sps:$4 sm:$0xff]   ;;  %v2291_v50 = vld [vmem:[%s3297_s1 + $0x31c] ss:$36 sps:$4 sm:$0xff]  }
  0x11   :  { %1478 = vmatpush1.bf16.msra.mxu1 %v2241_v16  ;;  %1436 = vmatprep.subr.bf16.mxu0 %v2242_v17  ;;  %v2289_v47 = vld [vmem:[%s3297_s1 + $0x12c] ss:$36 sps:$4 sm:$0xff]   ;;  %v2295_v52 = vld [vmem:[%s3297_s1 + $0xe4] ss:$36 sps:$4 sm:$0xff]   ;;  %v2296_v54 = vld [vmem:[%s3297_s1 + $0x318] ss:$36 sps:$4 sm:$0xff]  }
  0x12   :  { %1479 = vmatprep.subr.bf16.mxu1 %v2244_v18  ;;  %v2287_v48 = vld [vmem:[%s3297_s1 + $0x128] ss:$36 sps:$4 sm:$0xff]   ;;  %v2715_v51 = vld [vmem:[%s3298_s0 + $0x4] ss:$12 sps:$4 sm:$0xff]   ;;  %v2297_v55 = vld [vmem:[%s3297_s1 + $0x2d4] ss:$36 sps:$4 sm:$0xff]  }
  0x13   :  { %1460 = vmatprep.mubr.bf16.mxu0 %v2715_v51  ;;  %v2293_v53 = vld [vmem:[%s3297_s1 + $0xe0] ss:$36 sps:$4 sm:$0xff]   ;;  %v2299_v57 = vld [vmem:[%s3297_s1 + $0x98] ss:$36 sps:$4 sm:$0xff]   ;;  %v2302_v58 = vld [vmem:[%s3297_s1 + $0x2d0] ss:$36 sps:$4 sm:$0xff]  }
  0x14   :  { %1437 = vmatpush1.bf16.msra.mxu0 %v2246_v19  ;;  %v2301_v56 = vld [vmem:[%s3297_s1 + $0x9c] ss:$36 sps:$4 sm:$0xff]   ;;  %v2303_v59 = vld [vmem:[%s3297_s1 + $0x28c] ss:$36 sps:$4 sm:$0xff]   ;;  %v2307_v60 = vld [vmem:[%s3297_s1 + $0x54] ss:$36 sps:$4 sm:$0xff]  }
  0x15   :  { %1480 = vmatpush1.bf16.msra.mxu1 %v2247_v20  ;;  %1438 = vmatprep.subr.bf16.mxu0 %v2248_v21  ;;  %v2305_v61 = vld [vmem:[%s3297_s1 + $0x50] ss:$36 sps:$4 sm:$0xff]   ;;  %v2308_v62 = vld [vmem:[%s3297_s1 + $0x288] ss:$36 sps:$4 sm:$0xff]   ;;  %v2314_v3 = vld [vmem:[%s3297_s1 + $0x240] ss:$36 sps:$4 sm:$0xff]  }
  0x16   :  { %1481 = vmatprep.subr.bf16.mxu1 %v2250_v22  ;;  %v2309_v63 = vld [vmem:[%s3297_s1 + $0x244] ss:$36 sps:$4 sm:$0xff]   ;;  %v2313_v0 = vld [vmem:[%s3297_s1 + $0xc] ss:$36 sps:$4 sm:$0xff]   ;;  %v2326_v9 = vld [vmem:[%s3297_s1 + $0x3fc] ss:$36 sps:$4 sm:$0xff]  }
  0x17   :  { %v2311_v2 = vld [vmem:[%s3297_s1 + $0x8] ss:$36 sps:$4 sm:$0xff]   ;;  %v2318_v7 = vld [vmem:[%s3297_s1 + $0x440] ss:$36 sps:$4 sm:$0xff]   ;;  %v2324_v11 = vld [vmem:[%s3297_s1 + $0x3f8] ss:$36 sps:$4 sm:$0xff]  }
  0x18   :  { %1439 = vmatpush1.bf16.msra.mxu0 %v2252_v23  ;;  %v2320_v4 = vld [vmem:[%s3297_s1 + $0x444] ss:$36 sps:$4 sm:$0xff]   ;;  %v2773_v6 = vld [vmem:[%s3298_s0] ss:$12 sps:$4 sm:$0xff]   ;;  %v2327_v12 = vld [vmem:[%s3297_s1 + $0x638] ss:$36 sps:$4 sm:$0xff]  }
  0x19   :  { %1482 = vmatpush1.bf16.msra.mxu1 %v2253_v24  ;;  %1440 = vmatprep.subr.bf16.mxu0 %v2254_v25  ;;  %v2323_v5 = vld [vmem:[%s3297_s1 + $0x684] ss:$36 sps:$4 sm:$0xff]   ;;  %v2329_v10 = vld [vmem:[%s3297_s1 + $0x63c] ss:$36 sps:$4 sm:$0xff]   ;;  %v2332_v13 = vld [vmem:[%s3297_s1 + $0x3b4] ss:$36 sps:$4 sm:$0xff]  }
  0x1a   :  { %1483 = vmatprep.subr.bf16.mxu1 %v2256_v26  ;;  %v2321_v8 = vld [vmem:[%s3297_s1 + $0x680] ss:$36 sps:$4 sm:$0xff]   ;;  %v2335_v14 = vld [vmem:[%s3297_s1 + $0x5f4] ss:$36 sps:$4 sm:$0xff]   ;;  %v2338_v17 = vld [vmem:[%s3297_s1 + $0x36c] ss:$36 sps:$4 sm:$0xff]  }
  0x1b   :  { %v2330_v15 = vld [vmem:[%s3297_s1 + $0x3b0] ss:$36 sps:$4 sm:$0xff]   ;;  %v2336_v19 = vld [vmem:[%s3297_s1 + $0x368] ss:$36 sps:$4 sm:$0xff]   ;;  %v2342_v23 = vld [vmem:[%s3297_s1 + $0x320] ss:$36 sps:$4 sm:$0xff]  }
  0x1c   :  { %1441 = vmatpush1.bf16.msra.mxu0 %v2258_v27  ;;  %v2333_v16 = vld [vmem:[%s3297_s1 + $0x5f0] ss:$36 sps:$4 sm:$0xff]   ;;  %v2339_v20 = vld [vmem:[%s3297_s1 + $0x5a8] ss:$36 sps:$4 sm:$0xff]   ;;  %v2345_v24 = vld [vmem:[%s3297_s1 + $0x560] ss:$36 sps:$4 sm:$0xff]  }
  0x1d   :  { %1484 = vmatpush1.bf16.msra.mxu1 %v2259_v28  ;;  %1442 = vmatprep.subr.bf16.mxu0 %v2260_v29  ;;  %v2341_v18 = vld [vmem:[%s3297_s1 + $0x5ac] ss:$36 sps:$4 sm:$0xff]   ;;  %v2344_v21 = vld [vmem:[%s3297_s1 + $0x324] ss:$36 sps:$4 sm:$0xff]   ;;  %v2350_v25 = vld [vmem:[%s3297_s1 + $0x2dc] ss:$36 sps:$4 sm:$0xff]  }
  0x1e   :  { %1485 = vmatprep.subr.bf16.mxu1 %v2262_v30  ;;  %v2347_v22 = vld [vmem:[%s3297_s1 + $0x564] ss:$36 sps:$4 sm:$0xff]   ;;  %v2353_v26 = vld [vmem:[%s3297_s1 + $0x51c] ss:$36 sps:$4 sm:$0xff]   ;;  %v2356_v29 = vld [vmem:[%s3297_s1 + $0x294] ss:$36 sps:$4 sm:$0xff]  }
  0x1f   :  { %v2348_v27 = vld [vmem:[%s3297_s1 + $0x2d8] ss:$36 sps:$4 sm:$0xff]  }
  0x20   :  { %1443 = vmatpush1.bf16.msra.mxu0 %v2264_v31  ;;  %v2351_v28 = vld [vmem:[%s3297_s1 + $0x518] ss:$36 sps:$4 sm:$0xff]   ;;  %v2354_v31 = vld [vmem:[%s3297_s1 + $0x290] ss:$36 sps:$4 sm:$0xff]  }
  0x21   :  { %1486 = vmatpush1.bf16.msra.mxu1 %v2265_v32  ;;  %1444 = vmatprep.subr.bf16.mxu0 %v2266_v33  ;;  %v2359_v30 = vld [vmem:[%s3297_s1 + $0x4d4] ss:$36 sps:$4 sm:$0xff]   ;;  %v2362_v33 = vld [vmem:[%s3297_s1 + $0x24c] ss:$36 sps:$4 sm:$0xff]  }
  0x22   :  { %1514 = vmatprep.subr.bf16.mxu1 %v2270_v34  ;;  %v2357_v32 = vld [vmem:[%s3297_s1 + $0x4d0] ss:$36 sps:$4 sm:$0xff]  }
  0x23   :  { %v2365_v34 = vld [vmem:[%s3297_s1 + $0x48c] ss:$36 sps:$4 sm:$0xff]  }
  0x24   :  { %1504 = vmatmul.mubr.bf16.vlgmr.msra.gmra.mxu1 %v2664_v35  ;;  %1445 = vmatpush2.bf16.msra.mxu0 %v2271_v37  ;;  %v2363_v37 = vld [vmem:[%s3297_s1 + $0x488] ss:$36 sps:$4 sm:$0xff]  }
  0x25   :  { %1515 = vmatpush1.bf16.msra.mxu1 %v2268_v36  ;;  %1446 = vmatprep.subr.bf16.mxu0 %v2273_v38  ;;  %v2360_v36 = vld [vmem:[%s3297_s1 + $0x248] ss:$36 sps:$4 sm:$0xff]  }
  0x26   :  { %1516 = vmatprep.subr.bf16.mxu1 %v2277_v39  ;;  %1546 = vmatprep.mubr.bf16.mxu1 %v2715_v51  ;;  %v2368_v38 = vld [vmem:[%s3297_s1 + $0x20c] ss:$36 sps:$4 sm:$0xff]  }
  0x27   :  { %v2371_v39 = vld [vmem:[%s3297_s1 + $0x68c] ss:$36 sps:$4 sm:$0xff]  }
  0x28   :  { %1447 = vmatpush2.bf16.msra.mxu0 %v2278_v41  ;;  %v2369_v41 = vld [vmem:[%s3297_s1 + $0x688] ss:$36 sps:$4 sm:$0xff]  }
  0x29   :  { %1517 = vmatpush1.bf16.msra.mxu1 %v2275_v40  ;;  %1448 = vmatprep.subr.bf16.mxu0 %v2279_v42  ;;  %v2366_v40 = vld [vmem:[%s3297_s1 + $0x208] ss:$36 sps:$4 sm:$0xff]  }
  0x2a   :  { %1518 = vmatprep.subr.bf16.mxu1 %v2283_v43  ;;  %v2374_v42 = vld [vmem:[%s3297_s1 + $0x1c4] ss:$36 sps:$4 sm:$0xff]  }
  0x2b   :  { %v2377_v43 = vld [vmem:[%s3297_s1 + $0x644] ss:$36 sps:$4 sm:$0xff]  }
  0x2c   :  { %1449 = vmatpush2.bf16.msra.mxu0 %v2284_v45  ;;  %v2375_v45 = vld [vmem:[%s3297_s1 + $0x640] ss:$36 sps:$4 sm:$0xff]  }
  0x2d   :  { %1519 = vmatpush1.bf16.msra.mxu1 %v2281_v44  ;;  %1450 = vmatprep.subr.bf16.mxu0 %v2285_v46  ;;  %v2372_v44 = vld [vmem:[%s3297_s1 + $0x1c0] ss:$36 sps:$4 sm:$0xff]  }
  0x2e   :  { %1520 = vmatprep.subr.bf16.mxu1 %v2289_v47  ;;  %v2380_v46 = vld [vmem:[%s3297_s1 + $0x17c] ss:$36 sps:$4 sm:$0xff]  }
  0x2f   :  { %v2383_v47 = vld [vmem:[%s3297_s1 + $0x5fc] ss:$36 sps:$4 sm:$0xff]  }
  0x30   :  { %1451 = vmatpush2.bf16.msra.mxu0 %v2290_v49  ;;  %v2381_v49 = vld [vmem:[%s3297_s1 + $0x5f8] ss:$36 sps:$4 sm:$0xff]  }
  0x31   :  { %1521 = vmatpush1.bf16.msra.mxu1 %v2287_v48  ;;  %1452 = vmatprep.subr.bf16.mxu0 %v2291_v50  ;;  %v2378_v48 = vld [vmem:[%s3297_s1 + $0x178] ss:$36 sps:$4 sm:$0xff]  }
  0x32   :  { %1522 = vmatprep.subr.bf16.mxu1 %v2295_v52  ;;  %v2386_v50 = vld [vmem:[%s3297_s1 + $0x134] ss:$36 sps:$4 sm:$0xff]  }
  0x33   :  { %v2389_v52 = vld [vmem:[%s3297_s1 + $0x5b4] ss:$36 sps:$4 sm:$0xff]  }
  0x34   :  { %1453 = vmatpush2.bf16.msra.mxu0 %v2296_v54  ;;  %v2387_v54 = vld [vmem:[%s3297_s1 + $0x5b0] ss:$36 sps:$4 sm:$0xff]  }
  0x35   :  { %1523 = vmatpush1.bf16.msra.mxu1 %v2293_v53  ;;  %1454 = vmatprep.subr.bf16.mxu0 %v2297_v55  ;;  %v2384_v53 = vld [vmem:[%s3297_s1 + $0x130] ss:$36 sps:$4 sm:$0xff]  }
  0x36   :  { %1524 = vmatprep.subr.bf16.mxu1 %v2301_v56  ;;  %v2392_v55 = vld [vmem:[%s3297_s1 + $0xec] ss:$36 sps:$4 sm:$0xff]  }
  0x37   :  { %v2395_v56 = vld [vmem:[%s3297_s1 + $0x56c] ss:$36 sps:$4 sm:$0xff]  }
  0x38   :  { %1455 = vmatpush2.bf16.msra.mxu0 %v2302_v58  ;;  %v2393_v58 = vld [vmem:[%s3297_s1 + $0x568] ss:$36 sps:$4 sm:$0xff]  }
  0x39   :  { %1525 = vmatpush1.bf16.msra.mxu1 %v2299_v57  ;;  %1456 = vmatprep.subr.bf16.mxu0 %v2303_v59  ;;  %v2390_v57 = vld [vmem:[%s3297_s1 + $0xe8] ss:$36 sps:$4 sm:$0xff]  }
  0x3a   :  { %1526 = vmatprep.subr.bf16.mxu1 %v2307_v60  ;;  %v2398_v59 = vld [vmem:[%s3297_s1 + $0xa4] ss:$36 sps:$4 sm:$0xff]  }
  0x3b   :  { %v2401_v60 = vld [vmem:[%s3297_s1 + $0x524] ss:$36 sps:$4 sm:$0xff]  }
  0x3c   :  { %1457 = vmatpush2.bf16.msra.mxu0 %v2308_v62  ;;  %v2399_v62 = vld [vmem:[%s3297_s1 + $0x520] ss:$36 sps:$4 sm:$0xff]  }
  0x3d   :  { %1527 = vmatpush1.bf16.msra.mxu1 %v2305_v61  ;;  %1458 = vmatprep.subr.bf16.mxu0 %v2309_v63  ;;  %v2396_v61 = vld [vmem:[%s3297_s1 + $0xa0] ss:$36 sps:$4 sm:$0xff]  }
  0x3e   :  { %1528 = vmatprep.subr.bf16.mxu1 %v2313_v0  ;;  %v2404_v63 = vld [vmem:[%s3297_s1 + $0x5c] ss:$36 sps:$4 sm:$0xff]  }
  0x3f   :  { %v2407_v0 = vld [vmem:[%s3297_s1 + $0x4dc] ss:$36 sps:$4 sm:$0xff]  }
  0x40   :  { %1459 = vmatpush2.bf16.msra.mxu0 %v2314_v3  ;;  %v2405_v3 = vld [vmem:[%s3297_s1 + $0x4d8] ss:$36 sps:$4 sm:$0xff]  }
  0x41   :  { %1529 = vmatpush1.bf16.msra.mxu1 %v2311_v2  ;;  %1557 = vmatprep.subr.bf16.mxu0 %v2323_v5  ;;  %v2402_v2 = vld [vmem:[%s3297_s1 + $0x58] ss:$36 sps:$4 sm:$0xff]  }
  0x42   :  { %1530 = vmatprep.subr.bf16.mxu1 %v2320_v4  ;;  %v2410_v4 = vld [vmem:[%s3297_s1 + $0x14] ss:$36 sps:$4 sm:$0xff]  }
  0x43   :  { %1461 = vmatmul.mubr.bf16.vlgmr.msra.gmra.mxu0 %v2773_v6  ;;  %v2413_v5 = vld [vmem:[%s3297_s1 + $0x494] ss:$36 sps:$4 sm:$0xff]  }
  0x44   :  { %1558 = vmatpush1.bf16.msra.mxu0 %v2321_v8  ;;  %1589 = vmatprep.mubr.bf16.mxu0 %v2535_v1  ;;  %v2411_v8 = vld [vmem:[%s3297_s1 + $0x490] ss:$36 sps:$4 sm:$0xff]  }
  0x45   :  { %1531 = vmatpush2.bf16.msra.mxu1 %v2318_v7  ;;  %1559 = vmatprep.subr.bf16.mxu0 %v2329_v10  ;;  %v2408_v7 = vld [vmem:[%s3297_s1 + $0x10] ss:$36 sps:$4 sm:$0xff]  }
  0x46   :  { %1532 = vmatprep.subr.bf16.mxu1 %v2326_v9  ;;  %v2416_v9 = vld [vmem:[%s3297_s1 + $0x44c] ss:$36 sps:$4 sm:$0xff]   ;;  %v2419_v10 = vld [vmem:[%s3297_s1 + $0x214] ss:$36 sps:$4 sm:$0xff]  }
  0x48   :  { %1560 = vmatpush1.bf16.msra.mxu0 %v2327_v12  ;;  %v2417_v12 = vld [vmem:[%s3297_s1 + $0x210] ss:$36 sps:$4 sm:$0xff]  }
  0x49   :  { %1533 = vmatpush2.bf16.msra.mxu1 %v2324_v11  ;;  %1561 = vmatprep.subr.bf16.mxu0 %v2335_v14  ;;  %v2414_v11 = vld [vmem:[%s3297_s1 + $0x448] ss:$36 sps:$4 sm:$0xff]  }
  0x4a   :  { %1534 = vmatprep.subr.bf16.mxu1 %v2332_v13  ;;  %v2422_v13 = vld [vmem:[%s3297_s1 + $0x404] ss:$36 sps:$4 sm:$0xff]   ;;  %v2425_v14 = vld [vmem:[%s3297_s1 + $0x1cc] ss:$36 sps:$4 sm:$0xff]  }
  0x4c   :  { %1562 = vmatpush1.bf16.msra.mxu0 %v2333_v16  ;;  %v2423_v16 = vld [vmem:[%s3297_s1 + $0x1c8] ss:$36 sps:$4 sm:$0xff]  }
  0x4d   :  { %1535 = vmatpush2.bf16.msra.mxu1 %v2330_v15  ;;  %1563 = vmatprep.subr.bf16.mxu0 %v2341_v18  ;;  %v2420_v15 = vld [vmem:[%s3297_s1 + $0x400] ss:$36 sps:$4 sm:$0xff]  }
  0x4e   :  { %1536 = vmatprep.subr.bf16.mxu1 %v2338_v17  ;;  %v2428_v17 = vld [vmem:[%s3297_s1 + $0x3bc] ss:$36 sps:$4 sm:$0xff]   ;;  %v2431_v18 = vld [vmem:[%s3297_s1 + $0x184] ss:$36 sps:$4 sm:$0xff]  }
  0x50   :  { %1564 = vmatpush1.bf16.msra.mxu0 %v2339_v20  ;;  %v2434_v20 = vld [vmem:[%s3297_s1 + $0x374] ss:$36 sps:$4 sm:$0xff]  }
  0x51   :  { %1537 = vmatpush2.bf16.msra.mxu1 %v2336_v19  ;;  %1565 = vmatprep.subr.bf16.mxu0 %v2347_v22  ;;  %v2429_v19 = vld [vmem:[%s3297_s1 + $0x180] ss:$36 sps:$4 sm:$0xff]   ;;  %v2432_v22 = vld [vmem:[%s3297_s1 + $0x370] ss:$36 sps:$4 sm:$0xff]  }
  0x52   :  { %1538 = vmatprep.subr.bf16.mxu1 %v2344_v21  ;;  %v2437_v21 = vld [vmem:[%s3297_s1 + $0x13c] ss:$36 sps:$4 sm:$0xff]  }
  0x54   :  { %1566 = vmatpush1.bf16.msra.mxu0 %v2345_v24  ;;  %v2440_v24 = vld [vmem:[%s3297_s1 + $0x32c] ss:$36 sps:$4 sm:$0xff]  }
  0x55   :  { %1539 = vmatpush2.bf16.msra.mxu1 %v2342_v23  ;;  %1567 = vmatprep.subr.bf16.mxu0 %v2353_v26  ;;  %v2435_v23 = vld [vmem:[%s3297_s1 + $0x138] ss:$36 sps:$4 sm:$0xff]   ;;  %v2438_v26 = vld [vmem:[%s3297_s1 + $0x328] ss:$36 sps:$4 sm:$0xff]  }
  0x56   :  { %1540 = vmatprep.subr.bf16.mxu1 %v2350_v25  ;;  %v2443_v25 = vld [vmem:[%s3297_s1 + $0xf4] ss:$36 sps:$4 sm:$0xff]  }
  0x58   :  { %1568 = vmatpush1.bf16.msra.mxu0 %v2351_v28  ;;  %v2446_v28 = vld [vmem:[%s3297_s1 + $0x2e4] ss:$36 sps:$4 sm:$0xff]  }
  0x59   :  { %1541 = vmatpush2.bf16.msra.mxu1 %v2348_v27  ;;  %1569 = vmatprep.subr.bf16.mxu0 %v2359_v30  ;;  %v2441_v27 = vld [vmem:[%s3297_s1 + $0xf0] ss:$36 sps:$4 sm:$0xff]   ;;  %v2444_v30 = vld [vmem:[%s3297_s1 + $0x2e0] ss:$36 sps:$4 sm:$0xff]  }
  0x5a   :  { %1542 = vmatprep.subr.bf16.mxu1 %v2356_v29  ;;  %v2449_v29 = vld [vmem:[%s3297_s1 + $0xac] ss:$36 sps:$4 sm:$0xff]  }
  0x5c   :  { %1570 = vmatpush1.bf16.msra.mxu0 %v2357_v32  ;;  %v2452_v32 = vld [vmem:[%s3297_s1 + $0x29c] ss:$36 sps:$4 sm:$0xff]  }
  0x5d   :  { %1543 = vmatpush2.bf16.msra.mxu1 %v2354_v31  ;;  %1571 = vmatprep.subr.bf16.mxu0 %v2365_v34  ;;  %v2447_v31 = vld [vmem:[%s3297_s1 + $0xa8] ss:$36 sps:$4 sm:$0xff]   ;;  %v2450_v34 = vld [vmem:[%s3297_s1 + $0x298] ss:$36 sps:$4 sm:$0xff]  }
  0x5e   :  { %1544 = vmatprep.subr.bf16.mxu1 %v2362_v33  ;;  %v2455_v33 = vld [vmem:[%s3297_s1 + $0x64] ss:$36 sps:$4 sm:$0xff]  }
  0x60   :  { %1572 = vmatpush1.bf16.msra.mxu0 %v2363_v37  ;;  %v2458_v37 = vld [vmem:[%s3297_s1 + $0x254] ss:$36 sps:$4 sm:$0xff]  }
  0x61   :  { %1545 = vmatpush2.bf16.msra.mxu1 %v2360_v36  ;;  %1600 = vmatprep.subr.bf16.mxu0 %v2368_v38  ;;  %v2453_v36 = vld [vmem:[%s3297_s1 + $0x60] ss:$36 sps:$4 sm:$0xff]  }
  0x62   :  { %1643 = vmatprep.subr.bf16.mxu1 %v2371_v39  ;;  %v2461_v38 = vld [vmem:[%s3297_s1 + $0x1c] ss:$36 sps:$4 sm:$0xff]   ;;  %v2456_v39 = vld [vmem:[%s3297_s1 + $0x250] ss:$36 sps:$4 sm:$0xff]  }
  0x63   :  { %1590 = vmatmul.mubr.bf16.vlgmr.msra.gmra.mxu0 %v2664_v35 }
  0x64   :  { %1547 = vmatmul.mubr.bf16.vlgmr.msra.gmra.mxu1 %v2773_v6  ;;  %1601 = vmatpush1.bf16.msra.mxu0 %v2366_v40  ;;  %v2459_v40 = vld [vmem:[%s3297_s1 + $0x18] ss:$36 sps:$4 sm:$0xff]  }
  0x65   :  { %1644 = vmatpush1.bf16.msra.mxu1 %v2369_v41  ;;  %1602 = vmatprep.subr.bf16.mxu0 %v2374_v42  ;;  %v2464_v41 = vld [vmem:[%s3297_s1 + $0x454] ss:$36 sps:$4 sm:$0xff]  }
  0x66   :  { %1645 = vmatprep.subr.bf16.mxu1 %v2377_v43  ;;  %1675 = vmatprep.mubr.bf16.mxu1 %v2535_v1  ;;  %v2467_v42 = vld [vmem:[%s3297_s1 + $0x694] ss:$36 sps:$4 sm:$0xff]  }
  0x67   :  { %1632 = vmatprep.mubr.bf16.mxu0 %v2715_v51  ;;  %v2462_v43 = vld [vmem:[%s3297_s1 + $0x450] ss:$36 sps:$4 sm:$0xff]  }
  0x68   :  { %1603 = vmatpush1.bf16.msra.mxu0 %v2372_v44  ;;  %v2465_v44 = vld [vmem:[%s3297_s1 + $0x690] ss:$36 sps:$4 sm:$0xff]  }
  0x69   :  { %1646 = vmatpush1.bf16.msra.mxu1 %v2375_v45  ;;  %1604 = vmatprep.subr.bf16.mxu0 %v2380_v46  ;;  %v2470_v45 = vld [vmem:[%s3297_s1 + $0x40c] ss:$36 sps:$4 sm:$0xff]  }
  0x6a   :  { %1647 = vmatprep.subr.bf16.mxu1 %v2383_v47  ;;  %v2473_v46 = vld [vmem:[%s3297_s1 + $0x64c] ss:$36 sps:$4 sm:$0xff]  }
  0x6b   :  { %v2468_v47 = vld [vmem:[%s3297_s1 + $0x408] ss:$36 sps:$4 sm:$0xff]  }
  0x6c   :  { %1605 = vmatpush1.bf16.msra.mxu0 %v2378_v48  ;;  %v2471_v48 = vld [vmem:[%s3297_s1 + $0x648] ss:$36 sps:$4 sm:$0xff]  }
  0x6d   :  { %1648 = vmatpush1.bf16.msra.mxu1 %v2381_v49  ;;  %1606 = vmatprep.subr.bf16.mxu0 %v2386_v50  ;;  %v2476_v49 = vld [vmem:[%s3297_s1 + $0x3c4] ss:$36 sps:$4 sm:$0xff]  }
  0x6e   :  { %1649 = vmatprep.subr.bf16.mxu1 %v2389_v52  ;;  %v2479_v50 = vld [vmem:[%s3297_s1 + $0x604] ss:$36 sps:$4 sm:$0xff]  }
  0x6f   :  { %v2474_v52 = vld [vmem:[%s3297_s1 + $0x3c0] ss:$36 sps:$4 sm:$0xff]  }
  0x70   :  { %1607 = vmatpush1.bf16.msra.mxu0 %v2384_v53  ;;  %v2477_v53 = vld [vmem:[%s3297_s1 + $0x600] ss:$36 sps:$4 sm:$0xff]  }
  0x71   :  { %1650 = vmatpush1.bf16.msra.mxu1 %v2387_v54  ;;  %1608 = vmatprep.subr.bf16.mxu0 %v2392_v55  ;;  %v2482_v54 = vld [vmem:[%s3297_s1 + $0x37c] ss:$36 sps:$4 sm:$0xff]  }
  0x72   :  { %1651 = vmatprep.subr.bf16.mxu1 %v2395_v56  ;;  %v2480_v55 = vld [vmem:[%s3297_s1 + $0x378] ss:$36 sps:$4 sm:$0xff]  }
  0x73   :  { %v2483_v56 = vld [vmem:[%s3297_s1 + $0x5b8] ss:$36 sps:$4 sm:$0xff]  }
  0x74   :  { %1609 = vmatpush1.bf16.msra.mxu0 %v2390_v57  ;;  %v2488_v57 = vld [vmem:[%s3297_s1 + $0x334] ss:$36 sps:$4 sm:$0xff]  }
  0x75   :  { %1652 = vmatpush1.bf16.msra.mxu1 %v2393_v58  ;;  %1610 = vmatprep.subr.bf16.mxu0 %v2398_v59  ;;  %v2491_v58 = vld [vmem:[%s3297_s1 + $0x574] ss:$36 sps:$4 sm:$0xff]  }
  0x76   :  { %1653 = vmatprep.subr.bf16.mxu1 %v2401_v60  ;;  %v2486_v59 = vld [vmem:[%s3297_s1 + $0x330] ss:$36 sps:$4 sm:$0xff]  }
  0x77   :  { %v2489_v60 = vld [vmem:[%s3297_s1 + $0x570] ss:$36 sps:$4 sm:$0xff]  }
  0x78   :  { %1611 = vmatpush1.bf16.msra.mxu0 %v2396_v61  ;;  %v2494_v61 = vld [vmem:[%s3297_s1 + $0x2ec] ss:$36 sps:$4 sm:$0xff]  }
  0x79   :  { %1654 = vmatpush1.bf16.msra.mxu1 %v2399_v62  ;;  %1612 = vmatprep.subr.bf16.mxu0 %v2404_v63  ;;  %v2497_v62 = vld [vmem:[%s3297_s1 + $0x52c] ss:$36 sps:$4 sm:$0xff]  }
  0x7a   :  { %1655 = vmatprep.subr.bf16.mxu1 %v2407_v0  ;;  %v2492_v63 = vld [vmem:[%s3297_s1 + $0x2e8] ss:$36 sps:$4 sm:$0xff]  }
  0x7b   :  { %v2495_v0 = vld [vmem:[%s3297_s1 + $0x528] ss:$36 sps:$4 sm:$0xff]  }
  0x7c   :  { %1613 = vmatpush1.bf16.msra.mxu0 %v2402_v2  ;;  %v2500_v2 = vld [vmem:[%s3297_s1 + $0x2a4] ss:$36 sps:$4 sm:$0xff]  }
  0x7d   :  { %1656 = vmatpush1.bf16.msra.mxu1 %v2405_v3  ;;  %1614 = vmatprep.subr.bf16.mxu0 %v2410_v4  ;;  %v2503_v3 = vld [vmem:[%s3297_s1 + $0x4e4] ss:$36 sps:$4 sm:$0xff]  }
  0x7e   :  { %1657 = vmatprep.subr.bf16.mxu1 %v2413_v5  ;;  %v2498_v4 = vld [vmem:[%s3297_s1 + $0x2a0] ss:$36 sps:$4 sm:$0xff]  }
  0x7f   :  { %v2501_v5 = vld [vmem:[%s3297_s1 + $0x4e0] ss:$36 sps:$4 sm:$0xff]  }
  0x80   :  { %1615 = vmatpush1.bf16.msra.mxu0 %v2408_v7  ;;  %v2506_v7 = vld [vmem:[%s3297_s1 + $0x25c] ss:$36 sps:$4 sm:$0xff]  }
  0x81   :  { %1658 = vmatpush1.bf16.msra.mxu1 %v2411_v8  ;;  %1616 = vmatprep.subr.bf16.mxu0 %v2416_v9  ;;  %v2509_v8 = vld [vmem:[%s3297_s1 + $0x49c] ss:$36 sps:$4 sm:$0xff]  }
  0x82   :  { %1686 = vmatprep.subr.bf16.mxu1 %v2419_v10  ;;  %v2504_v9 = vld [vmem:[%s3297_s1 + $0x258] ss:$36 sps:$4 sm:$0xff]  }
  0x83   :  { %v2507_v10 = vld [vmem:[%s3297_s1 + $0x498] ss:$36 sps:$4 sm:$0xff]  }
  0x84   :  { %1676 = vmatmul.mubr.bf16.vlgmr.msra.gmra.mxu1 %v2664_v35  ;;  %1617 = vmatpush2.bf16.msra.mxu0 %v2414_v11  ;;  %v2426_v35 = vld [vmem:[%s3297_s1 + $0x3b8] ss:$36 sps:$4 sm:$0xff]  }
  0x85   :  { %1687 = vmatpush1.bf16.msra.mxu1 %v2417_v12  ;;  %1618 = vmatprep.subr.bf16.mxu0 %v2422_v13  ;;  %v2510_v11 = vld [vmem:[%s3297_s1 + $0x458] ss:$36 sps:$4 sm:$0xff]  }
  0x86   :  { %1688 = vmatprep.subr.bf16.mxu1 %v2425_v14  ;;  %1718 = vmatprep.mubr.bf16.mxu1 %v2715_v51  ;;  %v2511_v12 = vld [vmem:[%s3297_s1 + $0x218] ss:$36 sps:$4 sm:$0xff]   ;;  %v2536_v14 = vmov 0.0  }
  0x87   :  { %v2512_v13 = vld [vmem:[%s3297_s1 + $0x698] ss:$36 sps:$4 sm:$0xff]  }
  0x88   :  { %1619 = vmatpush2.bf16.msra.mxu0 %v2420_v15  ;;  %v2513_v15 = vld [vmem:[%s3297_s1 + $0x410] ss:$36 sps:$4 sm:$0xff]  }
  0x89   :  { %1689 = vmatpush1.bf16.msra.mxu1 %v2423_v16  ;;  %1620 = vmatprep.subr.bf16.mxu0 %v2428_v17  ;;  %v2534_v16 = vld [vmem:[%s3298_s0 + $0x8] ss:$12 sps:$4 sm:$0xff]  }
  0x8a   :  { %1690 = vmatprep.subr.bf16.mxu1 %v2431_v18  ;;  %v2514_v17 = vld [vmem:[%s3297_s1 + $0x1d0] ss:$36 sps:$4 sm:$0xff]  }
  0x8b   :  { %v2515_v18 = vld [vmem:[%s3297_s1 + $0x650] ss:$36 sps:$4 sm:$0xff]  }
  0x8c   :  { %1621 = vmatpush2.bf16.msra.mxu0 %v2426_v35  ;;  %v2516_v35 = vld [vmem:[%s3297_s1 + $0x3c8] ss:$36 sps:$4 sm:$0xff]  }
  0x8d   :  { %1691 = vmatpush1.bf16.msra.mxu1 %v2429_v19  ;;  %1622 = vmatprep.subr.bf16.mxu0 %v2434_v20  ;;  %v2517_v19 = vld [vmem:[%s3297_s1 + $0x188] ss:$36 sps:$4 sm:$0xff]  }
  0x8e   :  { %1692 = vmatprep.subr.bf16.mxu1 %v2437_v21  ;;  %v2518_v20 = vld [vmem:[%s3297_s1 + $0x608] ss:$36 sps:$4 sm:$0xff]   ;;  %v2519_v21 = vld [vmem:[%s3297_s1 + $0x380] ss:$36 sps:$4 sm:$0xff]  }
  0x90   :  { %1623 = vmatpush2.bf16.msra.mxu0 %v2432_v22  ;;  %v2521_v22 = vld [vmem:[%s3297_s1 + $0x5c0] ss:$36 sps:$4 sm:$0xff]  }
  0x91   :  { %1693 = vmatpush1.bf16.msra.mxu1 %v2435_v23  ;;  %1624 = vmatprep.subr.bf16.mxu0 %v2440_v24  ;;  %v2522_v23 = vld [vmem:[%s3297_s1 + $0x338] ss:$36 sps:$4 sm:$0xff]  }
  0x92   :  { %1694 = vmatprep.subr.bf16.mxu1 %v2443_v25  ;;  %v2523_v24 = vld [vmem:[%s3297_s1 + $0xf8] ss:$36 sps:$4 sm:$0xff]  }
  0x93   :  { %v2524_v25 = vld [vmem:[%s3297_s1 + $0x578] ss:$36 sps:$4 sm:$0xff]  }
  0x94   :  { %1625 = vmatpush2.bf16.msra.mxu0 %v2438_v26  ;;  %v2525_v26 = vld [vmem:[%s3297_s1 + $0x2f0] ss:$36 sps:$4 sm:$0xff]  }
  0x95   :  { %1695 = vmatpush1.bf16.msra.mxu1 %v2441_v27  ;;  %1626 = vmatprep.subr.bf16.mxu0 %v2446_v28  ;;  %v2526_v27 = vld [vmem:[%s3297_s1 + $0xb0] ss:$36 sps:$4 sm:$0xff]  }
  0x96   :  { %1696 = vmatprep.subr.bf16.mxu1 %v2449_v29  ;;  %v2527_v28 = vld [vmem:[%s3297_s1 + $0x530] ss:$36 sps:$4 sm:$0xff]   ;;  %v2528_v29 = vld [vmem:[%s3297_s1 + $0x2a8] ss:$36 sps:$4 sm:$0xff]  }
  0x98   :  { %1627 = vmatpush2.bf16.msra.mxu0 %v2444_v30  ;;  %v2529_v30 = vld [vmem:[%s3297_s1 + $0x68] ss:$36 sps:$4 sm:$0xff]  }
  0x99   :  { %1697 = vmatpush1.bf16.msra.mxu1 %v2447_v31  ;;  %1628 = vmatprep.subr.bf16.mxu0 %v2452_v32  ;;  %v2530_v31 = vld [vmem:[%s3297_s1 + $0x4e8] ss:$36 sps:$4 sm:$0xff]   ;;  %v2531_v32 = vld [vmem:[%s3297_s1 + $0x260] ss:$36 sps:$4 sm:$0xff]  }
  0x9a   :  { %1698 = vmatprep.subr.bf16.mxu1 %v2455_v33  ;;  %v2532_v33 = vld [vmem:[%s3297_s1 + $0x20] ss:$36 sps:$4 sm:$0xff]  }
  0x9c   :  { %1629 = vmatpush2.bf16.msra.mxu0 %v2450_v34  ;;  %v2533_v34 = vld [vmem:[%s3297_s1 + $0x4a0] ss:$36 sps:$4 sm:$0xff]  }
  0x9d   :  { %1699 = vmatpush1.bf16.msra.mxu1 %v2453_v36  ;;  %1630 = vmatprep.subr.bf16.mxu0 %v2458_v37  ;;  %v263_v36 = vlaneseq }
  0x9e   :  { %1700 = vmatprep.subr.bf16.mxu1 %v2461_v38 }
  0x9f   :  { %v3241_v37 = vshrl.u32 %v263_v36, 7 }
  0xa0   :  { %1631 = vmatpush2.bf16.msra.mxu0 %v2456_v39  ;;  %v3247_v39 = vld [vmem:[%s3299_s2] sm:$0xff] }
  0xa1   :  { %1701 = vmatpush1.bf16.msra.mxu1 %v2459_v40  ;;  %1729 = vmatprep.subr.bf16.mxu0 %v2467_v42  ;;  %v265_v38 = vsub.s32 0, %v3241_v37  ;;  %v269_v40 = vsub.s32 1, %v3241_v37 }
  0xa2   :  { %1702 = vmatprep.subr.bf16.mxu1 %v2464_v41 }
  0xa3   :  { %1633 = vmatmul.mubr.bf16.vlgmr.msra.gmra.mxu0 %v2773_v6  ;;  %v266_v42 = vrot.slane %v3247_v39, %v265_v38 }
  0xa4   :  { %1730 = vmatpush1.bf16.msra.mxu0 %v2465_v44  ;;  %1761 = vmatprep.mubr.bf16.mxu0 %v2535_v1  ;;  %v2485_v1 = vld [vmem:[%s3297_s1 + $0x5bc] ss:$36 sps:$4 sm:$0xff]  }
  0xa5   :  { %1703 = vmatpush2.bf16.msra.mxu1 %v2462_v43  ;;  %1731 = vmatprep.subr.bf16.mxu0 %v2473_v46  ;;  %v270_v43 = vrot.slane %v3247_v39, %v269_v40 }
  0xa6   :  { %1704 = vmatprep.subr.bf16.mxu1 %v2470_v45 }
  0xa8   :  { %1732 = vmatpush1.bf16.msra.mxu0 %v2471_v48 }
  0xa9   :  { %1705 = vmatpush2.bf16.msra.mxu1 %v2468_v47  ;;  %1733 = vmatprep.subr.bf16.mxu0 %v2479_v50 }
  0xaa   :  { %1706 = vmatprep.subr.bf16.mxu1 %v2476_v49 }
  0xac   :  { %1734 = vmatpush1.bf16.msra.mxu0 %v2477_v53 }
  0xad   :  { %1707 = vmatpush2.bf16.msra.mxu1 %v2474_v52  ;;  %1735 = vmatprep.subr.bf16.mxu0 %v2485_v1 }
  0xae   :  { %1708 = vmatprep.subr.bf16.mxu1 %v2482_v54 }
  0xb0   :  { %1736 = vmatpush1.bf16.msra.mxu0 %v2483_v56 }
  0xb1   :  { %1709 = vmatpush2.bf16.msra.mxu1 %v2480_v55  ;;  %1737 = vmatprep.subr.bf16.mxu0 %v2491_v58 }
  0xb2   :  { %1710 = vmatprep.subr.bf16.mxu1 %v2488_v57 }
  0xb4   :  { %1738 = vmatpush1.bf16.msra.mxu0 %v2489_v60  ;;  %v273_v60 = vsub.s32 2, %v3241_v37 }
  0xb5   :  { %1711 = vmatpush2.bf16.msra.mxu1 %v2486_v59  ;;  %1739 = vmatprep.subr.bf16.mxu0 %v2497_v62 }
  0xb6   :  { %1712 = vmatprep.subr.bf16.mxu1 %v2494_v61  ;;  %v277_v61 = vsub.s32 3, %v3241_v37  ;;  %v274_v62 = vrot.slane %v3247_v39, %v273_v60 }
  0xb8   :  { %1740 = vmatpush1.bf16.msra.mxu0 %v2495_v0 }
  0xb9   :  { %1713 = vmatpush2.bf16.msra.mxu1 %v2492_v63  ;;  %1741 = vmatprep.subr.bf16.mxu0 %v2503_v3  ;;  %v278_v63 = vrot.slane %v3247_v39, %v277_v61 }
  0xba   :  { %1714 = vmatprep.subr.bf16.mxu1 %v2500_v2 }
  0xbc   :  { %1742 = vmatpush1.bf16.msra.mxu0 %v2501_v5 }
  0xbd   :  { %1715 = vmatpush2.bf16.msra.mxu1 %v2498_v4  ;;  %1743 = vmatprep.subr.bf16.mxu0 %v2509_v8 }
  0xbe   :  { %1716 = vmatprep.subr.bf16.mxu1 %v2506_v7 }
  0xc0   :  { %1744 = vmatpush1.bf16.msra.mxu0 %v2507_v10 }
  0xc1   :  { %1717 = vmatpush2.bf16.msra.mxu1 %v2504_v9  ;;  %2164 = vmatprep.subr.bf16.mxu0 %v2510_v11 }
  0xc2   :  { %2195 = vmatprep.subr.bf16.mxu1 %v2536_v14 }
  0xc3   :  { %1762 = vmatmul.mubr.bf16.vlgmr.msra.gmra.mxu0 %v2534_v16 }
  0xc4   :  { %1719 = vmatmul.mubr.bf16.vlgmr.msra.gmra.mxu1 %v2773_v6  ;;  %2165 = vmatpush3.bf16.msra.mxu0 %v2511_v12 }
  0xc5   :  { %2196 = vmatpush3.bf16.msra.mxu1 %v2512_v13  ;;  %2166 = vmatprep.subr.bf16.mxu0 %v2513_v15 }
  0xc6   :  { %2197 = vmatprep.subr.bf16.mxu1 %v2536_v14  ;;  %1804 = vmatprep.mubr.bf16.mxu0 %v2715_v51  ;;  %v2520_v51 = vld [vmem:[%s3297_s1 + $0x140] ss:$36 sps:$4 sm:$0xff]  }
  0xc7   :  { %2211 = vmatprep.mubr.msk.bf16.mxu1 %vm2537_vm0, %v2536_v14 }
  0xc8   :  { %2167 = vmatpush3.bf16.msra.mxu0 %v2514_v17 }
  0xc9   :  { %2198 = vmatpush3.bf16.msra.mxu1 %v2515_v18  ;;  %2168 = vmatprep.subr.bf16.mxu0 %v2516_v35 }
  0xca   :  { %2199 = vmatprep.subr.bf16.mxu1 %v2536_v14 }
  0xcc   :  { %2169 = vmatpush3.bf16.msra.mxu0 %v2517_v19  ;;  %v281_v19 = vsub.s32 4, %v3241_v37 }
  0xcd   :  { %2200 = vmatpush3.bf16.msra.mxu1 %v2518_v20  ;;  %2170 = vmatprep.subr.bf16.mxu0 %v2519_v21  ;;  %v285_v20 = vsub.s32 5, %v3241_v37 }
  0xce   :  { %2201 = vmatprep.subr.bf16.mxu1 %v2536_v14 }
  0xd0   :  { %2171 = vmatpush3.bf16.msra.mxu0 %v2520_v51  ;;  %v282_v51 = vrot.slane %v3247_v39, %v281_v19 }
  0xd1   :  { %2202 = vmatpush3.bf16.msra.mxu1 %v2521_v22  ;;  %2172 = vmatprep.subr.bf16.mxu0 %v2522_v23  ;;  %v286_v22 = vrot.slane %v3247_v39, %v285_v20 }
  0xd2   :  { %2203 = vmatprep.subr.bf16.mxu1 %v2536_v14 }
  0xd4   :  { %2173 = vmatpush3.bf16.msra.mxu0 %v2523_v24 }
  0xd5   :  { %2204 = vmatpush3.bf16.msra.mxu1 %v2524_v25  ;;  %2174 = vmatprep.subr.bf16.mxu0 %v2525_v26 }
  0xd6   :  { %2205 = vmatprep.subr.bf16.mxu1 %v2536_v14 }
  0xd8   :  { %2175 = vmatpush3.bf16.msra.mxu0 %v2526_v27 }
  0xd9   :  { %2206 = vmatpush3.bf16.msra.mxu1 %v2527_v28  ;;  %2176 = vmatprep.subr.bf16.mxu0 %v2528_v29 }
  0xda   :  { %2207 = vmatprep.subr.bf16.mxu1 %v2536_v14 }
  0xdc   :  { %2177 = vmatpush3.bf16.msra.mxu0 %v2529_v30 }
  0xdd   :  { %2208 = vmatpush3.bf16.msra.mxu1 %v2530_v31  ;;  %2178 = vmatprep.subr.bf16.mxu0 %v2531_v32 }
  0xde   :  { %2209 = vmatprep.subr.bf16.mxu1 %v2536_v14 }
  0xe0   :  { %2179 = vmatpush3.bf16.msra.mxu0 %v2532_v33 }
  0xe1   :  { %2210 = vmatpush3.bf16.msra.mxu1 %v2533_v34 }
  0xe3   :  { %1805 = vmatmul.mubr.bf16.vlgmr.msra.gmra.mxu0 %v2773_v6 }
  0xe4   :  { %2212 = vmatmul.mubr.bf16.vlgmr.msra.gmra.mxu1 %v2534_v16  ;;  %v1505_v41 = vpop.f32.mrf.mxu1 }
  0xe6   :  { %v1507_v44 = vpop.f32.mrf.mxu1 }
  0xe8   :  { %v1509_v48 = vpop.f32.mrf.mxu1 }
  0xea   :  { %v1511_v56 = vpop.f32.mrf.mxu1 }
 0x103   :  { %v1462_v6 = vpop.f32.mrf.mxu0 }
 0x104   :  { %v1463_v45 = vadd.f32 %v1462_v6, %v266_v42 }
 0x105   :  { %v1464_v46 = vpop.f32.mrf.mxu0 }
 0x106   :  { %v1465_v47 = vadd.f32 %v1464_v46, %v270_v43  ;;  %v1506_v50 = vadd.f32 %v1505_v41, %v1463_v45 }
 0x107   :  { %v1466_v49 = vpop.f32.mrf.mxu0 }
 0x108   :  { %v1508_v52 = vadd.f32 %v1507_v44, %v1465_v47  ;;  %v1467_v53 = vadd.f32 %v1466_v49, %v266_v42  ;;  %v293_v44 = vsub.s32 7, %v3241_v37 }
 0x109   :  { %v1468_v54 = vpop.f32.mrf.mxu0 }
 0x10a   :  { %v2154_v1 = vpack.c.bf16 %v1508_v52, %v1506_v50  ;;  %v1469_v55 = vadd.f32 %v1468_v54, %v270_v43  ;;  %v1510_v57 = vadd.f32 %v1509_v48, %v1467_v53  ;;  %v289_v43 = vsub.s32 6, %v3241_v37 }
 0x10b   :  { %v294_v45 = vrot.slane %v3247_v39, %v293_v44 }
 0x10c   :  { %1910 = vst [vmem:[%s3300_s3] sm:$0xff] %v2154_v1  ;;  %v1512_v58 = vadd.f32 %v1511_v56, %v1469_v55  ;;  %v290_v6 = vrot.slane %v3247_v39, %v289_v43 }
 0x10e   :  { %v2159_v59 = vpack.c.bf16 %v1512_v58, %v1510_v57 }
 0x110   :  { %1915 = vst [vmem:[%s3300_s3 + $0x24] sm:$0xff] %v2159_v59 }
 0x123   :  { %v1591_v2 = vpop.f32.mrf.mxu0 }
 0x124   :  { %v1548_v0 = vpop.f32.mrf.mxu1 }
 0x125   :  { %v1549_v3 = vadd.f32 %v1548_v0, %v274_v62  ;;  %v1593_v5 = vpop.f32.mrf.mxu0  ;;  %v1924_v0 = vld [vmem:[%s3299_s2 + $0x8] ss:$0 sm:$0xff] }
 0x126   :  { %v1550_v4 = vpop.f32.mrf.mxu1 }
 0x127   :  { %v1551_v7 = vadd.f32 %v1550_v4, %v278_v63  ;;  %v1595_v9 = vpop.f32.mrf.mxu0  ;;  %v1592_v10 = vadd.f32 %v1591_v2, %v1549_v3 }
 0x128   :  { %v1552_v8 = vpop.f32.mrf.mxu1 }
 0x129   :  { %v1594_v11 = vadd.f32 %v1593_v5, %v1551_v7  ;;  %v1553_v12 = vadd.f32 %v1552_v8, %v274_v62  ;;  %v1597_v16 = vpop.f32.mrf.mxu0 }
 0x12a   :  { %v1554_v13 = vpop.f32.mrf.mxu1 }
 0x12b   :  { %v2155_v14 = vpack.c.bf16 %v1594_v11, %v1592_v10  ;;  %v1555_v15 = vadd.f32 %v1554_v13, %v278_v63  ;;  %v1596_v17 = vadd.f32 %v1595_v9, %v1553_v12 }
 0x12d   :  { %1911 = vst [vmem:[%s3300_s3 + $0x8] sm:$0xff] %v2155_v14  ;;  %v1598_v18 = vadd.f32 %v1597_v16, %v1555_v15 }
 0x12f   :  { %v2160_v35 = vpack.c.bf16 %v1598_v18, %v1596_v17 }
 0x131   :  { %1916 = vst [vmem:[%s3300_s3 + $0x2c] sm:$0xff] %v2160_v35 }
 0x144   :  { %v1677_v21 = vpop.f32.mrf.mxu1 }
 0x146   :  { %v1679_v23 = vpop.f32.mrf.mxu1 }
 0x148   :  { %v1681_v28 = vpop.f32.mrf.mxu1 }
 0x14a   :  { %v1683_v38 = vpop.f32.mrf.mxu1 }
 0x163   :  { %v1634_v24 = vpop.f32.mrf.mxu0 }
 0x164   :  { %v1635_v25 = vadd.f32 %v1634_v24, %v282_v51 }
 0x165   :  { %v1636_v26 = vpop.f32.mrf.mxu0 }
 0x166   :  { %v1637_v27 = vadd.f32 %v1636_v26, %v286_v22  ;;  %v1678_v30 = vadd.f32 %v1677_v21, %v1635_v25 }
 0x167   :  { %v1638_v29 = vpop.f32.mrf.mxu0 }
 0x168   :  { %v1680_v31 = vadd.f32 %v1679_v23, %v1637_v27  ;;  %v1639_v32 = vadd.f32 %v1638_v29, %v282_v51 }
 0x169   :  { %v1640_v33 = vpop.f32.mrf.mxu0 }
 0x16a   :  { %v2156_v34 = vpack.c.bf16 %v1680_v31, %v1678_v30  ;;  %v1641_v36 = vadd.f32 %v1640_v33, %v286_v22  ;;  %v1682_v40 = vadd.f32 %v1681_v28, %v1639_v32 }
 0x16c   :  { %1912 = vst [vmem:[%s3300_s3 + $0x10] sm:$0xff] %v2156_v34  ;;  %v1684_v41 = vadd.f32 %v1683_v38, %v1641_v36 }
 0x16e   :  { %v2161_v42 = vpack.c.bf16 %v1684_v41, %v1682_v40 }
 0x170   :  { %1917 = vst [vmem:[%s3300_s3 + $0x34] sm:$0xff] %v2161_v42 }
 0x183   :  { %v1763_v47 = vpop.f32.mrf.mxu0 }
 0x184   :  { %v1720_v46 = vpop.f32.mrf.mxu1 }
 0x185   :  { %v1721_v48 = vadd.f32 %v1720_v46, %v290_v6  ;;  %v1765_v50 = vpop.f32.mrf.mxu0 }
 0x186   :  { %v1722_v49 = vpop.f32.mrf.mxu1 }
 0x187   :  { %v1723_v52 = vadd.f32 %v1722_v49, %v294_v45  ;;  %v1767_v54 = vpop.f32.mrf.mxu0  ;;  %v1764_v1 = vadd.f32 %v1763_v47, %v1721_v48 }
 0x188   :  { %v1724_v53 = vpop.f32.mrf.mxu1 }
 0x189   :  { %v1766_v55 = vadd.f32 %v1765_v50, %v1723_v52  ;;  %v1725_v56 = vadd.f32 %v1724_v53, %v290_v6  ;;  %v1769_v60 = vpop.f32.mrf.mxu0 }
 0x18a   :  { %v1726_v57 = vpop.f32.mrf.mxu1 }
 0x18b   :  { %v2157_v58 = vpack.c.bf16 %v1766_v55, %v1764_v1  ;;  %v1727_v59 = vadd.f32 %v1726_v57, %v294_v45  ;;  %v1768_v37 = vadd.f32 %v1767_v54, %v1725_v56 }
 0x18d   :  { %1913 = vst [vmem:[%s3300_s3 + $0x18] sm:$0xff] %v2157_v58  ;;  %v1770_v39 = vadd.f32 %v1769_v60, %v1727_v59 }
 0x18f   :  { %v2162_v61 = vpack.c.bf16 %v1770_v39, %v1768_v37 }
 0x191   :  { %1918 = vst [vmem:[%s3300_s3 + $0x3c] sm:$0xff] %v2162_v61 }
 0x1a3   :  { %v2180_v62 = vpop.f32.mrf.mxu0 }
 0x1a4   :  { %v1847_v63 = vpop.f32.mrf.mxu1 }
 0x1a5   :  { %v2181_v2 = vpop.f32.mrf.mxu0 }
 0x1a6   :  { %v2213_v3 = vpop.f32.mrf.mxu1  ;;  %v2182_v4 = vadd.f32 %v2181_v2, %v2180_v62 }
 0x1a7   :  { %v2183_v5 = vpop.f32.mrf.mxu0 }
 0x1a8   :  { %v1850_v7 = vpop.f32.mrf.mxu1  ;;  %v1807_v8 = vadd.f32 %v2182_v4, %v1924_v0 }
 0x1a9   :  { %v2184_v9 = vpop.f32.mrf.mxu0 }
 0x1aa   :  { %v2214_v10 = vpop.f32.mrf.mxu1  ;;  %v1848_v11 = vadd.f32 %v1847_v63, %v1807_v8  ;;  %v2185_v12 = vadd.f32 %v2184_v9, %v2183_v5 }
 0x1ac   :  { %v2158_v13 = vpack.c.bf16 %v1848_v11, %v1848_v11  ;;  %v1810_v14 = vadd.f32 %v2185_v12, %v1924_v0 }
 0x1ae   :  { %1914 = vst [vmem:[%s3300_s3 + $0x20] sm:$0xf] %v2158_v13  ;;  %v1851_v15 = vadd.f32 %v1850_v7, %v1810_v14 }
 0x1b0   :  { %v2163_v16 = vpack.c.bf16 %v1851_v15, %v1851_v15 }
 0x1b2   :  { %1919 = vst [vmem:[%s3300_s3 + $0x44] sm:$0xf] %v2163_v16 }

// kernel: vqa_backbone_forward.13
= control target key start
LH: loop header
LB: loop body
LE: loop exit
PB: predicated region body
PF: predicated region fallthrough
CT: control target
= control target key end

     0   :  { %v984_v1 = vmov 0   ;;  %vm986_vm0 = vmmov 0   ;;  %s1265_s1 = inlined_call_operand.vmem [shape: bf16[384,384], index: 1, kind: input, shape index: {}]   ;;  %s1266_s0 = inlined_call_operand.vmem [shape: bf16[16,384], index: 0, kind: input, shape index: {}]   ;;  %s1267_s2 = inlined_call_operand.vmem [shape: f32[1,384], index: 2, kind: input, shape index: {}]   ;;  %s1268_s3 = inlined_call_operand.vmem [shape: bf16[16,384], index: 3, kind: input, shape index: {}]   ;;  %s1269_s4 = inlined_call_operand.vmem [shape: bf16[16,384], index: 4, kind: output, shape index: {}]  }
   0x1   :  { %v884_v0 = vld [vmem:[%s1265_s1 + $0xac] ss:$12 sps:$4 sm:$0xff]   ;;  %610 = vmatprep.mubr.bf16.mxu1 %v984_v1  ;;  %v886_v2 = vld [vmem:[%s1265_s1 + $0xa8] ss:$12 sps:$4 sm:$0xff]   ;;  %v889_v4 = vld [vmem:[%s1265_s1 + $0x90] ss:$12 sps:$4 sm:$0xff]  }
   0x2   :  { %535 = vmatprep.subr.bf16.mxu0 %v884_v0  ;;  %v887_v3 = vld [vmem:[%s1265_s1 + $0x94] ss:$12 sps:$4 sm:$0xff]   ;;  %v890_v5 = vld [vmem:[%s1265_s1 + $0x7c] ss:$12 sps:$4 sm:$0xff]   ;;  %v892_v6 = vld [vmem:[%s1265_s1 + $0x78] ss:$12 sps:$4 sm:$0xff]  }
   0x3   :  { %536 = vmatpush1.bf16.msra.mxu0 %v886_v2  ;;  %v893_v7 = vld [vmem:[%s1265_s1 + $0x64] ss:$12 sps:$4 sm:$0xff]   ;;  %v901_v8 = vld [vmem:[%s1265_s1 + $0x22c] ss:$12 sps:$4 sm:$0xff]   ;;  %v904_v9 = vld [vmem:[%s1265_s1 + $0x228] ss:$12 sps:$4 sm:$0xff]  }
   0x4   :  { %537 = vmatprep.subr.bf16.mxu0 %v887_v3  ;;  %578 = vmatprep.subr.bf16.mxu1 %v901_v8  ;;  %v895_v10 = vld [vmem:[%s1265_s1 + $0x60] ss:$12 sps:$4 sm:$0xff]   ;;  %v910_v12 = vld [vmem:[%s1265_s1 + $0x210] ss:$12 sps:$4 sm:$0xff]   ;;  %v898_v15 = vld [vmem:[%s1265_s1 + $0x48] ss:$12 sps:$4 sm:$0xff]  }
   0x5   :  { %579 = vmatpush1.bf16.msra.mxu1 %v904_v9  ;;  %v907_v11 = vld [vmem:[%s1265_s1 + $0x214] ss:$12 sps:$4 sm:$0xff]   ;;  %v896_v13 = vld [vmem:[%s1265_s1 + $0x4c] ss:$12 sps:$4 sm:$0xff]   ;;  %v913_v14 = vld [vmem:[%s1265_s1 + $0x1fc] ss:$12 sps:$4 sm:$0xff]  }
   0x6   :  { %580 = vmatprep.subr.bf16.mxu1 %v907_v11  ;;  %v916_v16 = vld [vmem:[%s1265_s1 + $0x1f8] ss:$12 sps:$4 sm:$0xff]   ;;  %v899_v17 = vld [vmem:[%s1265_s1 + $0x34] ss:$12 sps:$4 sm:$0xff]   ;;  %v903_v19 = vld [vmem:[%s1265_s1 + $0x30] ss:$12 sps:$4 sm:$0xff]  }
   0x7   :  { %538 = vmatpush1.bf16.msra.mxu0 %v889_v4  ;;  %v919_v18 = vld [vmem:[%s1265_s1 + $0x1e4] ss:$12 sps:$4 sm:$0xff]   ;;  %v905_v20 = vld [vmem:[%s1265_s1 + $0x1c] ss:$12 sps:$4 sm:$0xff]   ;;  %v922_v21 = vld [vmem:[%s1265_s1 + $0x1e0] ss:$12 sps:$4 sm:$0xff]  }
   0x8   :  { %539 = vmatprep.subr.bf16.mxu0 %v890_v5  ;;  %v925_v22 = vld [vmem:[%s1265_s1 + $0x1cc] ss:$12 sps:$4 sm:$0xff]   ;;  %v928_v24 = vld [vmem:[%s1265_s1 + $0x1c8] ss:$12 sps:$4 sm:$0xff]   ;;  %v911_v25 = vld [vmem:[%s1265_s1 + $0x4] ss:$12 sps:$4 sm:$0xff]  }
   0x9   :  { %581 = vmatpush1.bf16.msra.mxu1 %v910_v12  ;;  %v909_v23 = vld [vmem:[%s1265_s1 + $0x18] ss:$12 sps:$4 sm:$0xff]   ;;  %v931_v26 = vld [vmem:[%s1265_s1 + $0x1b4] ss:$12 sps:$4 sm:$0xff]   ;;  %v934_v29 = vld [vmem:[%s1265_s1 + $0x1b0] ss:$12 sps:$4 sm:$0xff]  }
   0xa   :  { %582 = vmatprep.subr.bf16.mxu1 %v913_v14  ;;  %v915_v27 = vld [vmem:[%s1265_s1] ss:$12 sps:$4 sm:$0xff]   ;;  %v937_v30 = vld [vmem:[%s1265_s1 + $0x19c] ss:$12 sps:$4 sm:$0xff]   ;;  %v940_v33 = vld [vmem:[%s1265_s1 + $0x198] ss:$12 sps:$4 sm:$0xff]  }
   0xb   :  { %540 = vmatpush1.bf16.msra.mxu0 %v892_v6  ;;  %v917_v28 = vld [vmem:[%s1265_s1 + $0x16c] ss:$12 sps:$4 sm:$0xff]   ;;  %v921_v31 = vld [vmem:[%s1265_s1 + $0x168] ss:$12 sps:$4 sm:$0xff]   ;;  %v943_v34 = vld [vmem:[%s1265_s1 + $0x184] ss:$12 sps:$4 sm:$0xff]  }
   0xc   :  { %541 = vmatprep.subr.bf16.mxu0 %v893_v7  ;;  %v923_v32 = vld [vmem:[%s1265_s1 + $0x154] ss:$12 sps:$4 sm:$0xff]   ;;  %v927_v35 = vld [vmem:[%s1265_s1 + $0x150] ss:$12 sps:$4 sm:$0xff]   ;;  %v933_v39 = vld [vmem:[%s1265_s1 + $0x138] ss:$12 sps:$4 sm:$0xff]  }
   0xd   :  { %583 = vmatpush1.bf16.msra.mxu1 %v916_v16  ;;  %v929_v36 = vld [vmem:[%s1265_s1 + $0x13c] ss:$12 sps:$4 sm:$0xff]   ;;  %v946_v37 = vld [vmem:[%s1265_s1 + $0x180] ss:$12 sps:$4 sm:$0xff]   ;;  %v935_v41 = vld [vmem:[%s1265_s1 + $0x124] ss:$12 sps:$4 sm:$0xff]  }
   0xe   :  { %584 = vmatprep.subr.bf16.mxu1 %v919_v18  ;;  %v949_v38 = vld [vmem:[%s1265_s1 + $0x170] ss:$12 sps:$4 sm:$0xff]   ;;  %v1132_v40 = vld [vmem:[%s1266_s0 + $0x8] ss:$12 sps:$4 sm:$0xff]   ;;  %v955_v43 = vld [vmem:[%s1265_s1 + $0x158] ss:$12 sps:$4 sm:$0xff]  }
   0xf   :  { %542 = vmatpush1.bf16.msra.mxu0 %v895_v10  ;;  %v952_v42 = vld [vmem:[%s1265_s1 + $0xb0] ss:$12 sps:$4 sm:$0xff]   ;;  %v939_v45 = vld [vmem:[%s1265_s1 + $0x120] ss:$12 sps:$4 sm:$0xff]   ;;  %v957_v47 = vld [vmem:[%s1265_s1 + $0x98] ss:$12 sps:$4 sm:$0xff]  }
  0x10   :  { %543 = vmatprep.subr.bf16.mxu0 %v896_v13  ;;  %v965_v44 = vld [vmem:[%s1266_s0 + $0x4] ss:$12 sps:$4 sm:$0xff]   ;;  %v941_v46 = vld [vmem:[%s1265_s1 + $0x10c] ss:$12 sps:$4 sm:$0xff]   ;;  %v945_v49 = vld [vmem:[%s1265_s1 + $0x108] ss:$12 sps:$4 sm:$0xff]   ;;  %v120_v13 = vlaneseq }
  0x11   :  { %585 = vmatpush1.bf16.msra.mxu1 %v922_v21  ;;  %567 = vmatprep.mubr.bf16.mxu0 %v965_v44  ;;  %v960_v48 = vld [vmem:[%s1265_s1 + $0x140] ss:$12 sps:$4 sm:$0xff]   ;;  %v966_v52 = vld [vmem:[%s1265_s1 + $0x128] ss:$12 sps:$4 sm:$0xff]   ;;  %v950_v53 = vld [vmem:[%s1265_s1 + $0xf0] ss:$12 sps:$4 sm:$0xff]  }
  0x12   :  { %586 = vmatprep.subr.bf16.mxu1 %v925_v22  ;;  %v947_v50 = vld [vmem:[%s1265_s1 + $0xf4] ss:$12 sps:$4 sm:$0xff]   ;;  %v953_v54 = vld [vmem:[%s1265_s1 + $0xdc] ss:$12 sps:$4 sm:$0xff]   ;;  %v956_v57 = vld [vmem:[%s1265_s1 + $0xd8] ss:$12 sps:$4 sm:$0xff]  }
  0x13   :  { %544 = vmatpush1.bf16.msra.mxu0 %v898_v15  ;;  %v962_v51 = vld [vmem:[%s1265_s1 + $0x80] ss:$12 sps:$4 sm:$0xff]   ;;  %v967_v55 = vld [vmem:[%s1265_s1 + $0x68] ss:$12 sps:$4 sm:$0xff]   ;;  %v969_v56 = vld [vmem:[%s1265_s1 + $0x110] ss:$12 sps:$4 sm:$0xff]  }
  0x14   :  { %545 = vmatprep.subr.bf16.mxu0 %v899_v17  ;;  %v958_v58 = vld [vmem:[%s1265_s1 + $0xc4] ss:$12 sps:$4 sm:$0xff]   ;;  %v961_v61 = vld [vmem:[%s1265_s1 + $0xc0] ss:$12 sps:$4 sm:$0xff]   ;;  %v985_v3 = vmov 0.0   ;;  %v121_v14 = vshrl.u32 %v120_v13, 7 }
  0x15   :  { %587 = vmatpush1.bf16.msra.mxu1 %v928_v24  ;;  %v970_v59 = vld [vmem:[%s1265_s1 + $0x50] ss:$12 sps:$4 sm:$0xff]   ;;  %v972_v60 = vld [vmem:[%s1265_s1 + $0xf8] ss:$12 sps:$4 sm:$0xff]   ;;  %v975_v63 = vld [vmem:[%s1265_s1 + $0xe0] ss:$12 sps:$4 sm:$0xff]  }
  0x16   :  { %588 = vmatprep.subr.bf16.mxu1 %v931_v26  ;;  %v973_v62 = vld [vmem:[%s1265_s1 + $0x38] ss:$12 sps:$4 sm:$0xff]   ;;  %v963_v0 = vld [vmem:[%s1266_s0] ss:$12 sps:$4 sm:$0xff]   ;;  %v968_v1 = vld [vmem:[%s1265_s1 + $0x230] ss:$12 sps:$4 sm:$0xff]  }
  0x17   :  { %546 = vmatpush1.bf16.msra.mxu0 %v903_v19  ;;  %v976_v2 = vld [vmem:[%s1265_s1 + $0x20] ss:$12 sps:$4 sm:$0xff]   ;;  %v978_v4 = vld [vmem:[%s1265_s1 + $0xc8] ss:$12 sps:$4 sm:$0xff]   ;;  %v971_v5 = vld [vmem:[%s1265_s1 + $0x218] ss:$12 sps:$4 sm:$0xff]  }
  0x18   :  { %547 = vmatprep.subr.bf16.mxu0 %v905_v20  ;;  %v979_v6 = vld [vmem:[%s1265_s1 + $0x8] ss:$12 sps:$4 sm:$0xff]   ;;  %v974_v7 = vld [vmem:[%s1265_s1 + $0x200] ss:$12 sps:$4 sm:$0xff]   ;;  %v980_v9 = vld [vmem:[%s1265_s1 + $0x1d0] ss:$12 sps:$4 sm:$0xff]  }
  0x19   :  { %589 = vmatpush1.bf16.msra.mxu1 %v934_v29  ;;  %v977_v8 = vld [vmem:[%s1265_s1 + $0x1e8] ss:$12 sps:$4 sm:$0xff]   ;;  %v981_v10 = vld [vmem:[%s1265_s1 + $0x1b8] ss:$12 sps:$4 sm:$0xff]   ;;  %v982_v11 = vld [vmem:[%s1265_s1 + $0x1a0] ss:$12 sps:$4 sm:$0xff]  }
  0x1a   :  { %590 = vmatprep.subr.bf16.mxu1 %v937_v30  ;;  %v983_v12 = vld [vmem:[%s1265_s1 + $0x188] ss:$12 sps:$4 sm:$0xff]   ;;  %v122_v15 = vsub.s32 0, %v121_v14  ;;  %v118_v16 = vld [vmem:[%s1267_s2] sm:$0x7]  ;;  %v126_v17 = vsub.s32 1, %v121_v14 }
  0x1b   :  { %548 = vmatpush1.bf16.msra.mxu0 %v909_v23  ;;  %v703_v23 = vld [vmem:[%s1268_s3] sm:$0xff]  ;;  %v705_v30 = vld [vmem:[%s1268_s3 + $0xc] sm:$0xff] }
  0x1c   :  { %549 = vmatprep.subr.bf16.mxu0 %v911_v25  ;;  %v123_v19 = vrot.slane %v118_v16, %v122_v15  ;;  %v127_v20 = vrot.slane %v118_v16, %v126_v17  ;;  %v708_v29 = vunpack.c.h.bf16 %v703_v23 }
  0x1d   :  { %591 = vmatpush1.bf16.msra.mxu1 %v940_v33 }
  0x1e   :  { %592 = vmatprep.subr.bf16.mxu1 %v943_v34 }
  0x1f   :  { %550 = vmatpush1.bf16.msra.mxu0 %v915_v27  ;;  %v707_v27 = vunpack.c.l.bf16 %v703_v23 }
  0x20   :  { %551 = vmatprep.subr.bf16.mxu0 %v917_v28 }
  0x21   :  { %593 = vmatpush1.bf16.msra.mxu1 %v946_v37  ;;  %v711_v37 = vunpack.c.h.bf16 %v705_v30 }
  0x22   :  { %830 = vmatprep.subr.bf16.mxu1 %v949_v38 }
  0x23   :  { %552 = vmatpush2.bf16.msra.mxu0 %v921_v31 }
  0x24   :  { %553 = vmatprep.subr.bf16.mxu0 %v923_v32  ;;  %611 = vmatmul.mubr.bf16.vlgmr.msra.gmra.mxu1 %v1132_v40 }
  0x25   :  { %831 = vmatpush3.bf16.msra.mxu1 %v952_v42  ;;  %653 = vmatprep.mubr.bf16.mxu1 %v965_v44 }
  0x26   :  { %832 = vmatprep.subr.bf16.mxu1 %v955_v43 }
  0x27   :  { %554 = vmatpush2.bf16.msra.mxu0 %v927_v35  ;;  %v710_v35 = vunpack.c.l.bf16 %v705_v30 }
  0x28   :  { %555 = vmatprep.subr.bf16.mxu0 %v929_v36 }
  0x29   :  { %833 = vmatpush3.bf16.msra.mxu1 %v957_v47 }
  0x2a   :  { %834 = vmatprep.subr.bf16.mxu1 %v960_v48 }
  0x2b   :  { %556 = vmatpush2.bf16.msra.mxu0 %v933_v39 }
  0x2c   :  { %557 = vmatprep.subr.bf16.mxu0 %v935_v41 }
  0x2d   :  { %835 = vmatpush3.bf16.msra.mxu1 %v962_v51 }
  0x2e   :  { %836 = vmatprep.subr.bf16.mxu1 %v966_v52 }
  0x2f   :  { %558 = vmatpush2.bf16.msra.mxu0 %v939_v45 }
  0x30   :  { %559 = vmatprep.subr.bf16.mxu0 %v941_v46 }
  0x31   :  { %837 = vmatpush3.bf16.msra.mxu1 %v967_v55  ;;  %v704_v55 = vld [vmem:[%s1268_s3 + $0x8] ss:$12 sps:$4 sm:$0xff]  }
  0x32   :  { %838 = vmatprep.subr.bf16.mxu1 %v969_v56 }
  0x33   :  { %560 = vmatpush2.bf16.msra.mxu0 %v945_v49 }
  0x34   :  { %561 = vmatprep.subr.bf16.mxu0 %v947_v50  ;;  %v130_v50 = vsub.s32 2, %v121_v14 }
  0x35   :  { %839 = vmatpush3.bf16.msra.mxu1 %v970_v59 }
  0x36   :  { %840 = vmatprep.subr.bf16.mxu1 %v972_v60 }
  0x37   :  { %562 = vmatpush2.bf16.msra.mxu0 %v950_v53  ;;  %v131_v53 = vrot.slane %v118_v16, %v130_v50 }
  0x38   :  { %563 = vmatprep.subr.bf16.mxu0 %v953_v54 }
  0x39   :  { %841 = vmatpush3.bf16.msra.mxu1 %v973_v62 }
  0x3a   :  { %842 = vmatprep.subr.bf16.mxu1 %v975_v63 }
  0x3b   :  { %564 = vmatpush2.bf16.msra.mxu0 %v956_v57 }
  0x3c   :  { %565 = vmatprep.subr.bf16.mxu0 %v958_v58  ;;  %v709_v58 = vunpack.c.l.bf16 %v704_v55 }
  0x3d   :  { %843 = vmatpush3.bf16.msra.mxu1 %v976_v2 }
  0x3e   :  { %844 = vmatprep.subr.bf16.mxu1 %v978_v4 }
  0x3f   :  { %566 = vmatpush2.bf16.msra.mxu0 %v961_v61 }
  0x40   :  { %861 = vmatprep.subr.bf16.mxu0 %v985_v3 }
  0x41   :  { %845 = vmatpush3.bf16.msra.mxu1 %v979_v6 }
  0x42   :  { %568 = vmatmul.mubr.bf16.vlgmr.msra.gmra.mxu0 %v963_v0 }
  0x43   :  { %862 = vmatpush3.bf16.msra.mxu0 %v968_v1  ;;  %877 = vmatprep.mubr.msk.bf16.mxu0 %vm986_vm0, %v985_v3 }
  0x44   :  { %863 = vmatprep.subr.bf16.mxu0 %v985_v3  ;;  %654 = vmatmul.mubr.bf16.vlgmr.msra.gmra.mxu1 %v963_v0  ;;  %v712_v0 = vunpack.c.h.bf16 %v704_v55 }
  0x47   :  { %864 = vmatpush3.bf16.msra.mxu0 %v971_v5 }
  0x48   :  { %865 = vmatprep.subr.bf16.mxu0 %v985_v3 }
  0x4b   :  { %866 = vmatpush3.bf16.msra.mxu0 %v974_v7 }
  0x4c   :  { %867 = vmatprep.subr.bf16.mxu0 %v985_v3 }
  0x4f   :  { %868 = vmatpush3.bf16.msra.mxu0 %v977_v8 }
  0x50   :  { %869 = vmatprep.subr.bf16.mxu0 %v985_v3 }
  0x53   :  { %870 = vmatpush3.bf16.msra.mxu0 %v980_v9 }
  0x54   :  { %871 = vmatprep.subr.bf16.mxu0 %v985_v3 }
  0x57   :  { %872 = vmatpush3.bf16.msra.mxu0 %v981_v10 }
  0x58   :  { %873 = vmatprep.subr.bf16.mxu0 %v985_v3 }
  0x5b   :  { %874 = vmatpush3.bf16.msra.mxu0 %v982_v11 }
  0x5c   :  { %875 = vmatprep.subr.bf16.mxu0 %v985_v3 }
  0x5f   :  { %876 = vmatpush3.bf16.msra.mxu0 %v983_v12 }
  0x62   :  { %878 = vmatmul.mubr.bf16.vlgmr.msra.gmra.mxu0 %v1132_v40 }
  0xe4   :  { %v612_v18 = vpop.f32.mrf.mxu1 }
  0xe6   :  { %v614_v21 = vpop.f32.mrf.mxu1 }
  0xe8   :  { %v616_v31 = vpop.f32.mrf.mxu1 }
  0xea   :  { %v618_v42 = vpop.f32.mrf.mxu1 }
 0x102   :  { %v569_v22 = vpop.f32.mrf.mxu0 }
 0x103   :  { %v570_v24 = vadd.f32 %v569_v22, %v123_v19 }
 0x104   :  { %v571_v25 = vpop.f32.mrf.mxu0  ;;  %v846_v48 = vpop.f32.mrf.mxu1 }
 0x105   :  { %v613_v26 = vadd.f32 %v612_v18, %v570_v24  ;;  %v572_v28 = vadd.f32 %v571_v25, %v127_v20 }
 0x106   :  { %v573_v32 = vpop.f32.mrf.mxu0  ;;  %v847_v49 = vpop.f32.mrf.mxu1 }
 0x107   :  { %v615_v33 = vadd.f32 %v614_v21, %v572_v28  ;;  %v574_v34 = vadd.f32 %v573_v32, %v123_v19  ;;  %v713_v38 = vadd.f32 %v707_v27, %v613_v26  ;;  %v848_v52 = vadd.f32 %v847_v49, %v846_v48 }
 0x108   :  { %v575_v36 = vpop.f32.mrf.mxu0  ;;  %v849_v51 = vpop.f32.mrf.mxu1 }
 0x109   :  { %v714_v39 = vadd.f32 %v708_v29, %v615_v33  ;;  %v617_v40 = vadd.f32 %v616_v31, %v574_v34  ;;  %v576_v41 = vadd.f32 %v575_v36, %v127_v20  ;;  %v656_v57 = vadd.f32 %v848_v52, %v131_v53 }
 0x10a   :  { %v850_v54 = vpop.f32.mrf.mxu1 }
 0x10b   :  { %v826_v43 = vpack.c.bf16 %v714_v39, %v713_v38  ;;  %v619_v44 = vadd.f32 %v618_v42, %v576_v41  ;;  %v716_v45 = vadd.f32 %v710_v35, %v617_v40  ;;  %v851_v56 = vadd.f32 %v850_v54, %v849_v51 }
 0x10d   :  { %739 = vst [vmem:[%s1269_s4] sm:$0xff] %v826_v43  ;;  %v717_v46 = vadd.f32 %v711_v37, %v619_v44  ;;  %v659_v63 = vadd.f32 %v851_v56, %v131_v53 }
 0x10f   :  { %v828_v47 = vpack.c.bf16 %v717_v46, %v716_v45 }
 0x111   :  { %741 = vst [vmem:[%s1269_s4 + $0xc] sm:$0xff] %v828_v47 }
 0x122   :  { %v696_v59 = vpop.f32.mrf.mxu0 }
 0x123   :  { %v697_v60 = vadd.f32 %v696_v59, %v656_v57 }
 0x124   :  { %v879_v61 = vpop.f32.mrf.mxu0 }
 0x125   :  { %v715_v62 = vadd.f32 %v709_v58, %v697_v60 }
 0x126   :  { %v699_v1 = vpop.f32.mrf.mxu0 }
 0x127   :  { %v827_v2 = vpack.c.bf16 %v715_v62, %v715_v62  ;;  %v700_v3 = vadd.f32 %v699_v1, %v659_v63 }
 0x128   :  { %v880_v4 = vpop.f32.mrf.mxu0 }
 0x129   :  { %740 = vst [vmem:[%s1269_s4 + $0x8] sm:$0xf] %v827_v2  ;;  %v718_v5 = vadd.f32 %v712_v0, %v700_v3 }
 0x12b   :  { %v829_v6 = vpack.c.bf16 %v718_v5, %v718_v5 }
 0x12d   :  { %742 = vst [vmem:[%s1269_s4 + $0x14] sm:$0xf] %v829_v6 }

// kernel: custom-call.4
= control target key start
LH: loop header
LB: loop body
LE: loop exit
PB: predicated region body
PF: predicated region fallthrough
CT: control target
= control target key end

     0   :  { %s6_s0 = inlined_call_operand.vmem [shape: bf16[8,2,384], index: 0, kind: output, shape index: {}]  }

// kernel: custom-call.1
= control target key start
LH: loop header
LB: loop body
LE: loop exit
PB: predicated region body
PF: predicated region fallthrough
CT: control target
= control target key end

     0   :  { %s6_s0 = inlined_call_operand.vmem [shape: f32[2,384], index: 0, kind: output, shape index: {}]  }

// kernel: custom-call
= control target key start
LH: loop header
LB: loop body
LE: loop exit
PB: predicated region body
PF: predicated region fallthrough
CT: control target
= control target key end

     0   :  { %s6_s0 = inlined_call_operand.vmem [shape: bf16[2,384], index: 0, kind: output, shape index: {}]  }

// kernel: vqa_backbone_forward.15
= control target key start
LH: loop header
LB: loop body
LE: loop exit
PB: predicated region body
PF: predicated region fallthrough
CT: control target
= control target key end

     0   :  { %vm1458_vm0 = vcmask 1045504   ;;  %v2630_v1 = vmov 0   ;;  %vm1454_vm1 = vcmask 359424   ;;  %s3511_s1 = inlined_call_operand.vmem [shape: bf16[300,1536], index: 1, kind: input, shape index: {}]   ;;  %s3512_s0 = inlined_call_operand.vmem [shape: bf16[16,300], index: 0, kind: input, shape index: {}]   ;;  %s3513_s2 = inlined_call_operand.vmem [shape: f32[1,1536], index: 2, kind: input, shape index: {}]   ;;  %s3514_s3 = inlined_call_operand.vmem [shape: f32[16,1536], index: 3, kind: output, shape index: {}]  }
   0x1   :  { %v2283_v0 = vld [vmem:[%s3511_s1 + $0x2a4] ss:$48 sps:$4 sm:$0xff]   ;;  %1570 = vmatprep.mubr.bf16.mxu1 %v2630_v1  ;;  %v2287_v3 = vld [vmem:[%s3511_s1 + $0x2a0] ss:$48 sps:$4 sm:$0xff]   ;;  %v2306_v16 = vld [vmem:[%s3511_s1 + $0x2ac] ss:$48 sps:$4 sm:$0xff]  }
   0x2   :  { %v2285_v2 = vld [vmem:[%s3511_s1 + $0x6c4] ss:$48 sps:$4 sm:$0x3f]   ;;  %1495 = vmatprep.subr.bf16.mxu0 %v2283_v0  ;;  %v2288_v4 = vld [vmem:[%s3511_s1 + $0x6c0] ss:$48 sps:$4 sm:$0x3f]  }
   0x3   :  { %2270 = vmatprep.subr.msk.bf16.mxu1 %vm1458_vm0, %v2285_v2  ;;  %v2289_v5 = vld [vmem:[%s3511_s1 + $0x244] ss:$48 sps:$4 sm:$0xff]   ;;  %1496 = vmatpush1.bf16.msra.mxu0 %v2287_v3  ;;  %v1460_v6 = vsel %vm1458_vm0, %v2288_v4, 0  ;;  %v2293_v8 = vld [vmem:[%s3511_s1 + $0x240] ss:$48 sps:$4 sm:$0xff]  }
   0x4   :  { %v2291_v7 = vld [vmem:[%s3511_s1 + $0x664] ss:$48 sps:$4 sm:$0xff]   ;;  %1549 = vmatpush1.bf16.msra.mxu1 %v1460_v6  ;;  %1497 = vmatprep.subr.bf16.mxu0 %v2289_v5  ;;  %v2294_v9 = vld [vmem:[%s3511_s1 + $0x660] ss:$48 sps:$4 sm:$0xff]   ;;  %v2304_v18 = vld [vmem:[%s3511_s1 + $0x2a8] ss:$48 sps:$4 sm:$0xff]  }
   0x5   :  { %1550 = vmatprep.subr.bf16.mxu1 %v2291_v7  ;;  %v2295_v10 = vld [vmem:[%s3511_s1 + $0x1e4] ss:$48 sps:$4 sm:$0xff]   ;;  %v2299_v12 = vld [vmem:[%s3511_s1 + $0x1e0] ss:$48 sps:$4 sm:$0xff]   ;;  %v2312_v20 = vld [vmem:[%s3511_s1 + $0x24c] ss:$48 sps:$4 sm:$0xff]  }
   0x6   :  { %v2297_v11 = vld [vmem:[%s3511_s1 + $0x604] ss:$48 sps:$4 sm:$0xff]   ;;  %v2300_v13 = vld [vmem:[%s3511_s1 + $0x600] ss:$48 sps:$4 sm:$0xff]   ;;  %v2310_v21 = vld [vmem:[%s3511_s1 + $0x248] ss:$48 sps:$4 sm:$0xff]  }
   0x7   :  { %1498 = vmatpush1.bf16.msra.mxu0 %v2293_v8  ;;  %v2301_v14 = vld [vmem:[%s3511_s1 + $0x184] ss:$48 sps:$4 sm:$0xff]   ;;  %v2307_v17 = vld [vmem:[%s3511_s1 + $0x180] ss:$48 sps:$4 sm:$0xff]   ;;  %v2318_v24 = vld [vmem:[%s3511_s1 + $0x1ec] ss:$48 sps:$4 sm:$0xff]  }
   0x8   :  { %1551 = vmatpush1.bf16.msra.mxu1 %v2294_v9  ;;  %1499 = vmatprep.subr.bf16.mxu0 %v2295_v10  ;;  %v2696_v15 = vld [vmem:[%s3512_s0 + $0x8] ss:$12 sps:$4 sm:$0xff]   ;;  %v2313_v22 = vld [vmem:[%s3511_s1 + $0x120] ss:$48 sps:$4 sm:$0xff]   ;;  %v2324_v28 = vld [vmem:[%s3511_s1 + $0x18c] ss:$48 sps:$4 sm:$0xff]  }
   0x9   :  { %1552 = vmatprep.subr.bf16.mxu1 %v2297_v11  ;;  %v2308_v19 = vld [vmem:[%s3511_s1 + $0x124] ss:$48 sps:$4 sm:$0xff]   ;;  %v2319_v25 = vld [vmem:[%s3511_s1 + $0xc0] ss:$48 sps:$4 sm:$0xff]   ;;  %v2316_v26 = vld [vmem:[%s3511_s1 + $0x1e8] ss:$48 sps:$4 sm:$0xff]  }
   0xa   :  { %v2314_v23 = vld [vmem:[%s3511_s1 + $0xc4] ss:$48 sps:$4 sm:$0xff]   ;;  %v2322_v29 = vld [vmem:[%s3511_s1 + $0x188] ss:$48 sps:$4 sm:$0xff]   ;;  %v2325_v30 = vld [vmem:[%s3511_s1 + $0x60] ss:$48 sps:$4 sm:$0xff]  }
   0xb   :  { %1500 = vmatpush1.bf16.msra.mxu0 %v2299_v12  ;;  %v2320_v27 = vld [vmem:[%s3511_s1 + $0x64] ss:$48 sps:$4 sm:$0xff]   ;;  %v2330_v32 = vld [vmem:[%s3511_s1 + $0x12c] ss:$48 sps:$4 sm:$0xff]   ;;  %v2331_v33 = vld [vmem:[%s3511_s1] ss:$48 sps:$4 sm:$0xff]  }
   0xc   :  { %1553 = vmatpush1.bf16.msra.mxu1 %v2300_v13  ;;  %1501 = vmatprep.subr.bf16.mxu0 %v2301_v14  ;;  %v2326_v31 = vld [vmem:[%s3511_s1 + $0x4] ss:$48 sps:$4 sm:$0xff]   ;;  %v2328_v34 = vld [vmem:[%s3511_s1 + $0x128] ss:$48 sps:$4 sm:$0xff]   ;;  %v2336_v36 = vld [vmem:[%s3511_s1 + $0xcc] ss:$48 sps:$4 sm:$0xff]  }
   0xd   :  { %1581 = vmatprep.subr.bf16.mxu1 %v2306_v16  ;;  %v2332_v35 = vld [vmem:[%s3511_s1 + $0x5a4] ss:$48 sps:$4 sm:$0xff]   ;;  %v2334_v37 = vld [vmem:[%s3511_s1 + $0xc8] ss:$48 sps:$4 sm:$0xff]   ;;  %v2337_v38 = vld [vmem:[%s3511_s1 + $0x5a0] ss:$48 sps:$4 sm:$0xff]  }
   0xe   :  { %v2338_v39 = vld [vmem:[%s3511_s1 + $0x544] ss:$48 sps:$4 sm:$0xff]   ;;  %v2342_v40 = vld [vmem:[%s3511_s1 + $0x6c] ss:$48 sps:$4 sm:$0xff]   ;;  %v2343_v41 = vld [vmem:[%s3511_s1 + $0x540] ss:$48 sps:$4 sm:$0xff]  }
   0xf   :  { %2271 = vmatmul.mubr.msk.bf16.vlgmr.msra.gmra.mxu1 %vm1454_vm1, %v2696_v15  ;;  %1502 = vmatpush1.bf16.msra.mxu0 %v2307_v17  ;;  %v2340_v42 = vld [vmem:[%s3511_s1 + $0x68] ss:$48 sps:$4 sm:$0xff]   ;;  %v2344_v43 = vld [vmem:[%s3511_s1 + $0x4e4] ss:$48 sps:$4 sm:$0xff]   ;;  %v2348_v44 = vld [vmem:[%s3511_s1 + $0xc] ss:$48 sps:$4 sm:$0xff]  }
  0x10   :  { %1582 = vmatpush1.bf16.msra.mxu1 %v2304_v18  ;;  %1503 = vmatprep.subr.bf16.mxu0 %v2308_v19  ;;  %v2346_v45 = vld [vmem:[%s3511_s1 + $0x8] ss:$48 sps:$4 sm:$0xff]   ;;  %v2349_v46 = vld [vmem:[%s3511_s1 + $0x4e0] ss:$48 sps:$4 sm:$0xff]   ;;  %v2350_v47 = vld [vmem:[%s3511_s1 + $0x484] ss:$48 sps:$4 sm:$0xff]  }
  0x11   :  { %1583 = vmatprep.subr.bf16.mxu1 %v2312_v20  ;;  %v2354_v48 = vld [vmem:[%s3511_s1 + $0x5ac] ss:$48 sps:$4 sm:$0xff]   ;;  %v2352_v49 = vld [vmem:[%s3511_s1 + $0x5a8] ss:$48 sps:$4 sm:$0xff]   ;;  %v2355_v50 = vld [vmem:[%s3511_s1 + $0x480] ss:$48 sps:$4 sm:$0xff]  }
  0x12   :  { %v2808_v51 = vld [vmem:[%s3512_s0 + $0x4] ss:$12 sps:$4 sm:$0xff]   ;;  %v2360_v53 = vld [vmem:[%s3511_s1 + $0x54c] ss:$48 sps:$4 sm:$0xff]   ;;  %v2358_v54 = vld [vmem:[%s3511_s1 + $0x548] ss:$48 sps:$4 sm:$0xff]  }
  0x13   :  { %1504 = vmatpush1.bf16.msra.mxu0 %v2313_v22  ;;  %v2356_v52 = vld [vmem:[%s3511_s1 + $0x424] ss:$48 sps:$4 sm:$0xff]   ;;  %1527 = vmatprep.mubr.bf16.mxu0 %v2808_v51  ;;  %v2361_v55 = vld [vmem:[%s3511_s1 + $0x420] ss:$48 sps:$4 sm:$0xff]   ;;  %v2366_v57 = vld [vmem:[%s3511_s1 + $0x4ec] ss:$48 sps:$4 sm:$0xff]  }
  0x14   :  { %1584 = vmatpush1.bf16.msra.mxu1 %v2310_v21  ;;  %1505 = vmatprep.subr.bf16.mxu0 %v2314_v23  ;;  %v2362_v56 = vld [vmem:[%s3511_s1 + $0x3c4] ss:$48 sps:$4 sm:$0xff]   ;;  %v2364_v58 = vld [vmem:[%s3511_s1 + $0x4e8] ss:$48 sps:$4 sm:$0xff]   ;;  %v2367_v59 = vld [vmem:[%s3511_s1 + $0x3c0] ss:$48 sps:$4 sm:$0xff]  }
  0x15   :  { %1585 = vmatprep.subr.bf16.mxu1 %v2318_v24  ;;  %1613 = vmatprep.mubr.bf16.mxu1 %v2808_v51  ;;  %v2368_v60 = vld [vmem:[%s3511_s1 + $0x364] ss:$48 sps:$4 sm:$0xff]   ;;  %v2372_v61 = vld [vmem:[%s3511_s1 + $0x48c] ss:$48 sps:$4 sm:$0xff]   ;;  %v2370_v62 = vld [vmem:[%s3511_s1 + $0x488] ss:$48 sps:$4 sm:$0xff]  }
  0x16   :  { %v2373_v63 = vld [vmem:[%s3511_s1 + $0x360] ss:$48 sps:$4 sm:$0xff]   ;;  %v2374_v0 = vld [vmem:[%s3511_s1 + $0x304] ss:$48 sps:$4 sm:$0xff]   ;;  %v2378_v2 = vld [vmem:[%s3511_s1 + $0x42c] ss:$48 sps:$4 sm:$0xff]  }
  0x17   :  { %1506 = vmatpush1.bf16.msra.mxu0 %v2319_v25  ;;  %v2376_v3 = vld [vmem:[%s3511_s1 + $0x428] ss:$48 sps:$4 sm:$0xff]   ;;  %v2379_v4 = vld [vmem:[%s3511_s1 + $0x300] ss:$48 sps:$4 sm:$0xff]   ;;  %v2385_v7 = vld [vmem:[%s3511_s1 + $0x3cc] ss:$48 sps:$4 sm:$0xff]  }
  0x18   :  { %1586 = vmatpush1.bf16.msra.mxu1 %v2316_v26  ;;  %1507 = vmatprep.subr.bf16.mxu0 %v2320_v27  ;;  %v2386_v5 = vld [vmem:[%s3511_s1 + $0x6cc] ss:$48 sps:$4 sm:$0x3f]   ;;  %v2388_v6 = vld [vmem:[%s3511_s1 + $0x6c8] ss:$48 sps:$4 sm:$0x3f]  }
  0x19   :  { %1587 = vmatprep.subr.bf16.mxu1 %v2324_v28  ;;  %v2872_v8 = vld [vmem:[%s3512_s0] ss:$12 sps:$4 sm:$0xff]   ;;  %v2383_v9 = vld [vmem:[%s3511_s1 + $0x3c8] ss:$48 sps:$4 sm:$0xff]   ;;  %v1466_v10 = vsel %vm1458_vm0, %v2388_v6, 0 }
  0x1a   :  { %v2394_v11 = vld [vmem:[%s3511_s1 + $0x66c] ss:$48 sps:$4 sm:$0xff]   ;;  %v2389_v13 = vld [vmem:[%s3511_s1 + $0x368] ss:$48 sps:$4 sm:$0xff]   ;;  %v2403_v20 = vld [vmem:[%s3511_s1 + $0x2b4] ss:$48 sps:$4 sm:$0xff]  }
  0x1b   :  { %1508 = vmatpush1.bf16.msra.mxu0 %v2325_v30  ;;  %v2391_v12 = vld [vmem:[%s3511_s1 + $0x36c] ss:$48 sps:$4 sm:$0xff]   ;;  %v2392_v14 = vld [vmem:[%s3511_s1 + $0x668] ss:$48 sps:$4 sm:$0xff]   ;;  %v2401_v23 = vld [vmem:[%s3511_s1 + $0x2b0] ss:$48 sps:$4 sm:$0xff]  }
  0x1c   :  { %1588 = vmatpush1.bf16.msra.mxu1 %v2322_v29  ;;  %1509 = vmatprep.subr.bf16.mxu0 %v2326_v31  ;;  %v2400_v16 = vld [vmem:[%s3511_s1 + $0x60c] ss:$48 sps:$4 sm:$0xff]   ;;  %v2395_v18 = vld [vmem:[%s3511_s1 + $0x308] ss:$48 sps:$4 sm:$0xff]   ;;  %v2409_v24 = vld [vmem:[%s3511_s1 + $0x254] ss:$48 sps:$4 sm:$0xff]  }
  0x1d   :  { %1589 = vmatprep.subr.bf16.mxu1 %v2330_v32  ;;  %v2397_v17 = vld [vmem:[%s3511_s1 + $0x30c] ss:$48 sps:$4 sm:$0xff]   ;;  %v2398_v19 = vld [vmem:[%s3511_s1 + $0x608] ss:$48 sps:$4 sm:$0xff]   ;;  %v2412_v26 = vld [vmem:[%s3511_s1 + $0x674] ss:$48 sps:$4 sm:$0xff]  }
  0x1e   :  { %v2404_v21 = vld [vmem:[%s3511_s1 + $0x6d4] ss:$48 sps:$4 sm:$0x3f]   ;;  %v2406_v22 = vld [vmem:[%s3511_s1 + $0x6d0] ss:$48 sps:$4 sm:$0x3f]  }
  0x1f   :  { %1510 = vmatpush1.bf16.msra.mxu0 %v2331_v33  ;;  %v1472_v25 = vsel %vm1458_vm0, %v2406_v22, 0  ;;  %v2407_v27 = vld [vmem:[%s3511_s1 + $0x250] ss:$48 sps:$4 sm:$0xff]   ;;  %v2415_v29 = vld [vmem:[%s3511_s1 + $0x1f4] ss:$48 sps:$4 sm:$0xff]  }
  0x20   :  { %1590 = vmatpush1.bf16.msra.mxu1 %v2328_v34  ;;  %1511 = vmatprep.subr.bf16.mxu0 %v2332_v35  ;;  %v2410_v28 = vld [vmem:[%s3511_s1 + $0x670] ss:$48 sps:$4 sm:$0xff]   ;;  %v2418_v30 = vld [vmem:[%s3511_s1 + $0x614] ss:$48 sps:$4 sm:$0xff]   ;;  %v2424_v34 = vld [vmem:[%s3511_s1 + $0x2bc] ss:$48 sps:$4 sm:$0xff]  }
  0x21   :  { %1591 = vmatprep.subr.bf16.mxu1 %v2336_v36  ;;  %v2413_v31 = vld [vmem:[%s3511_s1 + $0x1f0] ss:$48 sps:$4 sm:$0xff]   ;;  %v2421_v33 = vld [vmem:[%s3511_s1 + $0x194] ss:$48 sps:$4 sm:$0xff]   ;;  %v2422_v36 = vld [vmem:[%s3511_s1 + $0x2b8] ss:$48 sps:$4 sm:$0xff]  }
  0x22   :  { %v2416_v32 = vld [vmem:[%s3511_s1 + $0x610] ss:$48 sps:$4 sm:$0xff]   ;;  %v2475_v6 = vld [vmem:[%s3511_s1 + $0x434] ss:$48 sps:$4 sm:$0xff]  }
  0x23   :  { %1512 = vmatpush2.bf16.msra.mxu0 %v2337_v38  ;;  %v2419_v35 = vld [vmem:[%s3511_s1 + $0x190] ss:$48 sps:$4 sm:$0xff]   ;;  %v2430_v38 = vld [vmem:[%s3511_s1 + $0x25c] ss:$48 sps:$4 sm:$0xff]  }
  0x24   :  { %1592 = vmatpush1.bf16.msra.mxu1 %v2334_v37  ;;  %1513 = vmatprep.subr.bf16.mxu0 %v2338_v39  ;;  %v2427_v37 = vld [vmem:[%s3511_s1 + $0x134] ss:$48 sps:$4 sm:$0xff]   ;;  %v2425_v39 = vld [vmem:[%s3511_s1 + $0x130] ss:$48 sps:$4 sm:$0xff]  }
  0x25   :  { %1593 = vmatprep.subr.bf16.mxu1 %v2342_v40  ;;  %v2428_v40 = vld [vmem:[%s3511_s1 + $0x258] ss:$48 sps:$4 sm:$0xff]   ;;  %v2491_v22 = vld [vmem:[%s3511_s1 + $0x310] ss:$48 sps:$4 sm:$0xff]  }
  0x27   :  { %1514 = vmatpush2.bf16.msra.mxu0 %v2343_v41  ;;  %v2433_v41 = vld [vmem:[%s3511_s1 + $0xd4] ss:$48 sps:$4 sm:$0xff]  }
  0x28   :  { %1594 = vmatpush1.bf16.msra.mxu1 %v2340_v42  ;;  %1515 = vmatprep.subr.bf16.mxu0 %v2344_v43  ;;  %v2436_v42 = vld [vmem:[%s3511_s1 + $0x1fc] ss:$48 sps:$4 sm:$0xff]   ;;  %v2434_v43 = vld [vmem:[%s3511_s1 + $0x1f8] ss:$48 sps:$4 sm:$0xff]  }
  0x29   :  { %1595 = vmatprep.subr.bf16.mxu1 %v2348_v44  ;;  %v2439_v44 = vld [vmem:[%s3511_s1 + $0x74] ss:$48 sps:$4 sm:$0xff]  }
  0x2b   :  { %1516 = vmatpush2.bf16.msra.mxu0 %v2349_v46  ;;  %v2437_v46 = vld [vmem:[%s3511_s1 + $0x70] ss:$48 sps:$4 sm:$0xff]  }
  0x2c   :  { %1596 = vmatpush1.bf16.msra.mxu1 %v2346_v45  ;;  %1517 = vmatprep.subr.bf16.mxu0 %v2350_v47  ;;  %v2442_v45 = vld [vmem:[%s3511_s1 + $0x19c] ss:$48 sps:$4 sm:$0xff]   ;;  %v2440_v47 = vld [vmem:[%s3511_s1 + $0x198] ss:$48 sps:$4 sm:$0xff]  }
  0x2d   :  { %1597 = vmatprep.subr.bf16.mxu1 %v2354_v48  ;;  %v2445_v48 = vld [vmem:[%s3511_s1 + $0x14] ss:$48 sps:$4 sm:$0xff]  }
  0x2f   :  { %1518 = vmatpush2.bf16.msra.mxu0 %v2355_v50  ;;  %v2443_v50 = vld [vmem:[%s3511_s1 + $0x10] ss:$48 sps:$4 sm:$0xff]  }
  0x30   :  { %1598 = vmatpush2.bf16.msra.mxu1 %v2352_v49  ;;  %1519 = vmatprep.subr.bf16.mxu0 %v2356_v52  ;;  %v2448_v49 = vld [vmem:[%s3511_s1 + $0x13c] ss:$48 sps:$4 sm:$0xff]   ;;  %v2446_v52 = vld [vmem:[%s3511_s1 + $0x138] ss:$48 sps:$4 sm:$0xff]  }
  0x31   :  { %1599 = vmatprep.subr.bf16.mxu1 %v2360_v53  ;;  %v2451_v53 = vld [vmem:[%s3511_s1 + $0x5b4] ss:$48 sps:$4 sm:$0xff]  }
  0x33   :  { %1520 = vmatpush2.bf16.msra.mxu0 %v2361_v55  ;;  %v2449_v55 = vld [vmem:[%s3511_s1 + $0x5b0] ss:$48 sps:$4 sm:$0xff]  }
  0x34   :  { %1600 = vmatpush2.bf16.msra.mxu1 %v2358_v54  ;;  %1521 = vmatprep.subr.bf16.mxu0 %v2362_v56  ;;  %v2454_v54 = vld [vmem:[%s3511_s1 + $0xdc] ss:$48 sps:$4 sm:$0xff]   ;;  %v2452_v56 = vld [vmem:[%s3511_s1 + $0xd8] ss:$48 sps:$4 sm:$0xff]  }
  0x35   :  { %1601 = vmatprep.subr.bf16.mxu1 %v2366_v57  ;;  %v2457_v57 = vld [vmem:[%s3511_s1 + $0x554] ss:$48 sps:$4 sm:$0xff]  }
  0x37   :  { %1522 = vmatpush2.bf16.msra.mxu0 %v2367_v59  ;;  %v2455_v59 = vld [vmem:[%s3511_s1 + $0x550] ss:$48 sps:$4 sm:$0xff]  }
  0x38   :  { %1602 = vmatpush2.bf16.msra.mxu1 %v2364_v58  ;;  %1523 = vmatprep.subr.bf16.mxu0 %v2368_v60  ;;  %v2460_v58 = vld [vmem:[%s3511_s1 + $0x7c] ss:$48 sps:$4 sm:$0xff]   ;;  %v2458_v60 = vld [vmem:[%s3511_s1 + $0x78] ss:$48 sps:$4 sm:$0xff]  }
  0x39   :  { %1603 = vmatprep.subr.bf16.mxu1 %v2372_v61  ;;  %v2463_v61 = vld [vmem:[%s3511_s1 + $0x4f4] ss:$48 sps:$4 sm:$0xff]  }
  0x3b   :  { %1524 = vmatpush2.bf16.msra.mxu0 %v2373_v63  ;;  %v2461_v63 = vld [vmem:[%s3511_s1 + $0x4f0] ss:$48 sps:$4 sm:$0xff]  }
  0x3c   :  { %1604 = vmatpush2.bf16.msra.mxu1 %v2370_v62  ;;  %1525 = vmatprep.subr.bf16.mxu0 %v2374_v0  ;;  %v2466_v62 = vld [vmem:[%s3511_s1 + $0x1c] ss:$48 sps:$4 sm:$0xff]   ;;  %v2464_v0 = vld [vmem:[%s3511_s1 + $0x18] ss:$48 sps:$4 sm:$0xff]  }
  0x3d   :  { %1605 = vmatprep.subr.bf16.mxu1 %v2378_v2  ;;  %v2469_v2 = vld [vmem:[%s3511_s1 + $0x494] ss:$48 sps:$4 sm:$0xff]  }
  0x3f   :  { %1526 = vmatpush2.bf16.msra.mxu0 %v2379_v4  ;;  %v2467_v4 = vld [vmem:[%s3511_s1 + $0x490] ss:$48 sps:$4 sm:$0xff]  }
  0x40   :  { %1606 = vmatpush2.bf16.msra.mxu1 %v2376_v3  ;;  %2272 = vmatprep.subr.msk.bf16.mxu0 %vm1458_vm0, %v2386_v5  ;;  %v2472_v3 = vld [vmem:[%s3511_s1 + $0x5bc] ss:$48 sps:$4 sm:$0xff]   ;;  %v2470_v5 = vld [vmem:[%s3511_s1 + $0x5b8] ss:$48 sps:$4 sm:$0xff]  }
  0x41   :  { %1607 = vmatprep.subr.bf16.mxu1 %v2385_v7  ;;  %v2478_v7 = vld [vmem:[%s3511_s1 + $0x55c] ss:$48 sps:$4 sm:$0xff]  }
  0x42   :  { %1528 = vmatmul.mubr.bf16.vlgmr.msra.gmra.mxu0 %v2872_v8 }
  0x43   :  { %1635 = vmatpush1.bf16.msra.mxu0 %v1466_v10  ;;  %1656 = vmatprep.mubr.bf16.mxu0 %v2630_v1  ;;  %v2476_v10 = vld [vmem:[%s3511_s1 + $0x558] ss:$48 sps:$4 sm:$0xff]  }
  0x44   :  { %1608 = vmatpush2.bf16.msra.mxu1 %v2383_v9  ;;  %1636 = vmatprep.subr.bf16.mxu0 %v2394_v11  ;;  %v2473_v9 = vld [vmem:[%s3511_s1 + $0x430] ss:$48 sps:$4 sm:$0xff]   ;;  %v2481_v11 = vld [vmem:[%s3511_s1 + $0x3d4] ss:$48 sps:$4 sm:$0xff]  }
  0x45   :  { %1609 = vmatprep.subr.bf16.mxu1 %v2391_v12  ;;  %v2484_v12 = vld [vmem:[%s3511_s1 + $0x4fc] ss:$48 sps:$4 sm:$0xff]  }
  0x47   :  { %1637 = vmatpush1.bf16.msra.mxu0 %v2392_v14  ;;  %v2482_v14 = vld [vmem:[%s3511_s1 + $0x4f8] ss:$48 sps:$4 sm:$0xff]  }
  0x48   :  { %1610 = vmatpush2.bf16.msra.mxu1 %v2389_v13  ;;  %1638 = vmatprep.subr.bf16.mxu0 %v2400_v16  ;;  %v2479_v13 = vld [vmem:[%s3511_s1 + $0x3d0] ss:$48 sps:$4 sm:$0xff]   ;;  %v2487_v16 = vld [vmem:[%s3511_s1 + $0x374] ss:$48 sps:$4 sm:$0xff]  }
  0x49   :  { %1611 = vmatprep.subr.bf16.mxu1 %v2397_v17  ;;  %v2490_v17 = vld [vmem:[%s3511_s1 + $0x49c] ss:$48 sps:$4 sm:$0xff]  }
  0x4b   :  { %1639 = vmatpush1.bf16.msra.mxu0 %v2398_v19  ;;  %v2488_v19 = vld [vmem:[%s3511_s1 + $0x498] ss:$48 sps:$4 sm:$0xff]  }
  0x4c   :  { %1612 = vmatpush2.bf16.msra.mxu1 %v2395_v18  ;;  %1667 = vmatprep.subr.bf16.mxu0 %v2403_v20  ;;  %v2485_v18 = vld [vmem:[%s3511_s1 + $0x370] ss:$48 sps:$4 sm:$0xff]   ;;  %v2493_v20 = vld [vmem:[%s3511_s1 + $0x314] ss:$48 sps:$4 sm:$0xff]  }
  0x4d   :  { %2274 = vmatprep.subr.msk.bf16.mxu1 %vm1458_vm0, %v2404_v21  ;;  %v2496_v21 = vld [vmem:[%s3511_s1 + $0x43c] ss:$48 sps:$4 sm:$0xff]  }
  0x4e   :  { %2273 = vmatmul.mubr.msk.bf16.vlgmr.msra.gmra.mxu0 %vm1454_vm1, %v2696_v15 }
  0x4f   :  { %1614 = vmatmul.mubr.bf16.vlgmr.msra.gmra.mxu1 %v2872_v8  ;;  %1668 = vmatpush1.bf16.msra.mxu0 %v2401_v23  ;;  %v2500_v23 = vld [vmem:[%s3511_s1 + $0x6dc] ss:$48 sps:$4 sm:$0x3f]  }
  0x50   :  { %1721 = vmatpush1.bf16.msra.mxu1 %v1472_v25  ;;  %1669 = vmatprep.subr.bf16.mxu0 %v2409_v24  ;;  %v2494_v24 = vld [vmem:[%s3511_s1 + $0x438] ss:$48 sps:$4 sm:$0xff]  }
  0x51   :  { %1722 = vmatprep.subr.bf16.mxu1 %v2412_v26  ;;  %1742 = vmatprep.mubr.bf16.mxu1 %v2630_v1  ;;  %v2502_v25 = vld [vmem:[%s3511_s1 + $0x6d8] ss:$48 sps:$4 sm:$0x3f]   ;;  %v2499_v26 = vld [vmem:[%s3511_s1 + $0x3dc] ss:$48 sps:$4 sm:$0xff]  }
  0x52   :  { %1699 = vmatprep.mubr.bf16.mxu0 %v2808_v51 }
  0x53   :  { %1670 = vmatpush1.bf16.msra.mxu0 %v2407_v27  ;;  %v2497_v27 = vld [vmem:[%s3511_s1 + $0x3d8] ss:$48 sps:$4 sm:$0xff]  }
  0x54   :  { %1723 = vmatpush1.bf16.msra.mxu1 %v2410_v28  ;;  %1671 = vmatprep.subr.bf16.mxu0 %v2415_v29  ;;  %v1478_v28 = vsel %vm1458_vm0, %v2502_v25, 0  ;;  %v2508_v29 = vld [vmem:[%s3511_s1 + $0x67c] ss:$48 sps:$4 sm:$0xff]   ;;  %v2589_v25 = vld [vmem:[%s3511_s1 + $0x444] ss:$48 sps:$4 sm:$0xff]  }
  0x55   :  { %1724 = vmatprep.subr.bf16.mxu1 %v2418_v30  ;;  %v2505_v30 = vld [vmem:[%s3511_s1 + $0x37c] ss:$48 sps:$4 sm:$0xff]  }
  0x57   :  { %1672 = vmatpush1.bf16.msra.mxu0 %v2413_v31  ;;  %v2506_v31 = vld [vmem:[%s3511_s1 + $0x678] ss:$48 sps:$4 sm:$0xff]  }
  0x58   :  { %1725 = vmatpush1.bf16.msra.mxu1 %v2416_v32  ;;  %1673 = vmatprep.subr.bf16.mxu0 %v2421_v33  ;;  %v2503_v32 = vld [vmem:[%s3511_s1 + $0x378] ss:$48 sps:$4 sm:$0xff]   ;;  %v2514_v33 = vld [vmem:[%s3511_s1 + $0x61c] ss:$48 sps:$4 sm:$0xff]  }
  0x59   :  { %1753 = vmatprep.subr.bf16.mxu1 %v2424_v34  ;;  %v2511_v34 = vld [vmem:[%s3511_s1 + $0x31c] ss:$48 sps:$4 sm:$0xff]  }
  0x5b   :  { %2275 = vmatmul.mubr.msk.bf16.vlgmr.msra.gmra.mxu1 %vm1454_vm1, %v2696_v15  ;;  %1674 = vmatpush1.bf16.msra.mxu0 %v2419_v35  ;;  %v2431_v15 = vld [vmem:[%s3511_s1 + $0xd0] ss:$48 sps:$4 sm:$0xff]   ;;  %v2509_v35 = vld [vmem:[%s3511_s1 + $0x318] ss:$48 sps:$4 sm:$0xff]  }
  0x5c   :  { %1754 = vmatpush1.bf16.msra.mxu1 %v2422_v36  ;;  %1675 = vmatprep.subr.bf16.mxu0 %v2427_v37  ;;  %v2512_v36 = vld [vmem:[%s3511_s1 + $0x618] ss:$48 sps:$4 sm:$0xff]   ;;  %v2517_v37 = vld [vmem:[%s3511_s1 + $0x2c4] ss:$48 sps:$4 sm:$0xff]  }
  0x5d   :  { %1755 = vmatprep.subr.bf16.mxu1 %v2430_v38  ;;  %1785 = vmatprep.mubr.bf16.mxu1 %v2808_v51  ;;  %v2518_v38 = vld [vmem:[%s3511_s1 + $0x6e4] ss:$48 sps:$4 sm:$0x3f]  }
  0x5f   :  { %1676 = vmatpush1.bf16.msra.mxu0 %v2425_v39  ;;  %v2520_v39 = vld [vmem:[%s3511_s1 + $0x6e0] ss:$48 sps:$4 sm:$0x3f]  }
  0x60   :  { %1756 = vmatpush1.bf16.msra.mxu1 %v2428_v40  ;;  %1677 = vmatprep.subr.bf16.mxu0 %v2433_v41  ;;  %v2515_v40 = vld [vmem:[%s3511_s1 + $0x2c0] ss:$48 sps:$4 sm:$0xff]   ;;  %v2523_v41 = vld [vmem:[%s3511_s1 + $0x264] ss:$48 sps:$4 sm:$0xff]  }
  0x61   :  { %1757 = vmatprep.subr.bf16.mxu1 %v2436_v42  ;;  %v1484_v42 = vsel %vm1458_vm0, %v2520_v39, 0  ;;  %v2605_v39 = vld [vmem:[%s3511_s1 + $0x320] ss:$48 sps:$4 sm:$0xff]  }
  0x63   :  { %1678 = vmatpush1.bf16.msra.mxu0 %v2431_v15  ;;  %v2526_v15 = vld [vmem:[%s3511_s1 + $0x684] ss:$48 sps:$4 sm:$0xff]  }
  0x64   :  { %1758 = vmatpush1.bf16.msra.mxu1 %v2434_v43  ;;  %1679 = vmatprep.subr.bf16.mxu0 %v2439_v44  ;;  %v3170_v43 = vld [vmem:[%s3512_s0 + $0x8] ss:$12 sps:$4 sm:$0xff]   ;;  %v2521_v44 = vld [vmem:[%s3511_s1 + $0x260] ss:$48 sps:$4 sm:$0xff]  }
  0x65   :  { %1759 = vmatprep.subr.bf16.mxu1 %v2442_v45  ;;  %v2524_v45 = vld [vmem:[%s3511_s1 + $0x680] ss:$48 sps:$4 sm:$0xff]  }
  0x67   :  { %1680 = vmatpush1.bf16.msra.mxu0 %v2437_v46  ;;  %v2529_v46 = vld [vmem:[%s3511_s1 + $0x204] ss:$48 sps:$4 sm:$0xff]  }
  0x68   :  { %1760 = vmatpush1.bf16.msra.mxu1 %v2440_v47  ;;  %1681 = vmatprep.subr.bf16.mxu0 %v2445_v48  ;;  %v2532_v47 = vld [vmem:[%s3511_s1 + $0x624] ss:$48 sps:$4 sm:$0xff]   ;;  %v2527_v48 = vld [vmem:[%s3511_s1 + $0x200] ss:$48 sps:$4 sm:$0xff]  }
  0x69   :  { %1761 = vmatprep.subr.bf16.mxu1 %v2448_v49  ;;  %v2530_v49 = vld [vmem:[%s3511_s1 + $0x620] ss:$48 sps:$4 sm:$0xff]  }
  0x6b   :  { %1682 = vmatpush1.bf16.msra.mxu0 %v2443_v50  ;;  %v2535_v50 = vld [vmem:[%s3511_s1 + $0x1a4] ss:$48 sps:$4 sm:$0xff]  }
  0x6c   :  { %1762 = vmatpush1.bf16.msra.mxu1 %v2446_v52  ;;  %1683 = vmatprep.subr.bf16.mxu0 %v2451_v53  ;;  %v2538_v52 = vld [vmem:[%s3511_s1 + $0x2cc] ss:$48 sps:$4 sm:$0xff]   ;;  %v2533_v53 = vld [vmem:[%s3511_s1 + $0x1a0] ss:$48 sps:$4 sm:$0xff]  }
  0x6d   :  { %1763 = vmatprep.subr.bf16.mxu1 %v2454_v54  ;;  %v2536_v54 = vld [vmem:[%s3511_s1 + $0x2c8] ss:$48 sps:$4 sm:$0xff]  }
  0x6f   :  { %1684 = vmatpush2.bf16.msra.mxu0 %v2449_v55  ;;  %v2541_v55 = vld [vmem:[%s3511_s1 + $0x144] ss:$48 sps:$4 sm:$0xff]  }
  0x70   :  { %1764 = vmatpush1.bf16.msra.mxu1 %v2452_v56  ;;  %1685 = vmatprep.subr.bf16.mxu0 %v2457_v57  ;;  %v2544_v56 = vld [vmem:[%s3511_s1 + $0x26c] ss:$48 sps:$4 sm:$0xff]   ;;  %v2539_v57 = vld [vmem:[%s3511_s1 + $0x140] ss:$48 sps:$4 sm:$0xff]  }
  0x71   :  { %1765 = vmatprep.subr.bf16.mxu1 %v2460_v58  ;;  %v2542_v58 = vld [vmem:[%s3511_s1 + $0x268] ss:$48 sps:$4 sm:$0xff]  }
  0x73   :  { %1686 = vmatpush2.bf16.msra.mxu0 %v2455_v59  ;;  %v2547_v59 = vld [vmem:[%s3511_s1 + $0xe4] ss:$48 sps:$4 sm:$0xff]  }
  0x74   :  { %1766 = vmatpush1.bf16.msra.mxu1 %v2458_v60  ;;  %1687 = vmatprep.subr.bf16.mxu0 %v2463_v61  ;;  %v2550_v60 = vld [vmem:[%s3511_s1 + $0x20c] ss:$48 sps:$4 sm:$0xff]   ;;  %v2545_v61 = vld [vmem:[%s3511_s1 + $0xe0] ss:$48 sps:$4 sm:$0xff]  }
  0x75   :  { %1767 = vmatprep.subr.bf16.mxu1 %v2466_v62  ;;  %v2548_v62 = vld [vmem:[%s3511_s1 + $0x208] ss:$48 sps:$4 sm:$0xff]  }
  0x77   :  { %1688 = vmatpush2.bf16.msra.mxu0 %v2461_v63  ;;  %v2553_v63 = vld [vmem:[%s3511_s1 + $0x84] ss:$48 sps:$4 sm:$0xff]  }
  0x78   :  { %1768 = vmatpush1.bf16.msra.mxu1 %v2464_v0  ;;  %1689 = vmatprep.subr.bf16.mxu0 %v2469_v2  ;;  %v2551_v0 = vld [vmem:[%s3511_s1 + $0x80] ss:$48 sps:$4 sm:$0xff]   ;;  %v2554_v2 = vld [vmem:[%s3511_s1 + $0x1a8] ss:$48 sps:$4 sm:$0xff]  }
  0x79   :  { %1769 = vmatprep.subr.bf16.mxu1 %v2472_v3  ;;  %v2559_v3 = vld [vmem:[%s3511_s1 + $0x24] ss:$48 sps:$4 sm:$0xff]  }
  0x7b   :  { %1690 = vmatpush2.bf16.msra.mxu0 %v2467_v4  ;;  %v2562_v4 = vld [vmem:[%s3511_s1 + $0x14c] ss:$48 sps:$4 sm:$0xff]  }
  0x7c   :  { %1770 = vmatpush2.bf16.msra.mxu1 %v2470_v5  ;;  %1691 = vmatprep.subr.bf16.mxu0 %v2475_v6  ;;  %v2557_v5 = vld [vmem:[%s3511_s1 + $0x20] ss:$48 sps:$4 sm:$0xff]   ;;  %v2560_v6 = vld [vmem:[%s3511_s1 + $0x148] ss:$48 sps:$4 sm:$0xff]  }
  0x7d   :  { %1771 = vmatprep.subr.bf16.mxu1 %v2478_v7  ;;  %v2565_v7 = vld [vmem:[%s3511_s1 + $0x5c4] ss:$48 sps:$4 sm:$0xff]  }
  0x7f   :  { %1692 = vmatpush2.bf16.msra.mxu0 %v2473_v9  ;;  %v2568_v9 = vld [vmem:[%s3511_s1 + $0xec] ss:$48 sps:$4 sm:$0xff]  }
  0x80   :  { %1772 = vmatpush2.bf16.msra.mxu1 %v2476_v10  ;;  %1693 = vmatprep.subr.bf16.mxu0 %v2481_v11  ;;  %v2563_v10 = vld [vmem:[%s3511_s1 + $0x5c0] ss:$48 sps:$4 sm:$0xff]   ;;  %v2566_v11 = vld [vmem:[%s3511_s1 + $0xe8] ss:$48 sps:$4 sm:$0xff]  }
  0x81   :  { %1773 = vmatprep.subr.bf16.mxu1 %v2484_v12  ;;  %v2571_v12 = vld [vmem:[%s3511_s1 + $0x564] ss:$48 sps:$4 sm:$0xff]  }
  0x83   :  { %1694 = vmatpush2.bf16.msra.mxu0 %v2479_v13  ;;  %v2574_v13 = vld [vmem:[%s3511_s1 + $0x8c] ss:$48 sps:$4 sm:$0xff]  }
  0x84   :  { %1774 = vmatpush2.bf16.msra.mxu1 %v2482_v14  ;;  %1695 = vmatprep.subr.bf16.mxu0 %v2487_v16  ;;  %v2569_v14 = vld [vmem:[%s3511_s1 + $0x560] ss:$48 sps:$4 sm:$0xff]   ;;  %v2572_v16 = vld [vmem:[%s3511_s1 + $0x88] ss:$48 sps:$4 sm:$0xff]  }
  0x85   :  { %1775 = vmatprep.subr.bf16.mxu1 %v2490_v17  ;;  %v2577_v17 = vld [vmem:[%s3511_s1 + $0x504] ss:$48 sps:$4 sm:$0xff]  }
  0x87   :  { %1696 = vmatpush2.bf16.msra.mxu0 %v2485_v18  ;;  %v2580_v18 = vld [vmem:[%s3511_s1 + $0x2c] ss:$48 sps:$4 sm:$0xff]  }
  0x88   :  { %1776 = vmatpush2.bf16.msra.mxu1 %v2488_v19  ;;  %1697 = vmatprep.subr.bf16.mxu0 %v2493_v20  ;;  %v2575_v19 = vld [vmem:[%s3511_s1 + $0x500] ss:$48 sps:$4 sm:$0xff]   ;;  %v2578_v20 = vld [vmem:[%s3511_s1 + $0x28] ss:$48 sps:$4 sm:$0xff]  }
  0x89   :  { %1777 = vmatprep.subr.bf16.mxu1 %v2496_v21  ;;  %v2583_v21 = vld [vmem:[%s3511_s1 + $0x4a4] ss:$48 sps:$4 sm:$0xff]  }
  0x8b   :  { %1698 = vmatpush2.bf16.msra.mxu0 %v2491_v22  ;;  %v2586_v22 = vld [vmem:[%s3511_s1 + $0x5cc] ss:$48 sps:$4 sm:$0xff]  }
  0x8c   :  { %1778 = vmatpush2.bf16.msra.mxu1 %v2494_v24  ;;  %2276 = vmatprep.subr.msk.bf16.mxu0 %vm1458_vm0, %v2500_v23  ;;  %v2581_v23 = vld [vmem:[%s3511_s1 + $0x4a0] ss:$48 sps:$4 sm:$0xff]   ;;  %v2584_v24 = vld [vmem:[%s3511_s1 + $0x5c8] ss:$48 sps:$4 sm:$0xff]  }
  0x8d   :  { %1779 = vmatprep.subr.bf16.mxu1 %v2499_v26  ;;  %v2592_v26 = vld [vmem:[%s3511_s1 + $0x56c] ss:$48 sps:$4 sm:$0xff]  }
  0x8e   :  { %1700 = vmatmul.mubr.bf16.vlgmr.msra.gmra.mxu0 %v2872_v8 }
  0x8f   :  { %1807 = vmatpush1.bf16.msra.mxu0 %v1478_v28  ;;  %1828 = vmatprep.mubr.bf16.mxu0 %v2630_v1  ;;  %v2590_v28 = vld [vmem:[%s3511_s1 + $0x568] ss:$48 sps:$4 sm:$0xff]  }
  0x90   :  { %1780 = vmatpush2.bf16.msra.mxu1 %v2497_v27  ;;  %1808 = vmatprep.subr.bf16.mxu0 %v2508_v29  ;;  %v2587_v27 = vld [vmem:[%s3511_s1 + $0x440] ss:$48 sps:$4 sm:$0xff]   ;;  %v2595_v29 = vld [vmem:[%s3511_s1 + $0x3e4] ss:$48 sps:$4 sm:$0xff]  }
  0x91   :  { %1781 = vmatprep.subr.bf16.mxu1 %v2505_v30  ;;  %v2598_v30 = vld [vmem:[%s3511_s1 + $0x50c] ss:$48 sps:$4 sm:$0xff]  }
  0x93   :  { %1809 = vmatpush1.bf16.msra.mxu0 %v2506_v31  ;;  %v2593_v31 = vld [vmem:[%s3511_s1 + $0x3e0] ss:$48 sps:$4 sm:$0xff]  }
  0x94   :  { %1782 = vmatpush2.bf16.msra.mxu1 %v2503_v32  ;;  %1810 = vmatprep.subr.bf16.mxu0 %v2514_v33  ;;  %v2596_v32 = vld [vmem:[%s3511_s1 + $0x508] ss:$48 sps:$4 sm:$0xff]   ;;  %v2601_v33 = vld [vmem:[%s3511_s1 + $0x384] ss:$48 sps:$4 sm:$0xff]  }
  0x95   :  { %1783 = vmatprep.subr.bf16.mxu1 %v2511_v34  ;;  %v2604_v34 = vld [vmem:[%s3511_s1 + $0x4ac] ss:$48 sps:$4 sm:$0xff]  }
  0x97   :  { %1811 = vmatpush1.bf16.msra.mxu0 %v2512_v36  ;;  %v2602_v36 = vld [vmem:[%s3511_s1 + $0x4a8] ss:$48 sps:$4 sm:$0xff]  }
  0x98   :  { %1784 = vmatpush2.bf16.msra.mxu1 %v2509_v35  ;;  %1839 = vmatprep.subr.bf16.mxu0 %v2517_v37  ;;  %v2599_v35 = vld [vmem:[%s3511_s1 + $0x380] ss:$48 sps:$4 sm:$0xff]   ;;  %v2607_v37 = vld [vmem:[%s3511_s1 + $0x324] ss:$48 sps:$4 sm:$0xff]  }
  0x99   :  { %2278 = vmatprep.subr.msk.bf16.mxu1 %vm1458_vm0, %v2518_v38  ;;  %v2610_v38 = vld [vmem:[%s3511_s1 + $0x44c] ss:$48 sps:$4 sm:$0xff]  }
  0x9a   :  { %2277 = vmatmul.mubr.msk.bf16.vlgmr.msra.gmra.mxu0 %vm1454_vm1, %v3170_v43 }
  0x9b   :  { %1786 = vmatmul.mubr.bf16.vlgmr.msra.gmra.mxu1 %v2872_v8  ;;  %1840 = vmatpush1.bf16.msra.mxu0 %v2515_v40  ;;  %v2608_v40 = vld [vmem:[%s3511_s1 + $0x448] ss:$48 sps:$4 sm:$0xff]  }
  0x9c   :  { %1893 = vmatpush1.bf16.msra.mxu1 %v1484_v42  ;;  %1841 = vmatprep.subr.bf16.mxu0 %v2523_v41  ;;  %v2614_v41 = vld [vmem:[%s3511_s1 + $0x6ec] ss:$48 sps:$4 sm:$0x3f]   ;;  %v2616_v42 = vld [vmem:[%s3511_s1 + $0x6e8] ss:$48 sps:$4 sm:$0x3f]  }
  0x9d   :  { %1894 = vmatprep.subr.bf16.mxu1 %v2526_v15  ;;  %1914 = vmatprep.mubr.bf16.mxu1 %v2630_v1  ;;  %v2613_v15 = vld [vmem:[%s3511_s1 + $0x3ec] ss:$48 sps:$4 sm:$0xff]  }
  0x9e   :  { %1871 = vmatprep.mubr.bf16.mxu0 %v2808_v51 }
  0x9f   :  { %1842 = vmatpush1.bf16.msra.mxu0 %v2521_v44  ;;  %v2611_v44 = vld [vmem:[%s3511_s1 + $0x3e8] ss:$48 sps:$4 sm:$0xff]  }
  0xa0   :  { %1895 = vmatpush1.bf16.msra.mxu1 %v2524_v45  ;;  %1843 = vmatprep.subr.bf16.mxu0 %v2529_v46  ;;  %v1490_v45 = vsel %vm1458_vm0, %v2616_v42, 0  ;;  %v2622_v46 = vld [vmem:[%s3511_s1 + $0x68c] ss:$48 sps:$4 sm:$0xff]  }
  0xa1   :  { %1896 = vmatprep.subr.bf16.mxu1 %v2532_v47  ;;  %v2619_v47 = vld [vmem:[%s3511_s1 + $0x38c] ss:$48 sps:$4 sm:$0xff]  }
  0xa3   :  { %1844 = vmatpush1.bf16.msra.mxu0 %v2527_v48  ;;  %v2620_v48 = vld [vmem:[%s3511_s1 + $0x688] ss:$48 sps:$4 sm:$0xff]  }
  0xa4   :  { %1897 = vmatpush1.bf16.msra.mxu1 %v2530_v49  ;;  %1845 = vmatprep.subr.bf16.mxu0 %v2535_v50  ;;  %v2617_v49 = vld [vmem:[%s3511_s1 + $0x388] ss:$48 sps:$4 sm:$0xff]   ;;  %v2628_v50 = vld [vmem:[%s3511_s1 + $0x62c] ss:$48 sps:$4 sm:$0xff]  }
  0xa5   :  { %1925 = vmatprep.subr.bf16.mxu1 %v2538_v52  ;;  %v2625_v52 = vld [vmem:[%s3511_s1 + $0x32c] ss:$48 sps:$4 sm:$0xff]  }
  0xa7   :  { %2279 = vmatmul.mubr.msk.bf16.vlgmr.msra.gmra.mxu1 %vm1454_vm1, %v3170_v43  ;;  %1846 = vmatpush1.bf16.msra.mxu0 %v2533_v53  ;;  %v2623_v53 = vld [vmem:[%s3511_s1 + $0x328] ss:$48 sps:$4 sm:$0xff]  }
  0xa8   :  { %1926 = vmatpush1.bf16.msra.mxu1 %v2536_v54  ;;  %1847 = vmatprep.subr.bf16.mxu0 %v2541_v55  ;;  %v251_v54 = vlaneseq }
  0xa9   :  { %1927 = vmatprep.subr.bf16.mxu1 %v2544_v56  ;;  %1957 = vmatprep.mubr.bf16.mxu1 %v2808_v51  ;;  %v2556_v51 = vld [vmem:[%s3511_s1 + $0x1ac] ss:$48 sps:$4 sm:$0xff]  }
  0xaa   :  { %v3397_v55 = vshrl.u32 %v251_v54, 7 }
  0xab   :  { %1848 = vmatpush1.bf16.msra.mxu0 %v2539_v57  ;;  %v3403_v57 = vld [vmem:[%s3513_s2] sm:$0xff] }
  0xac   :  { %1928 = vmatpush1.bf16.msra.mxu1 %v2542_v58  ;;  %1849 = vmatprep.subr.bf16.mxu0 %v2547_v59  ;;  %v253_v56 = vsub.s32 0, %v3397_v55  ;;  %v257_v58 = vsub.s32 1, %v3397_v55 }
  0xad   :  { %1929 = vmatprep.subr.bf16.mxu1 %v2550_v60 }
  0xae   :  { %v254_v60 = vrot.slane %v3403_v57, %v253_v56 }
  0xaf   :  { %1850 = vmatpush1.bf16.msra.mxu0 %v2545_v61 }
  0xb0   :  { %1930 = vmatpush1.bf16.msra.mxu1 %v2548_v62  ;;  %1851 = vmatprep.subr.bf16.mxu0 %v2553_v63 }
  0xb1   :  { %1931 = vmatprep.subr.bf16.mxu1 %v2556_v51 }
  0xb3   :  { %1852 = vmatpush1.bf16.msra.mxu0 %v2551_v0 }
  0xb4   :  { %1932 = vmatpush1.bf16.msra.mxu1 %v2554_v2  ;;  %1853 = vmatprep.subr.bf16.mxu0 %v2559_v3 }
  0xb5   :  { %1933 = vmatprep.subr.bf16.mxu1 %v2562_v4 }
  0xb7   :  { %1854 = vmatpush1.bf16.msra.mxu0 %v2557_v5 }
  0xb8   :  { %1934 = vmatpush1.bf16.msra.mxu1 %v2560_v6  ;;  %1855 = vmatprep.subr.bf16.mxu0 %v2565_v7  ;;  %v261_v7 = vsub.s32 2, %v3397_v55 }
  0xb9   :  { %1935 = vmatprep.subr.bf16.mxu1 %v2568_v9 }
  0xbb   :  { %1856 = vmatpush2.bf16.msra.mxu0 %v2563_v10 }
  0xbc   :  { %1936 = vmatpush1.bf16.msra.mxu1 %v2566_v11  ;;  %1857 = vmatprep.subr.bf16.mxu0 %v2571_v12  ;;  %v265_v12 = vsub.s32 3, %v3397_v55 }
  0xbd   :  { %1937 = vmatprep.subr.bf16.mxu1 %v2574_v13 }
  0xbf   :  { %1858 = vmatpush2.bf16.msra.mxu0 %v2569_v14  ;;  %v262_v14 = vrot.slane %v3403_v57, %v261_v7 }
  0xc0   :  { %1938 = vmatpush1.bf16.msra.mxu1 %v2572_v16  ;;  %1859 = vmatprep.subr.bf16.mxu0 %v2577_v17  ;;  %v266_v17 = vrot.slane %v3403_v57, %v265_v12 }
  0xc1   :  { %1939 = vmatprep.subr.bf16.mxu1 %v2580_v18 }
  0xc3   :  { %1860 = vmatpush2.bf16.msra.mxu0 %v2575_v19 }
  0xc4   :  { %1940 = vmatpush1.bf16.msra.mxu1 %v2578_v20  ;;  %1861 = vmatprep.subr.bf16.mxu0 %v2583_v21 }
  0xc5   :  { %1941 = vmatprep.subr.bf16.mxu1 %v2586_v22 }
  0xc7   :  { %1862 = vmatpush2.bf16.msra.mxu0 %v2581_v23 }
  0xc8   :  { %1942 = vmatpush2.bf16.msra.mxu1 %v2584_v24  ;;  %1863 = vmatprep.subr.bf16.mxu0 %v2589_v25 }
  0xc9   :  { %1943 = vmatprep.subr.bf16.mxu1 %v2592_v26 }
  0xcb   :  { %1864 = vmatpush2.bf16.msra.mxu0 %v2587_v27 }
  0xcc   :  { %1944 = vmatpush2.bf16.msra.mxu1 %v2590_v28  ;;  %1865 = vmatprep.subr.bf16.mxu0 %v2595_v29 }
  0xcd   :  { %1945 = vmatprep.subr.bf16.mxu1 %v2598_v30 }
  0xcf   :  { %1866 = vmatpush2.bf16.msra.mxu0 %v2593_v31  ;;  %v1572_v59 = vpop.f32.mrf.mxu1 }
  0xd0   :  { %1946 = vmatpush2.bf16.msra.mxu1 %v2596_v32  ;;  %1867 = vmatprep.subr.bf16.mxu0 %v2601_v33  ;;  %v269_v33 = vsub.s32 4, %v3397_v55 }
  0xd1   :  { %1947 = vmatprep.subr.bf16.mxu1 %v2604_v34  ;;  %v273_v34 = vsub.s32 5, %v3397_v55 }
  0xd3   :  { %1868 = vmatpush2.bf16.msra.mxu0 %v2599_v35 }
  0xd4   :  { %1948 = vmatpush2.bf16.msra.mxu1 %v2602_v36  ;;  %1869 = vmatprep.subr.bf16.mxu0 %v2607_v37  ;;  %v270_v36 = vrot.slane %v3403_v57, %v269_v33  ;;  %v274_v37 = vrot.slane %v3403_v57, %v273_v34 }
  0xd5   :  { %1949 = vmatprep.subr.bf16.mxu1 %v2610_v38 }
  0xd7   :  { %1870 = vmatpush2.bf16.msra.mxu0 %v2605_v39 }
  0xd8   :  { %1950 = vmatpush2.bf16.msra.mxu1 %v2608_v40  ;;  %2280 = vmatprep.subr.msk.bf16.mxu0 %vm1458_vm0, %v2614_v41 }
  0xd9   :  { %1951 = vmatprep.subr.bf16.mxu1 %v2613_v15 }
  0xda   :  { %1872 = vmatmul.mubr.bf16.vlgmr.msra.gmra.mxu0 %v2872_v8 }
  0xdb   :  { %1979 = vmatpush1.bf16.msra.mxu0 %v1490_v45  ;;  %2000 = vmatprep.mubr.bf16.mxu0 %v2630_v1  ;;  %v2626_v1 = vld [vmem:[%s3511_s1 + $0x628] ss:$48 sps:$4 sm:$0xff]  }
  0xdc   :  { %1952 = vmatpush2.bf16.msra.mxu1 %v2611_v44  ;;  %1980 = vmatprep.subr.bf16.mxu0 %v2622_v46 }
  0xdd   :  { %1953 = vmatprep.subr.bf16.mxu1 %v2619_v47 }
  0xdf   :  { %1981 = vmatpush1.bf16.msra.mxu0 %v2620_v48 }
  0xe0   :  { %1954 = vmatpush2.bf16.msra.mxu1 %v2617_v49  ;;  %1982 = vmatprep.subr.bf16.mxu0 %v2628_v50  ;;  %v277_v49 = vsub.s32 6, %v3397_v55 }
  0xe1   :  { %1955 = vmatprep.subr.bf16.mxu1 %v2625_v52 }
  0xe3   :  { %1983 = vmatpush1.bf16.msra.mxu0 %v2626_v1 }
  0xe4   :  { %1956 = vmatpush2.bf16.msra.mxu1 %v2623_v53  ;;  %v281_v53 = vsub.s32 7, %v3397_v55 }
  0xe6   :  { %2281 = vmatmul.mubr.msk.bf16.vlgmr.msra.gmra.mxu0 %vm1454_vm1, %v3170_v43  ;;  %v1574_v43 = vpop.f32.mrf.mxu1 }
  0xe7   :  { %1958 = vmatmul.mubr.bf16.vlgmr.msra.gmra.mxu1 %v2872_v8  ;;  %v258_v8 = vrot.slane %v3403_v57, %v257_v58 }
  0xe8   :  { %v1576_v2 = vpop.f32.mrf.mxu1 }
  0xea   :  { %v1578_v11 = vpop.f32.mrf.mxu1 }
 0x102   :  { %v1529_v61 = vpop.f32.mrf.mxu0 }
 0x103   :  { %v1530_v62 = vadd.f32 %v1529_v61, %v254_v60 }
 0x104   :  { %v1531_v63 = vpop.f32.mrf.mxu0 }
 0x105   :  { %v1573_v51 = vadd.f32 %v1572_v59, %v1530_v62  ;;  %v1532_v0 = vadd.f32 %v1531_v63, %v258_v8  ;;  %v278_v59 = vrot.slane %v3403_v57, %v277_v49 }
 0x106   :  { %v1533_v3 = vpop.f32.mrf.mxu0 }
 0x107   :  { %2011 = vst [vmem:[%s3514_s3] sm:$0xff] %v1573_v51  ;;  %v1575_v4 = vadd.f32 %v1574_v43, %v1532_v0  ;;  %v1534_v5 = vadd.f32 %v1533_v3, %v254_v60 }
 0x108   :  { %v1535_v6 = vpop.f32.mrf.mxu0 }
 0x109   :  { %2012 = vst [vmem:[%s3514_s3 + $0x8] sm:$0xff] %v1575_v4  ;;  %v1577_v9 = vadd.f32 %v1576_v2, %v1534_v5  ;;  %v1536_v10 = vadd.f32 %v1535_v6, %v258_v8  ;;  %v282_v8 = vrot.slane %v3403_v57, %v281_v53 }
 0x10b   :  { %2023 = vst [vmem:[%s3514_s3 + $0x60] sm:$0xff] %v1577_v9  ;;  %v1579_v13 = vadd.f32 %v1578_v11, %v1536_v10 }
 0x10d   :  { %2024 = vst [vmem:[%s3514_s3 + $0x68] sm:$0xff] %v1579_v13  ;;  %v248_v13 = vld [vmem:[%s3513_s2 + $0x8] sm:$0xf] }
 0x10e   :  { %v1658_v16 = vpop.f32.mrf.mxu0  ;;  %v298_v33 = vrot.slane %v248_v13, %v265_v12 }
 0x10f   :  { %v1615_v18 = vpop.f32.mrf.mxu1 }
 0x110   :  { %v1616_v19 = vadd.f32 %v1615_v18, %v262_v14  ;;  %v1660_v20 = vpop.f32.mrf.mxu0 }
 0x111   :  { %v1617_v21 = vpop.f32.mrf.mxu1 }
 0x112   :  { %v1659_v22 = vadd.f32 %v1658_v16, %v1616_v19  ;;  %v1618_v23 = vadd.f32 %v1617_v21, %v266_v17  ;;  %v1662_v25 = vpop.f32.mrf.mxu0  ;;  %v286_v16 = vrot.slane %v248_v13, %v253_v56 }
 0x113   :  { %v1619_v24 = vpop.f32.mrf.mxu1 }
 0x114   :  { %2013 = vst [vmem:[%s3514_s3 + $0x10] sm:$0xff] %v1659_v22  ;;  %v1661_v26 = vadd.f32 %v1660_v20, %v1618_v23  ;;  %v1620_v27 = vadd.f32 %v1619_v24, %v262_v14  ;;  %v1664_v31 = vpop.f32.mrf.mxu0 }
 0x115   :  { %v1621_v28 = vpop.f32.mrf.mxu1 }
 0x116   :  { %2014 = vst [vmem:[%s3514_s3 + $0x18] sm:$0xff] %v1661_v26  ;;  %v1663_v29 = vadd.f32 %v1662_v25, %v1620_v27  ;;  %v1622_v30 = vadd.f32 %v1621_v28, %v266_v17  ;;  %v290_v17 = vrot.slane %v248_v13, %v257_v58 }
 0x118   :  { %2025 = vst [vmem:[%s3514_s3 + $0x70] sm:$0xff] %v1663_v29  ;;  %v1665_v32 = vadd.f32 %v1664_v31, %v1622_v30  ;;  %v294_v31 = vrot.slane %v248_v13, %v261_v7 }
 0x11a   :  { %2026 = vst [vmem:[%s3514_s3 + $0x78] sm:$0xff] %v1665_v32 }
 0x11b   :  { %v1744_v35 = vpop.f32.mrf.mxu1 }
 0x11d   :  { %v1746_v38 = vpop.f32.mrf.mxu1 }
 0x11f   :  { %v1748_v44 = vpop.f32.mrf.mxu1 }
 0x121   :  { %v1750_v1 = vpop.f32.mrf.mxu1 }
 0x14e   :  { %v1701_v39 = vpop.f32.mrf.mxu0 }
 0x14f   :  { %v1702_v40 = vadd.f32 %v1701_v39, %v270_v36 }
 0x150   :  { %v1703_v41 = vpop.f32.mrf.mxu0 }
 0x151   :  { %v1745_v42 = vadd.f32 %v1744_v35, %v1702_v40  ;;  %v1704_v15 = vadd.f32 %v1703_v41, %v274_v37 }
 0x152   :  { %v1705_v45 = vpop.f32.mrf.mxu0 }
 0x153   :  { %2015 = vst [vmem:[%s3514_s3 + $0x20] sm:$0xff] %v1745_v42  ;;  %v1747_v46 = vadd.f32 %v1746_v38, %v1704_v15  ;;  %v1706_v47 = vadd.f32 %v1705_v45, %v270_v36 }
 0x154   :  { %v1707_v48 = vpop.f32.mrf.mxu0 }
 0x155   :  { %2016 = vst [vmem:[%s3514_s3 + $0x28] sm:$0xff] %v1747_v46  ;;  %v1749_v50 = vadd.f32 %v1748_v44, %v1706_v47  ;;  %v1708_v52 = vadd.f32 %v1707_v48, %v274_v37 }
 0x157   :  { %2027 = vst [vmem:[%s3514_s3 + $0x80] sm:$0xff] %v1749_v50  ;;  %v1751_v54 = vadd.f32 %v1750_v1, %v1708_v52 }
 0x159   :  { %2028 = vst [vmem:[%s3514_s3 + $0x88] sm:$0xff] %v1751_v54 }
 0x15a   :  { %v1830_v60 = vpop.f32.mrf.mxu0 }
 0x15b   :  { %v1787_v43 = vpop.f32.mrf.mxu1 }
 0x15c   :  { %v1788_v61 = vadd.f32 %v1787_v43, %v278_v59  ;;  %v1832_v62 = vpop.f32.mrf.mxu0 }
 0x15d   :  { %v1789_v63 = vpop.f32.mrf.mxu1 }
 0x15e   :  { %v1831_v51 = vadd.f32 %v1830_v60, %v1788_v61  ;;  %v1790_v0 = vadd.f32 %v1789_v63, %v282_v8  ;;  %v1834_v3 = vpop.f32.mrf.mxu0 }
 0x15f   :  { %v1791_v2 = vpop.f32.mrf.mxu1 }
 0x160   :  { %2017 = vst [vmem:[%s3514_s3 + $0x30] sm:$0xff] %v1831_v51  ;;  %v1833_v4 = vadd.f32 %v1832_v62, %v1790_v0  ;;  %v1792_v5 = vadd.f32 %v1791_v2, %v278_v59  ;;  %v1836_v10 = vpop.f32.mrf.mxu0 }
 0x161   :  { %v1793_v6 = vpop.f32.mrf.mxu1 }
 0x162   :  { %2018 = vst [vmem:[%s3514_s3 + $0x38] sm:$0xff] %v1833_v4  ;;  %v1835_v57 = vadd.f32 %v1834_v3, %v1792_v5  ;;  %v1794_v9 = vadd.f32 %v1793_v6, %v282_v8 }
 0x164   :  { %2029 = vst [vmem:[%s3514_s3 + $0x90] sm:$0xff] %v1835_v57  ;;  %v1837_v11 = vadd.f32 %v1836_v10, %v1794_v9 }
 0x166   :  { %2030 = vst [vmem:[%s3514_s3 + $0x98] sm:$0xff] %v1837_v11 }
 0x167   :  { %v1916_v14 = vpop.f32.mrf.mxu1 }
 0x169   :  { %v1918_v18 = vpop.f32.mrf.mxu1 }
 0x16b   :  { %v1920_v24 = vpop.f32.mrf.mxu1 }
 0x16d   :  { %v1922_v29 = vpop.f32.mrf.mxu1 }
 0x19a   :  { %v1873_v19 = vpop.f32.mrf.mxu0 }
 0x19b   :  { %v1874_v20 = vadd.f32 %v1873_v19, %v286_v16 }
 0x19c   :  { %v1875_v21 = vpop.f32.mrf.mxu0 }
 0x19d   :  { %v1917_v22 = vadd.f32 %v1916_v14, %v1874_v20  ;;  %v1876_v23 = vadd.f32 %v1875_v21, %v290_v17 }
 0x19e   :  { %v1877_v25 = vpop.f32.mrf.mxu0 }
 0x19f   :  { %2019 = vst [vmem:[%s3514_s3 + $0x40] sm:$0xff] %v1917_v22  ;;  %v1919_v26 = vadd.f32 %v1918_v18, %v1876_v23  ;;  %v1878_v27 = vadd.f32 %v1877_v25, %v286_v16 }
 0x1a0   :  { %v1879_v28 = vpop.f32.mrf.mxu0 }
 0x1a1   :  { %2020 = vst [vmem:[%s3514_s3 + $0x48] sm:$0xff] %v1919_v26  ;;  %v1921_v56 = vadd.f32 %v1920_v24, %v1878_v27  ;;  %v1880_v58 = vadd.f32 %v1879_v28, %v290_v17 }
 0x1a3   :  { %2031 = vst [vmem:[%s3514_s3 + $0xa0] sm:$0xff] %v1921_v56  ;;  %v1923_v30 = vadd.f32 %v1922_v29, %v1880_v58 }
 0x1a5   :  { %2032 = vst [vmem:[%s3514_s3 + $0xa8] sm:$0xff] %v1923_v30 }
 0x1a6   :  { %v2002_v32 = vpop.f32.mrf.mxu0 }
 0x1a7   :  { %v1959_v34 = vpop.f32.mrf.mxu1 }
 0x1a8   :  { %v1960_v35 = vadd.f32 %v1959_v34, %v294_v31  ;;  %v2004_v36 = vpop.f32.mrf.mxu0 }
 0x1a9   :  { %v1961_v37 = vpop.f32.mrf.mxu1 }
 0x1aa   :  { %v2003_v38 = vadd.f32 %v2002_v32, %v1960_v35  ;;  %v1962_v39 = vadd.f32 %v1961_v37, %v298_v33  ;;  %v2006_v41 = vpop.f32.mrf.mxu0 }
 0x1ab   :  { %v1963_v40 = vpop.f32.mrf.mxu1 }
 0x1ac   :  { %2021 = vst [vmem:[%s3514_s3 + $0x50] sm:$0xff] %v2003_v38  ;;  %v2005_v7 = vadd.f32 %v2004_v36, %v1962_v39  ;;  %v1964_v42 = vadd.f32 %v1963_v40, %v294_v31  ;;  %v2008_v44 = vpop.f32.mrf.mxu0 }
 0x1ad   :  { %v1965_v15 = vpop.f32.mrf.mxu1 }
 0x1ae   :  { %2022 = vst [vmem:[%s3514_s3 + $0x58] sm:$0xff] %v2005_v7  ;;  %v2007_v55 = vadd.f32 %v2006_v41, %v1964_v42  ;;  %v1966_v12 = vadd.f32 %v1965_v15, %v298_v33 }
 0x1b0   :  { %2033 = vst [vmem:[%s3514_s3 + $0xb0] sm:$0xff] %v2007_v55  ;;  %v2009_v45 = vadd.f32 %v2008_v44, %v1966_v12 }
 0x1b2   :  { %2034 = vst [vmem:[%s3514_s3 + $0xb8] sm:$0xff] %v2009_v45 }

// kernel: vqa_backbone_forward.17
= control target key start
LH: loop header
LB: loop body
LE: loop exit
PB: predicated region body
PF: predicated region fallthrough
CT: control target
= control target key end

     0   :  { %s702_s15 = smov 0   ;;  %s747_s0 = inlined_call_operand.vmem [shape: bf16[2,8,384], index: 0, kind: input, shape index: {}]   ;;  %s748_s1 = inlined_call_operand.vmem [shape: bf16[2,4,384], index: 1, kind: input, shape index: {}, may-alias: {1,2}]   ;;  %s749_s2 = inlined_call_operand.vmem [shape: bf16[2,4,384], index: 2, kind: input, shape index: {}, may-alias: {1,2}]   ;;  %s750_s3 = inlined_call_operand.vmem [shape: f32[2,1,4], index: 3, kind: input, shape index: {}]   ;;  %s751_s4 = inlined_call_operand.vmem [shape: bf16[2,8,384], index: 4, kind: output, shape index: {}]  }
   0x1 LB: > { %s605_s16 = sadd.s32 4294967295, %s671_s15   ;;  %p609_p0 = scmp.ge.s32.totalorder %s671_s15, 1  ;;  %s671_s15 = sphi %s702_s15, %s14_s15  }
   0x2   : > { %p190_p1 = scmp.lt.s32.totalorder %s671_s15, 3 }
   0x4   : > { %p191_p2 = pnand %p609_p0, %p190_p1 }
   0x5   : > { %p229_p3 = scmp.lt.s32.totalorder (!%p191_p2), %s605_s16, 1 }
   0x6   : > { %194 = sbr.rel (%p191_p2) target bundleno = 742 (0x2e6), region = 36 }
   0xb   : > { %v273_v0 = vlaneseq  ;;  %v673_v1 = vmov 0.0   ;;  %v674_v2 = vmov 1983009808   ;;  %vm675_vm0 = vmmov 0   ;;  %s753_s16 = smov (!%p229_p3, %s605_s16), 1 }
   0xc   : > { %630 = vmatprep.subr.bf16.mxu1 %v673_v1  ;;  %v271_v3 = vunpack.c.l.s4 %v674_v2  ;;  %632 = vmatprep.mubr.msk.bf16.mxu1 %vm675_vm0, %v673_v1  ;;  %s643_s17 = smul.u32 6, %s753_s16  ;;  %s246_s27 = scalar_lea.vmem %s750_s3, %s753_s16  ;;  %vm378_vm1 = vcmask 31744   ;;  %vm411_vm2 = vcmask 1041408   ;;  %v676_v42 = vmov 0  }
   0xd   : > { %v274_v4 = vshrl.u32 %v273_v0, 7  ;;  %s642_s18 = smul.u32 12, %s753_s16  ;;  %v369_v16 = vld [vmem:[%s246_s27] sm:$0x1] }
   0xe   : > { %v272_v5 = vunpack.c.0.s8 %v271_v3  ;;  %s238_s21 = scalar_lea.vmem %s748_s1, %s643_s17  ;;  %v370_v17 = vmul.f32 1e+09, %v369_v16  ;;  %s243_s30 = scalar_lea.vmem %s749_s2, %s643_s17 }
   0xf   : > { %v255_v7 = vld [vmem:[%s238_s21] sm:$0x3f]  ;;  %s233_s24 = scalar_lea.vmem %s747_s0, %s642_s18  ;;  %v374_v18 = vsub.s32 0, %v274_v4  ;;  %s251_s7 = scalar_lea.vmem %s751_s4, %s642_s18 }
  0x10   : > { %v275_v6 = vsub.s32 %v272_v5, %v274_v4  ;;  %v269_v9 = vcombine.high %v255_v7, %v255_v7  ;;  %v253_v10 = vld [vmem:[%s233_s24] sm:$0xff]  ;;  %v659_v14 = vld [vmem:[%s233_s24 + $0x8] ss:$0 sps:$4 sm:$0xff]  }
  0x11   : > { %v615_v11 = vcombine.high %v253_v10, %v253_v10  ;;  %v614_v15 = vcombine.low %v253_v10, %v253_v10  ;;  %v375_v23 = vrot.slane %v370_v17, %v374_v18  ;;  %v256_v37 = vld [vmem:[%s243_s30] sm:$0x3f] }
  0x12   : > { %v276_v8 = vrot.slane %v255_v7, %v275_v6  ;;  %v283_v13 = vrot.slane %v269_v9, %v275_v6  ;;  %v399_v38 = vrot.slane %v256_v37, %v275_v6  ;;  %v392_v40 = vcombine.high %v256_v37, %v256_v37 }
  0x13   : > { %320 = vmatprep.mubr.bf16.mxu0 %v615_v11 }
  0x14   : > { %v284_v12 = vcombine.high %v276_v8, %v276_v8  ;;  %631 = vmatpush3.bf16.xpose.msra.mxu1 %v283_v13  ;;  %v407_v39 = vcombine.high %v399_v38, %v399_v38  ;;  %v413_v41 = vsel %vm411_vm2, %v399_v38, 0  ;;  %v406_v43 = vrot.slane %v392_v40, %v275_v6 }
  0x15   : > { %636 = vmatprep.subr.bf16.mxu1 %v673_v1 }
  0x16   : > { %302 = vmatprep.subr.bf16.mxu0 %v284_v12  ;;  %v419_v44 = vsel %vm411_vm2, %v406_v43, 0 }
  0x17   : > { %303 = vmatpush1.bf16.xpose.msra.mxu0 %v276_v8 }
  0x18   : > { %617 = vmatprep.subr.msk.bf16.mxu0 %vm411_vm2, %v407_v39 }
  0x1b   : > { %633 = vmatmul.mubr.bf16.vlgmr.msra.gmra.mxu1 %v659_v14 }
  0x1c   : > { %638 = vmatprep.mubr.msk.bf16.mxu1 %vm675_vm0, %v673_v1  ;;  %637 = vmatpush3.bf16.msra.mxu1 %v419_v44 }
  0x1e   : > { %321 = vmatmul.mubr.bf16.vlgmr.msra.gmra.mxu0 %v614_v15 }
  0x1f   : > { %453 = vmatprep.mubr.bf16.mxu0 %v676_v42  ;;  %436 = vmatpush1.bf16.msra.mxu0 %v413_v41 }
  0xdb   : > { %v362_v19 = vpop.f32.mrf.mxu1 }
  0xdd   : > { %v634_v22 = vpop.f32.mrf.mxu1 }
  0xde   : > { %v322_v20 = vpop.f32.mrf.mxu0 }
  0xdf   : > { %v363_v21 = vadd.f32 %v362_v19, %v322_v20  ;;  %v365_v26 = vpop.f32.mrf.mxu1 }
  0xe0   : > { %v324_v24 = vpop.f32.mrf.mxu0 }
  0xe1   : > { %v368_v25 = vmul.f32 0.051031034, %v363_v21  ;;  %v635_v28 = vpop.f32.mrf.mxu1 }
  0xe2   : > { %v325_v27 = vpop.f32.mrf.mxu0 }
  0xe3   : > { %v377_v29 = vsub.f32 %v368_v25, %v375_v23 }
  0xe4   : > { %v326_v30 = vpop.f32.mrf.mxu0 }
  0xe5   : > { %v379_v31 = vsel %vm378_vm1, %v377_v29, -inf }
  0xe6   : > { %380 = vmax.xlane.f32.xlu0 %v379_v31 }
 0x16f   : > { %v381_v32 = vpop.xlane.xlu0 %380 }
 0x170   : > { %v382_v33 = vsub.f32 %v377_v29, %v381_v32 }
 0x172   : > { %v383_v34 = vmul.f32 1.442695, %v382_v33 }
 0x174   : > { %661 = vpow2.f32 %v383_v34 }
 0x181   : > { %v662_v35 = vpop.eup %661 }
 0x182   : > { %v385_v36 = vsel %vm378_vm1, %v662_v35, 0.0 }
 0x183   : > { %386 = vadd.xlane.f32.xlu0 %v385_v36 }
 0x20c   : > { %v387_v45 = vpop.xlane.xlu0 %386 }
 0x20d   : > { %663 = vrcp.f32 %v387_v45 }
 0x21a   : > { %v664_v46 = vpop.eup %663 }
 0x21b   : > { %v389_v47 = vmul.f32 %v664_v46, %v662_v35 }
 0x21d   : > { %v390_v48 = vpack.c.bf16 %v389_v47, %v389_v47 }
 0x21f   : > { %618 = vmatmul.mubr.msk.bf16.vlgmr.msra.gmra.mxu0 %vm378_vm1, %v390_v48  ;;  %639 = vmatmul.mubr.msk.bf16.vlgmr.msra.gmra.mxu1 %vm378_vm1, %v390_v48 }
 0x2df   : > { %v455_v49 = vpop.f32.mrf.mxu0  ;;  %v496_v50 = vpop.f32.mrf.mxu1 }
 0x2e0   : > { %v625_v51 = vpack.c.bf16 %v496_v50, %v496_v50 }
 0x2e1   : > { %v457_v52 = vpop.f32.mrf.mxu0  ;;  %v640_v53 = vpop.f32.mrf.mxu1 }
 0x2e2   : > { %516 = vst [vmem:[%s251_s7 + $0x8] sm:$0xf] %v625_v51  ;;  %v624_v54 = vpack.c.bf16 %v457_v52, %v455_v49 }
 0x2e3   : > { %v459_v55 = vpop.f32.mrf.mxu0  ;;  %v499_v56 = vpop.f32.mrf.mxu1 }
 0x2e4   : > { %515 = vst [vmem:[%s251_s7] sm:$0xff] %v624_v54 }
 0x2e5   : > { %v460_v57 = vpop.f32.mrf.mxu0  ;;  %v641_v58 = vpop.f32.mrf.mxu1 }
 0x2e6 PF: > { %s14_s15 = sadd.s32 1, %s671_s15  }
 0x2e7   : > { %p11_p4 = scmp.ge.s32.totalorder %s14_s15, 4  }
 0x2e9   :  { %13 = sbr.rel (!%p11_p4) target bundleno = 1 (0x1), region = 75 }

// kernel: vqa_backbone_forward.16
= control target key start
LH: loop header
LB: loop body
LE: loop exit
PB: predicated region body
PF: predicated region fallthrough
CT: control target
= control target key end

     0   :  { %s706_s15 = smov 0   ;;  %s753_s0 = inlined_call_operand.vmem [shape: bf16[2,4,384], index: 0, kind: input, shape index: {}]   ;;  %s754_s1 = inlined_call_operand.vmem [shape: bf16[2,8,384], index: 1, kind: input, shape index: {}, may-alias: {1,2}]   ;;  %s755_s2 = inlined_call_operand.vmem [shape: bf16[2,8,384], index: 2, kind: input, shape index: {}, may-alias: {1,2}]   ;;  %s756_s3 = inlined_call_operand.vmem [shape: f32[2,1,8], index: 3, kind: input, shape index: {}]   ;;  %s757_s4 = inlined_call_operand.vmem [shape: bf16[2,4,384], index: 4, kind: output, shape index: {}]  }
   0x1 LB: > { %s607_s16 = sadd.s32 4294967295, %s675_s15   ;;  %p611_p0 = scmp.ge.s32.totalorder %s675_s15, 1  ;;  %s675_s15 = sphi %s706_s15, %s14_s15  }
   0x2   : > { %p190_p1 = scmp.lt.s32.totalorder %s675_s15, 3 }
   0x4   : > { %p191_p2 = pnand %p611_p0, %p190_p1 }
   0x5   : > { %p229_p3 = scmp.lt.s32.totalorder (!%p191_p2), %s607_s16, 1 }
   0x6   : > { %194 = sbr.rel (%p191_p2) target bundleno = 741 (0x2e5), region = 36 }
   0xb   : > { %v263_v0 = vlaneseq  ;;  %v677_v1 = vmov 0.0   ;;  %vm678_vm0 = vmmov 0   ;;  %v679_v2 = vmov 1983009808   ;;  %s759_s16 = smov (!%p229_p3, %s607_s16), 1 }
   0xc   : > { %632 = vmatprep.subr.bf16.mxu1 %v677_v1  ;;  %634 = vmatprep.mubr.msk.bf16.mxu1 %vm678_vm0, %v677_v1  ;;  %v261_v3 = vunpack.c.l.s4 %v679_v2  ;;  %s645_s17 = smul.u32 12, %s759_s16  ;;  %s246_s30 = scalar_lea.vmem %s756_s3, %s759_s16  ;;  %vm379_vm1 = vcmask 60416   ;;  %vm404_vm2 = vcmask 1043456   ;;  %v680_v41 = vmov 0  }
   0xd   : > { %v264_v4 = vshrl.u32 %v263_v0, 7  ;;  %s644_s18 = smul.u32 6, %s759_s16  ;;  %v370_v16 = vld [vmem:[%s246_s30] sm:$0x1]  ;;  %vm400_vm3 = vcmask 64512  }
   0xe   : > { %v262_v5 = vunpack.c.0.s8 %v261_v3  ;;  %s238_s21 = scalar_lea.vmem %s754_s1, %s645_s17  ;;  %s727_s24 = scalar_lea.vmem %s755_s2, %s645_s17  ;;  %v371_v17 = vmul.f32 1e+09, %v370_v16 }
   0xf   : > { %v254_v7 = vld [vmem:[%s238_s21] sm:$0xff]  ;;  %s233_s27 = scalar_lea.vmem %s753_s0, %s644_s18  ;;  %v659_v9 = vld [vmem:[%s238_s21 + $0x8] ss:$0 sps:$4 sm:$0xff]   ;;  %v375_v18 = vsub.s32 0, %v264_v4  ;;  %s251_s7 = scalar_lea.vmem %s757_s4, %s644_s18 }
  0x10   : > { %v719_v6 = vsub.s32 %v262_v5, %v264_v4  ;;  %v617_v8 = vcombine.high %v254_v7, %v254_v7  ;;  %v616_v10 = vcombine.low %v254_v7, %v254_v7  ;;  %v253_v11 = vld [vmem:[%s233_s27] sm:$0x3f]  ;;  %633 = vmatpush3.bf16.xpose.msra.mxu1 %v659_v9  ;;  %v664_v40 = vld [vmem:[%s727_s24 + $0x8] ss:$0 sps:$4 sm:$0xff]  }
  0x11   : > { %v259_v12 = vcombine.high %v253_v11, %v253_v11  ;;  %638 = vmatprep.subr.bf16.mxu1 %v677_v1  ;;  %v376_v23 = vrot.slane %v371_v17, %v375_v18  ;;  %v256_v37 = vld [vmem:[%s727_s24] sm:$0xff]  ;;  %v412_v43 = vsel %vm404_vm2, %v664_v40, 0 }
  0x12   : > { %v266_v13 = vrot.slane %v253_v11, %v719_v6  ;;  %303 = vmatprep.subr.bf16.mxu0 %v617_v8  ;;  %v620_v38 = vcombine.high %v256_v37, %v256_v37  ;;  %v619_v39 = vcombine.low %v256_v37, %v256_v37 }
  0x13   : > { %304 = vmatpush1.bf16.xpose.msra.mxu0 %v616_v10  ;;  %v273_v15 = vrot.slane %v259_v12, %v719_v6 }
  0x14   : > { %v274_v14 = vcombine.high %v266_v13, %v266_v13  ;;  %622 = vmatprep.subr.msk.bf16.mxu0 %vm404_vm2, %v620_v38  ;;  %v406_v42 = vsel %vm404_vm2, %v619_v39, 0 }
  0x16   : > { %321 = vmatprep.mubr.bf16.mxu0 %v274_v14 }
  0x17   : > { %635 = vmatmul.mubr.bf16.vlgmr.msra.gmra.mxu1 %v273_v15 }
  0x18   : > { %640 = vmatprep.mubr.msk.bf16.mxu1 %vm678_vm0, %v677_v1  ;;  %639 = vmatpush3.bf16.msra.mxu1 %v412_v43 }
  0x1a   : > { %322 = vmatmul.mubr.bf16.vlgmr.msra.gmra.mxu0 %v266_v13 }
  0x1b   : > { %446 = vmatprep.mubr.bf16.mxu0 %v680_v41  ;;  %429 = vmatpush1.bf16.msra.mxu0 %v406_v42 }
  0xd7   : > { %v363_v19 = vpop.f32.mrf.mxu1 }
  0xd9   : > { %v636_v22 = vpop.f32.mrf.mxu1 }
  0xda   : > { %v323_v20 = vpop.f32.mrf.mxu0 }
  0xdb   : > { %v364_v21 = vadd.f32 %v363_v19, %v323_v20  ;;  %v366_v26 = vpop.f32.mrf.mxu1 }
  0xdc   : > { %v325_v24 = vpop.f32.mrf.mxu0 }
  0xdd   : > { %v369_v25 = vmul.f32 0.051031034, %v364_v21  ;;  %v637_v28 = vpop.f32.mrf.mxu1 }
  0xde   : > { %v326_v27 = vpop.f32.mrf.mxu0 }
  0xdf   : > { %v378_v29 = vsub.f32 %v369_v25, %v376_v23 }
  0xe0   : > { %v327_v30 = vpop.f32.mrf.mxu0 }
  0xe1   : > { %v380_v31 = vsel %vm379_vm1, %v378_v29, -inf }
  0xe2   : > { %381 = vmax.xlane.f32.xlu0 %v380_v31 }
 0x16b   : > { %v382_v32 = vpop.xlane.xlu0 %381 }
 0x16c   : > { %v383_v33 = vsub.f32 %v378_v29, %v382_v32 }
 0x16e   : > { %v384_v34 = vmul.f32 1.442695, %v383_v33 }
 0x170   : > { %665 = vpow2.f32 %v384_v34 }
 0x17d   : > { %v666_v35 = vpop.eup %665 }
 0x17e   : > { %v386_v36 = vsel %vm379_vm1, %v666_v35, 0.0 }
 0x17f   : > { %387 = vadd.xlane.f32.xlu0 %v386_v36 }
 0x208   : > { %v388_v44 = vpop.xlane.xlu0 %387 }
 0x209   : > { %667 = vrcp.f32 %v388_v44 }
 0x216   : > { %v668_v45 = vpop.eup %667 }
 0x217   : > { %v390_v46 = vmul.f32 %v668_v45, %v666_v35 }
 0x219   : > { %v391_v47 = vpack.c.bf16 %v390_v46, %v390_v46 }
 0x21b   : > { %623 = vmatmul.mubr.msk.bf16.vlgmr.msra.gmra.mxu0 %vm400_vm3, %v391_v47  ;;  %641 = vmatmul.mubr.msk.bf16.vlgmr.msra.gmra.mxu1 %vm400_vm3, %v391_v47 }
 0x2db   : > { %v448_v48 = vpop.f32.mrf.mxu0  ;;  %v489_v49 = vpop.f32.mrf.mxu1 }
 0x2dc   : > { %v497_v50 = vpack.c.bf16 %v489_v49, %v489_v49 }
 0x2dd   : > { %v450_v51 = vpop.f32.mrf.mxu0  ;;  %v642_v52 = vpop.f32.mrf.mxu1 }
 0x2de   : > { %v625_v53 = vpack.c.bf16 %v450_v51, %v448_v48  ;;  %v515_v56 = vrot.slane %v497_v50, %v719_v6 }
 0x2df   : > { %v452_v54 = vpop.f32.mrf.mxu0  ;;  %v492_v55 = vpop.f32.mrf.mxu1 }
 0x2e0   : > { %v508_v57 = vrot.slane %v625_v53, %v719_v6 }
 0x2e1   : > { %v453_v58 = vpop.f32.mrf.mxu0  ;;  %v643_v59 = vpop.f32.mrf.mxu1 }
 0x2e2   : > { %v516_v60 = vcombine.low %v508_v57, %v515_v56 }
 0x2e4   : > { %518 = vst [vmem:[%s251_s7] sm:$0x3f] %v516_v60 }
 0x2e5 PF: > { %s14_s15 = sadd.s32 1, %s675_s15  }
 0x2e6   : > { %p11_p4 = scmp.ge.s32.totalorder %s14_s15, 4  }
 0x2e8   :  { %13 = sbr.rel (!%p11_p4) target bundleno = 1 (0x1), region = 75 }

// kernel: vqa_backbone_forward.14
= control target key start
LH: loop header
LB: loop body
LE: loop exit
PB: predicated region body
PF: predicated region fallthrough
CT: control target
= control target key end

     0   :  { %v6657_v1 = vmov 0   ;;  %s8788_s1 = inlined_call_operand.vmem [shape: bf16[384,1536], index: 1, kind: input, shape index: {}]   ;;  %s8789_s0 = inlined_call_operand.vmem [shape: bf16[16,384], index: 0, kind: input, shape index: {}, may-alias: {0,5}]   ;;  %s8790_s3 = inlined_call_operand.vmem [shape: bf16[1536,384], index: 3, kind: input, shape index: {}]   ;;  %s8791_s2 = inlined_call_operand.vmem [shape: f32[1,1536], index: 2, kind: input, shape index: {}]   ;;  %s8792_s4 = inlined_call_operand.vmem [shape: f32[1,384], index: 4, kind: input, shape index: {}]   ;;  %s8793_s5 = inlined_call_operand.vmem [shape: bf16[16,384], index: 5, kind: input, shape index: {}, may-alias: {0,5}]   ;;  %s8794_s6 = inlined_call_operand.vmem [shape: bf16[16,384], index: 6, kind: output, shape index: {}]  }
   0x1   :  { %v5785_v0 = vld [vmem:[%s8788_s1 + $0x2a4] ss:$48 sps:$4 sm:$0xff]   ;;  %1911 = vmatprep.mubr.bf16.mxu1 %v6657_v1  ;;  %v5789_v3 = vld [vmem:[%s8788_s1 + $0x2a0] ss:$48 sps:$4 sm:$0xff]   ;;  %v5838_v34 = vld [vmem:[%s8788_s1 + $0x2ac] ss:$48 sps:$4 sm:$0xff]  }
   0x2   :  { %v5787_v2 = vld [vmem:[%s8788_s1 + $0x8a4] ss:$48 sps:$4 sm:$0xff]   ;;  %1836 = vmatprep.subr.bf16.mxu0 %v5785_v0  ;;  %v5790_v4 = vld [vmem:[%s8788_s1 + $0x8a0] ss:$48 sps:$4 sm:$0xff]   ;;  %v5836_v36 = vld [vmem:[%s8788_s1 + $0x2a8] ss:$48 sps:$4 sm:$0xff]  }
   0x3   :  { %1879 = vmatprep.subr.bf16.mxu1 %v5787_v2  ;;  %v5791_v5 = vld [vmem:[%s8788_s1 + $0x244] ss:$48 sps:$4 sm:$0xff]   ;;  %1837 = vmatpush1.bf16.msra.mxu0 %v5789_v3  ;;  %v5795_v7 = vld [vmem:[%s8788_s1 + $0x240] ss:$48 sps:$4 sm:$0xff]   ;;  %v5844_v39 = vld [vmem:[%s8788_s1 + $0x24c] ss:$48 sps:$4 sm:$0xff]  }
   0x4   :  { %1880 = vmatpush1.bf16.msra.mxu1 %v5790_v4  ;;  %v5793_v6 = vld [vmem:[%s8788_s1 + $0x844] ss:$48 sps:$4 sm:$0xff]   ;;  %1838 = vmatprep.subr.bf16.mxu0 %v5791_v5  ;;  %v5796_v8 = vld [vmem:[%s8788_s1 + $0x840] ss:$48 sps:$4 sm:$0xff]   ;;  %v5842_v40 = vld [vmem:[%s8788_s1 + $0x248] ss:$48 sps:$4 sm:$0xff]  }
   0x5   :  { %1881 = vmatprep.subr.bf16.mxu1 %v5793_v6  ;;  %v5797_v9 = vld [vmem:[%s8788_s1 + $0x1e4] ss:$48 sps:$4 sm:$0xff]   ;;  %v5801_v11 = vld [vmem:[%s8788_s1 + $0x1e0] ss:$48 sps:$4 sm:$0xff]   ;;  %v5850_v43 = vld [vmem:[%s8788_s1 + $0x1ec] ss:$48 sps:$4 sm:$0xff]  }
   0x6   :  { %v5799_v10 = vld [vmem:[%s8788_s1 + $0x7e4] ss:$48 sps:$4 sm:$0xff]   ;;  %v5802_v12 = vld [vmem:[%s8788_s1 + $0x7e0] ss:$48 sps:$4 sm:$0xff]   ;;  %v5848_v44 = vld [vmem:[%s8788_s1 + $0x1e8] ss:$48 sps:$4 sm:$0xff]  }
   0x7   :  { %1839 = vmatpush1.bf16.msra.mxu0 %v5795_v7  ;;  %v5803_v13 = vld [vmem:[%s8788_s1 + $0x184] ss:$48 sps:$4 sm:$0xff]   ;;  %v5807_v15 = vld [vmem:[%s8788_s1 + $0x180] ss:$48 sps:$4 sm:$0xff]   ;;  %v5856_v47 = vld [vmem:[%s8788_s1 + $0x18c] ss:$48 sps:$4 sm:$0xff]  }
   0x8   :  { %1882 = vmatpush1.bf16.msra.mxu1 %v5796_v8  ;;  %1840 = vmatprep.subr.bf16.mxu0 %v5797_v9  ;;  %v5805_v14 = vld [vmem:[%s8788_s1 + $0x784] ss:$48 sps:$4 sm:$0xff]   ;;  %v5808_v16 = vld [vmem:[%s8788_s1 + $0x780] ss:$48 sps:$4 sm:$0xff]   ;;  %v5854_v48 = vld [vmem:[%s8788_s1 + $0x188] ss:$48 sps:$4 sm:$0xff]  }
   0x9   :  { %1883 = vmatprep.subr.bf16.mxu1 %v5799_v10  ;;  %v5809_v17 = vld [vmem:[%s8788_s1 + $0x124] ss:$48 sps:$4 sm:$0xff]   ;;  %v5813_v19 = vld [vmem:[%s8788_s1 + $0x120] ss:$48 sps:$4 sm:$0xff]   ;;  %v5862_v52 = vld [vmem:[%s8788_s1 + $0x12c] ss:$48 sps:$4 sm:$0xff]  }
   0xa   :  { %v5811_v18 = vld [vmem:[%s8788_s1 + $0x724] ss:$48 sps:$4 sm:$0xff]   ;;  %v5814_v20 = vld [vmem:[%s8788_s1 + $0x720] ss:$48 sps:$4 sm:$0xff]   ;;  %v5860_v53 = vld [vmem:[%s8788_s1 + $0x128] ss:$48 sps:$4 sm:$0xff]  }
   0xb   :  { %1841 = vmatpush1.bf16.msra.mxu0 %v5801_v11  ;;  %v5815_v21 = vld [vmem:[%s8788_s1 + $0xc4] ss:$48 sps:$4 sm:$0xff]   ;;  %v5819_v23 = vld [vmem:[%s8788_s1 + $0xc0] ss:$48 sps:$4 sm:$0xff]   ;;  %v5868_v56 = vld [vmem:[%s8788_s1 + $0xcc] ss:$48 sps:$4 sm:$0xff]  }
   0xc   :  { %1884 = vmatpush1.bf16.msra.mxu1 %v5802_v12  ;;  %1842 = vmatprep.subr.bf16.mxu0 %v5803_v13  ;;  %v5817_v22 = vld [vmem:[%s8788_s1 + $0x6c4] ss:$48 sps:$4 sm:$0xff]   ;;  %v5820_v24 = vld [vmem:[%s8788_s1 + $0x6c0] ss:$48 sps:$4 sm:$0xff]   ;;  %v5866_v57 = vld [vmem:[%s8788_s1 + $0xc8] ss:$48 sps:$4 sm:$0xff]  }
   0xd   :  { %1885 = vmatprep.subr.bf16.mxu1 %v5805_v14  ;;  %v5821_v25 = vld [vmem:[%s8788_s1 + $0x64] ss:$48 sps:$4 sm:$0xff]   ;;  %v5825_v27 = vld [vmem:[%s8788_s1 + $0x60] ss:$48 sps:$4 sm:$0xff]   ;;  %v5874_v60 = vld [vmem:[%s8788_s1 + $0x6c] ss:$48 sps:$4 sm:$0xff]  }
   0xe   :  { %v5823_v26 = vld [vmem:[%s8788_s1 + $0x664] ss:$48 sps:$4 sm:$0xff]   ;;  %v5826_v28 = vld [vmem:[%s8788_s1 + $0x660] ss:$48 sps:$4 sm:$0xff]   ;;  %v5872_v61 = vld [vmem:[%s8788_s1 + $0x68] ss:$48 sps:$4 sm:$0xff]  }
   0xf   :  { %1843 = vmatpush1.bf16.msra.mxu0 %v5807_v15  ;;  %v5827_v29 = vld [vmem:[%s8788_s1 + $0x4] ss:$48 sps:$4 sm:$0xff]   ;;  %v5831_v31 = vld [vmem:[%s8788_s1] ss:$48 sps:$4 sm:$0xff]   ;;  %v5880_v0 = vld [vmem:[%s8788_s1 + $0xc] ss:$48 sps:$4 sm:$0xff]  }
  0x10   :  { %1886 = vmatpush1.bf16.msra.mxu1 %v5808_v16  ;;  %1844 = vmatprep.subr.bf16.mxu0 %v5809_v17  ;;  %v5829_v30 = vld [vmem:[%s8788_s1 + $0x604] ss:$48 sps:$4 sm:$0xff]   ;;  %v5832_v32 = vld [vmem:[%s8788_s1 + $0x600] ss:$48 sps:$4 sm:$0xff]   ;;  %v5878_v2 = vld [vmem:[%s8788_s1 + $0x8] ss:$48 sps:$4 sm:$0xff]  }
  0x11   :  { %1887 = vmatprep.subr.bf16.mxu1 %v5811_v18  ;;  %v5833_v33 = vld [vmem:[%s8788_s1 + $0x5a4] ss:$48 sps:$4 sm:$0xff]   ;;  %v5839_v37 = vld [vmem:[%s8788_s1 + $0x5a0] ss:$48 sps:$4 sm:$0xff]   ;;  %v5887_v4 = vld [vmem:[%s8788_s1 + $0x5ac] ss:$48 sps:$4 sm:$0xff]  }
  0x12   :  { %v6799_v35 = vld [vmem:[%s8789_s0 + $0x8] ss:$12 sps:$4 sm:$0xff]   ;;  %v5845_v41 = vld [vmem:[%s8788_s1 + $0x540] ss:$48 sps:$4 sm:$0xff]   ;;  %v5890_v5 = vld [vmem:[%s8788_s1 + $0x8ac] ss:$48 sps:$4 sm:$0xff]  }
  0x13   :  { %1845 = vmatpush1.bf16.msra.mxu0 %v5813_v19  ;;  %v5840_v38 = vld [vmem:[%s8788_s1 + $0x544] ss:$48 sps:$4 sm:$0xff]   ;;  %v5851_v45 = vld [vmem:[%s8788_s1 + $0x4e0] ss:$48 sps:$4 sm:$0xff]   ;;  %v5885_v7 = vld [vmem:[%s8788_s1 + $0x5a8] ss:$48 sps:$4 sm:$0xff]  }
  0x14   :  { %1888 = vmatpush1.bf16.msra.mxu1 %v5814_v20  ;;  %1846 = vmatprep.subr.bf16.mxu0 %v5815_v21  ;;  %v5846_v42 = vld [vmem:[%s8788_s1 + $0x4e4] ss:$48 sps:$4 sm:$0xff]   ;;  %v5857_v49 = vld [vmem:[%s8788_s1 + $0x480] ss:$48 sps:$4 sm:$0xff]   ;;  %v5888_v8 = vld [vmem:[%s8788_s1 + $0x8a8] ss:$48 sps:$4 sm:$0xff]  }
  0x15   :  { %1889 = vmatprep.subr.bf16.mxu1 %v5817_v22  ;;  %v5852_v46 = vld [vmem:[%s8788_s1 + $0x484] ss:$48 sps:$4 sm:$0xff]   ;;  %v5863_v54 = vld [vmem:[%s8788_s1 + $0x420] ss:$48 sps:$4 sm:$0xff]   ;;  %v5893_v9 = vld [vmem:[%s8788_s1 + $0x54c] ss:$48 sps:$4 sm:$0xff]  }
  0x16   :  { %v5858_v50 = vld [vmem:[%s8788_s1 + $0x424] ss:$48 sps:$4 sm:$0xff]   ;;  %v5869_v58 = vld [vmem:[%s8788_s1 + $0x3c0] ss:$48 sps:$4 sm:$0xff]   ;;  %v5896_v10 = vld [vmem:[%s8788_s1 + $0x84c] ss:$48 sps:$4 sm:$0xff]  }
  0x17   :  { %1847 = vmatpush1.bf16.msra.mxu0 %v5819_v23  ;;  %v6850_v51 = vld [vmem:[%s8789_s0 + $0x4] ss:$12 sps:$4 sm:$0xff]   ;;  %v6908_v6 = vld [vmem:[%s8789_s0] ss:$12 sps:$4 sm:$0xff]   ;;  %v5891_v11 = vld [vmem:[%s8788_s1 + $0x548] ss:$48 sps:$4 sm:$0xff]  }
  0x18   :  { %1890 = vmatpush1.bf16.msra.mxu1 %v5820_v24  ;;  %1848 = vmatprep.subr.bf16.mxu0 %v5821_v25  ;;  %v5864_v55 = vld [vmem:[%s8788_s1 + $0x3c4] ss:$48 sps:$4 sm:$0xff]   ;;  %v5875_v62 = vld [vmem:[%s8788_s1 + $0x360] ss:$48 sps:$4 sm:$0xff]   ;;  %v5894_v12 = vld [vmem:[%s8788_s1 + $0x848] ss:$48 sps:$4 sm:$0xff]  }
  0x19   :  { %1891 = vmatprep.subr.bf16.mxu1 %v5823_v26  ;;  %1868 = vmatprep.mubr.bf16.mxu0 %v6850_v51  ;;  %v5870_v59 = vld [vmem:[%s8788_s1 + $0x364] ss:$48 sps:$4 sm:$0xff]   ;;  %v5881_v3 = vld [vmem:[%s8788_s1 + $0x300] ss:$48 sps:$4 sm:$0xff]   ;;  %v5899_v13 = vld [vmem:[%s8788_s1 + $0x4ec] ss:$48 sps:$4 sm:$0xff]  }
  0x1a   :  { %v5876_v63 = vld [vmem:[%s8788_s1 + $0x304] ss:$48 sps:$4 sm:$0xff]   ;;  %v5902_v14 = vld [vmem:[%s8788_s1 + $0x7ec] ss:$48 sps:$4 sm:$0xff]   ;;  %v5897_v15 = vld [vmem:[%s8788_s1 + $0x4e8] ss:$48 sps:$4 sm:$0xff]  }
  0x1b   :  { %1849 = vmatpush1.bf16.msra.mxu0 %v5825_v27  ;;  %v5900_v16 = vld [vmem:[%s8788_s1 + $0x7e8] ss:$48 sps:$4 sm:$0xff]   ;;  %v5905_v17 = vld [vmem:[%s8788_s1 + $0x48c] ss:$48 sps:$4 sm:$0xff]  }
  0x1c   :  { %1892 = vmatpush1.bf16.msra.mxu1 %v5826_v28  ;;  %1850 = vmatprep.subr.bf16.mxu0 %v5827_v29  ;;  %v5908_v18 = vld [vmem:[%s8788_s1 + $0x78c] ss:$48 sps:$4 sm:$0xff]   ;;  %v5903_v19 = vld [vmem:[%s8788_s1 + $0x488] ss:$48 sps:$4 sm:$0xff]  }
  0x1d   :  { %1893 = vmatprep.subr.bf16.mxu1 %v5829_v30  ;;  %v5906_v20 = vld [vmem:[%s8788_s1 + $0x788] ss:$48 sps:$4 sm:$0xff]   ;;  %v5911_v21 = vld [vmem:[%s8788_s1 + $0x42c] ss:$48 sps:$4 sm:$0xff]  }
  0x1e   :  { %v5914_v22 = vld [vmem:[%s8788_s1 + $0x72c] ss:$48 sps:$4 sm:$0xff]   ;;  %v5909_v23 = vld [vmem:[%s8788_s1 + $0x428] ss:$48 sps:$4 sm:$0xff]  }
  0x1f   :  { %1851 = vmatpush1.bf16.msra.mxu0 %v5831_v31  ;;  %v5912_v24 = vld [vmem:[%s8788_s1 + $0x728] ss:$48 sps:$4 sm:$0xff]   ;;  %v5917_v25 = vld [vmem:[%s8788_s1 + $0x3cc] ss:$48 sps:$4 sm:$0xff]  }
  0x20   :  { %1894 = vmatpush1.bf16.msra.mxu1 %v5832_v32  ;;  %1852 = vmatprep.subr.bf16.mxu0 %v5833_v33  ;;  %v5920_v26 = vld [vmem:[%s8788_s1 + $0x6cc] ss:$48 sps:$4 sm:$0xff]   ;;  %v5915_v27 = vld [vmem:[%s8788_s1 + $0x3c8] ss:$48 sps:$4 sm:$0xff]  }
  0x21   :  { %1922 = vmatprep.subr.bf16.mxu1 %v5838_v34  ;;  %v5918_v28 = vld [vmem:[%s8788_s1 + $0x6c8] ss:$48 sps:$4 sm:$0xff]   ;;  %v5923_v29 = vld [vmem:[%s8788_s1 + $0x36c] ss:$48 sps:$4 sm:$0xff]  }
  0x22   :  { %v5926_v30 = vld [vmem:[%s8788_s1 + $0x66c] ss:$48 sps:$4 sm:$0xff]   ;;  %v5921_v31 = vld [vmem:[%s8788_s1 + $0x368] ss:$48 sps:$4 sm:$0xff]  }
  0x23   :  { %1912 = vmatmul.mubr.bf16.vlgmr.msra.gmra.mxu1 %v6799_v35  ;;  %1853 = vmatpush2.bf16.msra.mxu0 %v5839_v37  ;;  %v5924_v32 = vld [vmem:[%s8788_s1 + $0x668] ss:$48 sps:$4 sm:$0xff]   ;;  %v5929_v33 = vld [vmem:[%s8788_s1 + $0x30c] ss:$48 sps:$4 sm:$0xff]  }
  0x24   :  { %1923 = vmatpush1.bf16.msra.mxu1 %v5836_v36  ;;  %1854 = vmatprep.subr.bf16.mxu0 %v5840_v38  ;;  %v5932_v34 = vld [vmem:[%s8788_s1 + $0x60c] ss:$48 sps:$4 sm:$0xff]   ;;  %v5927_v36 = vld [vmem:[%s8788_s1 + $0x308] ss:$48 sps:$4 sm:$0xff]   ;;  %v5935_v38 = vld [vmem:[%s8788_s1 + $0x2b4] ss:$48 sps:$4 sm:$0xff]  }
  0x25   :  { %1924 = vmatprep.subr.bf16.mxu1 %v5844_v39  ;;  %1954 = vmatprep.mubr.bf16.mxu1 %v6850_v51  ;;  %v5930_v37 = vld [vmem:[%s8788_s1 + $0x608] ss:$48 sps:$4 sm:$0xff]   ;;  %v5938_v39 = vld [vmem:[%s8788_s1 + $0x8b4] ss:$48 sps:$4 sm:$0xff]  }
  0x27   :  { %1855 = vmatpush2.bf16.msra.mxu0 %v5845_v41  ;;  %v5936_v41 = vld [vmem:[%s8788_s1 + $0x8b0] ss:$48 sps:$4 sm:$0xff]  }
  0x28   :  { %1925 = vmatpush1.bf16.msra.mxu1 %v5842_v40  ;;  %1856 = vmatprep.subr.bf16.mxu0 %v5846_v42  ;;  %v5933_v40 = vld [vmem:[%s8788_s1 + $0x2b0] ss:$48 sps:$4 sm:$0xff]   ;;  %v5941_v42 = vld [vmem:[%s8788_s1 + $0x254] ss:$48 sps:$4 sm:$0xff]  }
  0x29   :  { %1926 = vmatprep.subr.bf16.mxu1 %v5850_v43  ;;  %v5944_v43 = vld [vmem:[%s8788_s1 + $0x854] ss:$48 sps:$4 sm:$0xff]  }
  0x2b   :  { %1857 = vmatpush2.bf16.msra.mxu0 %v5851_v45  ;;  %v5942_v45 = vld [vmem:[%s8788_s1 + $0x850] ss:$48 sps:$4 sm:$0xff]  }
  0x2c   :  { %1927 = vmatpush1.bf16.msra.mxu1 %v5848_v44  ;;  %1858 = vmatprep.subr.bf16.mxu0 %v5852_v46  ;;  %v5939_v44 = vld [vmem:[%s8788_s1 + $0x250] ss:$48 sps:$4 sm:$0xff]   ;;  %v5947_v46 = vld [vmem:[%s8788_s1 + $0x1f4] ss:$48 sps:$4 sm:$0xff]  }
  0x2d   :  { %1928 = vmatprep.subr.bf16.mxu1 %v5856_v47  ;;  %v5950_v47 = vld [vmem:[%s8788_s1 + $0x7f4] ss:$48 sps:$4 sm:$0xff]  }
  0x2f   :  { %1859 = vmatpush2.bf16.msra.mxu0 %v5857_v49  ;;  %v5948_v49 = vld [vmem:[%s8788_s1 + $0x7f0] ss:$48 sps:$4 sm:$0xff]  }
  0x30   :  { %1929 = vmatpush1.bf16.msra.mxu1 %v5854_v48  ;;  %1860 = vmatprep.subr.bf16.mxu0 %v5858_v50  ;;  %v5945_v48 = vld [vmem:[%s8788_s1 + $0x1f0] ss:$48 sps:$4 sm:$0xff]   ;;  %v5953_v50 = vld [vmem:[%s8788_s1 + $0x194] ss:$48 sps:$4 sm:$0xff]  }
  0x31   :  { %1930 = vmatprep.subr.bf16.mxu1 %v5862_v52  ;;  %v5956_v52 = vld [vmem:[%s8788_s1 + $0x794] ss:$48 sps:$4 sm:$0xff]  }
  0x33   :  { %1861 = vmatpush2.bf16.msra.mxu0 %v5863_v54  ;;  %v5954_v54 = vld [vmem:[%s8788_s1 + $0x790] ss:$48 sps:$4 sm:$0xff]  }
  0x34   :  { %1931 = vmatpush1.bf16.msra.mxu1 %v5860_v53  ;;  %1862 = vmatprep.subr.bf16.mxu0 %v5864_v55  ;;  %v5951_v53 = vld [vmem:[%s8788_s1 + $0x190] ss:$48 sps:$4 sm:$0xff]   ;;  %v5959_v55 = vld [vmem:[%s8788_s1 + $0x134] ss:$48 sps:$4 sm:$0xff]  }
  0x35   :  { %1932 = vmatprep.subr.bf16.mxu1 %v5868_v56  ;;  %v5962_v56 = vld [vmem:[%s8788_s1 + $0x734] ss:$48 sps:$4 sm:$0xff]  }
  0x37   :  { %1863 = vmatpush2.bf16.msra.mxu0 %v5869_v58  ;;  %v5960_v58 = vld [vmem:[%s8788_s1 + $0x730] ss:$48 sps:$4 sm:$0xff]  }
  0x38   :  { %1933 = vmatpush1.bf16.msra.mxu1 %v5866_v57  ;;  %1864 = vmatprep.subr.bf16.mxu0 %v5870_v59  ;;  %v5957_v57 = vld [vmem:[%s8788_s1 + $0x130] ss:$48 sps:$4 sm:$0xff]   ;;  %v5965_v59 = vld [vmem:[%s8788_s1 + $0xd4] ss:$48 sps:$4 sm:$0xff]  }
  0x39   :  { %1934 = vmatprep.subr.bf16.mxu1 %v5874_v60  ;;  %v5968_v60 = vld [vmem:[%s8788_s1 + $0x6d4] ss:$48 sps:$4 sm:$0xff]  }
  0x3b   :  { %1865 = vmatpush2.bf16.msra.mxu0 %v5875_v62  ;;  %v5966_v62 = vld [vmem:[%s8788_s1 + $0x6d0] ss:$48 sps:$4 sm:$0xff]  }
  0x3c   :  { %1935 = vmatpush1.bf16.msra.mxu1 %v5872_v61  ;;  %1866 = vmatprep.subr.bf16.mxu0 %v5876_v63  ;;  %v5963_v61 = vld [vmem:[%s8788_s1 + $0xd0] ss:$48 sps:$4 sm:$0xff]   ;;  %v5971_v63 = vld [vmem:[%s8788_s1 + $0x74] ss:$48 sps:$4 sm:$0xff]  }
  0x3d   :  { %1936 = vmatprep.subr.bf16.mxu1 %v5880_v0  ;;  %v5974_v0 = vld [vmem:[%s8788_s1 + $0x674] ss:$48 sps:$4 sm:$0xff]  }
  0x3f   :  { %1867 = vmatpush2.bf16.msra.mxu0 %v5881_v3  ;;  %v5972_v3 = vld [vmem:[%s8788_s1 + $0x670] ss:$48 sps:$4 sm:$0xff]  }
  0x40   :  { %1937 = vmatpush1.bf16.msra.mxu1 %v5878_v2  ;;  %1965 = vmatprep.subr.bf16.mxu0 %v5890_v5  ;;  %v5969_v2 = vld [vmem:[%s8788_s1 + $0x70] ss:$48 sps:$4 sm:$0xff]   ;;  %v5980_v5 = vld [vmem:[%s8788_s1 + $0x614] ss:$48 sps:$4 sm:$0xff]  }
  0x41   :  { %1938 = vmatprep.subr.bf16.mxu1 %v5887_v4  ;;  %v5977_v4 = vld [vmem:[%s8788_s1 + $0x14] ss:$48 sps:$4 sm:$0xff]  }
  0x42   :  { %1869 = vmatmul.mubr.bf16.vlgmr.msra.gmra.mxu0 %v6908_v6 }
  0x43   :  { %1966 = vmatpush1.bf16.msra.mxu0 %v5888_v8  ;;  %1997 = vmatprep.mubr.bf16.mxu0 %v6657_v1  ;;  %v5978_v8 = vld [vmem:[%s8788_s1 + $0x610] ss:$48 sps:$4 sm:$0xff]  }
  0x44   :  { %1939 = vmatpush2.bf16.msra.mxu1 %v5885_v7  ;;  %1967 = vmatprep.subr.bf16.mxu0 %v5896_v10  ;;  %v5975_v7 = vld [vmem:[%s8788_s1 + $0x10] ss:$48 sps:$4 sm:$0xff]   ;;  %v5986_v10 = vld [vmem:[%s8788_s1 + $0x2bc] ss:$48 sps:$4 sm:$0xff]  }
  0x45   :  { %1940 = vmatprep.subr.bf16.mxu1 %v5893_v9  ;;  %v5983_v9 = vld [vmem:[%s8788_s1 + $0x5b4] ss:$48 sps:$4 sm:$0xff]  }
  0x47   :  { %1968 = vmatpush1.bf16.msra.mxu0 %v5894_v12  ;;  %v5984_v12 = vld [vmem:[%s8788_s1 + $0x2b8] ss:$48 sps:$4 sm:$0xff]  }
  0x48   :  { %1941 = vmatpush2.bf16.msra.mxu1 %v5891_v11  ;;  %1969 = vmatprep.subr.bf16.mxu0 %v5902_v14  ;;  %v5981_v11 = vld [vmem:[%s8788_s1 + $0x5b0] ss:$48 sps:$4 sm:$0xff]   ;;  %v5992_v14 = vld [vmem:[%s8788_s1 + $0x25c] ss:$48 sps:$4 sm:$0xff]  }
  0x49   :  { %1942 = vmatprep.subr.bf16.mxu1 %v5899_v13  ;;  %v5989_v13 = vld [vmem:[%s8788_s1 + $0x554] ss:$48 sps:$4 sm:$0xff]  }
  0x4b   :  { %1970 = vmatpush1.bf16.msra.mxu0 %v5900_v16  ;;  %v5990_v16 = vld [vmem:[%s8788_s1 + $0x258] ss:$48 sps:$4 sm:$0xff]  }
  0x4c   :  { %1943 = vmatpush2.bf16.msra.mxu1 %v5897_v15  ;;  %1971 = vmatprep.subr.bf16.mxu0 %v5908_v18  ;;  %v5987_v15 = vld [vmem:[%s8788_s1 + $0x550] ss:$48 sps:$4 sm:$0xff]  }
  0x4d   :  { %1944 = vmatprep.subr.bf16.mxu1 %v5905_v17  ;;  %v5995_v17 = vld [vmem:[%s8788_s1 + $0x4f4] ss:$48 sps:$4 sm:$0xff]   ;;  %v5993_v18 = vld [vmem:[%s8788_s1 + $0x4f0] ss:$48 sps:$4 sm:$0xff]  }
  0x4f   :  { %1972 = vmatpush1.bf16.msra.mxu0 %v5906_v20  ;;  %v6001_v20 = vld [vmem:[%s8788_s1 + $0x494] ss:$48 sps:$4 sm:$0xff]  }
  0x50   :  { %1945 = vmatpush2.bf16.msra.mxu1 %v5903_v19  ;;  %1973 = vmatprep.subr.bf16.mxu0 %v5914_v22  ;;  %v5996_v19 = vld [vmem:[%s8788_s1 + $0x1f8] ss:$48 sps:$4 sm:$0xff]  }
  0x51   :  { %1946 = vmatprep.subr.bf16.mxu1 %v5911_v21  ;;  %v5999_v21 = vld [vmem:[%s8788_s1 + $0x490] ss:$48 sps:$4 sm:$0xff]   ;;  %v6002_v22 = vld [vmem:[%s8788_s1 + $0x198] ss:$48 sps:$4 sm:$0xff]  }
  0x53   :  { %1974 = vmatpush1.bf16.msra.mxu0 %v5912_v24  ;;  %v6010_v24 = vld [vmem:[%s8788_s1 + $0x13c] ss:$48 sps:$4 sm:$0xff]  }
  0x54   :  { %1947 = vmatpush2.bf16.msra.mxu1 %v5909_v23  ;;  %1975 = vmatprep.subr.bf16.mxu0 %v5920_v26  ;;  %v6007_v23 = vld [vmem:[%s8788_s1 + $0x434] ss:$48 sps:$4 sm:$0xff]   ;;  %v6008_v26 = vld [vmem:[%s8788_s1 + $0x138] ss:$48 sps:$4 sm:$0xff]  }
  0x55   :  { %1948 = vmatprep.subr.bf16.mxu1 %v5917_v25  ;;  %v6005_v25 = vld [vmem:[%s8788_s1 + $0x430] ss:$48 sps:$4 sm:$0xff]  }
  0x57   :  { %1976 = vmatpush1.bf16.msra.mxu0 %v5918_v28  ;;  %v6016_v28 = vld [vmem:[%s8788_s1 + $0xdc] ss:$48 sps:$4 sm:$0xff]  }
  0x58   :  { %1949 = vmatpush2.bf16.msra.mxu1 %v5915_v27  ;;  %1977 = vmatprep.subr.bf16.mxu0 %v5926_v30  ;;  %v6013_v27 = vld [vmem:[%s8788_s1 + $0x3d4] ss:$48 sps:$4 sm:$0xff]   ;;  %v6014_v30 = vld [vmem:[%s8788_s1 + $0xd8] ss:$48 sps:$4 sm:$0xff]  }
  0x59   :  { %1950 = vmatprep.subr.bf16.mxu1 %v5923_v29  ;;  %v6011_v29 = vld [vmem:[%s8788_s1 + $0x3d0] ss:$48 sps:$4 sm:$0xff]  }
  0x5b   :  { %1978 = vmatpush1.bf16.msra.mxu0 %v5924_v32  ;;  %v6022_v32 = vld [vmem:[%s8788_s1 + $0x7c] ss:$48 sps:$4 sm:$0xff]  }
  0x5c   :  { %1951 = vmatpush2.bf16.msra.mxu1 %v5921_v31  ;;  %1979 = vmatprep.subr.bf16.mxu0 %v5932_v34  ;;  %v6019_v31 = vld [vmem:[%s8788_s1 + $0x374] ss:$48 sps:$4 sm:$0xff]   ;;  %v6020_v34 = vld [vmem:[%s8788_s1 + $0x78] ss:$48 sps:$4 sm:$0xff]  }
  0x5d   :  { %1952 = vmatprep.subr.bf16.mxu1 %v5929_v33  ;;  %v6017_v33 = vld [vmem:[%s8788_s1 + $0x370] ss:$48 sps:$4 sm:$0xff]  }
  0x5f   :  { %1980 = vmatpush1.bf16.msra.mxu0 %v5930_v37  ;;  %v6028_v37 = vld [vmem:[%s8788_s1 + $0x1c] ss:$48 sps:$4 sm:$0xff]  }
  0x60   :  { %1953 = vmatpush2.bf16.msra.mxu1 %v5927_v36  ;;  %2008 = vmatprep.subr.bf16.mxu0 %v5935_v38  ;;  %v6025_v36 = vld [vmem:[%s8788_s1 + $0x314] ss:$48 sps:$4 sm:$0xff]   ;;  %v6023_v38 = vld [vmem:[%s8788_s1 + $0x310] ss:$48 sps:$4 sm:$0xff]  }
  0x61   :  { %2051 = vmatprep.subr.bf16.mxu1 %v5938_v39  ;;  %v6026_v39 = vld [vmem:[%s8788_s1 + $0x18] ss:$48 sps:$4 sm:$0xff]  }
  0x62   :  { %1998 = vmatmul.mubr.bf16.vlgmr.msra.gmra.mxu0 %v6799_v35 }
  0x63   :  { %1955 = vmatmul.mubr.bf16.vlgmr.msra.gmra.mxu1 %v6908_v6  ;;  %2009 = vmatpush1.bf16.msra.mxu0 %v5933_v40  ;;  %v6031_v40 = vld [vmem:[%s8788_s1 + $0x5bc] ss:$48 sps:$4 sm:$0xff]  }
  0x64   :  { %2052 = vmatpush1.bf16.msra.mxu1 %v5936_v41  ;;  %2010 = vmatprep.subr.bf16.mxu0 %v5941_v42  ;;  %v6034_v41 = vld [vmem:[%s8788_s1 + $0x8bc] ss:$48 sps:$4 sm:$0xff]   ;;  %v6029_v42 = vld [vmem:[%s8788_s1 + $0x5b8] ss:$48 sps:$4 sm:$0xff]  }
  0x65   :  { %2053 = vmatprep.subr.bf16.mxu1 %v5944_v43  ;;  %2083 = vmatprep.mubr.bf16.mxu1 %v6657_v1  ;;  %v6032_v43 = vld [vmem:[%s8788_s1 + $0x8b8] ss:$48 sps:$4 sm:$0xff]  }
  0x66   :  { %2040 = vmatprep.mubr.bf16.mxu0 %v6850_v51 }
  0x67   :  { %2011 = vmatpush1.bf16.msra.mxu0 %v5939_v44  ;;  %v6037_v44 = vld [vmem:[%s8788_s1 + $0x55c] ss:$48 sps:$4 sm:$0xff]  }
  0x68   :  { %2054 = vmatpush1.bf16.msra.mxu1 %v5942_v45  ;;  %2012 = vmatprep.subr.bf16.mxu0 %v5947_v46  ;;  %v6040_v45 = vld [vmem:[%s8788_s1 + $0x85c] ss:$48 sps:$4 sm:$0xff]   ;;  %v6035_v46 = vld [vmem:[%s8788_s1 + $0x558] ss:$48 sps:$4 sm:$0xff]  }
  0x69   :  { %2055 = vmatprep.subr.bf16.mxu1 %v5950_v47  ;;  %v6038_v47 = vld [vmem:[%s8788_s1 + $0x858] ss:$48 sps:$4 sm:$0xff]  }
  0x6b   :  { %2013 = vmatpush1.bf16.msra.mxu0 %v5945_v48  ;;  %v6043_v48 = vld [vmem:[%s8788_s1 + $0x4fc] ss:$48 sps:$4 sm:$0xff]  }
  0x6c   :  { %2056 = vmatpush1.bf16.msra.mxu1 %v5948_v49  ;;  %2014 = vmatprep.subr.bf16.mxu0 %v5953_v50  ;;  %v6046_v49 = vld [vmem:[%s8788_s1 + $0x7fc] ss:$48 sps:$4 sm:$0xff]   ;;  %v6041_v50 = vld [vmem:[%s8788_s1 + $0x4f8] ss:$48 sps:$4 sm:$0xff]  }
  0x6d   :  { %2057 = vmatprep.subr.bf16.mxu1 %v5956_v52  ;;  %v6044_v52 = vld [vmem:[%s8788_s1 + $0x7f8] ss:$48 sps:$4 sm:$0xff]  }
  0x6f   :  { %2015 = vmatpush1.bf16.msra.mxu0 %v5951_v53  ;;  %v6049_v53 = vld [vmem:[%s8788_s1 + $0x49c] ss:$48 sps:$4 sm:$0xff]  }
  0x70   :  { %2058 = vmatpush1.bf16.msra.mxu1 %v5954_v54  ;;  %2016 = vmatprep.subr.bf16.mxu0 %v5959_v55  ;;  %v6052_v54 = vld [vmem:[%s8788_s1 + $0x79c] ss:$48 sps:$4 sm:$0xff]   ;;  %v6047_v55 = vld [vmem:[%s8788_s1 + $0x498] ss:$48 sps:$4 sm:$0xff]  }
  0x71   :  { %2059 = vmatprep.subr.bf16.mxu1 %v5962_v56  ;;  %v6050_v56 = vld [vmem:[%s8788_s1 + $0x798] ss:$48 sps:$4 sm:$0xff]  }
  0x73   :  { %2017 = vmatpush1.bf16.msra.mxu0 %v5957_v57  ;;  %v6055_v57 = vld [vmem:[%s8788_s1 + $0x43c] ss:$48 sps:$4 sm:$0xff]  }
  0x74   :  { %2060 = vmatpush1.bf16.msra.mxu1 %v5960_v58  ;;  %2018 = vmatprep.subr.bf16.mxu0 %v5965_v59  ;;  %v6058_v58 = vld [vmem:[%s8788_s1 + $0x73c] ss:$48 sps:$4 sm:$0xff]   ;;  %v6053_v59 = vld [vmem:[%s8788_s1 + $0x438] ss:$48 sps:$4 sm:$0xff]  }
  0x75   :  { %2061 = vmatprep.subr.bf16.mxu1 %v5968_v60  ;;  %v6056_v60 = vld [vmem:[%s8788_s1 + $0x738] ss:$48 sps:$4 sm:$0xff]  }
  0x77   :  { %2019 = vmatpush1.bf16.msra.mxu0 %v5963_v61  ;;  %v6061_v61 = vld [vmem:[%s8788_s1 + $0x3dc] ss:$48 sps:$4 sm:$0xff]  }
  0x78   :  { %2062 = vmatpush1.bf16.msra.mxu1 %v5966_v62  ;;  %2020 = vmatprep.subr.bf16.mxu0 %v5971_v63  ;;  %v6064_v62 = vld [vmem:[%s8788_s1 + $0x6dc] ss:$48 sps:$4 sm:$0xff]   ;;  %v6059_v63 = vld [vmem:[%s8788_s1 + $0x3d8] ss:$48 sps:$4 sm:$0xff]  }
  0x79   :  { %2063 = vmatprep.subr.bf16.mxu1 %v5974_v0  ;;  %v6062_v0 = vld [vmem:[%s8788_s1 + $0x6d8] ss:$48 sps:$4 sm:$0xff]  }
  0x7b   :  { %2021 = vmatpush1.bf16.msra.mxu0 %v5969_v2  ;;  %v6067_v2 = vld [vmem:[%s8788_s1 + $0x37c] ss:$48 sps:$4 sm:$0xff]  }
  0x7c   :  { %2064 = vmatpush1.bf16.msra.mxu1 %v5972_v3  ;;  %2022 = vmatprep.subr.bf16.mxu0 %v5977_v4  ;;  %v6070_v3 = vld [vmem:[%s8788_s1 + $0x67c] ss:$48 sps:$4 sm:$0xff]   ;;  %v6065_v4 = vld [vmem:[%s8788_s1 + $0x378] ss:$48 sps:$4 sm:$0xff]  }
  0x7d   :  { %2065 = vmatprep.subr.bf16.mxu1 %v5980_v5  ;;  %v6068_v5 = vld [vmem:[%s8788_s1 + $0x678] ss:$48 sps:$4 sm:$0xff]  }
  0x7f   :  { %2023 = vmatpush1.bf16.msra.mxu0 %v5975_v7  ;;  %v6073_v7 = vld [vmem:[%s8788_s1 + $0x31c] ss:$48 sps:$4 sm:$0xff]  }
  0x80   :  { %2066 = vmatpush1.bf16.msra.mxu1 %v5978_v8  ;;  %2024 = vmatprep.subr.bf16.mxu0 %v5983_v9  ;;  %v6076_v8 = vld [vmem:[%s8788_s1 + $0x61c] ss:$48 sps:$4 sm:$0xff]   ;;  %v6071_v9 = vld [vmem:[%s8788_s1 + $0x318] ss:$48 sps:$4 sm:$0xff]  }
  0x81   :  { %2094 = vmatprep.subr.bf16.mxu1 %v5986_v10  ;;  %v6074_v10 = vld [vmem:[%s8788_s1 + $0x618] ss:$48 sps:$4 sm:$0xff]  }
  0x83   :  { %2084 = vmatmul.mubr.bf16.vlgmr.msra.gmra.mxu1 %v6799_v35  ;;  %2025 = vmatpush2.bf16.msra.mxu0 %v5981_v11  ;;  %v5998_v35 = vld [vmem:[%s8788_s1 + $0x1fc] ss:$48 sps:$4 sm:$0xff]   ;;  %v6079_v11 = vld [vmem:[%s8788_s1 + $0x2c4] ss:$48 sps:$4 sm:$0xff]  }
  0x84   :  { %2095 = vmatpush1.bf16.msra.mxu1 %v5984_v12  ;;  %2026 = vmatprep.subr.bf16.mxu0 %v5989_v13  ;;  %v6082_v12 = vld [vmem:[%s8788_s1 + $0x8c4] ss:$48 sps:$4 sm:$0xff]   ;;  %v6077_v13 = vld [vmem:[%s8788_s1 + $0x2c0] ss:$48 sps:$4 sm:$0xff]  }
  0x85   :  { %2096 = vmatprep.subr.bf16.mxu1 %v5992_v14  ;;  %2126 = vmatprep.mubr.bf16.mxu1 %v6850_v51  ;;  %v6004_v51 = vld [vmem:[%s8788_s1 + $0x19c] ss:$48 sps:$4 sm:$0xff]   ;;  %v6080_v14 = vld [vmem:[%s8788_s1 + $0x8c0] ss:$48 sps:$4 sm:$0xff]  }
  0x87   :  { %2027 = vmatpush2.bf16.msra.mxu0 %v5987_v15  ;;  %v6085_v15 = vld [vmem:[%s8788_s1 + $0x264] ss:$48 sps:$4 sm:$0xff]  }
  0x88   :  { %2097 = vmatpush1.bf16.msra.mxu1 %v5990_v16  ;;  %2028 = vmatprep.subr.bf16.mxu0 %v5995_v17  ;;  %v6088_v16 = vld [vmem:[%s8788_s1 + $0x864] ss:$48 sps:$4 sm:$0xff]  }
  0x89   :  { %2098 = vmatprep.subr.bf16.mxu1 %v5998_v35  ;;  %v7320_v17 = vld [vmem:[%s8789_s0 + $0x8] ss:$12 sps:$4 sm:$0xff]   ;;  %v6083_v35 = vld [vmem:[%s8788_s1 + $0x260] ss:$48 sps:$4 sm:$0xff]  }
  0x8b   :  { %2029 = vmatpush2.bf16.msra.mxu0 %v5993_v18  ;;  %v6086_v18 = vld [vmem:[%s8788_s1 + $0x860] ss:$48 sps:$4 sm:$0xff]  }
  0x8c   :  { %2099 = vmatpush1.bf16.msra.mxu1 %v5996_v19  ;;  %2030 = vmatprep.subr.bf16.mxu0 %v6001_v20  ;;  %v6094_v19 = vld [vmem:[%s8788_s1 + $0x804] ss:$48 sps:$4 sm:$0xff]  }
  0x8d   :  { %2100 = vmatprep.subr.bf16.mxu1 %v6004_v51  ;;  %v7339_v20 = vld [vmem:[%s8789_s0 + $0x4] ss:$12 sps:$4 sm:$0xff]  }
  0x8e   :  { %v6089_v51 = vld [vmem:[%s8788_s1 + $0x200] ss:$48 sps:$4 sm:$0xff]  }
  0x8f   :  { %2031 = vmatpush2.bf16.msra.mxu0 %v5999_v21  ;;  %v6092_v21 = vld [vmem:[%s8788_s1 + $0x800] ss:$48 sps:$4 sm:$0xff]  }
  0x90   :  { %2101 = vmatpush1.bf16.msra.mxu1 %v6002_v22  ;;  %2032 = vmatprep.subr.bf16.mxu0 %v6007_v23  ;;  %v6097_v22 = vld [vmem:[%s8788_s1 + $0x1a4] ss:$48 sps:$4 sm:$0xff]  }
  0x91   :  { %2102 = vmatprep.subr.bf16.mxu1 %v6010_v24  ;;  %v6100_v23 = vld [vmem:[%s8788_s1 + $0x7a4] ss:$48 sps:$4 sm:$0xff]   ;;  %v6095_v24 = vld [vmem:[%s8788_s1 + $0x1a0] ss:$48 sps:$4 sm:$0xff]  }
  0x93   :  { %2033 = vmatpush2.bf16.msra.mxu0 %v6005_v25  ;;  %v6098_v25 = vld [vmem:[%s8788_s1 + $0x7a0] ss:$48 sps:$4 sm:$0xff]  }
  0x94   :  { %2103 = vmatpush1.bf16.msra.mxu1 %v6008_v26  ;;  %2034 = vmatprep.subr.bf16.mxu0 %v6013_v27  ;;  %v6103_v26 = vld [vmem:[%s8788_s1 + $0x144] ss:$48 sps:$4 sm:$0xff]  }
  0x95   :  { %2104 = vmatprep.subr.bf16.mxu1 %v6016_v28  ;;  %v6106_v27 = vld [vmem:[%s8788_s1 + $0x744] ss:$48 sps:$4 sm:$0xff]   ;;  %v6101_v28 = vld [vmem:[%s8788_s1 + $0x140] ss:$48 sps:$4 sm:$0xff]  }
  0x97   :  { %2035 = vmatpush2.bf16.msra.mxu0 %v6011_v29  ;;  %v6104_v29 = vld [vmem:[%s8788_s1 + $0x740] ss:$48 sps:$4 sm:$0xff]  }
  0x98   :  { %2105 = vmatpush1.bf16.msra.mxu1 %v6014_v30  ;;  %2036 = vmatprep.subr.bf16.mxu0 %v6019_v31  ;;  %v6109_v30 = vld [vmem:[%s8788_s1 + $0xe4] ss:$48 sps:$4 sm:$0xff]  }
  0x99   :  { %2106 = vmatprep.subr.bf16.mxu1 %v6022_v32  ;;  %v6112_v31 = vld [vmem:[%s8788_s1 + $0x6e4] ss:$48 sps:$4 sm:$0xff]   ;;  %v6107_v32 = vld [vmem:[%s8788_s1 + $0xe0] ss:$48 sps:$4 sm:$0xff]  }
  0x9b   :  { %2037 = vmatpush2.bf16.msra.mxu0 %v6017_v33  ;;  %v6110_v33 = vld [vmem:[%s8788_s1 + $0x6e0] ss:$48 sps:$4 sm:$0xff]  }
  0x9c   :  { %2107 = vmatpush1.bf16.msra.mxu1 %v6020_v34  ;;  %2038 = vmatprep.subr.bf16.mxu0 %v6025_v36  ;;  %v6115_v34 = vld [vmem:[%s8788_s1 + $0x84] ss:$48 sps:$4 sm:$0xff]  }
  0x9d   :  { %2108 = vmatprep.subr.bf16.mxu1 %v6028_v37  ;;  %v6118_v36 = vld [vmem:[%s8788_s1 + $0x684] ss:$48 sps:$4 sm:$0xff]   ;;  %v6113_v37 = vld [vmem:[%s8788_s1 + $0x80] ss:$48 sps:$4 sm:$0xff]  }
  0x9f   :  { %2039 = vmatpush2.bf16.msra.mxu0 %v6023_v38  ;;  %v6116_v38 = vld [vmem:[%s8788_s1 + $0x680] ss:$48 sps:$4 sm:$0xff]  }
  0xa0   :  { %2109 = vmatpush1.bf16.msra.mxu1 %v6026_v39  ;;  %2137 = vmatprep.subr.bf16.mxu0 %v6034_v41  ;;  %v6121_v39 = vld [vmem:[%s8788_s1 + $0x24] ss:$48 sps:$4 sm:$0xff]   ;;  %v6119_v41 = vld [vmem:[%s8788_s1 + $0x20] ss:$48 sps:$4 sm:$0xff]  }
  0xa1   :  { %2110 = vmatprep.subr.bf16.mxu1 %v6031_v40  ;;  %v6124_v40 = vld [vmem:[%s8788_s1 + $0x624] ss:$48 sps:$4 sm:$0xff]  }
  0xa2   :  { %2041 = vmatmul.mubr.bf16.vlgmr.msra.gmra.mxu0 %v6908_v6 }
  0xa3   :  { %2138 = vmatpush1.bf16.msra.mxu0 %v6032_v43  ;;  %2169 = vmatprep.mubr.bf16.mxu0 %v6657_v1  ;;  %v6127_v43 = vld [vmem:[%s8788_s1 + $0x5c4] ss:$48 sps:$4 sm:$0xff]  }
  0xa4   :  { %2111 = vmatpush2.bf16.msra.mxu1 %v6029_v42  ;;  %2139 = vmatprep.subr.bf16.mxu0 %v6040_v45  ;;  %v6122_v42 = vld [vmem:[%s8788_s1 + $0x620] ss:$48 sps:$4 sm:$0xff]  }
  0xa5   :  { %2112 = vmatprep.subr.bf16.mxu1 %v6037_v44  ;;  %v6130_v44 = vld [vmem:[%s8788_s1 + $0x2cc] ss:$48 sps:$4 sm:$0xff]   ;;  %v6125_v45 = vld [vmem:[%s8788_s1 + $0x5c0] ss:$48 sps:$4 sm:$0xff]  }
  0xa7   :  { %2140 = vmatpush1.bf16.msra.mxu0 %v6038_v47  ;;  %v6133_v47 = vld [vmem:[%s8788_s1 + $0x564] ss:$48 sps:$4 sm:$0xff]  }
  0xa8   :  { %2113 = vmatpush2.bf16.msra.mxu1 %v6035_v46  ;;  %2141 = vmatprep.subr.bf16.mxu0 %v6046_v49  ;;  %v6128_v46 = vld [vmem:[%s8788_s1 + $0x2c8] ss:$48 sps:$4 sm:$0xff]   ;;  %v6131_v49 = vld [vmem:[%s8788_s1 + $0x560] ss:$48 sps:$4 sm:$0xff]  }
  0xa9   :  { %2114 = vmatprep.subr.bf16.mxu1 %v6043_v48  ;;  %v6136_v48 = vld [vmem:[%s8788_s1 + $0x26c] ss:$48 sps:$4 sm:$0xff]  }
  0xab   :  { %2142 = vmatpush1.bf16.msra.mxu0 %v6044_v52  ;;  %v6139_v52 = vld [vmem:[%s8788_s1 + $0x504] ss:$48 sps:$4 sm:$0xff]  }
  0xac   :  { %2115 = vmatpush2.bf16.msra.mxu1 %v6041_v50  ;;  %2143 = vmatprep.subr.bf16.mxu0 %v6052_v54  ;;  %v6134_v50 = vld [vmem:[%s8788_s1 + $0x268] ss:$48 sps:$4 sm:$0xff]   ;;  %v6137_v54 = vld [vmem:[%s8788_s1 + $0x500] ss:$48 sps:$4 sm:$0xff]  }
  0xad   :  { %2116 = vmatprep.subr.bf16.mxu1 %v6049_v53  ;;  %v6142_v53 = vld [vmem:[%s8788_s1 + $0x20c] ss:$48 sps:$4 sm:$0xff]  }
  0xaf   :  { %2144 = vmatpush1.bf16.msra.mxu0 %v6050_v56  ;;  %v6145_v56 = vld [vmem:[%s8788_s1 + $0x4a4] ss:$48 sps:$4 sm:$0xff]  }
  0xb0   :  { %2117 = vmatpush2.bf16.msra.mxu1 %v6047_v55  ;;  %2145 = vmatprep.subr.bf16.mxu0 %v6058_v58  ;;  %v6140_v55 = vld [vmem:[%s8788_s1 + $0x208] ss:$48 sps:$4 sm:$0xff]   ;;  %v6143_v58 = vld [vmem:[%s8788_s1 + $0x4a0] ss:$48 sps:$4 sm:$0xff]  }
  0xb1   :  { %2118 = vmatprep.subr.bf16.mxu1 %v6055_v57  ;;  %v6148_v57 = vld [vmem:[%s8788_s1 + $0x1ac] ss:$48 sps:$4 sm:$0xff]  }
  0xb3   :  { %2146 = vmatpush1.bf16.msra.mxu0 %v6056_v60  ;;  %v6151_v60 = vld [vmem:[%s8788_s1 + $0x444] ss:$48 sps:$4 sm:$0xff]  }
  0xb4   :  { %2119 = vmatpush2.bf16.msra.mxu1 %v6053_v59  ;;  %2147 = vmatprep.subr.bf16.mxu0 %v6064_v62  ;;  %v6146_v59 = vld [vmem:[%s8788_s1 + $0x1a8] ss:$48 sps:$4 sm:$0xff]   ;;  %v6149_v62 = vld [vmem:[%s8788_s1 + $0x440] ss:$48 sps:$4 sm:$0xff]  }
  0xb5   :  { %2120 = vmatprep.subr.bf16.mxu1 %v6061_v61  ;;  %v6154_v61 = vld [vmem:[%s8788_s1 + $0x14c] ss:$48 sps:$4 sm:$0xff]  }
  0xb7   :  { %2148 = vmatpush1.bf16.msra.mxu0 %v6062_v0  ;;  %v6157_v0 = vld [vmem:[%s8788_s1 + $0x3e4] ss:$48 sps:$4 sm:$0xff]  }
  0xb8   :  { %2121 = vmatpush2.bf16.msra.mxu1 %v6059_v63  ;;  %2149 = vmatprep.subr.bf16.mxu0 %v6070_v3  ;;  %v6152_v63 = vld [vmem:[%s8788_s1 + $0x148] ss:$48 sps:$4 sm:$0xff]   ;;  %v6155_v3 = vld [vmem:[%s8788_s1 + $0x3e0] ss:$48 sps:$4 sm:$0xff]  }
  0xb9   :  { %2122 = vmatprep.subr.bf16.mxu1 %v6067_v2  ;;  %v6160_v2 = vld [vmem:[%s8788_s1 + $0xec] ss:$48 sps:$4 sm:$0xff]  }
  0xbb   :  { %2150 = vmatpush1.bf16.msra.mxu0 %v6068_v5  ;;  %v6163_v5 = vld [vmem:[%s8788_s1 + $0x384] ss:$48 sps:$4 sm:$0xff]  }
  0xbc   :  { %2123 = vmatpush2.bf16.msra.mxu1 %v6065_v4  ;;  %2151 = vmatprep.subr.bf16.mxu0 %v6076_v8  ;;  %v6158_v4 = vld [vmem:[%s8788_s1 + $0xe8] ss:$48 sps:$4 sm:$0xff]   ;;  %v6161_v8 = vld [vmem:[%s8788_s1 + $0x380] ss:$48 sps:$4 sm:$0xff]  }
  0xbd   :  { %2124 = vmatprep.subr.bf16.mxu1 %v6073_v7  ;;  %v6166_v7 = vld [vmem:[%s8788_s1 + $0x8c] ss:$48 sps:$4 sm:$0xff]  }
  0xbf   :  { %2152 = vmatpush1.bf16.msra.mxu0 %v6074_v10  ;;  %v6169_v10 = vld [vmem:[%s8788_s1 + $0x324] ss:$48 sps:$4 sm:$0xff]  }
  0xc0   :  { %2125 = vmatpush2.bf16.msra.mxu1 %v6071_v9  ;;  %2180 = vmatprep.subr.bf16.mxu0 %v6079_v11  ;;  %v6164_v9 = vld [vmem:[%s8788_s1 + $0x88] ss:$48 sps:$4 sm:$0xff]   ;;  %v320_v11 = vlaneseq }
  0xc1   :  { %2223 = vmatprep.subr.bf16.mxu1 %v6082_v12  ;;  %v6172_v12 = vld [vmem:[%s8788_s1 + $0x2c] ss:$48 sps:$4 sm:$0xff]  }
  0xc2   :  { %2170 = vmatmul.mubr.bf16.vlgmr.msra.gmra.mxu0 %v7320_v17 }
  0xc3   :  { %2127 = vmatmul.mubr.bf16.vlgmr.msra.gmra.mxu1 %v6908_v6  ;;  %2181 = vmatpush1.bf16.msra.mxu0 %v6077_v13  ;;  %v6091_v6 = vld [vmem:[%s8788_s1 + $0x204] ss:$48 sps:$4 sm:$0xff]   ;;  %v6167_v13 = vld [vmem:[%s8788_s1 + $0x320] ss:$48 sps:$4 sm:$0xff]  }
  0xc4   :  { %2224 = vmatpush1.bf16.msra.mxu1 %v6080_v14  ;;  %2182 = vmatprep.subr.bf16.mxu0 %v6085_v15  ;;  %v6170_v14 = vld [vmem:[%s8788_s1 + $0x28] ss:$48 sps:$4 sm:$0xff]   ;;  %v7506_v15 = vshrl.u32 %v320_v11, 7 }
  0xc5   :  { %2225 = vmatprep.subr.bf16.mxu1 %v6088_v16  ;;  %2255 = vmatprep.mubr.bf16.mxu1 %v6657_v1  ;;  %v6175_v16 = vld [vmem:[%s8788_s1 + $0x5cc] ss:$48 sps:$4 sm:$0xff]   ;;  %v6218_v11 = vld [vmem:[%s8788_s1 + $0x628] ss:$48 sps:$4 sm:$0xff]  }
  0xc6   :  { %2212 = vmatprep.mubr.bf16.mxu0 %v7339_v20 }
  0xc7   :  { %2183 = vmatpush1.bf16.msra.mxu0 %v6083_v35  ;;  %v6178_v35 = vld [vmem:[%s8788_s1 + $0x8cc] ss:$48 sps:$4 sm:$0xff]  }
  0xc8   :  { %2226 = vmatpush1.bf16.msra.mxu1 %v6086_v18  ;;  %2184 = vmatprep.subr.bf16.mxu0 %v6091_v6  ;;  %v6173_v18 = vld [vmem:[%s8788_s1 + $0x5c8] ss:$48 sps:$4 sm:$0xff]  }
  0xc9   :  { %2227 = vmatprep.subr.bf16.mxu1 %v6094_v19  ;;  %v6176_v6 = vld [vmem:[%s8788_s1 + $0x8c8] ss:$48 sps:$4 sm:$0xff]   ;;  %v7521_v19 = vsub.s32 1, %v7506_v15 }
  0xcb   :  { %2185 = vmatpush1.bf16.msra.mxu0 %v6089_v51  ;;  %v7528_v51 = vld [vmem:[%s8791_s2] sm:$0xff] }
  0xcc   :  { %2228 = vmatpush1.bf16.msra.mxu1 %v6092_v21  ;;  %2186 = vmatprep.subr.bf16.mxu0 %v6097_v22  ;;  %v6181_v21 = vld [vmem:[%s8788_s1 + $0x56c] ss:$48 sps:$4 sm:$0xff]  }
  0xcd   :  { %2229 = vmatprep.subr.bf16.mxu1 %v6100_v23  ;;  %v6184_v22 = vld [vmem:[%s8788_s1 + $0x86c] ss:$48 sps:$4 sm:$0xff]   ;;  %v327_v23 = vrot.slane %v7528_v51, %v7521_v19 }
  0xcf   :  { %2187 = vmatpush1.bf16.msra.mxu0 %v6095_v24  ;;  %v6179_v24 = vld [vmem:[%s8788_s1 + $0x568] ss:$48 sps:$4 sm:$0xff]  }
  0xd0   :  { %2230 = vmatpush1.bf16.msra.mxu1 %v6098_v25  ;;  %2188 = vmatprep.subr.bf16.mxu0 %v6103_v26  ;;  %v6182_v25 = vld [vmem:[%s8788_s1 + $0x868] ss:$48 sps:$4 sm:$0xff]  }
  0xd1   :  { %2231 = vmatprep.subr.bf16.mxu1 %v6106_v27 }
  0xd3   :  { %2189 = vmatpush1.bf16.msra.mxu0 %v6101_v28  ;;  %v7549_v28 = vld [vmem:[%s8789_s0] ss:$12 sps:$4 sm:$0xff]  }
  0xd4   :  { %2232 = vmatpush1.bf16.msra.mxu1 %v6104_v29  ;;  %2190 = vmatprep.subr.bf16.mxu0 %v6109_v30  ;;  %v6187_v29 = vld [vmem:[%s8788_s1 + $0x50c] ss:$48 sps:$4 sm:$0xff]  }
  0xd5   :  { %2233 = vmatprep.subr.bf16.mxu1 %v6112_v31  ;;  %v6190_v30 = vld [vmem:[%s8788_s1 + $0x80c] ss:$48 sps:$4 sm:$0xff]  }
  0xd7   :  { %2191 = vmatpush1.bf16.msra.mxu0 %v6107_v32 }
  0xd8   :  { %2234 = vmatpush1.bf16.msra.mxu1 %v6110_v33  ;;  %2192 = vmatprep.subr.bf16.mxu0 %v6115_v34  ;;  %v6185_v33 = vld [vmem:[%s8788_s1 + $0x508] ss:$48 sps:$4 sm:$0xff]  }
  0xd9   :  { %2235 = vmatprep.subr.bf16.mxu1 %v6118_v36  ;;  %v6188_v34 = vld [vmem:[%s8788_s1 + $0x808] ss:$48 sps:$4 sm:$0xff]  }
  0xdb   :  { %2193 = vmatpush1.bf16.msra.mxu0 %v6113_v37 }
  0xdc   :  { %2236 = vmatpush1.bf16.msra.mxu1 %v6116_v38  ;;  %2194 = vmatprep.subr.bf16.mxu0 %v6121_v39  ;;  %v6193_v38 = vld [vmem:[%s8788_s1 + $0x4ac] ss:$48 sps:$4 sm:$0xff]  }
  0xdd   :  { %2237 = vmatprep.subr.bf16.mxu1 %v6124_v40  ;;  %v6196_v39 = vld [vmem:[%s8788_s1 + $0x7ac] ss:$48 sps:$4 sm:$0xff]  }
  0xdf   :  { %2195 = vmatpush1.bf16.msra.mxu0 %v6119_v41 }
  0xe0   :  { %2238 = vmatpush1.bf16.msra.mxu1 %v6122_v42  ;;  %2196 = vmatprep.subr.bf16.mxu0 %v6127_v43  ;;  %v6191_v43 = vld [vmem:[%s8788_s1 + $0x4a8] ss:$48 sps:$4 sm:$0xff]  }
  0xe1   :  { %2266 = vmatprep.subr.bf16.mxu1 %v6130_v44  ;;  %v6194_v44 = vld [vmem:[%s8788_s1 + $0x7a8] ss:$48 sps:$4 sm:$0xff]  }
  0xe3   :  { %2256 = vmatmul.mubr.bf16.vlgmr.msra.gmra.mxu1 %v7320_v17  ;;  %2197 = vmatpush2.bf16.msra.mxu0 %v6125_v45 }
  0xe4   :  { %2267 = vmatpush1.bf16.msra.mxu1 %v6128_v46  ;;  %2198 = vmatprep.subr.bf16.mxu0 %v6133_v47  ;;  %v6199_v46 = vld [vmem:[%s8788_s1 + $0x44c] ss:$48 sps:$4 sm:$0xff]  }
  0xe5   :  { %2268 = vmatprep.subr.bf16.mxu1 %v6136_v48  ;;  %2298 = vmatprep.mubr.bf16.mxu1 %v7339_v20  ;;  %v7523_v20 = vpop.f32.mrf.mxu1  ;;  %v6202_v47 = vld [vmem:[%s8788_s1 + $0x74c] ss:$48 sps:$4 sm:$0xff]  }
  0xe7   :  { %2199 = vmatpush2.bf16.msra.mxu0 %v6131_v49  ;;  %v1915_v26 = vpop.f32.mrf.mxu1 }
  0xe8   :  { %2269 = vmatpush1.bf16.msra.mxu1 %v6134_v50  ;;  %2200 = vmatprep.subr.bf16.mxu0 %v6139_v52 }
  0xe9   :  { %2270 = vmatprep.subr.bf16.mxu1 %v6142_v53  ;;  %v7565_v36 = vpop.f32.mrf.mxu1  ;;  %v6197_v53 = vld [vmem:[%s8788_s1 + $0x448] ss:$48 sps:$4 sm:$0xff]  }
  0xeb   :  { %2201 = vmatpush2.bf16.msra.mxu0 %v6137_v54  ;;  %v1919_v45 = vpop.f32.mrf.mxu1  ;;  %v6200_v54 = vld [vmem:[%s8788_s1 + $0x748] ss:$48 sps:$4 sm:$0xff]  }
  0xec   :  { %2271 = vmatpush1.bf16.msra.mxu1 %v6140_v55  ;;  %2202 = vmatprep.subr.bf16.mxu0 %v6145_v56  ;;  %v6205_v55 = vld [vmem:[%s8788_s1 + $0x3ec] ss:$48 sps:$4 sm:$0xff]  }
  0xed   :  { %2272 = vmatprep.subr.bf16.mxu1 %v6148_v57 }
  0xef   :  { %2203 = vmatpush2.bf16.msra.mxu0 %v6143_v58  ;;  %v6208_v58 = vld [vmem:[%s8788_s1 + $0x6ec] ss:$48 sps:$4 sm:$0xff]  }
  0xf0   :  { %2273 = vmatpush1.bf16.msra.mxu1 %v6146_v59  ;;  %2204 = vmatprep.subr.bf16.mxu0 %v6151_v60 }
  0xf1   :  { %2274 = vmatprep.subr.bf16.mxu1 %v6154_v61  ;;  %v6203_v61 = vld [vmem:[%s8788_s1 + $0x3e8] ss:$48 sps:$4 sm:$0xff]  }
  0xf3   :  { %2205 = vmatpush2.bf16.msra.mxu0 %v6149_v62  ;;  %v6206_v62 = vld [vmem:[%s8788_s1 + $0x6e8] ss:$48 sps:$4 sm:$0xff]  }
  0xf4   :  { %2275 = vmatpush1.bf16.msra.mxu1 %v6152_v63  ;;  %2206 = vmatprep.subr.bf16.mxu0 %v6157_v0  ;;  %v6211_v63 = vld [vmem:[%s8788_s1 + $0x38c] ss:$48 sps:$4 sm:$0xff]  }
  0xf5   :  { %2276 = vmatprep.subr.bf16.mxu1 %v6160_v2  ;;  %v6214_v0 = vld [vmem:[%s8788_s1 + $0x68c] ss:$48 sps:$4 sm:$0xff]  }
  0xf7   :  { %2207 = vmatpush2.bf16.msra.mxu0 %v6155_v3 }
  0xf8   :  { %2277 = vmatpush1.bf16.msra.mxu1 %v6158_v4  ;;  %2208 = vmatprep.subr.bf16.mxu0 %v6163_v5  ;;  %v6209_v4 = vld [vmem:[%s8788_s1 + $0x388] ss:$48 sps:$4 sm:$0xff]  }
  0xf9   :  { %2278 = vmatprep.subr.bf16.mxu1 %v6166_v7  ;;  %v6212_v5 = vld [vmem:[%s8788_s1 + $0x688] ss:$48 sps:$4 sm:$0xff]   ;;  %v6217_v7 = vld [vmem:[%s8788_s1 + $0x32c] ss:$48 sps:$4 sm:$0xff]  }
  0xfb   :  { %2209 = vmatpush2.bf16.msra.mxu0 %v6161_v8  ;;  %v6220_v8 = vld [vmem:[%s8788_s1 + $0x62c] ss:$48 sps:$4 sm:$0xff]  }
  0xfc   :  { %2279 = vmatpush1.bf16.msra.mxu1 %v6164_v9  ;;  %2210 = vmatprep.subr.bf16.mxu0 %v6169_v10  ;;  %v7636_v9 = vsub.s32 0, %v7506_v15  ;;  %v6215_v10 = vld [vmem:[%s8788_s1 + $0x328] ss:$48 sps:$4 sm:$0xff]  }
  0xfd   :  { %2280 = vmatprep.subr.bf16.mxu1 %v6172_v12  ;;  %v6223_v12 = vld [vmem:[%s8790_s3 + $0xac] ss:$12 sps:$4 sm:$0xff]  }
  0xff   :  { %2211 = vmatpush2.bf16.msra.mxu0 %v6167_v13  ;;  %v6226_v13 = vld [vmem:[%s8790_s3 + $0x22c] ss:$12 sps:$4 sm:$0xff]  }
 0x100   :  { %2281 = vmatpush1.bf16.msra.mxu1 %v6170_v14  ;;  %2309 = vmatprep.subr.bf16.mxu0 %v6178_v35  ;;  %v7651_v14 = vsub.s32 2, %v7506_v15  ;;  %v6221_v35 = vld [vmem:[%s8790_s3 + $0xa8] ss:$12 sps:$4 sm:$0xff]  }
 0x101   :  { %2282 = vmatprep.subr.bf16.mxu1 %v6175_v16  ;;  %v323_v16 = vrot.slane %v7528_v51, %v7636_v9 }
 0x102   :  { %v7544_v27 = vpop.f32.mrf.mxu0  ;;  %2213 = vmatmul.mubr.bf16.vlgmr.msra.gmra.mxu0 %v7549_v28 }
 0x103   :  { %2310 = vmatpush1.bf16.msra.mxu0 %v6176_v6  ;;  %2341 = vmatprep.mubr.bf16.mxu0 %v6657_v1  ;;  %v334_v6 = vsub.s32 3, %v7506_v15 }
 0x104   :  { %2283 = vmatpush2.bf16.msra.mxu1 %v6173_v18  ;;  %v1872_v31 = vpop.f32.mrf.mxu0  ;;  %2311 = vmatprep.subr.bf16.mxu0 %v6184_v22  ;;  %v6224_v18 = vld [vmem:[%s8790_s3 + $0x228] ss:$12 sps:$4 sm:$0xff]  }
 0x105   :  { %2284 = vmatprep.subr.bf16.mxu1 %v6181_v21  ;;  %v1873_v32 = vadd.f32 %v1872_v31, %v327_v23  ;;  %v6229_v21 = vld [vmem:[%s8790_s3 + $0x94] ss:$12 sps:$4 sm:$0xff]  }
 0x106   :  { %v7567_v37 = vpop.f32.mrf.mxu0  ;;  %v6232_v22 = vld [vmem:[%s8790_s3 + $0x214] ss:$12 sps:$4 sm:$0xff]  }
 0x107   :  { %v7575_v40 = vadd.f32 %v1915_v26, %v1873_v32  ;;  %2312 = vmatpush1.bf16.msra.mxu0 %v6182_v25  ;;  %v1871_v25 = vadd.f32 %v7544_v27, %v323_v16  ;;  %v335_v26 = vrot.slane %v7528_v51, %v334_v6  ;;  %v1875_v31 = vadd.f32 %v7567_v37, %v323_v16  ;;  %v6238_v27 = vld [vmem:[%s8790_s3 + $0x1fc] ss:$12 sps:$4 sm:$0xff]  }
 0x108   :  { %2285 = vmatpush2.bf16.msra.mxu1 %v6179_v24  ;;  %v1876_v41 = vpop.f32.mrf.mxu0  ;;  %2313 = vmatprep.subr.bf16.mxu0 %v6190_v30  ;;  %v331_v24 = vrot.slane %v7528_v51, %v7651_v14  ;;  %v6230_v30 = vld [vmem:[%s8790_s3 + $0x210] ss:$12 sps:$4 sm:$0xff]  }
 0x109   :  { %2286 = vmatprep.subr.bf16.mxu1 %v6187_v29  ;;  %v2353_v1 = vmul.f32 %v7575_v40, %v7575_v40  ;;  %v1877_v42 = vadd.f32 %v1876_v41, %v327_v23  ;;  %v6227_v29 = vld [vmem:[%s8790_s3 + $0x90] ss:$12 sps:$4 sm:$0xff]  }
 0x10a   :  { %v6235_v51 = vld [vmem:[%s8790_s3 + $0x7c] ss:$12 sps:$4 sm:$0xff]  }
 0x10b   :  { %v2377_v48 = vmul.f32 %v2353_v1, %v7575_v40  ;;  %v7592_v49 = vadd.f32 %v1919_v45, %v1877_v42  ;;  %2314 = vmatpush1.bf16.msra.mxu0 %v6188_v34  ;;  %v6233_v1 = vld [vmem:[%s8790_s3 + $0x78] ss:$12 sps:$4 sm:$0xff]  }
 0x10c   :  { %2287 = vmatpush2.bf16.msra.mxu1 %v6185_v33  ;;  %2315 = vmatprep.subr.bf16.mxu0 %v6196_v39 }
 0x10d   :  { %2288 = vmatprep.subr.bf16.mxu1 %v6193_v38  ;;  %v2401_v50 = vmul.f32 0.044715, %v2377_v48  ;;  %v2365_v52 = vmul.f32 %v7592_v49, %v7592_v49 }
 0x10f   :  { %v2425_v56 = vadd.f32 %v2401_v50, %v7575_v40  ;;  %v2389_v57 = vmul.f32 %v2365_v52, %v7592_v49  ;;  %2316 = vmatpush1.bf16.msra.mxu0 %v6194_v44 }
 0x110   :  { %2289 = vmatpush2.bf16.msra.mxu1 %v6191_v43  ;;  %2317 = vmatprep.subr.bf16.mxu0 %v6202_v47  ;;  %v7696_v43 = vadd.f32 %v7565_v36, %v1875_v31  ;;  %v6241_v36 = vld [vmem:[%s8790_s3 + $0x64] ss:$12 sps:$4 sm:$0xff]  }
 0x111   :  { %2290 = vmatprep.subr.bf16.mxu1 %v6199_v46  ;;  %v2449_v59 = vmul.f32 0.7978846, %v2425_v56  ;;  %v2413_v60 = vmul.f32 0.044715, %v2389_v57  ;;  %v6236_v46 = vld [vmem:[%s8790_s3 + $0x1f8] ss:$12 sps:$4 sm:$0xff]  }
 0x113   :  { %6605 = vtanh.f32 %v2449_v59  ;;  %v2437_v2 = vadd.f32 %v2413_v60, %v7592_v49  ;;  %2318 = vmatpush1.bf16.msra.mxu0 %v6200_v54  ;;  %v6244_v54 = vld [vmem:[%s8790_s3 + $0x1e4] ss:$12 sps:$4 sm:$0xff]   ;;  %v6242_v59 = vld [vmem:[%s8790_s3 + $0x1e0] ss:$12 sps:$4 sm:$0xff]   ;;  %v2364_v60 = vmul.f32 %v7696_v43, %v7696_v43 }
 0x114   :  { %2291 = vmatpush2.bf16.msra.mxu1 %v6197_v53  ;;  %2319 = vmatprep.subr.bf16.mxu0 %v6208_v58  ;;  %v6239_v58 = vld [vmem:[%s8790_s3 + $0x60] ss:$12 sps:$4 sm:$0xff]  }
 0x115   :  { %2292 = vmatprep.subr.bf16.mxu1 %v6205_v55  ;;  %v2461_v3 = vmul.f32 0.7978846, %v2437_v2 }
 0x117   :  { %6607 = vtanh.f32 %v2461_v3  ;;  %2320 = vmatpush1.bf16.msra.mxu0 %v6206_v62 }
 0x118   :  { %2293 = vmatpush2.bf16.msra.mxu1 %v6203_v61  ;;  %2321 = vmatprep.subr.bf16.mxu0 %v6214_v0  ;;  %v6247_v0 = vld [vmem:[%s8790_s3 + $0x4c] ss:$12 sps:$4 sm:$0xff]  }
 0x119   :  { %2294 = vmatprep.subr.bf16.mxu1 %v6211_v63 }
 0x11b   :  { %2322 = vmatpush1.bf16.msra.mxu0 %v6212_v5 }
 0x11c   :  { %2295 = vmatpush2.bf16.msra.mxu1 %v6209_v4  ;;  %2323 = vmatprep.subr.bf16.mxu0 %v6220_v8 }
 0x11d   :  { %2296 = vmatprep.subr.bf16.mxu1 %v6217_v7 }
 0x11f   :  { %2324 = vmatpush1.bf16.msra.mxu0 %v6218_v11  ;;  %v2388_v11 = vmul.f32 %v2364_v60, %v7696_v43 }
 0x120   :  { %2297 = vmatpush2.bf16.msra.mxu1 %v6215_v10  ;;  %v6606_v23 = vpop.eup %6605  ;;  %4517 = vmatprep.subr.bf16.mxu0 %v6223_v12 }
 0x121   :  { %4560 = vmatprep.subr.bf16.mxu1 %v6226_v13  ;;  %v2497_v34 = vadd.f32 1.0, %v6606_v23  ;;  %v6256_v23 = vld [vmem:[%s8790_s3 + $0x1b4] ss:$12 sps:$4 sm:$0xff]   ;;  %v2412_v31 = vmul.f32 0.044715, %v2388_v11 }
 0x122   :  { %v1999_v33 = vpop.f32.mrf.mxu0  ;;  %2342 = vmatmul.mubr.bf16.vlgmr.msra.gmra.mxu0 %v7320_v17 }
 0x123   :  { %v1956_v32 = vpop.f32.mrf.mxu1  ;;  %2299 = vmatmul.mubr.bf16.vlgmr.msra.gmra.mxu1 %v7549_v28  ;;  %4518 = vmatpush1.bf16.msra.mxu0 %v6221_v35  ;;  %v7690_v28 = vadd.f32 %v7523_v20, %v1871_v25  ;;  %v2521_v47 = vmul.f32 0.5, %v2497_v34  ;;  %v6245_v35 = vld [vmem:[%s8790_s3 + $0x48] ss:$12 sps:$4 sm:$0xff]  }
 0x124   :  { %4561 = vmatpush1.bf16.msra.mxu1 %v6224_v18  ;;  %v6608_v38 = vpop.eup %6607  ;;  %v1957_v39 = vadd.f32 %v1956_v32, %v331_v24  ;;  %v2001_v41 = vpop.f32.mrf.mxu0  ;;  %4519 = vmatprep.subr.bf16.mxu0 %v6229_v21  ;;  %v6248_v18 = vld [vmem:[%s8790_s3 + $0x1c8] ss:$12 sps:$4 sm:$0xff]  }
 0x125   :  { %v1958_v37 = vpop.f32.mrf.mxu1  ;;  %4562 = vmatprep.subr.bf16.mxu1 %v6232_v22  ;;  %v2509_v42 = vadd.f32 1.0, %v6608_v38  ;;  %v2352_v55 = vmul.f32 %v7690_v28, %v7690_v28  ;;  %v2545_v62 = vmul.f32 %v2521_v47, %v7575_v40  ;;  %v6250_v40 = vld [vmem:[%s8790_s3 + $0x1cc] ss:$12 sps:$4 sm:$0xff]   ;;  %v6253_v22 = vld [vmem:[%s8790_s3 + $0x34] ss:$12 sps:$4 sm:$0xff]  }
 0x126   :  { %v1959_v17 = vadd.f32 %v1958_v37, %v335_v26  ;;  %v2003_v45 = vpop.f32.mrf.mxu0  ;;  %v7703_v52 = vadd.f32 %v1999_v33, %v1957_v39  ;;  %v6257_v37 = vld [vmem:[%s8790_s3 + $0x18] ss:$12 sps:$4 sm:$0xff]   ;;  %v6263_v47 = vld [vmem:[%s8790_s3] ss:$12 sps:$4 sm:$0xff]  }
 0x127   :  { %v1960_v44 = vpop.f32.mrf.mxu1  ;;  %4520 = vmatpush1.bf16.msra.mxu0 %v6227_v29  ;;  %v2533_v50 = vmul.f32 0.5, %v2509_v42  ;;  %v6251_v29 = vld [vmem:[%s8790_s3 + $0x30] ss:$12 sps:$4 sm:$0xff]   ;;  %v2436_v42 = vadd.f32 %v2412_v31, %v7696_v43  ;;  %v6304_v31 = vld [vmem:[%s8790_s3 + $0x274] ss:$12 sps:$4 sm:$0xff]  }
 0x128   :  { %v7701_v48 = vadd.f32 %v2001_v41, %v1959_v17  ;;  %v1961_v20 = vadd.f32 %v1960_v44, %v331_v24  ;;  %4563 = vmatpush1.bf16.msra.mxu1 %v6230_v30  ;;  %4521 = vmatprep.subr.bf16.mxu0 %v6235_v51  ;;  %v2005_v61 = vpop.f32.mrf.mxu0  ;;  %v2354_v5 = vmul.f32 %v7703_v52, %v7703_v52  ;;  %v6254_v30 = vld [vmem:[%s8790_s3 + $0x1b0] ss:$12 sps:$4 sm:$0xff]   ;;  %v6260_v41 = vld [vmem:[%s8790_s3 + $0x198] ss:$12 sps:$4 sm:$0xff]  }
 0x129   :  { %v1962_v53 = vpop.f32.mrf.mxu1  ;;  %4564 = vmatprep.subr.bf16.mxu1 %v6238_v27  ;;  %v2557_v63 = vmul.f32 %v2533_v50, %v7592_v49  ;;  %v2376_v49 = vmul.f32 %v2352_v55, %v7690_v28  ;;  %v6259_v51 = vld [vmem:[%s8790_s3 + $0x1c] ss:$12 sps:$4 sm:$0xff]   ;;  %v6265_v17 = vld [vmem:[%s8790_s3 + $0x4] ss:$12 sps:$4 sm:$0xff]   ;;  %v6271_v50 = vld [vmem:[%s8790_s3 + $0x16c] ss:$12 sps:$4 sm:$0xff]  }
 0x12a   :  { %v2355_v56 = vmul.f32 %v7701_v48, %v7701_v48  ;;  %v1963_v57 = vadd.f32 %v1962_v53, %v335_v26  ;;  %v7729_v3 = vadd.f32 %v2003_v45, %v1961_v20  ;;  %v2378_v21 = vmul.f32 %v2354_v5, %v7703_v52  ;;  %v6262_v27 = vld [vmem:[%s8790_s3 + $0x19c] ss:$12 sps:$4 sm:$0xff]   ;;  %v6266_v20 = vld [vmem:[%s8790_s3 + $0x180] ss:$12 sps:$4 sm:$0xff]  }
 0x12b   :  { %4522 = vmatpush1.bf16.msra.mxu0 %v6233_v1  ;;  %v7735_v7 = vpack.c.bf16 %v2557_v63, %v2545_v62  ;;  %v2400_v24 = vmul.f32 0.044715, %v2376_v49  ;;  %v6268_v1 = vld [vmem:[%s8790_s3 + $0x184] ss:$12 sps:$4 sm:$0xff]   ;;  %v6274_v53 = vld [vmem:[%s8790_s3 + $0x2ec] ss:$12 sps:$4 sm:$0xff]  }
 0x12c   :  { %v2379_v2 = vmul.f32 %v2355_v56, %v7701_v48  ;;  %v7731_v4 = vadd.f32 %v2005_v61, %v1963_v57  ;;  %4565 = vmatpush1.bf16.msra.mxu1 %v6236_v46  ;;  %4523 = vmatprep.subr.bf16.mxu0 %v6241_v36  ;;  %v2366_v13 = vmul.f32 %v7729_v3, %v7729_v3  ;;  %v2402_v34 = vmul.f32 0.044715, %v2378_v21  ;;  %v6269_v56 = vld [vmem:[%s8790_s3 + $0x168] ss:$12 sps:$4 sm:$0xff]   ;;  %v6275_v62 = vld [vmem:[%s8790_s3 + $0x150] ss:$12 sps:$4 sm:$0xff]  }
 0x12d   :  { %4566 = vmatprep.subr.bf16.mxu1 %v6244_v54  ;;  %4549 = vmatprep.mubr.bf16.mxu0 %v7735_v7  ;;  %v2424_v38 = vadd.f32 %v2400_v24, %v7690_v28  ;;  %v2460_v36 = vmul.f32 0.7978846, %v2436_v42  ;;  %v6272_v57 = vld [vmem:[%s8790_s3 + $0x2e8] ss:$12 sps:$4 sm:$0xff]   ;;  %v6278_v63 = vld [vmem:[%s8790_s3 + $0x2d0] ss:$12 sps:$4 sm:$0xff]  }
 0x12e   :  { %v2403_v8 = vmul.f32 0.044715, %v2379_v2  ;;  %v2367_v10 = vmul.f32 %v7731_v4, %v7731_v4  ;;  %v2390_v32 = vmul.f32 %v2366_v13, %v7729_v3  ;;  %v2426_v46 = vadd.f32 %v2402_v34, %v7703_v52  ;;  %v6283_v2 = vld [vmem:[%s8790_s3 + $0x13c] ss:$12 sps:$4 sm:$0xff]   ;;  %v6281_v49 = vld [vmem:[%s8790_s3 + $0x138] ss:$12 sps:$4 sm:$0xff]  }
 0x12f   :  { %4524 = vmatpush1.bf16.msra.mxu0 %v6239_v58  ;;  %v2448_v45 = vmul.f32 0.7978846, %v2424_v38  ;;  %v6277_v58 = vld [vmem:[%s8790_s3 + $0x154] ss:$12 sps:$4 sm:$0xff]   ;;  %v6307_v34 = vld [vmem:[%s8790_s3 + $0xdc] ss:$12 sps:$4 sm:$0xff]  }
 0x130   :  { %v2427_v12 = vadd.f32 %v2403_v8, %v7701_v48  ;;  %v2391_v16 = vmul.f32 %v2367_v10, %v7731_v4  ;;  %4567 = vmatpush1.bf16.msra.mxu1 %v6242_v59  ;;  %4525 = vmatprep.subr.bf16.mxu0 %v6247_v0  ;;  %v2414_v44 = vmul.f32 0.044715, %v2390_v32  ;;  %v2450_v55 = vmul.f32 0.7978846, %v2426_v46  ;;  %v6280_v59 = vld [vmem:[%s8790_s3 + $0x2d4] ss:$12 sps:$4 sm:$0xff]  }
 0x131   :  { %4568 = vmatprep.subr.bf16.mxu1 %v6250_v40  ;;  %v6286_v40 = vld [vmem:[%s8790_s3 + $0x2bc] ss:$12 sps:$4 sm:$0xff]   ;;  %v6284_v8 = vld [vmem:[%s8790_s3 + $0x2b8] ss:$12 sps:$4 sm:$0xff]   ;;  %v6287_v21 = vld [vmem:[%s8790_s3 + $0x120] ss:$12 sps:$4 sm:$0xff]  }
 0x132   :  { %v2451_v25 = vmul.f32 0.7978846, %v2427_v12  ;;  %v2415_v26 = vmul.f32 0.044715, %v2391_v16  ;;  %v2438_v54 = vadd.f32 %v2414_v44, %v7729_v3  ;;  %v6289_v12 = vld [vmem:[%s8790_s3 + $0x124] ss:$12 sps:$4 sm:$0xff]  }
 0x133   :  { %4526 = vmatpush1.bf16.msra.mxu0 %v6245_v35  ;;  %v6292_v16 = vld [vmem:[%s8790_s3 + $0x2a4] ss:$12 sps:$4 sm:$0xff]   ;;  %v6293_v24 = vld [vmem:[%s8790_s3 + $0x108] ss:$12 sps:$4 sm:$0xff]  }
 0x134   :  { %6609 = vtanh.f32 %v2451_v25  ;;  %v2439_v33 = vadd.f32 %v2415_v26, %v7731_v4  ;;  %4569 = vmatpush1.bf16.msra.mxu1 %v6248_v18  ;;  %4527 = vmatprep.subr.bf16.mxu0 %v6253_v22  ;;  %v2462_v60 = vmul.f32 0.7978846, %v2438_v54  ;;  %v6290_v22 = vld [vmem:[%s8790_s3 + $0x2a0] ss:$12 sps:$4 sm:$0xff]   ;;  %v6296_v25 = vld [vmem:[%s8790_s3 + $0x288] ss:$12 sps:$4 sm:$0xff]  }
 0x135   :  { %4570 = vmatprep.subr.bf16.mxu1 %v6256_v23  ;;  %v6308_v42 = vld [vmem:[%s8790_s3 + $0x258] ss:$12 sps:$4 sm:$0xff]  }
 0x136   :  { %v2463_v39 = vmul.f32 0.7978846, %v2439_v33  ;;  %v6299_v33 = vld [vmem:[%s8790_s3 + $0xf0] ss:$12 sps:$4 sm:$0xff]  }
 0x137   :  { %4528 = vmatpush1.bf16.msra.mxu0 %v6251_v29  ;;  %v6316_v46 = vld [vmem:[%s8790_s3 + $0x244] ss:$12 sps:$4 sm:$0xff]  }
 0x138   :  { %6611 = vtanh.f32 %v2463_v39  ;;  %4571 = vmatpush1.bf16.msra.mxu1 %v6254_v30  ;;  %4529 = vmatprep.subr.bf16.mxu0 %v6259_v51  ;;  %v6301_v30 = vld [vmem:[%s8790_s3 + $0xf4] ss:$12 sps:$4 sm:$0xff]   ;;  %v6302_v51 = vld [vmem:[%s8790_s3 + $0x270] ss:$12 sps:$4 sm:$0xff]  }
 0x139   :  { %4572 = vmatprep.subr.bf16.mxu1 %v6262_v27  ;;  %6613 = vtanh.f32 %v2448_v45  ;;  %v6310_v39 = vld [vmem:[%s8790_s3 + $0x25c] ss:$12 sps:$4 sm:$0xff]   ;;  %v6313_v45 = vld [vmem:[%s8790_s3 + $0xc4] ss:$12 sps:$4 sm:$0xff]  }
 0x13a   :  { %6615 = vtanh.f32 %v2460_v36  ;;  %v342_v36 = vsub.s32 5, %v7506_v15 }
 0x13b   :  { %4530 = vmatpush1.bf16.msra.mxu0 %v6257_v37  ;;  %6617 = vtanh.f32 %v2462_v60  ;;  %v6317_v60 = vld [vmem:[%s8790_s3 + $0x3a8] ss:$12 sps:$4 sm:$0xff]  }
 0x13c   :  { %4573 = vmatpush1.bf16.msra.mxu1 %v6260_v41  ;;  %4531 = vmatprep.subr.bf16.mxu0 %v6265_v17  ;;  %6619 = vtanh.f32 %v2450_v55 }
 0x13d   :  { %4574 = vmatprep.subr.bf16.mxu1 %v6268_v1  ;;  %v6305_v1 = vld [vmem:[%s8790_s3 + $0xd8] ss:$12 sps:$4 sm:$0xff]  }
 0x13f   :  { %4532 = vmatpush1.bf16.msra.mxu0 %v6263_v47 }
 0x140   :  { %4575 = vmatpush1.bf16.msra.mxu1 %v6266_v20  ;;  %4533 = vmatprep.subr.bf16.mxu0 %v6271_v50  ;;  %v6311_v20 = vld [vmem:[%s8790_s3 + $0xc0] ss:$12 sps:$4 sm:$0xff]  }
 0x141   :  { %v6610_v61 = vpop.eup %6609  ;;  %4576 = vmatprep.subr.bf16.mxu1 %v6274_v53  ;;  %v6314_v50 = vld [vmem:[%s8790_s3 + $0x240] ss:$12 sps:$4 sm:$0xff]   ;;  %v338_v53 = vsub.s32 4, %v7506_v15 }
 0x142   :  { %v2499_v0 = vadd.f32 1.0, %v6610_v61  ;;  %v6329_v61 = vld [vmem:[%s8790_s3 + $0x528] ss:$12 sps:$4 sm:$0xff]  }
 0x143   :  { %4534 = vmatpush2.bf16.msra.mxu0 %v6269_v56  ;;  %v6319_v56 = vld [vmem:[%s8790_s3 + $0x3ac] ss:$12 sps:$4 sm:$0xff]  }
 0x144   :  { %4577 = vmatpush2.bf16.msra.mxu1 %v6272_v57  ;;  %4535 = vmatprep.subr.bf16.mxu0 %v6277_v58  ;;  %v2523_v11 = vmul.f32 0.5, %v2499_v0  ;;  %v6331_v57 = vld [vmem:[%s8790_s3 + $0x52c] ss:$12 sps:$4 sm:$0xff]  }
 0x145   :  { %v6612_v5 = vpop.eup %6611  ;;  %4578 = vmatprep.subr.bf16.mxu1 %v6280_v59 }
 0x146   :  { %v2511_v10 = vadd.f32 1.0, %v6612_v5  ;;  %v2547_v35 = vmul.f32 %v2523_v11, %v7701_v48  ;;  %v6295_v48 = vld [vmem:[%s8790_s3 + $0x10c] ss:$12 sps:$4 sm:$0xff]   ;;  %v6614_v26 = vpop.eup %6613 }
 0x147   :  { %4536 = vmatpush2.bf16.msra.mxu0 %v6275_v62  ;;  %v6616_v29 = vpop.eup %6615  ;;  %v2496_v17 = vadd.f32 1.0, %v6614_v26  ;;  %v6328_v26 = vld [vmem:[%s8790_s3 + $0x364] ss:$12 sps:$4 sm:$0xff]  }
 0x148   :  { %4579 = vmatpush2.bf16.msra.mxu1 %v6278_v63  ;;  %v2535_v13 = vmul.f32 0.5, %v2511_v10  ;;  %4537 = vmatprep.subr.bf16.mxu0 %v6283_v2  ;;  %v6618_v32 = vpop.eup %6617  ;;  %v2508_v37 = vadd.f32 1.0, %v6616_v29  ;;  %v2085_v63 = vpop.f32.mrf.mxu1  ;;  %v6349_v29 = vld [vmem:[%s8790_s3 + $0x4e4] ss:$12 sps:$4 sm:$0xff]  }
 0x149   :  { %4580 = vmatprep.subr.bf16.mxu1 %v6286_v40  ;;  %v6620_v27 = vpop.eup %6619  ;;  %v2510_v38 = vadd.f32 1.0, %v6618_v32  ;;  %v2520_v55 = vmul.f32 0.5, %v2496_v17  ;;  %v6320_v40 = vld [vmem:[%s8790_s3 + $0x390] ss:$12 sps:$4 sm:$0xff]   ;;  %v6326_v32 = vld [vmem:[%s8790_s3 + $0x360] ss:$12 sps:$4 sm:$0xff]  }
 0x14a   :  { %v2559_v18 = vmul.f32 %v2535_v13, %v7731_v4  ;;  %v6298_v4 = vld [vmem:[%s8790_s3 + $0x28c] ss:$12 sps:$4 sm:$0xff]   ;;  %v2498_v41 = vadd.f32 1.0, %v6620_v27  ;;  %v2532_v47 = vmul.f32 0.5, %v2508_v37  ;;  %v6343_v13 = vld [vmem:[%s8790_s3 + $0x4fc] ss:$12 sps:$4 sm:$0xff]  }
 0x14b   :  { %4538 = vmatpush2.bf16.msra.mxu0 %v6281_v49  ;;  %v2534_v44 = vmul.f32 0.5, %v2510_v38  ;;  %v2544_v0 = vmul.f32 %v2520_v55, %v7690_v28  ;;  %v7930_v28 = vld [vmem:[%s8791_s2] sm:$0xff]  ;;  %v6335_v49 = vld [vmem:[%s8790_s3 + $0x510] ss:$12 sps:$4 sm:$0xff]   ;;  %v6334_v37 = vld [vmem:[%s8790_s3 + $0x34c] ss:$12 sps:$4 sm:$0xff]  }
 0x14c   :  { %4581 = vmatpush2.bf16.msra.mxu1 %v6284_v8  ;;  %v7848_v23 = vpack.c.bf16 %v2559_v18, %v2547_v35  ;;  %4539 = vmatprep.subr.bf16.mxu0 %v6289_v12  ;;  %v2522_v54 = vmul.f32 0.5, %v2498_v41  ;;  %v2556_v59 = vmul.f32 %v2532_v47, %v7696_v43  ;;  %v6337_v43 = vld [vmem:[%s8790_s3 + $0x514] ss:$12 sps:$4 sm:$0xff]   ;;  %v2087_v8 = vpop.f32.mrf.mxu1  ;;  %v6325_v12 = vld [vmem:[%s8790_s3 + $0x37c] ss:$12 sps:$4 sm:$0xff]  }
 0x14d   :  { %4582 = vmatprep.subr.bf16.mxu1 %v6292_v16  ;;  %v2558_v58 = vmul.f32 %v2534_v44, %v7729_v3  ;;  %v6322_v3 = vld [vmem:[%s8790_s3 + $0x394] ss:$12 sps:$4 sm:$0xff]   ;;  %v339_v16 = vrot.slane %v7930_v28, %v338_v53  ;;  %v6323_v18 = vld [vmem:[%s8790_s3 + $0x378] ss:$12 sps:$4 sm:$0xff]  }
 0x14e   :  { %4592 = vmatprep.mubr.bf16.mxu1 %v7848_v23  ;;  %v2546_v62 = vmul.f32 %v2522_v54, %v7703_v52  ;;  %v7923_v2 = vpack.c.bf16 %v2556_v59, %v2544_v0  ;;  %v343_v52 = vrot.slane %v7930_v28, %v342_v36  ;;  %v6355_v41 = vld [vmem:[%s8790_s3 + $0x4cc] ss:$12 sps:$4 sm:$0xff]   ;;  %v6361_v53 = vld [vmem:[%s8790_s3 + $0x4b4] ss:$12 sps:$4 sm:$0xff]   ;;  %v6359_v59 = vld [vmem:[%s8790_s3 + $0x4b0] ss:$12 sps:$4 sm:$0xff]  }
 0x14f   :  { %4540 = vmatpush2.bf16.msra.mxu0 %v6287_v21  ;;  %v6341_v21 = vld [vmem:[%s8790_s3 + $0x4f8] ss:$12 sps:$4 sm:$0xff]  }
 0x150   :  { %4583 = vmatpush2.bf16.msra.mxu1 %v6290_v22  ;;  %4541 = vmatprep.subr.bf16.mxu0 %v6295_v48  ;;  %v7925_v5 = vpack.c.bf16 %v2558_v58, %v2546_v62  ;;  %v2089_v22 = vpop.f32.mrf.mxu1  ;;  %v6346_v58 = vld [vmem:[%s8790_s3 + $0x31c] ss:$12 sps:$4 sm:$0xff]   ;;  %v6365_v0 = vld [vmem:[%s8790_s3 + $0x498] ss:$12 sps:$4 sm:$0xff]  }
 0x151   :  { %4584 = vmatprep.subr.bf16.mxu1 %v6298_v4 }
 0x153   :  { %4542 = vmatpush2.bf16.msra.mxu0 %v6293_v24 }
 0x154   :  { %4585 = vmatpush2.bf16.msra.mxu1 %v6296_v25  ;;  %4543 = vmatprep.subr.bf16.mxu0 %v6301_v30 }
 0x155   :  { %4586 = vmatprep.subr.bf16.mxu1 %v6304_v31 }
 0x157   :  { %4544 = vmatpush2.bf16.msra.mxu0 %v6299_v33  ;;  %v2091_v33 = vpop.f32.mrf.mxu1 }
 0x158   :  { %4587 = vmatpush2.bf16.msra.mxu1 %v6302_v51  ;;  %4545 = vmatprep.subr.bf16.mxu0 %v6307_v34 }
 0x159   :  { %4588 = vmatprep.subr.bf16.mxu1 %v6310_v39  ;;  %v6347_v39 = vld [vmem:[%s8790_s3 + $0x4e0] ss:$12 sps:$4 sm:$0xff]  }
 0x15b   :  { %4546 = vmatpush2.bf16.msra.mxu0 %v6305_v1 }
 0x15c   :  { %4589 = vmatpush2.bf16.msra.mxu1 %v6308_v42  ;;  %4547 = vmatprep.subr.bf16.mxu0 %v6313_v45  ;;  %v6332_v42 = vld [vmem:[%s8790_s3 + $0x348] ss:$12 sps:$4 sm:$0xff]  }
 0x15d   :  { %4590 = vmatprep.subr.bf16.mxu1 %v6316_v46  ;;  %v6340_v46 = vld [vmem:[%s8790_s3 + $0x334] ss:$12 sps:$4 sm:$0xff]  }
 0x15f   :  { %4548 = vmatpush2.bf16.msra.mxu0 %v6311_v20 }
 0x160   :  { %4591 = vmatpush2.bf16.msra.mxu1 %v6314_v50  ;;  %4603 = vmatprep.subr.bf16.mxu0 %v6319_v56  ;;  %v6353_v50 = vld [vmem:[%s8790_s3 + $0x4c8] ss:$12 sps:$4 sm:$0xff]  }
 0x161   :  { %4646 = vmatprep.subr.bf16.mxu1 %v6331_v57  ;;  %v6338_v57 = vld [vmem:[%s8790_s3 + $0x330] ss:$12 sps:$4 sm:$0xff]  }
 0x162   :  { %v2042_v10 = vpop.f32.mrf.mxu0  ;;  %4550 = vmatmul.mubr.bf16.vlgmr.msra.gmra.mxu0 %v7923_v2 }
 0x163   :  { %4593 = vmatmul.mubr.bf16.vlgmr.msra.gmra.mxu1 %v7925_v5  ;;  %4604 = vmatpush1.bf16.msra.mxu0 %v6317_v60  ;;  %v2043_v51 = vadd.f32 %v2042_v10, %v339_v16  ;;  %v6371_v10 = vld [vmem:[%s8790_s3 + $0x480] ss:$12 sps:$4 sm:$0xff]  }
 0x164   :  { %4647 = vmatpush1.bf16.msra.mxu1 %v6329_v61  ;;  %v2044_v11 = vpop.f32.mrf.mxu0  ;;  %4605 = vmatprep.subr.bf16.mxu0 %v6322_v3  ;;  %v6367_v61 = vld [vmem:[%s8790_s3 + $0x49c] ss:$12 sps:$4 sm:$0xff]  }
 0x165   :  { %4648 = vmatprep.subr.bf16.mxu1 %v6337_v43  ;;  %v2045_v35 = vadd.f32 %v2044_v11, %v343_v52  ;;  %v7986_v44 = vadd.f32 %v2085_v63, %v2043_v51  ;;  %v6344_v63 = vld [vmem:[%s8790_s3 + $0x318] ss:$12 sps:$4 sm:$0xff]  }
 0x166   :  { %v2046_v48 = vpop.f32.mrf.mxu0 }
 0x167   :  { %v7954_v4 = vadd.f32 %v2087_v8, %v2045_v35  ;;  %v2047_v24 = vadd.f32 %v2046_v48, %v339_v16  ;;  %4606 = vmatpush1.bf16.msra.mxu0 %v6320_v40  ;;  %v2356_v55 = vmul.f32 %v7986_v44, %v7986_v44  ;;  %v6373_v40 = vld [vmem:[%s8790_s3 + $0x484] ss:$12 sps:$4 sm:$0xff]   ;;  %v346_v8 = vsub.s32 6, %v7506_v15  ;;  %v6356_v35 = vld [vmem:[%s8790_s3 + $0x468] ss:$12 sps:$4 sm:$0xff]  }
 0x168   :  { %4649 = vmatpush1.bf16.msra.mxu1 %v6335_v49  ;;  %v2048_v25 = vpop.f32.mrf.mxu0  ;;  %4607 = vmatprep.subr.bf16.mxu0 %v6325_v12  ;;  %v6350_v49 = vld [vmem:[%s8790_s3 + $0x300] ss:$12 sps:$4 sm:$0xff]   ;;  %v6377_v48 = vld [vmem:[%s8790_s3 + $0x5e8] ss:$12 sps:$4 sm:$0xff]  }
 0x169   :  { %4650 = vmatprep.subr.bf16.mxu1 %v6343_v13  ;;  %v2357_v30 = vmul.f32 %v7954_v4, %v7954_v4  ;;  %v2049_v31 = vadd.f32 %v2048_v25, %v343_v52  ;;  %v7967_v27 = vadd.f32 %v2089_v22, %v2047_v24  ;;  %v2380_v3 = vmul.f32 %v2356_v55, %v7986_v44  ;;  %v6352_v52 = vld [vmem:[%s8790_s3 + $0x304] ss:$12 sps:$4 sm:$0xff]   ;;  %v6358_v12 = vld [vmem:[%s8790_s3 + $0x46c] ss:$12 sps:$4 sm:$0xff]   ;;  %v6364_v22 = vld [vmem:[%s8790_s3 + $0x454] ss:$12 sps:$4 sm:$0xff]  }
 0x16a   :  { %v6379_v13 = vld [vmem:[%s8790_s3 + $0x5ec] ss:$12 sps:$4 sm:$0xff]   ;;  %v6385_v24 = vld [vmem:[%s8790_s3 + $0x5d4] ss:$12 sps:$4 sm:$0xff]  }
 0x16b   :  { %v2381_v34 = vmul.f32 %v2357_v30, %v7954_v4  ;;  %v7970_v38 = vadd.f32 %v2091_v33, %v2049_v31  ;;  %4608 = vmatpush1.bf16.msra.mxu0 %v6323_v18  ;;  %v2368_v45 = vmul.f32 %v7967_v27, %v7967_v27  ;;  %v2404_v11 = vmul.f32 0.044715, %v2380_v3  ;;  %v6362_v31 = vld [vmem:[%s8790_s3 + $0x450] ss:$12 sps:$4 sm:$0xff]  }
 0x16c   :  { %4651 = vmatpush1.bf16.msra.mxu1 %v6341_v21  ;;  %4609 = vmatprep.subr.bf16.mxu0 %v6328_v26  ;;  %v350_v18 = vsub.s32 7, %v7506_v15  ;;  %v347_v26 = vrot.slane %v7930_v28, %v346_v8  ;;  %v6522_v15 = vld [vmem:[%s8790_s3 + $0x844] ss:$12 sps:$4 sm:$0xff]  }
 0x16d   :  { %4652 = vmatprep.subr.bf16.mxu1 %v6349_v29  ;;  %v2405_v17 = vmul.f32 0.044715, %v2381_v34  ;;  %v2369_v1 = vmul.f32 %v7970_v38, %v7970_v38  ;;  %v2392_v56 = vmul.f32 %v2368_v45, %v7967_v27  ;;  %v2428_v21 = vadd.f32 %v2404_v11, %v7986_v44  ;;  %v6403_v11 = vld [vmem:[%s8790_s3 + $0x58c] ss:$12 sps:$4 sm:$0xff]  }
 0x16e   :  { %v351_v30 = vrot.slane %v7930_v28, %v350_v18  ;;  %v6391_v28 = vld [vmem:[%s8790_s3 + $0x5bc] ss:$12 sps:$4 sm:$0xff]  }
 0x16f   :  { %v2429_v47 = vadd.f32 %v2405_v17, %v7954_v4  ;;  %v2393_v20 = vmul.f32 %v2369_v1, %v7970_v38  ;;  %4610 = vmatpush1.bf16.msra.mxu0 %v6326_v32  ;;  %v2416_v43 = vmul.f32 0.044715, %v2392_v56  ;;  %v6383_v32 = vld [vmem:[%s8790_s3 + $0x5d0] ss:$12 sps:$4 sm:$0xff]   ;;  %v2452_v33 = vmul.f32 0.7978846, %v2428_v21 }
 0x170   :  { %4653 = vmatpush1.bf16.msra.mxu1 %v6347_v39  ;;  %4611 = vmatprep.subr.bf16.mxu0 %v6334_v37  ;;  %v6370_v39 = vld [vmem:[%s8790_s3 + $0x43c] ss:$12 sps:$4 sm:$0xff]  }
 0x171   :  { %4654 = vmatprep.subr.bf16.mxu1 %v6355_v41  ;;  %v2453_v36 = vmul.f32 0.7978846, %v2429_v47  ;;  %v2417_v54 = vmul.f32 0.044715, %v2393_v20  ;;  %v2440_v16 = vadd.f32 %v2416_v43, %v7967_v27  ;;  %v6374_v43 = vld [vmem:[%s8790_s3 + $0x420] ss:$12 sps:$4 sm:$0xff]  }
 0x173   :  { %6621 = vtanh.f32 %v2453_v36  ;;  %v2441_v60 = vadd.f32 %v2417_v54, %v7970_v38  ;;  %4612 = vmatpush1.bf16.msra.mxu0 %v6332_v42  ;;  %v2464_v25 = vmul.f32 0.7978846, %v2440_v16  ;;  %v6389_v54 = vld [vmem:[%s8790_s3 + $0x5b8] ss:$12 sps:$4 sm:$0xff]  }
 0x174   :  { %4655 = vmatpush1.bf16.msra.mxu1 %v6353_v50  ;;  %4613 = vmatprep.subr.bf16.mxu0 %v6340_v46 }
 0x175   :  { %4656 = vmatprep.subr.bf16.mxu1 %v6361_v53  ;;  %v2465_v62 = vmul.f32 0.7978846, %v2441_v60  ;;  %v6368_v53 = vld [vmem:[%s8790_s3 + $0x438] ss:$12 sps:$4 sm:$0xff]  }
 0x176   :  { %v6376_v60 = vld [vmem:[%s8790_s3 + $0x424] ss:$12 sps:$4 sm:$0xff]  }
 0x177   :  { %6623 = vtanh.f32 %v2465_v62  ;;  %4614 = vmatpush1.bf16.msra.mxu0 %v6338_v57 }
 0x178   :  { %4657 = vmatpush1.bf16.msra.mxu1 %v6359_v59  ;;  %4615 = vmatprep.subr.bf16.mxu0 %v6346_v58  ;;  %6625 = vtanh.f32 %v2464_v25  ;;  %v6401_v25 = vld [vmem:[%s8790_s3 + $0x588] ss:$12 sps:$4 sm:$0xff]  }
 0x179   :  { %4658 = vmatprep.subr.bf16.mxu1 %v6367_v61  ;;  %6627 = vtanh.f32 %v2452_v33  ;;  %v6397_v61 = vld [vmem:[%s8790_s3 + $0x5a4] ss:$12 sps:$4 sm:$0xff]  }
 0x17b   :  { %4616 = vmatpush1.bf16.msra.mxu0 %v6344_v63 }
 0x17c   :  { %4659 = vmatpush1.bf16.msra.mxu1 %v6365_v0  ;;  %4617 = vmatprep.subr.bf16.mxu0 %v6352_v52  ;;  %v6395_v52 = vld [vmem:[%s8790_s3 + $0x5a0] ss:$12 sps:$4 sm:$0xff]  }
 0x17d   :  { %4660 = vmatprep.subr.bf16.mxu1 %v6373_v40 }
 0x17f   :  { %4618 = vmatpush1.bf16.msra.mxu0 %v6350_v49 }
 0x180   :  { %4661 = vmatpush1.bf16.msra.mxu1 %v6371_v10  ;;  %v6622_v29 = vpop.eup %6621  ;;  %4619 = vmatprep.subr.bf16.mxu0 %v6358_v12  ;;  %v6382_v10 = vld [vmem:[%s8790_s3 + $0x40c] ss:$12 sps:$4 sm:$0xff]  }
 0x181   :  { %4662 = vmatprep.subr.bf16.mxu1 %v6379_v13  ;;  %v2501_v37 = vadd.f32 1.0, %v6622_v29 }
 0x182   :  { %v2171_v34 = vpop.f32.mrf.mxu0 }
 0x183   :  { %v2128_v51 = vpop.f32.mrf.mxu1  ;;  %4620 = vmatpush2.bf16.msra.mxu0 %v6356_v35  ;;  %v2525_v36 = vmul.f32 0.5, %v2501_v37  ;;  %v6386_v37 = vld [vmem:[%s8790_s3 + $0x3f0] ss:$12 sps:$4 sm:$0xff]  }
 0x184   :  { %v2129_v41 = vadd.f32 %v2128_v51, %v347_v26  ;;  %4663 = vmatpush2.bf16.msra.mxu1 %v6377_v48  ;;  %v6624_v17 = vpop.eup %6623  ;;  %v2173_v42 = vpop.f32.mrf.mxu0  ;;  %4621 = vmatprep.subr.bf16.mxu0 %v6364_v22  ;;  %v6380_v48 = vld [vmem:[%s8790_s3 + $0x408] ss:$12 sps:$4 sm:$0xff]  }
 0x185   :  { %v2130_v1 = vpop.f32.mrf.mxu1  ;;  %4664 = vmatprep.subr.bf16.mxu1 %v6385_v24  ;;  %v2513_v47 = vadd.f32 1.0, %v6624_v17  ;;  %v2549_v49 = vmul.f32 %v2525_v36, %v7954_v4  ;;  %v6388_v24 = vld [vmem:[%s8790_s3 + $0x3f4] ss:$12 sps:$4 sm:$0xff]   ;;  %v6626_v33 = vpop.eup %6625 }
 0x186   :  { %v8072_v45 = vadd.f32 %v2171_v34, %v2129_v41  ;;  %v2131_v46 = vadd.f32 %v2130_v1, %v351_v30  ;;  %v2175_v50 = vpop.f32.mrf.mxu0  ;;  %v6394_v41 = vld [vmem:[%s8790_s3 + $0x3dc] ss:$12 sps:$4 sm:$0xff]   ;;  %v6628_v17 = vpop.eup %6627 }
 0x187   :  { %v2132_v20 = vpop.f32.mrf.mxu1  ;;  %4622 = vmatpush2.bf16.msra.mxu0 %v6362_v31  ;;  %v2537_v58 = vmul.f32 0.5, %v2513_v47  ;;  %v6409_v47 = vld [vmem:[%s8790_s3 + $0x55c] ss:$12 sps:$4 sm:$0xff]   ;;  %v2500_v36 = vadd.f32 1.0, %v6628_v17 }
 0x188   :  { %v2358_v55 = vmul.f32 %v8072_v45, %v8072_v45  ;;  %v8082_v56 = vadd.f32 %v2173_v42, %v2131_v46  ;;  %v2133_v57 = vadd.f32 %v2132_v20, %v347_v26  ;;  %4665 = vmatpush2.bf16.msra.mxu1 %v6383_v32  ;;  %4623 = vmatprep.subr.bf16.mxu0 %v6370_v39  ;;  %v2177_v40 = vpop.f32.mrf.mxu0  ;;  %v6406_v26 = vld [vmem:[%s8790_s3 + $0x574] ss:$12 sps:$4 sm:$0xff]   ;;  %v2512_v46 = vadd.f32 1.0, %v6626_v33  ;;  %v6433_v17 = vld [vmem:[%s8790_s3 + $0x61c] ss:$12 sps:$4 sm:$0xff]  }
 0x189   :  { %v2134_v59 = vpop.f32.mrf.mxu1  ;;  %4666 = vmatprep.subr.bf16.mxu1 %v6391_v28  ;;  %v2561_v8 = vmul.f32 %v2537_v58, %v7970_v38  ;;  %v6404_v28 = vld [vmem:[%s8790_s3 + $0x570] ss:$12 sps:$4 sm:$0xff]   ;;  %v2524_v58 = vmul.f32 0.5, %v2500_v36  ;;  %v6422_v33 = vld [vmem:[%s8790_s3 + $0x660] ss:$12 sps:$4 sm:$0xff]  }
 0x18a   :  { %v2382_v62 = vmul.f32 %v2358_v55, %v8072_v45  ;;  %v2359_v63 = vmul.f32 %v8082_v56, %v8082_v56  ;;  %v8093_v0 = vadd.f32 %v2175_v50, %v2133_v57  ;;  %v2135_v3 = vadd.f32 %v2134_v59, %v351_v30  ;;  %v6392_v50 = vld [vmem:[%s8790_s3 + $0x3d8] ss:$12 sps:$4 sm:$0xff]   ;;  %v6398_v59 = vld [vmem:[%s8790_s3 + $0x3c0] ss:$12 sps:$4 sm:$0xff]   ;;  %v8263_v36 = vld [vmem:[%s8791_s2 + $0x8] sm:$0xf] }
 0x18b   :  { %4624 = vmatpush2.bf16.msra.mxu0 %v6368_v53  ;;  %v8114_v4 = vpack.c.bf16 %v2561_v8, %v2549_v49  ;;  %v6407_v53 = vld [vmem:[%s8790_s3 + $0x558] ss:$12 sps:$4 sm:$0xff]   ;;  %v2536_v55 = vmul.f32 0.5, %v2512_v46  ;;  %v6418_v49 = vld [vmem:[%s8790_s3 + $0x694] ss:$12 sps:$4 sm:$0xff]  }
 0x18c   :  { %v2406_v12 = vmul.f32 0.044715, %v2382_v62  ;;  %v2383_v13 = vmul.f32 %v2359_v63, %v8082_v56  ;;  %v2370_v16 = vmul.f32 %v8093_v0, %v8093_v0  ;;  %v8112_v35 = vadd.f32 %v2177_v40, %v2135_v3  ;;  %4667 = vmatpush2.bf16.msra.mxu1 %v6389_v54  ;;  %4625 = vmatprep.subr.bf16.mxu0 %v6376_v60  ;;  %v6400_v54 = vld [vmem:[%s8790_s3 + $0x3c4] ss:$12 sps:$4 sm:$0xff]   ;;  %v6410_v60 = vld [vmem:[%s8790_s3 + $0x540] ss:$12 sps:$4 sm:$0xff]  }
 0x18d   :  { %4668 = vmatprep.subr.bf16.mxu1 %v6397_v61  ;;  %4635 = vmatprep.mubr.bf16.mxu0 %v8114_v4  ;;  %v6412_v57 = vld [vmem:[%s8790_s3 + $0x544] ss:$12 sps:$4 sm:$0xff]   ;;  %v2560_v61 = vmul.f32 %v2536_v55, %v7967_v27  ;;  %v6415_v62 = vld [vmem:[%s8790_s3 + $0x6ac] ss:$12 sps:$4 sm:$0xff]   ;;  %v2548_v3 = vmul.f32 %v2524_v58, %v7986_v44  ;;  %v6472_v55 = vld [vmem:[%s8790_s3 + $0x7b4] ss:$12 sps:$4 sm:$0xff]   ;;  %v355_v58 = vrot.slane %v8263_v36, %v7636_v9 }
 0x18e   :  { %v2430_v38 = vadd.f32 %v2406_v12, %v8072_v45  ;;  %v2407_v18 = vmul.f32 0.044715, %v2383_v13  ;;  %v2394_v21 = vmul.f32 %v2370_v16, %v8093_v0  ;;  %v2371_v22 = vmul.f32 %v8112_v35, %v8112_v35  ;;  %v6442_v63 = vld [vmem:[%s8790_s3 + $0x82c] ss:$12 sps:$4 sm:$0xff]   ;;  %v6416_v12 = vld [vmem:[%s8790_s3 + $0x690] ss:$12 sps:$4 sm:$0xff]  }
 0x18f   :  { %4626 = vmatpush2.bf16.msra.mxu0 %v6374_v43  ;;  %v8178_v27 = vpack.c.bf16 %v2560_v61, %v2548_v3  ;;  %v6421_v16 = vld [vmem:[%s8790_s3 + $0x67c] ss:$12 sps:$4 sm:$0xff]   ;;  %v6458_v46 = vld [vmem:[%s8790_s3 + $0x7e0] ss:$12 sps:$4 sm:$0xff]  }
 0x190   :  { %v2454_v29 = vmul.f32 0.7978846, %v2430_v38  ;;  %v2431_v30 = vadd.f32 %v2407_v18, %v8082_v56  ;;  %v2418_v31 = vmul.f32 0.044715, %v2394_v21  ;;  %v2395_v32 = vmul.f32 %v2371_v22, %v8112_v35  ;;  %4669 = vmatpush2.bf16.msra.mxu1 %v6395_v52  ;;  %4627 = vmatprep.subr.bf16.mxu0 %v6382_v10  ;;  %v6413_v52 = vld [vmem:[%s8790_s3 + $0x6a8] ss:$12 sps:$4 sm:$0xff]  }
 0x191   :  { %4670 = vmatprep.subr.bf16.mxu1 %v6403_v11  ;;  %v6445_v61 = vld [vmem:[%s8790_s3 + $0x754] ss:$12 sps:$4 sm:$0xff]  }
 0x192   :  { %v2455_v51 = vmul.f32 0.7978846, %v2431_v30  ;;  %v2442_v34 = vadd.f32 %v2418_v31, %v8093_v0  ;;  %v2419_v39 = vmul.f32 0.044715, %v2395_v32  ;;  %6629 = vtanh.f32 %v2454_v29 }
 0x193   :  { %4628 = vmatpush2.bf16.msra.mxu0 %v6380_v48 }
 0x194   :  { %6631 = vtanh.f32 %v2455_v51  ;;  %v2466_v1 = vmul.f32 0.7978846, %v2442_v34  ;;  %v2443_v42 = vadd.f32 %v2419_v39, %v8112_v35  ;;  %4671 = vmatpush2.bf16.msra.mxu1 %v6401_v25  ;;  %4629 = vmatprep.subr.bf16.mxu0 %v6388_v24  ;;  %v6419_v24 = vld [vmem:[%s8790_s3 + $0x678] ss:$12 sps:$4 sm:$0xff]   ;;  %v6446_v34 = vld [vmem:[%s8790_s3 + $0x810] ss:$12 sps:$4 sm:$0xff]  }
 0x195   :  { %4672 = vmatprep.subr.bf16.mxu1 %v6406_v26  ;;  %v6424_v26 = vld [vmem:[%s8790_s3 + $0x664] ss:$12 sps:$4 sm:$0xff]   ;;  %v6430_v39 = vld [vmem:[%s8790_s3 + $0x634] ss:$12 sps:$4 sm:$0xff]  }
 0x196   :  { %6633 = vtanh.f32 %v2466_v1  ;;  %v2467_v20 = vmul.f32 0.7978846, %v2443_v42  ;;  %v6460_v1 = vld [vmem:[%s8790_s3 + $0x7e4] ss:$12 sps:$4 sm:$0xff]  }
 0x197   :  { %4630 = vmatpush2.bf16.msra.mxu0 %v6386_v37  ;;  %v6454_v37 = vld [vmem:[%s8790_s3 + $0x7fc] ss:$12 sps:$4 sm:$0xff]   ;;  %v6431_v42 = vld [vmem:[%s8790_s3 + $0x618] ss:$12 sps:$4 sm:$0xff]  }
 0x198   :  { %6635 = vtanh.f32 %v2467_v20  ;;  %4673 = vmatpush2.bf16.msra.mxu1 %v6404_v28  ;;  %4631 = vmatprep.subr.bf16.mxu0 %v6394_v41  ;;  %v6428_v41 = vld [vmem:[%s8790_s3 + $0x630] ss:$12 sps:$4 sm:$0xff]   ;;  %v6452_v28 = vld [vmem:[%s8790_s3 + $0x7f8] ss:$12 sps:$4 sm:$0xff]  }
 0x199   :  { %4674 = vmatprep.subr.bf16.mxu1 %v6409_v47  ;;  %v6436_v47 = vld [vmem:[%s8790_s3 + $0x604] ss:$12 sps:$4 sm:$0xff]   ;;  %v6466_v20 = vld [vmem:[%s8790_s3 + $0x7cc] ss:$12 sps:$4 sm:$0xff]  }
 0x19b   :  { %4632 = vmatpush2.bf16.msra.mxu0 %v6392_v50  ;;  %v6434_v50 = vld [vmem:[%s8790_s3 + $0x600] ss:$12 sps:$4 sm:$0xff]  }
 0x19c   :  { %4675 = vmatpush2.bf16.msra.mxu1 %v6407_v53  ;;  %4633 = vmatprep.subr.bf16.mxu0 %v6400_v54  ;;  %v6464_v53 = vld [vmem:[%s8790_s3 + $0x7c8] ss:$12 sps:$4 sm:$0xff]   ;;  %v6439_v54 = vld [vmem:[%s8790_s3 + $0x76c] ss:$12 sps:$4 sm:$0xff]  }
 0x19d   :  { %4676 = vmatprep.subr.bf16.mxu1 %v6412_v57 }
 0x19f   :  { %v6630_v43 = vpop.eup %6629  ;;  %4634 = vmatpush2.bf16.msra.mxu0 %v6398_v59  ;;  %v6437_v59 = vld [vmem:[%s8790_s3 + $0x768] ss:$12 sps:$4 sm:$0xff]  }
 0x1a0   :  { %4677 = vmatpush2.bf16.msra.mxu1 %v6410_v60  ;;  %4689 = vmatprep.subr.bf16.mxu0 %v6415_v62  ;;  %v2502_v11 = vadd.f32 1.0, %v6630_v43  ;;  %v6470_v60 = vld [vmem:[%s8790_s3 + $0x7b0] ss:$12 sps:$4 sm:$0xff]  }
 0x1a1   :  { %v6632_v40 = vpop.eup %6631  ;;  %4732 = vmatprep.subr.bf16.mxu1 %v6442_v63  ;;  %v6478_v62 = vld [vmem:[%s8790_s3 + $0x79c] ss:$12 sps:$4 sm:$0xff]   ;;  %v359_v63 = vrot.slane %v8263_v36, %v7521_v19 }
 0x1a2   :  { %v2503_v8 = vadd.f32 1.0, %v6632_v40  ;;  %4636 = vmatmul.mubr.bf16.vlgmr.msra.gmra.mxu0 %v8178_v27  ;;  %v2526_v22 = vmul.f32 0.5, %v2502_v11  ;;  %v6443_v40 = vld [vmem:[%s8790_s3 + $0x750] ss:$12 sps:$4 sm:$0xff]  }
 0x1a3   :  { %v6634_v10 = vpop.eup %6633  ;;  %4690 = vmatpush1.bf16.msra.mxu0 %v6413_v52  ;;  %v2257_v57 = vpop.f32.mrf.mxu1  ;;  %v6484_v11 = vld [vmem:[%s8790_s3 + $0x784] ss:$12 sps:$4 sm:$0xff]  }
 0x1a4   :  { %v2514_v44 = vadd.f32 1.0, %v6634_v10  ;;  %4691 = vmatprep.subr.bf16.mxu0 %v6418_v49  ;;  %v2527_v21 = vmul.f32 0.5, %v2503_v8  ;;  %v2550_v31 = vmul.f32 %v2526_v22, %v8072_v45  ;;  %v6448_v45 = vld [vmem:[%s8790_s3 + $0x814] ss:$12 sps:$4 sm:$0xff]   ;;  %v6476_v49 = vld [vmem:[%s8790_s3 + $0x798] ss:$12 sps:$4 sm:$0xff]  }
 0x1a5   :  { %v6636_v13 = vpop.eup %6635  ;;  %v2259_v3 = vpop.f32.mrf.mxu1  ;;  %v6451_v10 = vld [vmem:[%s8790_s3 + $0x73c] ss:$12 sps:$4 sm:$0xff]   ;;  %v6449_v22 = vld [vmem:[%s8790_s3 + $0x738] ss:$12 sps:$4 sm:$0xff]  }
 0x1a6   :  { %v2538_v38 = vmul.f32 0.5, %v2514_v44  ;;  %v2515_v18 = vadd.f32 1.0, %v6636_v13  ;;  %v2551_v29 = vmul.f32 %v2527_v21, %v8082_v56  ;;  %v6427_v56 = vld [vmem:[%s8790_s3 + $0x64c] ss:$12 sps:$4 sm:$0xff]  }
 0x1a7   :  { %4692 = vmatpush1.bf16.msra.mxu0 %v6416_v12  ;;  %v2261_v13 = vpop.f32.mrf.mxu1 }
 0x1a8   :  { %v2539_v48 = vmul.f32 0.5, %v2515_v18  ;;  %v2562_v25 = vmul.f32 %v2538_v38, %v8093_v0  ;;  %4693 = vmatprep.subr.bf16.mxu0 %v6421_v16  ;;  %v6440_v0 = vld [vmem:[%s8790_s3 + $0x828] ss:$12 sps:$4 sm:$0xff]  }
 0x1aa   :  { %v2563_v30 = vmul.f32 %v2539_v48, %v8112_v35  ;;  %v8208_v51 = vpack.c.bf16 %v2562_v25, %v2550_v31  ;;  %v6425_v35 = vld [vmem:[%s8790_s3 + $0x648] ss:$12 sps:$4 sm:$0xff]   ;;  %v6482_v48 = vld [vmem:[%s8790_s3 + $0x780] ss:$12 sps:$4 sm:$0xff]   ;;  %v6457_v25 = vld [vmem:[%s8790_s3 + $0x724] ss:$12 sps:$4 sm:$0xff]  }
 0x1ab   :  { %4694 = vmatpush1.bf16.msra.mxu0 %v6419_v24 }
 0x1ac   :  { %v8200_v32 = vpack.c.bf16 %v2563_v30, %v2551_v29  ;;  %4695 = vmatprep.subr.bf16.mxu0 %v6424_v26  ;;  %v6487_v26 = vld [vmem:[%s8790_s3 + $0x8ec] ss:$12 sps:$4 sm:$0xff]  }
 0x1ae   :  { %4678 = vmatprep.mubr.bf16.mxu1 %v8200_v32 }
 0x1af   :  { %4679 = vmatmul.mubr.bf16.vlgmr.msra.gmra.mxu1 %v8208_v51  ;;  %4696 = vmatpush1.bf16.msra.mxu0 %v6422_v33 }
 0x1b0   :  { %4733 = vmatpush1.bf16.msra.mxu1 %v6440_v0  ;;  %4697 = vmatprep.subr.bf16.mxu0 %v6427_v56  ;;  %v2263_v0 = vpop.f32.mrf.mxu1 }
 0x1b1   :  { %4734 = vmatprep.subr.bf16.mxu1 %v6448_v45 }
 0x1b3   :  { %4698 = vmatpush1.bf16.msra.mxu0 %v6425_v35 }
 0x1b4   :  { %4735 = vmatpush1.bf16.msra.mxu1 %v6446_v34  ;;  %4699 = vmatprep.subr.bf16.mxu0 %v6430_v39  ;;  %v6455_v39 = vld [vmem:[%s8790_s3 + $0x720] ss:$12 sps:$4 sm:$0xff]  }
 0x1b5   :  { %4736 = vmatprep.subr.bf16.mxu1 %v6454_v37  ;;  %v6485_v37 = vld [vmem:[%s8790_s3 + $0x8e8] ss:$12 sps:$4 sm:$0xff]  }
 0x1b7   :  { %4700 = vmatpush1.bf16.msra.mxu0 %v6428_v41  ;;  %v6463_v41 = vld [vmem:[%s8790_s3 + $0x70c] ss:$12 sps:$4 sm:$0xff]  }
 0x1b8   :  { %4737 = vmatpush1.bf16.msra.mxu1 %v6452_v28  ;;  %4701 = vmatprep.subr.bf16.mxu0 %v6433_v17  ;;  %v6492_v28 = vld [vmem:[%s8790_s3 + $0x8d4] ss:$12 sps:$4 sm:$0xff]  }
 0x1b9   :  { %4738 = vmatprep.subr.bf16.mxu1 %v6460_v1 }
 0x1bb   :  { %4702 = vmatpush1.bf16.msra.mxu0 %v6431_v42 }
 0x1bc   :  { %4739 = vmatpush1.bf16.msra.mxu1 %v6458_v46  ;;  %4703 = vmatprep.subr.bf16.mxu0 %v6436_v47  ;;  %v6461_v47 = vld [vmem:[%s8790_s3 + $0x708] ss:$12 sps:$4 sm:$0xff]  }
 0x1bd   :  { %4740 = vmatprep.subr.bf16.mxu1 %v6466_v20 }
 0x1bf   :  { %4704 = vmatpush1.bf16.msra.mxu0 %v6434_v50 }
 0x1c0   :  { %4741 = vmatpush1.bf16.msra.mxu1 %v6464_v53  ;;  %4705 = vmatprep.subr.bf16.mxu0 %v6439_v54 }
 0x1c1   :  { %4742 = vmatprep.subr.bf16.mxu1 %v6472_v55  ;;  %v6490_v55 = vld [vmem:[%s8790_s3 + $0x8d0] ss:$12 sps:$4 sm:$0xff]  }
 0x1c2   :  { %v2214_v43 = vpop.f32.mrf.mxu0 }
 0x1c3   :  { %v2215_v52 = vadd.f32 %v2214_v43, %v355_v58  ;;  %4706 = vmatpush2.bf16.msra.mxu0 %v6437_v59  ;;  %v6495_v43 = vld [vmem:[%s8790_s3 + $0x8b8] ss:$12 sps:$4 sm:$0xff]  }
 0x1c4   :  { %4743 = vmatpush1.bf16.msra.mxu1 %v6470_v60  ;;  %v2216_v8 = vpop.f32.mrf.mxu0  ;;  %4707 = vmatprep.subr.bf16.mxu0 %v6445_v61 }
 0x1c5   :  { %4744 = vmatprep.subr.bf16.mxu1 %v6478_v62  ;;  %v8299_v44 = vadd.f32 %v2257_v57, %v2215_v52  ;;  %v2217_v12 = vadd.f32 %v2216_v8, %v359_v63  ;;  %v6469_v57 = vld [vmem:[%s8790_s3 + $0x6f4] ss:$12 sps:$4 sm:$0xff]   ;;  %v6475_v52 = vld [vmem:[%s8790_s3 + $0x6dc] ss:$12 sps:$4 sm:$0xff]   ;;  %v6473_v8 = vld [vmem:[%s8790_s3 + $0x6d8] ss:$12 sps:$4 sm:$0xff]  }
 0x1c6   :  { %v2218_v16 = vpop.f32.mrf.mxu0 }
 0x1c7   :  { %v2360_v38 = vmul.f32 %v8299_v44, %v8299_v44  ;;  %v8303_v18 = vadd.f32 %v2259_v3, %v2217_v12  ;;  %v2219_v21 = vadd.f32 %v2218_v16, %v355_v58  ;;  %4708 = vmatpush2.bf16.msra.mxu0 %v6443_v40  ;;  %v6497_v58 = vld [vmem:[%s8790_s3 + $0x8bc] ss:$12 sps:$4 sm:$0xff]   ;;  %v6502_v40 = vld [vmem:[%s8790_s3 + $0x8a4] ss:$12 sps:$4 sm:$0xff]   ;;  %v6507_v12 = vld [vmem:[%s8790_s3 + $0x88c] ss:$12 sps:$4 sm:$0xff]  }
 0x1c8   :  { %4745 = vmatpush1.bf16.msra.mxu1 %v6476_v49  ;;  %v2220_v24 = vpop.f32.mrf.mxu0  ;;  %4709 = vmatprep.subr.bf16.mxu0 %v6451_v10  ;;  %v6467_v3 = vld [vmem:[%s8790_s3 + $0x6f0] ss:$12 sps:$4 sm:$0xff]   ;;  %v6500_v10 = vld [vmem:[%s8790_s3 + $0x8a0] ss:$12 sps:$4 sm:$0xff]   ;;  %v6505_v16 = vld [vmem:[%s8790_s3 + $0x888] ss:$12 sps:$4 sm:$0xff]  }
 0x1c9   :  { %4746 = vmatprep.subr.bf16.mxu1 %v6484_v11  ;;  %v2384_v29 = vmul.f32 %v2360_v38, %v8299_v44  ;;  %v2361_v30 = vmul.f32 %v8303_v18, %v8303_v18  ;;  %v8320_v31 = vadd.f32 %v2261_v13, %v2219_v21  ;;  %v2221_v33 = vadd.f32 %v2220_v24, %v359_v63  ;;  %v6481_v11 = vld [vmem:[%s8790_s3 + $0x6c4] ss:$12 sps:$4 sm:$0xff]   ;;  %v6479_v13 = vld [vmem:[%s8790_s3 + $0x6c0] ss:$12 sps:$4 sm:$0xff]  }
 0x1ca   :  { %v6488_v38 = vld [vmem:[%s8790_s3 + $0x170] ss:$12 sps:$4 sm:$0xff]   ;;  %v6512_v21 = vld [vmem:[%s8790_s3 + $0x874] ss:$12 sps:$4 sm:$0xff]  }
 0x1cb   :  { %v2408_v56 = vmul.f32 0.044715, %v2384_v29  ;;  %v2385_v45 = vmul.f32 %v2361_v30, %v8303_v18  ;;  %v2372_v35 = vmul.f32 %v8320_v31, %v8320_v31  ;;  %v8325_v34 = vadd.f32 %v2263_v0, %v2221_v33  ;;  %4710 = vmatpush2.bf16.msra.mxu0 %v6449_v22  ;;  %v6510_v24 = vld [vmem:[%s8790_s3 + $0x870] ss:$12 sps:$4 sm:$0xff]  }
 0x1cc   :  { %4747 = vmatpush1.bf16.msra.mxu1 %v6482_v48  ;;  %4711 = vmatprep.subr.bf16.mxu0 %v6457_v25  ;;  %v363_v48 = vrot.slane %v8263_v36, %v7651_v14  ;;  %v367_v29 = vrot.slane %v8263_v36, %v334_v6 }
 0x1cd   :  { %4748 = vmatprep.subr.bf16.mxu1 %v6487_v26  ;;  %v2432_v17 = vadd.f32 %v2408_v56, %v8299_v44  ;;  %v2409_v1 = vmul.f32 0.044715, %v2385_v45  ;;  %v2396_v42 = vmul.f32 %v2372_v35, %v8320_v31  ;;  %v2373_v46 = vmul.f32 %v8325_v34, %v8325_v34  ;;  %v6517_v26 = vld [vmem:[%s8790_s3 + $0x85c] ss:$12 sps:$4 sm:$0xff]  }
 0x1cf   :  { %v2456_v20 = vmul.f32 0.7978846, %v2432_v17  ;;  %v2433_v50 = vadd.f32 %v2409_v1, %v8303_v18  ;;  %v2420_v53 = vmul.f32 0.044715, %v2396_v42  ;;  %v2397_v54 = vmul.f32 %v2373_v46, %v8325_v34  ;;  %4712 = vmatpush2.bf16.msra.mxu0 %v6455_v39 }
 0x1d0   :  { %4749 = vmatpush2.bf16.msra.mxu1 %v6485_v37  ;;  %4713 = vmatprep.subr.bf16.mxu0 %v6463_v41  ;;  %v6515_v37 = vld [vmem:[%s8790_s3 + $0x858] ss:$12 sps:$4 sm:$0xff]  }
 0x1d1   :  { %4750 = vmatprep.subr.bf16.mxu1 %v6492_v28  ;;  %v2457_v59 = vmul.f32 0.7978846, %v2433_v50  ;;  %v2444_v60 = vadd.f32 %v2420_v53, %v8320_v31  ;;  %v2421_v61 = vmul.f32 0.044715, %v2397_v54  ;;  %6637 = vtanh.f32 %v2456_v20 }
 0x1d3   :  { %6639 = vtanh.f32 %v2457_v59  ;;  %v2468_v62 = vmul.f32 0.7978846, %v2444_v60  ;;  %v2445_v63 = vadd.f32 %v2421_v61, %v8325_v34  ;;  %4714 = vmatpush2.bf16.msra.mxu0 %v6461_v47  ;;  %v6525_v61 = vld [vmem:[%s8790_s3 + $0x2f0] ss:$12 sps:$4 sm:$0xff]  }
 0x1d4   :  { %4751 = vmatpush2.bf16.msra.mxu1 %v6490_v55  ;;  %4715 = vmatprep.subr.bf16.mxu0 %v6469_v57 }
 0x1d5   :  { %4752 = vmatprep.subr.bf16.mxu1 %v6497_v58  ;;  %6641 = vtanh.f32 %v2468_v62  ;;  %v2469_v49 = vmul.f32 0.7978846, %v2445_v63  ;;  %v6520_v58 = vld [vmem:[%s8790_s3 + $0x840] ss:$12 sps:$4 sm:$0xff]  }
 0x1d7   :  { %6643 = vtanh.f32 %v2469_v49  ;;  %4716 = vmatpush2.bf16.msra.mxu0 %v6467_v3 }
 0x1d8   :  { %4753 = vmatpush2.bf16.msra.mxu1 %v6495_v43  ;;  %4717 = vmatprep.subr.bf16.mxu0 %v6475_v52 }
 0x1d9   :  { %4754 = vmatprep.subr.bf16.mxu1 %v6502_v40 }
 0x1db   :  { %4718 = vmatpush2.bf16.msra.mxu0 %v6473_v8 }
 0x1dc   :  { %4755 = vmatpush2.bf16.msra.mxu1 %v6500_v10  ;;  %4719 = vmatprep.subr.bf16.mxu0 %v6481_v11 }
 0x1dd   :  { %4756 = vmatprep.subr.bf16.mxu1 %v6507_v12 }
 0x1de   :  { %v6638_v22 = vpop.eup %6637 }
 0x1df   :  { %4720 = vmatpush2.bf16.msra.mxu0 %v6479_v13  ;;  %v2504_v45 = vadd.f32 1.0, %v6638_v22  ;;  %v6493_v22 = vld [vmem:[%s8790_s3 + $0x158] ss:$12 sps:$4 sm:$0xff]  }
 0x1e0   :  { %4757 = vmatpush2.bf16.msra.mxu1 %v6505_v16  ;;  %v6640_v25 = vpop.eup %6639  ;;  %5652 = vmatprep.subr.bf16.mxu0 %v6488_v38 }
 0x1e1   :  { %4758 = vmatprep.subr.bf16.mxu1 %v6512_v21  ;;  %v2505_v56 = vadd.f32 1.0, %v6640_v25  ;;  %v2528_v20 = vmul.f32 0.5, %v2504_v45 }
 0x1e2   :  { %v6642_v30 = vpop.eup %6641  ;;  %v2343_v0 = vpop.f32.mrf.mxu0 }
 0x1e3   :  { %v2300_v33 = vpop.f32.mrf.mxu1  ;;  %v2516_v39 = vadd.f32 1.0, %v6642_v30  ;;  %v2529_v47 = vmul.f32 0.5, %v2505_v56  ;;  %v6498_v56 = vld [vmem:[%s8790_s3 + $0x140] ss:$12 sps:$4 sm:$0xff]  }
 0x1e4   :  { %v2301_v35 = vadd.f32 %v2300_v33, %v363_v48  ;;  %4759 = vmatpush2.bf16.msra.mxu1 %v6510_v24  ;;  %v6644_v41 = vpop.eup %6643  ;;  %v2345_v17 = vpop.f32.mrf.mxu0 }
 0x1e5   :  { %v2302_v28 = vpop.f32.mrf.mxu1  ;;  %4760 = vmatprep.subr.bf16.mxu1 %v6517_v26  ;;  %v2517_v1 = vadd.f32 1.0, %v6644_v41  ;;  %v2540_v50 = vmul.f32 0.5, %v2516_v39  ;;  %v2553_v40 = vmul.f32 %v2529_v47, %v8303_v18  ;;  %v6489_v18 = vld [vmem:[%s8790_s3 + $0xb0] ss:$12 sps:$4 sm:$0xff]   ;;  %v6504_v41 = vld [vmem:[%s8790_s3 + $0x68] ss:$12 sps:$4 sm:$0xff]  }
 0x1e6   :  { %v8412_v6 = vadd.f32 %v2343_v0, %v2301_v35  ;;  %v2303_v36 = vadd.f32 %v2302_v28, %v367_v29  ;;  %v2347_v46 = vpop.f32.mrf.mxu0  ;;  %v6508_v28 = vld [vmem:[%s8790_s3 + $0x110] ss:$12 sps:$4 sm:$0xff]  }
 0x1e7   :  { %v2304_v42 = vpop.f32.mrf.mxu1  ;;  %v2541_v57 = vmul.f32 0.5, %v2517_v1  ;;  %v2564_v60 = vmul.f32 %v2540_v50, %v8320_v31  ;;  %v2552_v31 = vmul.f32 %v2528_v20, %v8299_v44 }
 0x1e8   :  { %v2362_v53 = vmul.f32 %v8412_v6, %v8412_v6  ;;  %v8416_v54 = vadd.f32 %v2345_v17, %v2303_v36  ;;  %v2305_v55 = vadd.f32 %v2304_v42, %v363_v48  ;;  %4761 = vmatpush2.bf16.msra.mxu1 %v6515_v37  ;;  %v2349_v52 = vpop.f32.mrf.mxu0  ;;  %v6503_v37 = vld [vmem:[%s8790_s3 + $0x128] ss:$12 sps:$4 sm:$0xff]   ;;  %v6509_v17 = vld [vmem:[%s8790_s3 + $0x50] ss:$12 sps:$4 sm:$0xff]   ;;  %v6514_v42 = vld [vmem:[%s8790_s3 + $0x38] ss:$12 sps:$4 sm:$0xff]  }
 0x1e9   :  { %v2306_v59 = vpop.f32.mrf.mxu1  ;;  %4762 = vmatprep.subr.bf16.mxu1 %v6522_v15  ;;  %v2565_v49 = vmul.f32 %v2541_v57, %v8325_v34  ;;  %v8440_v16 = vpack.c.bf16 %v2564_v60, %v2552_v31  ;;  %v6513_v15 = vld [vmem:[%s8790_s3 + $0xf8] ss:$12 sps:$4 sm:$0xff]   ;;  %v6519_v57 = vld [vmem:[%s8790_s3 + $0x20] ss:$12 sps:$4 sm:$0xff]   ;;  %v6526_v31 = vld [vmem:[%s8790_s3 + $0x470] ss:$12 sps:$4 sm:$0xff]  }
 0x1ea   :  { %v2386_v62 = vmul.f32 %v2362_v53, %v8412_v6  ;;  %v2363_v63 = vmul.f32 %v8416_v54, %v8416_v54  ;;  %v8428_v3 = vadd.f32 %v2347_v46, %v2305_v55  ;;  %v2307_v43 = vadd.f32 %v2306_v59, %v367_v29  ;;  %v6494_v29 = vld [vmem:[%s8790_s3 + $0x98] ss:$12 sps:$4 sm:$0xff]   ;;  %v6518_v46 = vld [vmem:[%s8790_s3 + $0xe0] ss:$12 sps:$4 sm:$0xff]   ;;  %v6523_v59 = vld [vmem:[%s8790_s3 + $0xc8] ss:$12 sps:$4 sm:$0xff]  }
 0x1eb   :  { %v8438_v13 = vpack.c.bf16 %v2565_v49, %v2553_v40 }
 0x1ec   :  { %v2410_v8 = vmul.f32 0.044715, %v2386_v62  ;;  %v2387_v10 = vmul.f32 %v2363_v63, %v8416_v54  ;;  %v2374_v11 = vmul.f32 %v8428_v3, %v8428_v3  ;;  %v8436_v12 = vadd.f32 %v2349_v52, %v2307_v43  ;;  %4763 = vmatpush2.bf16.msra.mxu1 %v6520_v58  ;;  %v6524_v52 = vld [vmem:[%s8790_s3 + $0x8] ss:$12 sps:$4 sm:$0xff]  }
 0x1ed   :  { %5674 = vmatprep.subr.bf16.mxu1 %v6525_v61  ;;  %4721 = vmatprep.mubr.bf16.mxu0 %v8438_v13 }
 0x1ee   :  { %v2434_v44 = vadd.f32 %v2410_v8, %v8412_v6  ;;  %v2411_v34 = vmul.f32 0.044715, %v2387_v10  ;;  %v2398_v38 = vmul.f32 %v2374_v11, %v8428_v3  ;;  %v2375_v21 = vmul.f32 %v8436_v12, %v8436_v12  ;;  %4722 = vmatmul.mubr.bf16.vlgmr.msra.gmra.mxu0 %v8440_v16 }
 0x1ef   :  { %5653 = vmatpush3.bf16.msra.mxu0 %v6489_v18  ;;  %4807 = vmatprep.mubr.bf16.mxu0 %v7735_v7  ;;  %v6499_v7 = vld [vmem:[%s8790_s3 + $0x80] ss:$12 sps:$4 sm:$0xff]   ;;  %v6531_v18 = vld [vmem:[%s8790_s3 + $0x218] ss:$12 sps:$4 sm:$0xff]  }
 0x1f0   :  { %v2458_v48 = vmul.f32 0.7978846, %v2434_v44  ;;  %v2435_v24 = vadd.f32 %v2411_v34, %v8416_v54  ;;  %v2422_v25 = vmul.f32 0.044715, %v2398_v38  ;;  %v2399_v26 = vmul.f32 %v2375_v21, %v8436_v12  ;;  %5654 = vmatprep.subr.bf16.mxu0 %v6493_v22  ;;  %v6532_v44 = vld [vmem:[%s8790_s3 + $0x398] ss:$12 sps:$4 sm:$0xff]  }
 0x1f1   :  { %v6533_v34 = vld [vmem:[%s8790_s3 + $0x2c0] ss:$12 sps:$4 sm:$0xff]   ;;  %v6538_v21 = vld [vmem:[%s8790_s3 + $0x428] ss:$12 sps:$4 sm:$0xff]  }
 0x1f2   :  { %v2459_v30 = vmul.f32 0.7978846, %v2435_v24  ;;  %v2446_v33 = vadd.f32 %v2422_v25, %v8428_v3  ;;  %v2423_v0 = vmul.f32 0.044715, %v2399_v26  ;;  %6645 = vtanh.f32 %v2458_v48  ;;  %v6536_v38 = vld [vmem:[%s8790_s3 + $0x380] ss:$12 sps:$4 sm:$0xff]  }
 0x1f3   :  { %5655 = vmatpush3.bf16.msra.mxu0 %v6494_v29  ;;  %v6539_v22 = vld [vmem:[%s8790_s3 + $0x1e8] ss:$12 sps:$4 sm:$0xff]   ;;  %v6541_v24 = vld [vmem:[%s8790_s3 + $0x290] ss:$12 sps:$4 sm:$0xff]  }
 0x1f4   :  { %6647 = vtanh.f32 %v2459_v30  ;;  %v2470_v45 = vmul.f32 0.7978846, %v2446_v33  ;;  %v2447_v35 = vadd.f32 %v2423_v0, %v8436_v12  ;;  %5656 = vmatprep.subr.bf16.mxu0 %v6498_v56  ;;  %v6540_v48 = vld [vmem:[%s8790_s3 + $0x368] ss:$12 sps:$4 sm:$0xff]   ;;  %v6542_v25 = vld [vmem:[%s8790_s3 + $0x410] ss:$12 sps:$4 sm:$0xff]  }
 0x1f5   :  { %v6543_v26 = vld [vmem:[%s8790_s3 + $0x1d0] ss:$12 sps:$4 sm:$0xff]   ;;  %v6545_v30 = vld [vmem:[%s8790_s3 + $0x278] ss:$12 sps:$4 sm:$0xff]  }
 0x1f6   :  { %6649 = vtanh.f32 %v2470_v45  ;;  %v2471_v39 = vmul.f32 0.7978846, %v2447_v35  ;;  %v6544_v29 = vld [vmem:[%s8790_s3 + $0x350] ss:$12 sps:$4 sm:$0xff]   ;;  %v6546_v33 = vld [vmem:[%s8790_s3 + $0x3f8] ss:$12 sps:$4 sm:$0xff]  }
 0x1f7   :  { %5657 = vmatpush3.bf16.msra.mxu0 %v6499_v7  ;;  %v6547_v0 = vld [vmem:[%s8790_s3 + $0x1b8] ss:$12 sps:$4 sm:$0xff]   ;;  %v6549_v45 = vld [vmem:[%s8790_s3 + $0x260] ss:$12 sps:$4 sm:$0xff]  }
 0x1f8   :  { %6651 = vtanh.f32 %v2471_v39  ;;  %5658 = vmatprep.subr.bf16.mxu0 %v6503_v37  ;;  %v6548_v56 = vld [vmem:[%s8790_s3 + $0x338] ss:$12 sps:$4 sm:$0xff]   ;;  %v6550_v35 = vld [vmem:[%s8790_s3 + $0x3e0] ss:$12 sps:$4 sm:$0xff]   ;;  %v6553_v37 = vld [vmem:[%s8790_s3 + $0x248] ss:$12 sps:$4 sm:$0xff]  }
 0x1f9   :  { %v6551_v7 = vld [vmem:[%s8790_s3 + $0x1a0] ss:$12 sps:$4 sm:$0xff]  }
 0x1fa   :  { %v6552_v39 = vld [vmem:[%s8790_s3 + $0x320] ss:$12 sps:$4 sm:$0xff]  }
 0x1fb   :  { %5659 = vmatpush3.bf16.msra.mxu0 %v6504_v41  ;;  %v6554_v41 = vld [vmem:[%s8790_s3 + $0x3c8] ss:$12 sps:$4 sm:$0xff]  }
 0x1fc   :  { %5660 = vmatprep.subr.bf16.mxu0 %v6508_v28  ;;  %v6555_v28 = vld [vmem:[%s8790_s3 + $0x188] ss:$12 sps:$4 sm:$0xff]  }
 0x1ff   :  { %v6646_v36 = vpop.eup %6645  ;;  %5661 = vmatpush3.bf16.msra.mxu0 %v6509_v17  ;;  %v6556_v17 = vld [vmem:[%s8790_s3 + $0x308] ss:$12 sps:$4 sm:$0xff]  }
 0x200   :  { %5662 = vmatprep.subr.bf16.mxu0 %v6513_v15  ;;  %v2506_v50 = vadd.f32 1.0, %v6646_v36  ;;  %v6557_v15 = vld [vmem:[%s8790_s3 + $0x5f0] ss:$12 sps:$4 sm:$0xff]  }
 0x201   :  { %v6648_v1 = vpop.eup %6647  ;;  %v6558_v36 = vld [vmem:[%s8790_s3 + $0x770] ss:$12 sps:$4 sm:$0xff]  }
 0x202   :  { %v2507_v47 = vadd.f32 1.0, %v6648_v1  ;;  %v2530_v62 = vmul.f32 0.5, %v2506_v50  ;;  %v6559_v1 = vld [vmem:[%s8790_s3 + $0x530] ss:$12 sps:$4 sm:$0xff]   ;;  %v6564_v50 = vld [vmem:[%s8790_s3 + $0x698] ss:$12 sps:$4 sm:$0xff]  }
 0x203   :  { %v6650_v20 = vpop.eup %6649  ;;  %5663 = vmatpush3.bf16.msra.mxu0 %v6514_v42  ;;  %v6560_v42 = vld [vmem:[%s8790_s3 + $0x6b0] ss:$12 sps:$4 sm:$0xff]  }
 0x204   :  { %v2518_v53 = vadd.f32 1.0, %v6650_v20  ;;  %5664 = vmatprep.subr.bf16.mxu0 %v6518_v46  ;;  %v2531_v61 = vmul.f32 0.5, %v2507_v47  ;;  %v2554_v8 = vmul.f32 %v2530_v62, %v8412_v6  ;;  %v6529_v6 = vld [vmem:[%s8790_s3 + $0x2d8] ss:$12 sps:$4 sm:$0xff]   ;;  %v6576_v62 = vld [vmem:[%s8790_s3 + $0x650] ss:$12 sps:$4 sm:$0xff]  }
 0x205   :  { %v6652_v55 = vpop.eup %6651  ;;  %v6561_v46 = vld [vmem:[%s8790_s3 + $0x5d8] ss:$12 sps:$4 sm:$0xff]  }
 0x206   :  { %v2542_v58 = vmul.f32 0.5, %v2518_v53  ;;  %v2519_v60 = vadd.f32 1.0, %v6652_v55  ;;  %v2555_v40 = vmul.f32 %v2531_v61, %v8416_v54  ;;  %v6528_v54 = vld [vmem:[%s8790_s3 + $0x3b0] ss:$12 sps:$4 sm:$0xff]   ;;  %v6562_v47 = vld [vmem:[%s8790_s3 + $0x758] ss:$12 sps:$4 sm:$0xff]  }
 0x207   :  { %5665 = vmatpush3.bf16.msra.mxu0 %v6519_v57  ;;  %v6563_v20 = vld [vmem:[%s8790_s3 + $0x518] ss:$12 sps:$4 sm:$0xff]   ;;  %v6568_v53 = vld [vmem:[%s8790_s3 + $0x680] ss:$12 sps:$4 sm:$0xff]   ;;  %v6570_v55 = vld [vmem:[%s8790_s3 + $0x728] ss:$12 sps:$4 sm:$0xff]  }
 0x208   :  { %v2543_v63 = vmul.f32 0.5, %v2519_v60  ;;  %v2566_v43 = vmul.f32 %v2542_v58, %v8428_v3  ;;  %5666 = vmatprep.subr.bf16.mxu0 %v6523_v59  ;;  %v6527_v3 = vld [vmem:[%s8790_s3 + $0x230] ss:$12 sps:$4 sm:$0xff]   ;;  %v6571_v57 = vld [vmem:[%s8790_s3 + $0x4e8] ss:$12 sps:$4 sm:$0xff]  }
 0x209   :  { %v6572_v58 = vld [vmem:[%s8790_s3 + $0x668] ss:$12 sps:$4 sm:$0xff]   ;;  %v6573_v59 = vld [vmem:[%s8790_s3 + $0x590] ss:$12 sps:$4 sm:$0xff]  }
 0x20a   :  { %v2567_v49 = vmul.f32 %v2543_v63, %v8436_v12  ;;  %v8510_v11 = vpack.c.bf16 %v2566_v43, %v2554_v8  ;;  %v6530_v12 = vld [vmem:[%s8790_s3 + $0x458] ss:$12 sps:$4 sm:$0xff]   ;;  %v6574_v60 = vld [vmem:[%s8790_s3 + $0x710] ss:$12 sps:$4 sm:$0xff]   ;;  %v6583_v8 = vld [vmem:[%s8790_s3 + $0x4a0] ss:$12 sps:$4 sm:$0xff]  }
 0x20b   :  { %5667 = vmatpush3.bf16.msra.mxu0 %v6524_v52  ;;  %v6575_v61 = vld [vmem:[%s8790_s3 + $0x4d0] ss:$12 sps:$4 sm:$0xff]   ;;  %v6577_v63 = vld [vmem:[%s8790_s3 + $0x578] ss:$12 sps:$4 sm:$0xff]  }
 0x20c   :  { %v8505_v10 = vpack.c.bf16 %v2567_v49, %v2555_v40  ;;  %5696 = vmatprep.subr.bf16.mxu0 %v6526_v31  ;;  %v6578_v43 = vld [vmem:[%s8790_s3 + $0x6f8] ss:$12 sps:$4 sm:$0xff]   ;;  %v6581_v49 = vld [vmem:[%s8790_s3 + $0x560] ss:$12 sps:$4 sm:$0xff]  }
 0x20d   :  { %v6579_v52 = vld [vmem:[%s8790_s3 + $0x4b8] ss:$12 sps:$4 sm:$0xff]   ;;  %v6582_v31 = vld [vmem:[%s8790_s3 + $0x6e0] ss:$12 sps:$4 sm:$0xff]  }
 0x20e   :  { %4764 = vmatprep.mubr.bf16.mxu1 %v8505_v10  ;;  %4808 = vmatmul.mubr.bf16.vlgmr.msra.gmra.mxu0 %v7923_v2  ;;  %v6534_v2 = vld [vmem:[%s8790_s3 + $0x440] ss:$12 sps:$4 sm:$0xff]   ;;  %v6580_v40 = vld [vmem:[%s8790_s3 + $0x638] ss:$12 sps:$4 sm:$0xff]  }
 0x20f   :  { %4765 = vmatmul.mubr.bf16.vlgmr.msra.gmra.mxu1 %v8510_v11  ;;  %5697 = vmatpush3.bf16.msra.mxu0 %v6528_v54  ;;  %v6585_v54 = vld [vmem:[%s8790_s3 + $0x548] ss:$12 sps:$4 sm:$0xff]  }
 0x210   :  { %5675 = vmatpush3.bf16.msra.mxu1 %v6527_v3  ;;  %4889 = vmatprep.mubr.bf16.mxu0 %v8114_v4  ;;  %v6535_v4 = vld [vmem:[%s8790_s3 + $0x200] ss:$12 sps:$4 sm:$0xff]  }
 0x211   :  { %4848 = vmatprep.mubr.bf16.mxu1 %v7848_v23  ;;  %5676 = vmatprep.subr.bf16.mxu1 %v6529_v6  ;;  %v6537_v23 = vld [vmem:[%s8790_s3 + $0x2a8] ss:$12 sps:$4 sm:$0xff]   ;;  %v6584_v3 = vld [vmem:[%s8790_s3 + $0x620] ss:$12 sps:$4 sm:$0xff]  }
 0x212   :  { %5698 = vmatprep.subr.bf16.mxu0 %v6530_v12  ;;  %v6586_v6 = vld [vmem:[%s8790_s3 + $0x6c8] ss:$12 sps:$4 sm:$0xff]  }
 0x213   :  { %5699 = vmatpush3.bf16.msra.mxu0 %v6532_v44  ;;  %v6587_v12 = vld [vmem:[%s8790_s3 + $0x488] ss:$12 sps:$4 sm:$0xff]   ;;  %v6589_v44 = vld [vmem:[%s8790_s3 + $0x8f0] ss:$12 sps:$4 sm:$0xff]  }
 0x214   :  { %5677 = vmatpush3.bf16.msra.mxu1 %v6531_v18  ;;  %5700 = vmatprep.subr.bf16.mxu0 %v6534_v2  ;;  %v6588_v18 = vld [vmem:[%s8790_s3 + $0x608] ss:$12 sps:$4 sm:$0xff]   ;;  %v6591_v2 = vld [vmem:[%s8790_s3 + $0x8d8] ss:$12 sps:$4 sm:$0xff]  }
 0x215   :  { %5678 = vmatprep.subr.bf16.mxu1 %v6533_v34  ;;  %v6590_v34 = vld [vmem:[%s8790_s3 + $0x830] ss:$12 sps:$4 sm:$0xff]  }
 0x217   :  { %5701 = vmatpush3.bf16.msra.mxu0 %v6536_v38  ;;  %v6593_v38 = vld [vmem:[%s8790_s3 + $0x8c0] ss:$12 sps:$4 sm:$0xff]  }
 0x218   :  { %5679 = vmatpush3.bf16.msra.mxu1 %v6535_v4  ;;  %5702 = vmatprep.subr.bf16.mxu0 %v6538_v21  ;;  %v6592_v4 = vld [vmem:[%s8790_s3 + $0x818] ss:$12 sps:$4 sm:$0xff]   ;;  %v6598_v21 = vld [vmem:[%s8790_s3 + $0x7d0] ss:$12 sps:$4 sm:$0xff]  }
 0x219   :  { %5680 = vmatprep.subr.bf16.mxu1 %v6537_v23  ;;  %v6594_v23 = vld [vmem:[%s8790_s3 + $0x800] ss:$12 sps:$4 sm:$0xff]  }
 0x21b   :  { %5703 = vmatpush3.bf16.msra.mxu0 %v6540_v48  ;;  %v6600_v48 = vld [vmem:[%s8790_s3 + $0x7b8] ss:$12 sps:$4 sm:$0xff]  }
 0x21c   :  { %5681 = vmatpush3.bf16.msra.mxu1 %v6539_v22  ;;  %5704 = vmatprep.subr.bf16.mxu0 %v6542_v25  ;;  %v6599_v22 = vld [vmem:[%s8790_s3 + $0x878] ss:$12 sps:$4 sm:$0xff]   ;;  %v6602_v25 = vld [vmem:[%s8790_s3 + $0x7a0] ss:$12 sps:$4 sm:$0xff]  }
 0x21d   :  { %5682 = vmatprep.subr.bf16.mxu1 %v6541_v24  ;;  %v6601_v24 = vld [vmem:[%s8790_s3 + $0x860] ss:$12 sps:$4 sm:$0xff]  }
 0x21f   :  { %5705 = vmatpush3.bf16.msra.mxu0 %v6544_v29  ;;  %v6604_v29 = vld [vmem:[%s8790_s3 + $0x788] ss:$12 sps:$4 sm:$0xff]  }
 0x220   :  { %5683 = vmatpush3.bf16.msra.mxu1 %v6543_v26  ;;  %5706 = vmatprep.subr.bf16.mxu0 %v6546_v33  ;;  %v6603_v26 = vld [vmem:[%s8790_s3 + $0x848] ss:$12 sps:$4 sm:$0xff]  }
 0x221   :  { %5684 = vmatprep.subr.bf16.mxu1 %v6545_v30 }
 0x222   :  { %v4551_v30 = vpop.f32.mrf.mxu0 }
 0x223   :  { %5707 = vmatpush3.bf16.msra.mxu0 %v6548_v56  ;;  %v4594_v56 = vpop.f32.mrf.mxu1 }
 0x224   :  { %5685 = vmatpush3.bf16.msra.mxu1 %v6547_v0  ;;  %5708 = vmatprep.subr.bf16.mxu0 %v6550_v35  ;;  %v4553_v33 = vpop.f32.mrf.mxu0 }
 0x225   :  { %5686 = vmatprep.subr.bf16.mxu1 %v6549_v45  ;;  %v4596_v35 = vpop.f32.mrf.mxu1 }
 0x226   :  { %v4555_v0 = vpop.f32.mrf.mxu0 }
 0x227   :  { %5709 = vmatpush3.bf16.msra.mxu0 %v6552_v39  ;;  %v4598_v39 = vpop.f32.mrf.mxu1 }
 0x228   :  { %5687 = vmatpush3.bf16.msra.mxu1 %v6551_v7  ;;  %5710 = vmatprep.subr.bf16.mxu0 %v6554_v41  ;;  %v4557_v45 = vpop.f32.mrf.mxu0  ;;  %v8759_v41 = vld [vmem:[%s8792_s4] sm:$0x7] }
 0x229   :  { %5688 = vmatprep.subr.bf16.mxu1 %v6553_v37 }
 0x22b   :  { %5711 = vmatpush3.bf16.msra.mxu0 %v6556_v17 }
 0x22c   :  { %5689 = vmatpush3.bf16.msra.mxu1 %v6555_v28  ;;  %5740 = vmatprep.subr.bf16.mxu0 %v6558_v36  ;;  %v4600_v28 = vpop.f32.mrf.mxu1  ;;  %v2973_v36 = vrot.slane %v8759_v41, %v7521_v19 }
 0x22d   :  { %5718 = vmatprep.subr.bf16.mxu1 %v6557_v15  ;;  %v2969_v15 = vrot.slane %v8759_v41, %v7636_v9  ;;  %v5021_v9 = vld [vmem:[%s8793_s5] sm:$0xff] }
 0x22e   :  { %4890 = vmatmul.mubr.bf16.vlgmr.msra.gmra.mxu0 %v8178_v27  ;;  %v6566_v27 = vld [vmem:[%s8790_s3 + $0x740] ss:$12 sps:$4 sm:$0xff]  }
 0x22f   :  { %4849 = vmatmul.mubr.bf16.vlgmr.msra.gmra.mxu1 %v7925_v5  ;;  %5741 = vmatpush3.bf16.msra.mxu0 %v6560_v42  ;;  %v6565_v5 = vld [vmem:[%s8790_s3 + $0x5c0] ss:$12 sps:$4 sm:$0xff]   ;;  %v4552_v42 = vadd.f32 %v4551_v30, %v2969_v15 }
 0x230   :  { %5719 = vmatpush3.bf16.msra.mxu1 %v6559_v1  ;;  %4930 = vmatprep.mubr.bf16.mxu1 %v8200_v32  ;;  %v6567_v32 = vld [vmem:[%s8790_s3 + $0x500] ss:$12 sps:$4 sm:$0xff]  }
 0x231   :  { %4971 = vmatprep.mubr.bf16.mxu0 %v8438_v13  ;;  %5720 = vmatprep.subr.bf16.mxu1 %v6561_v46  ;;  %v6569_v13 = vld [vmem:[%s8790_s3 + $0x5a8] ss:$12 sps:$4 sm:$0xff]  }
 0x232   :  { %5742 = vmatprep.subr.bf16.mxu0 %v6562_v47 }
 0x233   :  { %5743 = vmatpush3.bf16.msra.mxu0 %v6564_v50  ;;  %v4595_v50 = vadd.f32 %v4594_v56, %v4552_v42 }
 0x234   :  { %5721 = vmatpush3.bf16.msra.mxu1 %v6563_v20  ;;  %5744 = vmatprep.subr.bf16.mxu0 %v6566_v27  ;;  %v4554_v20 = vadd.f32 %v4553_v33, %v2973_v36 }
 0x235   :  { %5722 = vmatprep.subr.bf16.mxu1 %v6565_v5  ;;  %v4556_v5 = vadd.f32 %v4555_v0, %v2969_v15 }
 0x237   :  { %5745 = vmatpush3.bf16.msra.mxu0 %v6568_v53  ;;  %v4597_v53 = vadd.f32 %v4596_v35, %v4554_v20 }
 0x238   :  { %5723 = vmatpush3.bf16.msra.mxu1 %v6567_v32  ;;  %5746 = vmatprep.subr.bf16.mxu0 %v6570_v55 }
 0x239   :  { %5724 = vmatprep.subr.bf16.mxu1 %v6569_v13  ;;  %v4558_v13 = vadd.f32 %v4557_v45, %v2973_v36 }
 0x23b   :  { %5747 = vmatpush3.bf16.msra.mxu0 %v6572_v58 }
 0x23c   :  { %5725 = vmatpush3.bf16.msra.mxu1 %v6571_v57  ;;  %5748 = vmatprep.subr.bf16.mxu0 %v6574_v60  ;;  %v4599_v57 = vadd.f32 %v4598_v39, %v4556_v5 }
 0x23d   :  { %5726 = vmatprep.subr.bf16.mxu1 %v6573_v59 }
 0x23f   :  { %5749 = vmatpush3.bf16.msra.mxu0 %v6576_v62 }
 0x240   :  { %5727 = vmatpush3.bf16.msra.mxu1 %v6575_v61  ;;  %5750 = vmatprep.subr.bf16.mxu0 %v6578_v43  ;;  %v4601_v61 = vadd.f32 %v4600_v28, %v4558_v13 }
 0x241   :  { %5728 = vmatprep.subr.bf16.mxu1 %v6577_v63 }
 0x243   :  { %5751 = vmatpush3.bf16.msra.mxu0 %v6580_v40  ;;  %v5025_v40 = vunpack.c.l.bf16 %v5021_v9 }
 0x244   :  { %5729 = vmatpush3.bf16.msra.mxu1 %v6579_v52  ;;  %5752 = vmatprep.subr.bf16.mxu0 %v6582_v31 }
 0x245   :  { %5730 = vmatprep.subr.bf16.mxu1 %v6581_v49  ;;  %v5026_v49 = vunpack.c.h.bf16 %v5021_v9 }
 0x247   :  { %5753 = vmatpush3.bf16.msra.mxu0 %v6584_v3 }
 0x248   :  { %5731 = vmatpush3.bf16.msra.mxu1 %v6583_v8  ;;  %5754 = vmatprep.subr.bf16.mxu0 %v6586_v6  ;;  %v5023_v6 = vld [vmem:[%s8793_s5 + $0xc] sm:$0xff] }
 0x249   :  { %5732 = vmatprep.subr.bf16.mxu1 %v6585_v54 }
 0x24b   :  { %5755 = vmatpush3.bf16.msra.mxu0 %v6588_v18 }
 0x24c   :  { %5733 = vmatpush3.bf16.msra.mxu1 %v6587_v12 }
 0x24d   :  { %5762 = vmatprep.subr.bf16.mxu1 %v6589_v44 }
 0x24e   :  { %4972 = vmatmul.mubr.bf16.vlgmr.msra.gmra.mxu0 %v8440_v16  ;;  %v6596_v16 = vld [vmem:[%s8790_s3 + $0x7e8] ss:$12 sps:$4 sm:$0xff]  }
 0x24f   :  { %4931 = vmatmul.mubr.bf16.vlgmr.msra.gmra.mxu1 %v8208_v51  ;;  %v6595_v51 = vld [vmem:[%s8790_s3 + $0x8a8] ss:$12 sps:$4 sm:$0xff]  }
 0x250   :  { %5763 = vmatpush3.bf16.msra.mxu1 %v6590_v34  ;;  %5012 = vmatprep.mubr.bf16.mxu1 %v8505_v10  ;;  %v6597_v10 = vld [vmem:[%s8790_s3 + $0x890] ss:$12 sps:$4 sm:$0xff]  }
 0x251   :  { %5764 = vmatprep.subr.bf16.mxu1 %v6591_v2 }
 0x254   :  { %5765 = vmatpush3.bf16.msra.mxu1 %v6592_v4 }
 0x255   :  { %5766 = vmatprep.subr.bf16.mxu1 %v6593_v38  ;;  %v5028_v38 = vunpack.c.l.bf16 %v5023_v6 }
 0x258   :  { %5767 = vmatpush3.bf16.msra.mxu1 %v6594_v23  ;;  %v5029_v23 = vunpack.c.h.bf16 %v5023_v6 }
 0x259   :  { %5768 = vmatprep.subr.bf16.mxu1 %v6595_v51 }
 0x25c   :  { %5769 = vmatpush3.bf16.msra.mxu1 %v6596_v16 }
 0x25d   :  { %5770 = vmatprep.subr.bf16.mxu1 %v6597_v10 }
 0x260   :  { %5771 = vmatpush3.bf16.msra.mxu1 %v6598_v21 }
 0x261   :  { %5772 = vmatprep.subr.bf16.mxu1 %v6599_v22 }
 0x262   :  { %v4637_v7 = vpop.f32.mrf.mxu0 }
 0x263   :  { %v4638_v55 = vadd.f32 %v4637_v7, %v4595_v50 }
 0x264   :  { %5773 = vmatpush3.bf16.msra.mxu1 %v6600_v48  ;;  %v4639_v37 = vpop.f32.mrf.mxu0 }
 0x265   :  { %5774 = vmatprep.subr.bf16.mxu1 %v6601_v24  ;;  %v4640_v58 = vadd.f32 %v4639_v37, %v4597_v53 }
 0x266   :  { %v4641_v17 = vpop.f32.mrf.mxu0 }
 0x267   :  { %v4642_v62 = vadd.f32 %v4641_v17, %v4599_v57 }
 0x268   :  { %5775 = vmatpush3.bf16.msra.mxu1 %v6602_v25  ;;  %v4643_v1 = vpop.f32.mrf.mxu0 }
 0x269   :  { %5776 = vmatprep.subr.bf16.mxu1 %v6603_v26  ;;  %v4644_v31 = vadd.f32 %v4643_v1, %v4601_v61 }
 0x26c   :  { %5777 = vmatpush3.bf16.msra.mxu1 %v6604_v29 }
 0x26f   :  { %5013 = vmatmul.mubr.bf16.vlgmr.msra.gmra.mxu1 %v8510_v11  ;;  %v4680_v11 = vpop.f32.mrf.mxu1 }
 0x270   :  { %v4681_v59 = vadd.f32 %v4680_v11, %v4638_v55  ;;  %v2977_v11 = vrot.slane %v8759_v41, %v7651_v14 }
 0x271   :  { %v4682_v46 = vpop.f32.mrf.mxu1 }
 0x272   :  { %v4683_v63 = vadd.f32 %v4682_v46, %v4640_v58 }
 0x273   :  { %v4684_v27 = vpop.f32.mrf.mxu1 }
 0x274   :  { %v4685_v8 = vadd.f32 %v4684_v27, %v4642_v62  ;;  %v5022_v62 = vld [vmem:[%s8793_s5 + $0x8] ss:$12 sps:$4 sm:$0xff]  }
 0x275   :  { %v4686_v19 = vpop.f32.mrf.mxu1 }
 0x276   :  { %v4687_v44 = vadd.f32 %v4686_v19, %v4644_v31 }
 0x2ae   :  { %v4723_v47 = vpop.f32.mrf.mxu0 }
 0x2af   :  { %v4724_v43 = vadd.f32 %v4723_v47, %v4681_v59 }
 0x2b0   :  { %v4725_v32 = vpop.f32.mrf.mxu0 }
 0x2b1   :  { %v4726_v3 = vadd.f32 %v4725_v32, %v4683_v63 }
 0x2b2   :  { %v4727_v60 = vpop.f32.mrf.mxu0 }
 0x2b3   :  { %v4728_v34 = vadd.f32 %v4727_v60, %v4685_v8 }
 0x2b4   :  { %v4729_v12 = vpop.f32.mrf.mxu0 }
 0x2b5   :  { %v4730_v51 = vadd.f32 %v4729_v12, %v4687_v44 }
 0x2ce   :  { %v5668_v30 = vpop.f32.mrf.mxu0 }
 0x2cf   :  { %v4766_v52 = vpop.f32.mrf.mxu1 }
 0x2d0   :  { %v4767_v54 = vadd.f32 %v4766_v52, %v4724_v43  ;;  %v5669_v33 = vpop.f32.mrf.mxu0 }
 0x2d1   :  { %v4768_v18 = vpop.f32.mrf.mxu1  ;;  %v5670_v36 = vadd.f32 %v5669_v33, %v5668_v30 }
 0x2d2   :  { %v4769_v2 = vadd.f32 %v4768_v18, %v4726_v3  ;;  %v5031_v16 = vadd.f32 %v5025_v40, %v4767_v54  ;;  %v5671_v0 = vpop.f32.mrf.mxu0  ;;  %v5027_v3 = vunpack.c.l.bf16 %v5022_v62 }
 0x2d3   :  { %v4770_v4 = vpop.f32.mrf.mxu1  ;;  %v4810_v20 = vadd.f32 %v5670_v36, %v2977_v11 }
 0x2d4   :  { %v5032_v10 = vadd.f32 %v5026_v49, %v4769_v2  ;;  %v4771_v21 = vadd.f32 %v4770_v4, %v4728_v34  ;;  %v5672_v45 = vpop.f32.mrf.mxu0  ;;  %v5030_v4 = vunpack.c.h.bf16 %v5022_v62 }
 0x2d5   :  { %v4772_v22 = vpop.f32.mrf.mxu1  ;;  %v5673_v50 = vadd.f32 %v5672_v45, %v5671_v0 }
 0x2d6   :  { %v5648_v48 = vpack.c.bf16 %v5032_v10, %v5031_v16  ;;  %v4773_v24 = vadd.f32 %v4772_v22, %v4730_v51  ;;  %v5034_v25 = vadd.f32 %v5028_v38, %v4771_v21 }
 0x2d7   :  { %v4813_v13 = vadd.f32 %v5673_v50, %v2977_v11 }
 0x2d8   :  { %5057 = vst [vmem:[%s8794_s6] sm:$0xff] %v5648_v48  ;;  %v5035_v26 = vadd.f32 %v5029_v23, %v4773_v24 }
 0x2da   :  { %v5650_v29 = vpack.c.bf16 %v5035_v26, %v5034_v25 }
 0x2dc   :  { %5059 = vst [vmem:[%s8794_s6 + $0xc] sm:$0xff] %v5650_v29 }
 0x2ee   :  { %v5712_v7 = vpop.f32.mrf.mxu0 }
 0x2ef   :  { %v5690_v56 = vpop.f32.mrf.mxu1 }
 0x2f0   :  { %v5713_v37 = vpop.f32.mrf.mxu0 }
 0x2f1   :  { %v5691_v35 = vpop.f32.mrf.mxu1  ;;  %v5714_v55 = vadd.f32 %v5713_v37, %v5712_v7 }
 0x2f2   :  { %v5715_v17 = vpop.f32.mrf.mxu0  ;;  %v5692_v46 = vadd.f32 %v5691_v35, %v5690_v56 }
 0x2f3   :  { %v5693_v39 = vpop.f32.mrf.mxu1 }
 0x2f4   :  { %v5716_v1 = vpop.f32.mrf.mxu0  ;;  %v4851_v27 = vadd.f32 %v5692_v46, %v4810_v20 }
 0x2f5   :  { %v5694_v28 = vpop.f32.mrf.mxu1  ;;  %v5717_v60 = vadd.f32 %v5716_v1, %v5715_v17 }
 0x2f6   :  { %v5695_v32 = vadd.f32 %v5694_v28, %v5693_v39  ;;  %v4892_v59 = vadd.f32 %v5714_v55, %v4851_v27 }
 0x2f8   :  { %v4854_v9 = vadd.f32 %v5695_v32, %v4813_v13 }
 0x2fa   :  { %v4895_v63 = vadd.f32 %v5717_v60, %v4854_v9 }
 0x30e   :  { %v5756_v47 = vpop.f32.mrf.mxu0 }
 0x30f   :  { %v5734_v15 = vpop.f32.mrf.mxu1 }
 0x310   :  { %v5757_v53 = vpop.f32.mrf.mxu0 }
 0x311   :  { %v5735_v42 = vpop.f32.mrf.mxu1  ;;  %v5758_v43 = vadd.f32 %v5757_v53, %v5756_v47 }
 0x312   :  { %v5736_v57 = vadd.f32 %v5735_v42, %v5734_v15  ;;  %v5759_v19 = vpop.f32.mrf.mxu0 }
 0x313   :  { %v5737_v5 = vpop.f32.mrf.mxu1 }
 0x314   :  { %v4933_v14 = vadd.f32 %v5736_v57, %v4892_v59  ;;  %v5760_v52 = vpop.f32.mrf.mxu0 }
 0x315   :  { %v5738_v58 = vpop.f32.mrf.mxu1  ;;  %v5761_v6 = vadd.f32 %v5760_v52, %v5759_v19 }
 0x316   :  { %v5739_v41 = vadd.f32 %v5738_v58, %v5737_v5  ;;  %v4974_v49 = vadd.f32 %v5758_v43, %v4933_v14 }
 0x318   :  { %v4936_v31 = vadd.f32 %v5739_v41, %v4895_v63 }
 0x31a   :  { %v4977_v44 = vadd.f32 %v5761_v6, %v4936_v31 }
 0x32f   :  { %v5778_v61 = vpop.f32.mrf.mxu1 }
 0x331   :  { %v5779_v40 = vpop.f32.mrf.mxu1 }
 0x332   :  { %v5780_v8 = vadd.f32 %v5779_v40, %v5778_v61 }
 0x333   :  { %v5781_v54 = vpop.f32.mrf.mxu1 }
 0x334   :  { %v5015_v12 = vadd.f32 %v5780_v8, %v4974_v49 }
 0x335   :  { %v5782_v18 = vpop.f32.mrf.mxu1 }
 0x336   :  { %v5033_v34 = vadd.f32 %v5027_v3, %v5015_v12  ;;  %v5783_v2 = vadd.f32 %v5782_v18, %v5781_v54 }
 0x338   :  { %v5649_v38 = vpack.c.bf16 %v5033_v34, %v5033_v34  ;;  %v5018_v23 = vadd.f32 %v5783_v2, %v4977_v44 }
 0x33a   :  { %5058 = vst [vmem:[%s8794_s6 + $0x8] sm:$0xf] %v5649_v38  ;;  %v5036_v51 = vadd.f32 %v5030_v4, %v5018_v23 }
 0x33c   :  { %v5651_v16 = vpack.c.bf16 %v5036_v51, %v5036_v51 }
 0x33e   :  { %5060 = vst [vmem:[%s8794_s6 + $0x14] sm:$0xf] %v5651_v16 }

// kernel: vqa_backbone_forward.18
= control target key start
LH: loop header
LB: loop body
LE: loop exit
PB: predicated region body
PF: predicated region fallthrough
CT: control target
= control target key end

     0   :  { %vm237_vm0 = vcmask 58368   ;;  %v79_v1 = vlaneseq  ;;  %vm164_vm1 = vcmask 25600   ;;  %v1333_v51 = vmov 0   ;;  %s1729_s0 = inlined_call_operand.vmem [shape: bf16[2,4,384], index: 0, kind: input, shape index: {}]   ;;  %s1730_s1 = inlined_call_operand.vmem [shape: bf16[2,4,384], index: 1, kind: input, shape index: {}]   ;;  %s1731_s2 = inlined_call_operand.vmem [shape: bf16[2,8,384], index: 2, kind: input, shape index: {}]   ;;  %s1732_s3 = inlined_call_operand.vmem [shape: bf16[2,8,384], index: 3, kind: input, shape index: {}]   ;;  %s1733_s4 = inlined_call_operand.vmem [shape: f32[2,4], index: 4, kind: input, shape index: {}]   ;;  %s1734_s5 = inlined_call_operand.vmem [shape: f32[2,8], index: 5, kind: input, shape index: {}]   ;;  %s1735_s6 = inlined_call_operand.vmem [shape: bf16[384,384], index: 6, kind: input, shape index: {}]   ;;  %s1736_s7 = inlined_call_operand.vmem [shape: f32[1,384], index: 7, kind: input, shape index: {}]   ;;  %s1737_s8 = inlined_call_operand.vmem [shape: bf16[2,768], index: 8, kind: output, shape index: {0}]   ;;  %s1738_s9 = inlined_call_operand.hbm [shape: f32[1,1], index: 9, kind: output, shape index: {1}]  }
   0x1   :  { %v77_v0 = vld [vmem:[%s1734_s5] sm:$0x3]  ;;  %v1207_v4 = vld [vmem:[%s1735_s6 + $0xac] ss:$12 sps:$4 sm:$0xff]   ;;  %v1209_v5 = vld [vmem:[%s1735_s6 + $0xa8] ss:$12 sps:$4 sm:$0xff]   ;;  %939 = vmatprep.mubr.bf16.mxu1 %v1333_v51 }
   0x2   :  { %v78_v2 = vsub.f32 1.0, %v77_v0  ;;  %v1392_v3 = vshrl.u32 %v79_v1, 7  ;;  %v1210_v7 = vld [vmem:[%s1735_s6 + $0x94] ss:$12 sps:$4 sm:$0xff]   ;;  %866 = vmatprep.subr.bf16.mxu0 %v1207_v4  ;;  %v1212_v9 = vld [vmem:[%s1735_s6 + $0x90] ss:$12 sps:$4 sm:$0xff]  }
   0x3   :  { %867 = vmatpush1.bf16.msra.mxu0 %v1209_v5  ;;  %v1213_v11 = vld [vmem:[%s1735_s6 + $0x7c] ss:$12 sps:$4 sm:$0xff]   ;;  %v1215_v12 = vld [vmem:[%s1735_s6 + $0x78] ss:$12 sps:$4 sm:$0xff]   ;;  %v1218_v14 = vld [vmem:[%s1735_s6 + $0x60] ss:$12 sps:$4 sm:$0xff]  }
   0x4   :  { %v238_v6 = vsel %vm237_vm0, %v78_v2, 0.0  ;;  %v1404_v8 = vsub.s32 0, %v1392_v3  ;;  %868 = vmatprep.subr.bf16.mxu0 %v1210_v7  ;;  %v1216_v13 = vld [vmem:[%s1735_s6 + $0x64] ss:$12 sps:$4 sm:$0xff]   ;;  %v1231_v15 = vld [vmem:[%s1735_s6 + $0x22c] ss:$12 sps:$4 sm:$0xff]  }
   0x5   :  { %239 = vadd.xlane.f32.xlu0 %v238_v6  ;;  %v1219_v16 = vld [vmem:[%s1735_s6 + $0x4c] ss:$12 sps:$4 sm:$0xff]   ;;  %v1235_v17 = vld [vmem:[%s1735_s6 + $0x228] ss:$12 sps:$4 sm:$0xff]   ;;  %907 = vmatprep.subr.bf16.mxu1 %v1231_v15  ;;  %v1438_v20 = vsub.s32 1, %v1392_v3 }
   0x6   :  { %v184_v10 = vrot.slane %v78_v2, %v1404_v8  ;;  %v1221_v18 = vld [vmem:[%s1735_s6 + $0x48] ss:$12 sps:$4 sm:$0xff]   ;;  %908 = vmatpush1.bf16.msra.mxu1 %v1235_v17  ;;  %v1241_v22 = vld [vmem:[%s1735_s6 + $0x210] ss:$12 sps:$4 sm:$0xff]   ;;  %v75_v23 = vld [vmem:[%s1733_s4] sm:$0x3] }
   0x7   :  { %869 = vmatpush1.bf16.msra.mxu0 %v1212_v9  ;;  %v1237_v19 = vld [vmem:[%s1735_s6 + $0x214] ss:$12 sps:$4 sm:$0xff]   ;;  %v1243_v24 = vld [vmem:[%s1735_s6 + $0x1fc] ss:$12 sps:$4 sm:$0xff]   ;;  %v191_v26 = vrot.slane %v78_v2, %v1438_v20  ;;  %v1247_v28 = vld [vmem:[%s1735_s6 + $0x1f8] ss:$12 sps:$4 sm:$0xff]  }
   0x8   :  { %186 = vbcast.lane.b32.xlu1 %v184_v10, 256  ;;  %870 = vmatprep.subr.bf16.mxu0 %v1213_v11  ;;  %v1222_v21 = vld [vmem:[%s1735_s6 + $0x34] ss:$12 sps:$4 sm:$0xff]   ;;  %v1224_v25 = vld [vmem:[%s1735_s6 + $0x30] ss:$12 sps:$4 sm:$0xff]   ;;  %v76_v30 = vsub.f32 1.0, %v75_v23 }
   0x9   :  { %909 = vmatprep.subr.bf16.mxu1 %v1237_v19  ;;  %v1225_v27 = vld [vmem:[%s1735_s6 + $0x1c] ss:$12 sps:$4 sm:$0xff]   ;;  %v1249_v29 = vld [vmem:[%s1735_s6 + $0x1e4] ss:$12 sps:$4 sm:$0xff]   ;;  %v1253_v32 = vld [vmem:[%s1735_s6 + $0x1e0] ss:$12 sps:$4 sm:$0xff]  }
   0xa   :  { %910 = vmatpush1.bf16.msra.mxu1 %v1241_v22  ;;  %v1227_v31 = vld [vmem:[%s1735_s6 + $0x18] ss:$12 sps:$4 sm:$0xff]   ;;  %v89_v34 = vrot.slane %v76_v30, %v1438_v20  ;;  %v1230_v36 = vld [vmem:[%s1735_s6] ss:$12 sps:$4 sm:$0xff]   ;;  %v1259_v37 = vld [vmem:[%s1735_s6 + $0x1c8] ss:$12 sps:$4 sm:$0xff]   ;;  %v82_v39 = vrot.slane %v76_v30, %v1404_v8 }
   0xb   :  { %871 = vmatpush1.bf16.msra.mxu0 %v1215_v12  ;;  %911 = vmatprep.subr.bf16.mxu1 %v1243_v24  ;;  %v1228_v33 = vld [vmem:[%s1735_s6 + $0x4] ss:$12 sps:$4 sm:$0xff]   ;;  %v1255_v35 = vld [vmem:[%s1735_s6 + $0x1cc] ss:$12 sps:$4 sm:$0xff]   ;;  %v1261_v38 = vld [vmem:[%s1735_s6 + $0x1b4] ss:$12 sps:$4 sm:$0xff]  }
   0xc   :  { %872 = vmatprep.subr.bf16.mxu0 %v1216_v13  ;;  %v1233_v40 = vld [vmem:[%s1735_s6 + $0x16c] ss:$12 sps:$4 sm:$0xff]   ;;  %v1265_v41 = vld [vmem:[%s1735_s6 + $0x1b0] ss:$12 sps:$4 sm:$0xff]   ;;  %v1236_v42 = vld [vmem:[%s1735_s6 + $0x168] ss:$12 sps:$4 sm:$0xff]  }
   0xd   :  { %v1267_v43 = vld [vmem:[%s1735_s6 + $0x19c] ss:$12 sps:$4 sm:$0xff]   ;;  %v1239_v44 = vld [vmem:[%s1735_s6 + $0x154] ss:$12 sps:$4 sm:$0xff]   ;;  %v1271_v46 = vld [vmem:[%s1735_s6 + $0x198] ss:$12 sps:$4 sm:$0xff]  }
   0xe   :  { %912 = vmatpush1.bf16.msra.mxu1 %v1247_v28  ;;  %v1242_v45 = vld [vmem:[%s1735_s6 + $0x150] ss:$12 sps:$4 sm:$0xff]   ;;  %v165_v47 = vsel %vm164_vm1, %v76_v30, 0.0  ;;  %v1277_v50 = vld [vmem:[%s1735_s6 + $0x180] ss:$12 sps:$4 sm:$0xff]  }
   0xf   :  { %873 = vmatpush1.bf16.msra.mxu0 %v1218_v14  ;;  %913 = vmatprep.subr.bf16.mxu1 %v1249_v29  ;;  %v1245_v48 = vld [vmem:[%s1735_s6 + $0x13c] ss:$12 sps:$4 sm:$0xff]   ;;  %v1273_v49 = vld [vmem:[%s1735_s6 + $0x184] ss:$12 sps:$4 sm:$0xff]   ;;  %v1254_v55 = vld [vmem:[%s1735_s6 + $0x120] ss:$12 sps:$4 sm:$0xff]  }
  0x10   :  { %874 = vmatprep.subr.bf16.mxu0 %v1219_v16  ;;  %v1248_v52 = vld [vmem:[%s1735_s6 + $0x138] ss:$12 sps:$4 sm:$0xff]   ;;  %v1279_v53 = vld [vmem:[%s1735_s6 + $0x170] ss:$12 sps:$4 sm:$0xff]   ;;  %v1260_v57 = vld [vmem:[%s1735_s6 + $0x108] ss:$12 sps:$4 sm:$0xff]  }
  0x11   :  { %v1251_v54 = vld [vmem:[%s1735_s6 + $0x124] ss:$12 sps:$4 sm:$0xff]   ;;  %v1257_v56 = vld [vmem:[%s1735_s6 + $0x10c] ss:$12 sps:$4 sm:$0xff]   ;;  %v1263_v58 = vld [vmem:[%s1735_s6 + $0xf4] ss:$12 sps:$4 sm:$0xff]  }
  0x12   :  { %914 = vmatpush1.bf16.msra.mxu1 %v1253_v32  ;;  %v1266_v59 = vld [vmem:[%s1735_s6 + $0xf0] ss:$12 sps:$4 sm:$0xff]   ;;  %v1272_v61 = vld [vmem:[%s1735_s6 + $0xd8] ss:$12 sps:$4 sm:$0xff]  }
  0x13   :  { %875 = vmatpush1.bf16.msra.mxu0 %v1221_v18  ;;  %915 = vmatprep.subr.bf16.mxu1 %v1255_v35  ;;  %v1269_v60 = vld [vmem:[%s1735_s6 + $0xdc] ss:$12 sps:$4 sm:$0xff]   ;;  %v1275_v62 = vld [vmem:[%s1735_s6 + $0xc4] ss:$12 sps:$4 sm:$0xff]  }
  0x14   :  { %876 = vmatprep.subr.bf16.mxu0 %v1222_v21 }
  0x16   :  { %916 = vmatpush1.bf16.msra.mxu1 %v1259_v37 }
  0x17   :  { %877 = vmatpush1.bf16.msra.mxu0 %v1224_v25  ;;  %917 = vmatprep.subr.bf16.mxu1 %v1261_v38 }
  0x18   :  { %878 = vmatprep.subr.bf16.mxu0 %v1225_v27 }
  0x1a   :  { %918 = vmatpush1.bf16.msra.mxu1 %v1265_v41 }
  0x1b   :  { %193 = vbcast.lane.b32.xlu0 %v191_v26, 256  ;;  %879 = vmatpush1.bf16.msra.mxu0 %v1227_v31 }
  0x1c   :  { %880 = vmatprep.subr.bf16.mxu0 %v1228_v33  ;;  %919 = vmatprep.subr.bf16.mxu1 %v1267_v43 }
  0x1e   :  { %920 = vmatpush1.bf16.msra.mxu1 %v1271_v46 }
  0x1f   :  { %91 = vbcast.lane.b32.xlu0 %v89_v34, 256  ;;  %881 = vmatpush1.bf16.msra.mxu0 %v1230_v36 }
  0x20   :  { %882 = vmatprep.subr.bf16.mxu0 %v1233_v40  ;;  %921 = vmatprep.subr.bf16.mxu1 %v1273_v49 }
  0x22   :  { %922 = vmatpush1.bf16.msra.mxu1 %v1277_v50 }
  0x23   :  { %84 = vbcast.lane.b32.xlu0 %v82_v39, 256  ;;  %883 = vmatpush2.bf16.msra.mxu0 %v1236_v42 }
  0x24   :  { %884 = vmatprep.subr.bf16.mxu0 %v1239_v44  ;;  %1148 = vmatprep.subr.bf16.mxu1 %v1279_v53 }
  0x27   :  { %885 = vmatpush2.bf16.msra.mxu0 %v1242_v45 }
  0x28   :  { %886 = vmatprep.subr.bf16.mxu0 %v1245_v48 }
  0x2b   :  { %887 = vmatpush2.bf16.msra.mxu0 %v1248_v52 }
  0x2c   :  { %166 = vadd.xlane.f32.xlu1 %v165_v47  ;;  %888 = vmatprep.subr.bf16.mxu0 %v1251_v54 }
  0x2f   :  { %889 = vmatpush2.bf16.msra.mxu0 %v1254_v55 }
  0x30   :  { %890 = vmatprep.subr.bf16.mxu0 %v1257_v56 }
  0x33   :  { %891 = vmatpush2.bf16.msra.mxu0 %v1260_v57 }
  0x34   :  { %892 = vmatprep.subr.bf16.mxu0 %v1263_v58 }
  0x37   :  { %893 = vmatpush2.bf16.msra.mxu0 %v1266_v59 }
  0x38   :  { %894 = vmatprep.subr.bf16.mxu0 %v1269_v60 }
  0x39   :  { %15 = vsyncpa [#allocation3], 0  ;;  %v1278_v63 = vld [vmem:[%s1735_s6 + $0xc0] ss:$12 sps:$4 sm:$0xff]   ;;  %v1334_v0 = vmov 0.0   ;;  %vm261_vm2 = vcmask 1041409  }
  0x3a   :  { %v49_v1 = vld [vmem:[%s1731_s2] sm:$0xff]  ;;  %v50_v4 = vld [vmem:[%s1731_s2 + $0x8] ss:$12 sps:$4 sm:$0xff]   ;;  %v51_v21 = vld [vmem:[%s1731_s2 + $0xc] sm:$0xff]  ;;  %v1335_v48 = vmov 839922192  }
  0x3b   :  { %895 = vmatpush2.bf16.msra.mxu0 %v1272_v61  ;;  %v59_v2 = vld [vmem:[%s1732_s3] sm:$0xff]  ;;  %v60_v5 = vld [vmem:[%s1732_s3 + $0x8] ss:$12 sps:$4 sm:$0xff]   ;;  %v54_v6 = vunpack.c.h.bf16 %v49_v1  ;;  %v53_v9 = vunpack.c.l.bf16 %v49_v1  ;;  %v55_v10 = vunpack.c.l.bf16 %v50_v4  ;;  %v61_v22 = vld [vmem:[%s1732_s3 + $0xc] sm:$0xff]  ;;  %v58_v26 = vunpack.c.h.bf16 %v50_v4 }
  0x3c   :  { %896 = vmatprep.subr.bf16.mxu0 %v1275_v62  ;;  %v64_v7 = vunpack.c.h.bf16 %v59_v2  ;;  %v63_v11 = vunpack.c.l.bf16 %v59_v2  ;;  %v65_v12 = vunpack.c.l.bf16 %v60_v5  ;;  %v68_v27 = vunpack.c.h.bf16 %v60_v5  ;;  %v34_v59 = vld [vmem:[%s1729_s0 + $0x6] sm:$0x3f] }
  0x3d   :  { %v56_v28 = vunpack.c.l.bf16 %v51_v21  ;;  %v57_v29 = vunpack.c.h.bf16 %v51_v21  ;;  %v66_v30 = vunpack.c.l.bf16 %v61_v22  ;;  %v67_v31 = vunpack.c.h.bf16 %v61_v22  ;;  %v40_v60 = vld [vmem:[%s1730_s1 + $0x6] sm:$0x3f] }
  0x3e   :  { %v70_v13 = vadd.f32 %v64_v7, %v54_v6  ;;  %v69_v15 = vadd.f32 %v63_v11, %v53_v9  ;;  %v71_v16 = vadd.f32 %v65_v12, %v55_v10  ;;  %v74_v39 = vadd.f32 %v68_v27, %v58_v26  ;;  %v39_v6 = vld [vmem:[%s1730_s1] sm:$0x3f] }
  0x3f   :  { %897 = vmatpush2.bf16.msra.mxu0 %v1278_v63  ;;  %v72_v37 = vadd.f32 %v66_v30, %v56_v28  ;;  %v73_v38 = vadd.f32 %v67_v31, %v57_v29  ;;  %v96_v49 = vunpack.c.l.s4 %v1335_v48  ;;  %v33_v63 = vld [vmem:[%s1729_s0] sm:$0x3f]  ;;  %v37_v10 = vunpack.c.l.bf16 %v34_v59 }
  0x40   :  { %1179 = vmatprep.subr.bf16.mxu0 %v1334_v0  ;;  %v43_v11 = vunpack.c.l.bf16 %v40_v60  ;;  %v44_v27 = vunpack.c.h.bf16 %v40_v60  ;;  %vm121_vm3 = vcmask 1043456   ;;  %vm1336_vm4 = vmmov 0  }
  0x41   :  { %v97_v61 = vunpack.c.0.s8 %v96_v49  ;;  %vm1034_vm5 = vcmask 1041408   ;;  %vm1053_vm6 = vcmask 0  }
  0x42   :  { %v47_v28 = vadd.f32 %v43_v11, %v37_v10 }
  0x7a   :  { %v187_v14 = vpop.permute.xlu1 %186 }
  0x7b   :  { %v196_v17 = vmul.f32 %v187_v14, %v70_v13  ;;  %v195_v18 = vmul.f32 %v187_v14, %v69_v15  ;;  %v197_v19 = vmul.f32 %v187_v14, %v71_v16  ;;  %v100_v15 = vsub.s32 %v97_v61, %v1392_v3 }
  0x7c   :  { %v38_v16 = vunpack.c.h.bf16 %v34_v59 }
  0x7d   :  { %v207_v23 = vrot.slane %v196_v17, 4  ;;  %v201_v24 = vrot.slane %v195_v18, 4  ;;  %v213_v25 = vrot.slane %v197_v19, 4 }
  0x7f   :  { %v208_v32 = vadd.f32 %v207_v23, %v196_v17  ;;  %v202_v34 = vadd.f32 %v201_v24, %v195_v18  ;;  %v214_v35 = vadd.f32 %v213_v25, %v197_v19  ;;  %v35_v17 = vunpack.c.l.bf16 %v33_v63 }
  0x80   :  { %v41_v18 = vunpack.c.l.bf16 %v39_v6 }
  0x81   :  { %v209_v41 = vrot.slane %v208_v32, 2  ;;  %v203_v42 = vrot.slane %v202_v34, 2  ;;  %v215_v43 = vrot.slane %v214_v35, 2 }
  0x83   :  { %v210_v50 = vadd.f32 %v209_v41, %v208_v32  ;;  %v204_v54 = vadd.f32 %v203_v42, %v202_v34  ;;  %v216_v55 = vadd.f32 %v215_v43, %v214_v35  ;;  %v36_v43 = vunpack.c.h.bf16 %v33_v63 }
  0x85   :  { %v211_v1 = vrot.slane %v210_v50, 1  ;;  %v205_v7 = vrot.slane %v204_v54, 1  ;;  %v217_v9 = vrot.slane %v216_v55, 1 }
  0x87   :  { %v212_v19 = vadd.f32 %v211_v1, %v210_v50  ;;  %v206_v25 = vadd.f32 %v205_v7, %v204_v54  ;;  %v218_v26 = vadd.f32 %v217_v9, %v216_v55  ;;  %v1280_v9 = vld [vmem:[%s1735_s6 + $0xb0] ss:$12 sps:$4 sm:$0xff]  }
  0x8e   :  { %v240_v33 = vpop.xlane.xlu0 %239 }
  0x8f   :  { %v241_v36 = vmax.f32 %v240_v33, 1.0 }
  0x91   :  { %v243_v40 = vrot.slane %v241_v36, 1  ;;  %1303 = vrcp.f32 %v241_v36 }
  0x92   :  { %v194_v44 = vpop.permute.xlu0 %193 }
  0x93   :  { %1305 = vrcp.f32 %v243_v40  ;;  %v198_v45 = vmul.f32 %v194_v44, %v72_v37  ;;  %v199_v46 = vmul.f32 %v194_v44, %v73_v38  ;;  %v200_v47 = vmul.f32 %v194_v44, %v74_v39 }
  0x94   :  { %v45_v38 = vadd.f32 %v41_v18, %v35_v17  ;;  %v42_v44 = vunpack.c.h.bf16 %v39_v6 }
  0x95   :  { %v219_v51 = vrot.slane %v198_v45, 4  ;;  %v225_v52 = vrot.slane %v199_v46, 4  ;;  %v231_v53 = vrot.slane %v200_v47, 4 }
  0x96   :  { %v92_v62 = vpop.permute.xlu0 %91 }
  0x97   :  { %v220_v56 = vadd.f32 %v219_v51, %v198_v45  ;;  %v226_v57 = vadd.f32 %v225_v52, %v199_v46  ;;  %v232_v58 = vadd.f32 %v231_v53, %v200_v47  ;;  %v108_v37 = vrot.slane %v92_v62, %v100_v15 }
  0x98   :  { %v48_v52 = vadd.f32 %v44_v27, %v38_v16 }
  0x99   :  { %v221_v2 = vrot.slane %v220_v56, 2  ;;  %v227_v4 = vrot.slane %v226_v57, 2  ;;  %v233_v5 = vrot.slane %v232_v58, 2  ;;  %v113_v53 = vmul.f32 %v108_v37, %v47_v28 }
  0x9a   :  { %v85_v29 = vpop.permute.xlu0 %84 }
  0x9b   :  { %v222_v12 = vadd.f32 %v221_v2, %v220_v56  ;;  %v228_v13 = vadd.f32 %v227_v4, %v226_v57  ;;  %v234_v14 = vadd.f32 %v233_v5, %v232_v58  ;;  %v101_v42 = vrot.slane %v85_v29, %v100_v15  ;;  %v1282_v15 = vld [vmem:[%s1735_s6 + $0x158] ss:$12 sps:$4 sm:$0xff]  }
  0x9c   :  { %v46_v57 = vadd.f32 %v42_v44, %v36_v43  ;;  %v114_v2 = vmul.f32 %v108_v37, %v48_v52  ;;  %v118_v4 = vcombine.high %v113_v53, %v113_v53  ;;  %v143_v16 = vsel %vm121_vm3, %v113_v53, 0.0  ;;  %v1288_v37 = vld [vmem:[%s1735_s6 + $0x128] ss:$12 sps:$4 sm:$0xff]  }
  0x9d   :  { %v223_v21 = vrot.slane %v222_v12, 1  ;;  %v229_v22 = vrot.slane %v228_v13, 1  ;;  %v235_v23 = vrot.slane %v234_v14, 1  ;;  %v111_v54 = vmul.f32 %v101_v42, %v45_v38 }
  0x9e   :  { %v1304_v24 = vpop.eup %1303  ;;  %v112_v11 = vmul.f32 %v101_v42, %v46_v57  ;;  %v150_v17 = vsel %vm121_vm3, %v118_v4, 0.0 }
  0x9f   :  { %v224_v30 = vadd.f32 %v223_v21, %v222_v12  ;;  %v230_v31 = vadd.f32 %v229_v22, %v228_v13  ;;  %v236_v32 = vadd.f32 %v235_v23, %v234_v14  ;;  %v1586_v33 = vmul.f32 %v1304_v24, %v212_v19  ;;  %v1281_v14 = vld [vmem:[%s1735_s6 + $0x230] ss:$12 sps:$4 sm:$0xff]   ;;  %v1283_v21 = vld [vmem:[%s1735_s6 + $0x98] ss:$12 sps:$4 sm:$0xff]  }
  0xa0   :  { %v1306_v34 = vpop.eup %1305  ;;  %v1588_v35 = vmul.f32 %v1304_v24, %v218_v26  ;;  %v1590_v36 = vmul.f32 %v1304_v24, %v206_v25  ;;  %v117_v5 = vcombine.high %v111_v54, %v111_v54  ;;  %v122_v18 = vsel %vm121_vm3, %v111_v54, 0.0  ;;  %v1284_v24 = vld [vmem:[%s1735_s6 + $0x218] ss:$12 sps:$4 sm:$0xff]   ;;  %v1285_v25 = vld [vmem:[%s1735_s6 + $0x140] ss:$12 sps:$4 sm:$0xff]  }
  0xa1   :  { %v1592_v39 = vmul.f32 %v1306_v34, %v224_v30  ;;  %v1594_v40 = vmul.f32 %v1306_v34, %v236_v32  ;;  %v1596_v41 = vmul.f32 %v1306_v34, %v230_v31  ;;  %v340_v45 = vpack.c.bf16 %v1586_v33, %v1586_v33  ;;  %v1286_v32 = vld [vmem:[%s1735_s6 + $0x80] ss:$12 sps:$4 sm:$0xff]  }
  0xa2   :  { %v341_v47 = vpack.c.bf16 %v1588_v35, %v1588_v35  ;;  %v339_v49 = vpack.c.bf16 %v1590_v36, %v1590_v36  ;;  %v129_v19 = vsel %vm121_vm3, %v117_v5, 0.0  ;;  %v157_v22 = vsel %vm121_vm3, %v114_v2, 0.0  ;;  %v1287_v34 = vld [vmem:[%s1735_s6 + $0x200] ss:$12 sps:$4 sm:$0xff]  }
  0xa3   :  { %v343_v46 = vpack.c.bf16 %v1596_v41, %v1596_v41  ;;  %v344_v48 = vpack.c.bf16 %v1594_v40, %v1594_v40  ;;  %v342_v50 = vpack.c.bf16 %v1592_v39, %v1592_v39  ;;  %v465_v58 = vunpack.c.l.b16 %v340_v45 }
  0xa4   :  { %v466_v60 = vunpack.c.l.b16 %v341_v47  ;;  %v464_v62 = vunpack.c.l.b16 %v339_v49  ;;  %v136_v23 = vsel %vm121_vm3, %v112_v11, 0.0  ;;  %v144_v26 = vrot.slane %v143_v16, 4 }
  0xa5   :  { %v468_v51 = vunpack.c.l.b16 %v343_v46  ;;  %v469_v55 = vunpack.c.l.b16 %v344_v48  ;;  %v467_v56 = vunpack.c.l.b16 %v342_v50  ;;  %v151_v27 = vrot.slane %v150_v17, 4  ;;  %v1289_v48 = vld [vmem:[%s1735_s6 + $0x68] ss:$12 sps:$4 sm:$0xff]  }
  0xa6   :  { %v123_v28 = vrot.slane %v122_v18, 4  ;;  %v130_v29 = vrot.slane %v129_v19, 4  ;;  %v158_v30 = vrot.slane %v157_v22, 4  ;;  %v137_v31 = vrot.slane %v136_v23, 4  ;;  %v1290_v50 = vld [vmem:[%s1735_s6 + $0x1e8] ss:$12 sps:$4 sm:$0xff]  }
  0xa7   :  { %v472_v59 = vrot.slane %v468_v51, 7  ;;  %v474_v61 = vrot.slane %v469_v55, 7  ;;  %v470_v63 = vrot.slane %v467_v56, 7  ;;  %v145_v38 = vadd.f32 %v144_v26, %v143_v16  ;;  %v1291_v51 = vld [vmem:[%s1735_s6 + $0x110] ss:$12 sps:$4 sm:$0xff]  }
  0xa8   :  { %v152_v42 = vadd.f32 %v151_v27, %v150_v17  ;;  %v124_v43 = vadd.f32 %v123_v28, %v122_v18  ;;  %v131_v44 = vadd.f32 %v130_v29, %v129_v19  ;;  %v159_v45 = vadd.f32 %v158_v30, %v157_v22  ;;  %v1298_v18 = vld [vmem:[%s1735_s6 + $0x20] ss:$12 sps:$4 sm:$0xff]  }
  0xa9   :  { %v473_v1 = vsel %vm261_vm2, %v472_v59, %v465_v58  ;;  %v475_v7 = vsel %vm261_vm2, %v474_v61, %v466_v60  ;;  %v471_v10 = vsel %vm261_vm2, %v470_v63, %v464_v62  ;;  %v138_v46 = vadd.f32 %v137_v31, %v136_v23  ;;  %v1292_v59 = vld [vmem:[%s1735_s6 + $0x50] ss:$12 sps:$4 sm:$0xff]   ;;  %v1294_v61 = vld [vmem:[%s1735_s6 + $0xf8] ss:$12 sps:$4 sm:$0xff]   ;;  %v1299_v23 = vld [vmem:[%s1735_s6 + $0x1a0] ss:$12 sps:$4 sm:$0xff]  }
  0xaa   :  { %v477_v6 = vpack.c.b16 %v473_v1, %v473_v1  ;;  %v1616_v12 = vpack.c.b16 %v475_v7, %v475_v7  ;;  %v1618_v13 = vpack.c.b16 %v471_v10, %v471_v10  ;;  %v146_v52 = vrot.slane %v145_v38, 2  ;;  %v1293_v60 = vld [vmem:[%s1735_s6 + $0x1d0] ss:$12 sps:$4 sm:$0xff]   ;;  %v1296_v7 = vld [vmem:[%s1735_s6 + $0x1b8] ss:$12 sps:$4 sm:$0xff]  }
  0xab   :  { %v153_v53 = vrot.slane %v152_v42, 2  ;;  %v125_v54 = vrot.slane %v124_v43, 2  ;;  %v132_v55 = vrot.slane %v131_v44, 2  ;;  %v160_v56 = vrot.slane %v159_v45, 2 }
  0xac   :  { %898 = vmatprep.mubr.bf16.mxu0 %v477_v6  ;;  %940 = vmatmul.mubr.bf16.vlgmr.msra.gmra.mxu1 %v1616_v12  ;;  %v139_v58 = vrot.slane %v138_v46, 2  ;;  %v147_v1 = vadd.f32 %v146_v52, %v145_v38  ;;  %v1337_v19 = vmov 1966171168   ;;  %v278_v22 = vrot.slane %v1596_v41, 7 }
  0xad   :  { %899 = vmatmul.mubr.bf16.vlgmr.msra.gmra.mxu0 %v1618_v13  ;;  %1149 = vmatpush3.bf16.msra.mxu1 %v1280_v9  ;;  %v126_v62 = vadd.f32 %v125_v54, %v124_v43  ;;  %v133_v63 = vadd.f32 %v132_v55, %v131_v44  ;;  %v154_v2 = vadd.f32 %v153_v53, %v152_v42  ;;  %v1297_v9 = vld [vmem:[%s1735_s6 + $0xe0] ss:$12 sps:$4 sm:$0xff]  }
  0xae   :  { %980 = vmatprep.mubr.bf16.mxu1 %v477_v6  ;;  %1180 = vmatpush3.bf16.msra.mxu0 %v1281_v14  ;;  %v161_v4 = vadd.f32 %v160_v56, %v159_v45  ;;  %v140_v5 = vadd.f32 %v139_v58, %v138_v46  ;;  %v1295_v6 = vld [vmem:[%s1735_s6 + $0x38] ss:$12 sps:$4 sm:$0xff]   ;;  %v148_v14 = vrot.slane %v147_v1, 1  ;;  %v276_v45 = vrot.slane %v1592_v39, 7 }
  0xaf   :  { %1150 = vmatprep.subr.bf16.mxu1 %v1282_v15  ;;  %1181 = vmatprep.subr.bf16.mxu0 %v1334_v0  ;;  %v127_v10 = vrot.slane %v126_v62, 1  ;;  %v134_v11 = vrot.slane %v133_v63, 1  ;;  %v155_v15 = vrot.slane %v154_v2, 1 }
  0xb0   :  { %1195 = vmatprep.mubr.msk.bf16.mxu0 %vm1336_vm4, %v1334_v0  ;;  %v162_v16 = vrot.slane %v161_v4, 1  ;;  %v141_v17 = vrot.slane %v140_v5, 1  ;;  %v149_v28 = vadd.f32 %v148_v14, %v147_v1  ;;  %v277_v54 = vsel %vm261_vm2, %v276_v45, %v1590_v36 }
  0xb1   :  { %1151 = vmatpush3.bf16.msra.mxu1 %v1283_v21  ;;  %v301_v21 = vunpack.c.l.s4 %v1337_v19  ;;  %v128_v26 = vadd.f32 %v127_v10, %v126_v62  ;;  %v135_v27 = vadd.f32 %v134_v11, %v133_v63  ;;  %v156_v29 = vadd.f32 %v155_v15, %v154_v2 }
  0xb2   :  { %1182 = vmatpush3.bf16.msra.mxu0 %v1284_v24  ;;  %1152 = vmatprep.subr.bf16.mxu1 %v1285_v25  ;;  %v1300_v24 = vld [vmem:[%s1735_s6 + $0xc8] ss:$12 sps:$4 sm:$0xff]   ;;  %v280_v25 = vrot.slane %v1594_v40, 7  ;;  %v163_v30 = vadd.f32 %v162_v16, %v161_v4  ;;  %v142_v41 = vadd.f32 %v141_v17, %v140_v5  ;;  %v453_v16 = vsub.s32 2, %v1392_v3 }
  0xb3   :  { %1183 = vmatprep.subr.bf16.mxu0 %v1334_v0  ;;  %v1302_v40 = vld [vmem:[%s1735_s6 + $0x188] ss:$12 sps:$4 sm:$0xff]  }
  0xb4   :  { %v281_v42 = vsel %vm261_vm2, %v280_v25, %v1588_v35 }
  0xb5   :  { %1153 = vmatpush3.bf16.msra.mxu1 %v1286_v32  ;;  %v167_v47 = vpop.xlane.xlu1 %166  ;;  %v1301_v32 = vld [vmem:[%s1735_s6 + $0x8] ss:$12 sps:$4 sm:$0xff]  }
  0xb6   :  { %1184 = vmatpush3.bf16.msra.mxu0 %v1287_v34  ;;  %v168_v49 = vmax.f32 %v167_v47, 1.0  ;;  %1154 = vmatprep.subr.bf16.mxu1 %v1288_v37  ;;  %v302_v34 = vunpack.c.0.s8 %v301_v21  ;;  %v279_v37 = vsel %vm261_vm2, %v278_v22, %v1586_v33 }
  0xb7   :  { %1185 = vmatprep.subr.bf16.mxu0 %v1334_v0  ;;  %v1075_v53 = vpack.c.bf16 %v281_v42, %v279_v37 }
  0xb8   :  { %v170_v57 = vrot.slane %v168_v49, 1  ;;  %1307 = vrcp.f32 %v168_v49  ;;  %v305_v52 = vsub.s32 %v302_v34, %v1392_v3 }
  0xb9   :  { %1155 = vmatpush3.bf16.msra.mxu1 %v1289_v48 }
  0xba   :  { %1309 = vrcp.f32 %v170_v57  ;;  %1186 = vmatpush3.bf16.msra.mxu0 %v1290_v50  ;;  %1156 = vmatprep.subr.bf16.mxu1 %v1291_v51  ;;  %v320_v57 = vrot.slane %v1075_v53, %v305_v52 }
  0xbb   :  { %1187 = vmatprep.subr.bf16.mxu0 %v1334_v0 }
  0xbd   :  { %1157 = vmatpush3.bf16.msra.mxu1 %v1292_v59 }
  0xbe   :  { %1188 = vmatpush3.bf16.msra.mxu0 %v1293_v60  ;;  %1158 = vmatprep.subr.bf16.mxu1 %v1294_v61  ;;  %v335_v61 = vrot.slane %v320_v57, %v305_v52 }
  0xbf   :  { %1189 = vmatprep.subr.bf16.mxu0 %v1334_v0 }
  0xc1   :  { %1159 = vmatpush3.bf16.msra.mxu1 %v1295_v6 }
  0xc2   :  { %1190 = vmatpush3.bf16.msra.mxu0 %v1296_v7  ;;  %1160 = vmatprep.subr.bf16.mxu1 %v1297_v9  ;;  %v441_v7 = vld [vmem:[%s1736_s7] sm:$0x7]  ;;  %s1338_s7 = smov [#allocation2]  }
  0xc3   :  { %1191 = vmatprep.subr.bf16.mxu0 %v1334_v0  ;;  %v450_v9 = vrot.slane %v441_v7, %v1438_v20  ;;  %v446_v10 = vrot.slane %v441_v7, %v1404_v8  ;;  %v454_v22 = vrot.slane %v441_v7, %v453_v16 }
  0xc5   :  { %v1308_v31 = vpop.eup %1307  ;;  %1161 = vmatpush3.bf16.msra.mxu1 %v1298_v18 }
  0xc6   :  { %1192 = vmatpush3.bf16.msra.mxu0 %v1299_v23  ;;  %1162 = vmatprep.subr.bf16.mxu1 %v1300_v24  ;;  %v174_v43 = vmul.f32 %v1308_v31, %v128_v26  ;;  %v175_v44 = vmul.f32 %v1308_v31, %v135_v27  ;;  %v176_v48 = vmul.f32 %v1308_v31, %v142_v41 }
  0xc7   :  { %v1310_v38 = vpop.eup %1309  ;;  %1193 = vmatprep.subr.bf16.mxu0 %v1334_v0 }
  0xc8   :  { %v178_v46 = vmul.f32 %v1310_v38, %v149_v28  ;;  %v179_v47 = vmul.f32 %v1310_v38, %v156_v29  ;;  %v180_v33 = vmul.f32 %v1310_v38, %v163_v30 }
  0xc9   :  { %1163 = vmatpush3.bf16.msra.mxu1 %v1301_v32 }
  0xca   :  { %1194 = vmatpush3.bf16.msra.mxu0 %v1302_v40  ;;  %v260_v49 = vrot.slane %v178_v46, 7  ;;  %v263_v50 = vrot.slane %v179_v47, 7  ;;  %v265_v51 = vrot.slane %v180_v33, 7 }
  0xcc   :  { %981 = vmatmul.mubr.bf16.vlgmr.msra.gmra.mxu1 %v1618_v13  ;;  %v262_v0 = vsel %vm261_vm2, %v260_v49, %v174_v43  ;;  %v264_v35 = vsel %vm261_vm2, %v263_v50, %v175_v44  ;;  %v266_v39 = vsel %vm261_vm2, %v265_v51, %v176_v48 }
  0xcd   :  { %1196 = vmatmul.mubr.bf16.vlgmr.msra.gmra.mxu0 %v1616_v12  ;;  %v1073_v55 = vpack.c.bf16 %v264_v35, %v262_v0  ;;  %v1074_v56 = vpack.c.bf16 %v277_v54, %v266_v39 }
  0xcf   :  { %v306_v58 = vrot.slane %v1073_v55, %v305_v52  ;;  %v313_v59 = vrot.slane %v1074_v56, %v305_v52 }
  0xd1   :  { %v321_v60 = vcombine.low %v306_v58, %v313_v59 }
  0xd3   :  { %v328_v62 = vrot.slane %v321_v60, %v305_v52 }
  0xd5   :  { %v336_v13 = vcombine.low %v328_v62, %v335_v61 }
  0xd7   :  { %338 = vst [vmem:[%s1737_s8] sm:$0x3f] %v336_v13  ;;  %s1063_s8 = sshll.u32 %s1338_s7, 4  ;;  %s1064_s8 = int_to_ptr.vmem [resolvable:$true] %s1063_s8 }
  0xd8   :  { %s1311_s12 = scalar_lea.vmem %s1064_s8, 16  ;;  %s1315_s13 = scalar_lea.vmem %s1064_s8, 32 }
  0xd9   :  { %p1312_p0 = scmp.ne.s32.totalorder %s1064_s8, %s1311_s12  ;;  %p1316_p1 = scmp.lt.s32.totalorder %s1064_s8, %s1064_s8 }
  0xda   :  { %p1317_p2 = scmp.lt.s32.totalorder %s1315_s13, %s1311_s12 }
  0xdc   :  { %p1318_p3 = por %p1317_p2, %p1316_p1 }
  0xde   :  { %p1319_p4 = pnand %p1318_p3, %p1312_p0 }
 0x16c   :  { %v941_v63 = vpop.f32.mrf.mxu1 }
 0x16d   :  { %v900_v1 = vpop.f32.mrf.mxu0 }
 0x16e   :  { %v943_v2 = vpop.f32.mrf.mxu1  ;;  %v901_v14 = vadd.f32 %v900_v1, %v446_v10 }
 0x16f   :  { %v902_v4 = vpop.f32.mrf.mxu0 }
 0x170   :  { %v945_v36 = vpop.f32.mrf.mxu1  ;;  %v903_v11 = vadd.f32 %v902_v4, %v450_v9  ;;  %v942_v17 = vadd.f32 %v941_v63, %v901_v14 }
 0x171   :  { %v904_v5 = vpop.f32.mrf.mxu0 }
 0x172   :  { %v946_v12 = vpop.f32.mrf.mxu1  ;;  %v944_v15 = vadd.f32 %v943_v2, %v903_v11  ;;  %v1028_v24 = vsub.f32 %v942_v17, %v262_v0 }
 0x173   :  { %v905_v6 = vpop.f32.mrf.mxu0 }
 0x174   :  { %v1029_v19 = vsub.f32 %v944_v15, %v264_v35  ;;  %v1031_v8 = vmul.f32 %v1028_v24, %v1028_v24 }
 0x176   :  { %v1032_v28 = vmul.f32 %v1029_v19, %v1029_v19  ;;  %v1035_v37 = vsel %vm1034_vm5, %v1031_v8, 0.0 }
 0x178   :  { %v1036_v3 = vsel %vm1034_vm5, %v1032_v28, 0.0 }
 0x179   :  { %v1037_v40 = vadd.f32 %v1036_v3, %v1035_v37 }
 0x18c   :  { %v1164_v18 = vpop.f32.mrf.mxu1 }
 0x18d   :  { %v1022_v21 = vpop.f32.mrf.mxu0 }
 0x18e   :  { %v1165_v23 = vpop.f32.mrf.mxu1 }
 0x18f   :  { %v1166_v25 = vadd.f32 %v1165_v23, %v1164_v18  ;;  %v1197_v26 = vpop.f32.mrf.mxu0 }
 0x190   :  { %v1167_v27 = vpop.f32.mrf.mxu1 }
 0x191   :  { %v983_v29 = vadd.f32 %v1166_v25, %v454_v22  ;;  %v1025_v20 = vpop.f32.mrf.mxu0 }
 0x192   :  { %v1168_v30 = vpop.f32.mrf.mxu1 }
 0x193   :  { %v1023_v41 = vadd.f32 %v1022_v21, %v983_v29  ;;  %v1198_v31 = vpop.f32.mrf.mxu0 }
 0x195   :  { %v1030_v32 = vsub.f32 %v1023_v41, %v266_v39 }
 0x197   :  { %v1033_v34 = vmul.f32 %v1030_v32, %v1030_v32 }
 0x199   :  { %v1038_v38 = vsel %vm1034_vm5, %v1033_v34, 0.0 }
 0x19a   :  { %v1039_v42 = vadd.f32 %v1038_v38, %v1037_v40 }
 0x19c   :  { %1040 = vadd.xlane.f32.xlu0 %v1039_v42 }
 0x225   :  { %v1041_v43 = vpop.xlane.xlu0 %1040 }
 0x226   :  { %v1042_v44 = vrot.slane %v1041_v43, 4 }
 0x228   :  { %v1043_v45 = vadd.f32 %v1042_v44, %v1041_v43 }
 0x22a   :  { %v1044_v46 = vrot.slane %v1043_v45, 2 }
 0x22c   :  { %v1045_v47 = vadd.f32 %v1044_v46, %v1043_v45 }
 0x22e   :  { %v1046_v48 = vrot.slane %v1045_v47, 1 }
 0x230   :  { %v1047_v33 = vadd.f32 %v1046_v48, %v1045_v47 }
 0x232   :  { %1199 = vpush %v1047_v33 }
 0x263   :  { %s1200_s10 = spop %1199 }
 0x264   :  { %s1051_s11 = smul.f32 0.0013020834, %s1200_s10 }
 0x266   :  { %v1052_v49 = vstv %s1051_s11 }
 0x267   :  { %1054 = vst.msk [vmem:[#allocation2] sm:$0x1] %vm1053_vm6, %v1052_v49 }
 0x268   :  { %1322 = shalt.err (!%p1319_p4)
}
 0x269   :  { %1066 = dma.vmem_to_hbm [thread:$0]  %s1064_s8, 16, %s1738_s9, [#allocation3]  }
 0x26a   :  { %1331 = dma.done.wait [#allocation3], 16  }
 0x26b   :  { %1332 = vsyncadd [#allocation3], 4294967280 }
 0x26c   :  { %1072 = vsyncpa [#allocation3], 1 }

</bundles_post_ra>
